<compile_context>
chip_gen: v6e
topology: v6e:2x2x1
jax: 0.10.0
libtpu: 0.0.40
codegen_flags: <defaults>
</compile_context>

<pallas_src>
import math

import jax
import jax.numpy as jnp
from jax.experimental import pallas as pl
from jax.experimental.pallas import tpu as pltpu


# -----------------------------------------------------------------------------
# Fused kernel builder
# -----------------------------------------------------------------------------
def _make_fused_kernel(spec, fks, batch, l0, n_in):
    """spec: tuple of (cin, cout, stride) per BasicBlock (trace-time static)."""
    pad = (fks - 1) // 2

    def kernel(*refs):
        hbm = refs[:n_in]                       # raw HBM refs (pl.ANY inputs)
        o_ref = refs[n_in]                      # (N, num_classes) f32, VMEM
        vbuf = refs[n_in + 1:2 * n_in + 1]      # per-input VMEM scratch
        sem = refs[2 * n_in + 1]                # DMA semaphores, one per copy

        # Kick off ALL weight/input DMAs up front; wait right before first use
        # so the big late-layer weight copies stream under early-block compute.
        copies = [pltpu.make_async_copy(hbm[i], vbuf[i], sem.at[i])
                  for i in range(n_in)]
        for cp in copies:
            cp.start()

        def vmem(i):
            copies[i].wait()
            return vbuf[i]

        def shifted(v, l, off):
            # w[m] = v[m + off] within each length-l segment of the folded
            # (N*l, C) layout; zero outside segment boundaries (== conv pad 1,
            # and also keeps batches from bleeding into each other).
            if off == 0:
                return v
            m = v.shape[0]
            pos = jax.lax.broadcasted_iota(jnp.int32, (m, 1), 0) % l
            r = pltpu.roll(v, shift=(-off) % m, axis=0)
            if off < 0:
                return jnp.where(pos < -off, 0.0, r)
            return jnp.where(pos >= l - off, 0.0, r)

        def conv3(v, l, w, b):
            # k=3 / stride 1 / pad 1 Conv1d as ONE K-stacked MXU matmul:
            # [x_{-1} | x_0 | x_{+1}] (M, 3*Cin) @ (3*Cin, Cout), f32 accum.
            xk = jnp.concatenate(
                [shifted(v, l, -1), v, shifted(v, l, 1)], axis=-1
            ).astype(jnp.bfloat16)
            return jnp.dot(xk, w, preferred_element_type=jnp.float32) + b

        def even_rows(v, mh):
            # Stride-2 downsample of the folded (N*l, C) activation: since l is
            # even, even sequence positions == even flattened rows.  Done as a
            # tiny 0/1 selection matmul (guaranteed lowering, MXU is idle).
            m = v.shape[0]
            r = jax.lax.broadcasted_iota(jnp.int32, (mh, m), 0)
            c = jax.lax.broadcasted_iota(jnp.int32, (mh, m), 1)
            sel = (c == 2 * r).astype(jnp.bfloat16)
            return jnp.dot(sel, v.astype(jnp.bfloat16),
                           preferred_element_type=jnp.float32)

        # ---- stem: Conv1d(1, 64, fks, pad=(fks-1)//2) + folded BN + ReLU ----
        x = vmem(0)[...]                        # (N*L, 1) f32
        sw = vmem(1)[...]                       # (fks, 64) f32
        sb = vmem(2)[...]                       # (1, 64)   f32
        m0 = x.shape[0]
        acc = jnp.zeros((m0, sw.shape[1]), jnp.float32)
        for k in range(fks):                    # Cin == 1 -> VPU broadcast MAC
            acc = acc + shifted(x, l0, k - pad) * sw[k:k + 1, :]
        h = jnp.maximum(acc + sb, 0.0)          # (N*L, 64) f32
        l = l0

        # ---- BasicBlocks (BN folded into conv weights / biases) --------------
        wi = 3
        for (cin, cout, stride) in spec:
            wp = vmem(wi)                       # packed [w1; w2; (ws)] bf16 ref
            bp = vmem(wi + 1)[...]              # packed [b1; b2; (bs)] f32
            wi += 2
            w1 = wp[0:3 * cin, :]
            w2 = wp[3 * cin:3 * cin + 3 * cout, :]
            b1 = bp[0:1, :]
            b2 = bp[1:2, :]
            if stride == 1:
                # identity shortcut: relu(conv2(relu(conv1(x))) + x)
                a1 = jnp.maximum(conv3(h, l, w1, b1), 0.0)
                h = jnp.maximum(conv3(a1, l, w2, b2) + h, 0.0)
            else:
                # stride-2 block with 1x1 projection shortcut
                ws = wp[3 * cin + 3 * cout:4 * cin + 3 * cout, :]
                bs = bp[2:3, :]
                mh = h.shape[0] // 2
                # conv1 at stride 1 (ample MXU M-slack), keep even output rows.
                a1 = jnp.maximum(conv3(h, l, w1, b1), 0.0)
                a1 = even_rows(a1, mh)
                l = l // 2
                a2 = conv3(a1, l, w2, b2)
                # shortcut: x[2i] @ ws + bs
                res = jnp.dot(even_rows(h, mh).astype(jnp.bfloat16), ws,
                              preferred_element_type=jnp.float32) + bs
                h = jnp.maximum(a2 + res, 0.0)

        # ---- AdaptiveMaxPool1d(1) + Dropout(eval: identity) + Linear ---------
        lw = vmem(wi)[...]                      # (num_classes, 512) f32
        lb = vmem(wi + 1)[...]                  # (1, num_classes)   f32
        pooled = jnp.concatenate(
            [jnp.max(h[bi * l:(bi + 1) * l, :], axis=0, keepdims=True)
             for bi in range(batch)], axis=0)   # (N, 512) f32
        logits = jnp.sum(pooled[:, None, :] * lw[None, :, :], axis=-1)
        o_ref[...] = logits + lb

    return kernel


# -----------------------------------------------------------------------------
# Forward pass wrapper (single fused pallas_call)
# -----------------------------------------------------------------------------
def resnet_forward(x_ncl, params):
    n, cin, l = x_ncl.shape
    assert cin == 1, "ResNet stem expects a single input channel"
    assert l % 8 == 0, "sequence length must be divisible by 8 (3 stride-2 stages)"
    # (N, 1, L) -> folded channels-last (N*L, 1); batch rides in the matmul M dim.
    x2d = jnp.transpose(x_ncl, (0, 2, 1)).reshape(n * l, 1).astype(jnp.float32)

    inputs = [x2d, params["stem_w"], params["stem_b"]]
    spec = []
    for blk in params["blocks"]:
        inputs += [blk["wpack"], blk["bpack"]]
        spec.append((blk["cin"], blk["cout"], blk["stride"]))
    inputs += [params["lin_w"], params["lin_b"]]
    n_in = len(inputs)
    nc = params["lin_w"].shape[0]
    fks = params["fks"]

    kernel = _make_fused_kernel(tuple(spec), fks, n, l, n_in)

    # Advisory cost estimate so XLA schedules surrounding ops around the call.
    m = n * l
    flops = 2 * m * fks * 64
    for (ci, co, s) in spec:
        flops += 2 * m * 3 * ci * co                 # conv1 (at stride 1)
        if s == 2:
            flops += 2 * (m // 2) * m * (co + ci)    # even-row selection matmuls
            m //= 2
            flops += 2 * m * ci * co                 # 1x1 projection shortcut
        flops += 2 * m * 3 * co * co                 # conv2
    flops += 2 * n * 512 * nc
    bytes_accessed = sum(int(t.size) * t.dtype.itemsize for t in inputs) + n * nc * 4

    return pl.pallas_call(
        kernel,
        out_shape=jax.ShapeDtypeStruct((n, nc), jnp.float32),
        in_specs=[pl.BlockSpec(memory_space=pl.ANY)] * n_in,   # weights stay in HBM
        scratch_shapes=(
            [pltpu.VMEM(t.shape, t.dtype) for t in inputs]
            + [pltpu.SemaphoreType.DMA((n_in,))]),
        cost_estimate=pl.CostEstimate(flops=flops, transcendentals=0,
                                      bytes_accessed=bytes_accessed),
    )(*inputs)


# -----------------------------------------------------------------------------
# Parameter construction (deterministic, synthetic), BN folding, K-stacked layout
# -----------------------------------------------------------------------------
def _fold_bn(w, b, bn, eps=1e-5):
    # Fold eval-mode BatchNorm1d into the preceding conv's weight/bias.
    gamma, beta, mean, var = bn
    scale = gamma / jnp.sqrt(var + eps)
    w_f = w * scale[:, None, None]
    if b is None:
        b = jnp.zeros_like(beta)
    b_f = (b - mean) * scale + beta
    return w_f, b_f


def build_params(key, num_blocks=(1, 1, 1, 1), fks=7, num_classes=1):
    assert fks % 2 == 1, "kernel size should be odd"
    keys = iter(jax.random.split(key, 512))
    nk = lambda: next(keys)

    def conv_w(cout, cin, k):
        fan_in = cin * k
        return jax.random.normal(nk(), (cout, cin, k), jnp.float32) / math.sqrt(fan_in)

    def bn_p(c):
        gamma = jax.random.uniform(nk(), (c,), jnp.float32, 0.8, 1.2)
        beta = 0.05 * jax.random.normal(nk(), (c,), jnp.float32)
        mean = 0.05 * jax.random.normal(nk(), (c,), jnp.float32)
        var = jax.random.uniform(nk(), (c,), jnp.float32, 0.8, 1.2)
        return gamma, beta, mean, var

    def kstack(w):
        # PyTorch Conv1d weight (Cout, Cin, K) -> K-stacked (K*Cin, Cout).
        cout, cin, k = w.shape
        return jnp.transpose(w, (2, 1, 0)).reshape(k * cin, cout)

    params = {"fks": fks}

    # Stem: Conv1d(1, 64, fks, stride=1, padding=(fks-1)//2, bias=True) + BN(64)
    w = conv_w(64, 1, fks)
    b = 0.05 * jax.random.normal(nk(), (64,), jnp.float32)
    wf, bf = _fold_bn(w, b, bn_p(64))
    params["stem_w"] = kstack(wf)                  # (fks, 64) f32 (Cin==1, VPU path)
    params["stem_b"] = bf.reshape(1, 64)

    in_planes = 64
    blocks = []
    for planes, stride0, nb in zip((64, 128, 256, 512), (1, 2, 2, 2), num_blocks):
        for s in [stride0] + [1] * (nb - 1):
            w1, b1 = _fold_bn(conv_w(planes, in_planes, 3), None, bn_p(planes))
            w2, b2 = _fold_bn(conv_w(planes, planes, 3), None, bn_p(planes))
            wpacks = [kstack(w1), kstack(w2)]
            bpacks = [b1.reshape(1, planes), b2.reshape(1, planes)]
            if s != 1 or in_planes != planes:
                assert s == 2, "stride-1 projection shortcut not implemented"
                ws, bs = _fold_bn(conv_w(planes, in_planes, 1), None, bn_p(planes))
                wpacks.append(kstack(ws))          # (Cin, Cout)
                bpacks.append(bs.reshape(1, planes))
            blocks.append(dict(
                cin=in_planes, cout=planes, stride=s,
                wpack=jnp.concatenate(wpacks, axis=0).astype(jnp.bfloat16),
                bpack=jnp.concatenate(bpacks, axis=0)))
            in_planes = planes
    params["blocks"] = blocks

    # Linear(512 * expansion, num_classes)
    bound = 1.0 / math.sqrt(512)
    params["lin_w"] = jax.random.uniform(nk(), (num_classes, 512), jnp.float32,
                                         -bound, bound)
    params["lin_b"] = jax.random.uniform(nk(), (1, num_classes), jnp.float32,
                                         -bound, bound)
    return params


# -----------------------------------------------------------------------------
# Main
# -----------------------------------------------------------------------------
if __name__ == "__main__":
    key = jax.random.PRNGKey(0)
    k_params, k_x = jax.random.split(key)

    N, L = 2, 64                              # module implies 1 input channel
    params = build_params(k_params, num_blocks=(1, 1, 1, 1), fks=7, num_classes=1)

    x = jax.random.normal(k_x, (N, 1, L), jnp.float32)   # PyTorch NCL layout

    fwd = jax.jit(lambda inp: resnet_forward(inp, params))
    out = jax.block_until_ready(fwd(x))

    assert out.shape == (N, 1), out.shape
    assert bool(jnp.all(jnp.isfinite(out)))
    print("KERNEL_OK")
</pallas_src>

<mosaic_0001>
module attributes {stable_mosaic.version = 11 : i64} {
  func.func @kernel(%arg0: memref<128x1xf32, #tpu.memory_space<any>>, %arg1: memref<7x64xf32, #tpu.memory_space<any>>, %arg2: memref<1x64xf32, #tpu.memory_space<any>>, %arg3: memref<384x64xbf16, #tpu.memory_space<any>>, %arg4: memref<2x64xf32, #tpu.memory_space<any>>, %arg5: memref<640x128xbf16, #tpu.memory_space<any>>, %arg6: memref<3x128xf32, #tpu.memory_space<any>>, %arg7: memref<1280x256xbf16, #tpu.memory_space<any>>, %arg8: memref<3x256xf32, #tpu.memory_space<any>>, %arg9: memref<2560x512xbf16, #tpu.memory_space<any>>, %arg10: memref<3x512xf32, #tpu.memory_space<any>>, %arg11: memref<1x512xf32, #tpu.memory_space<any>>, %arg12: memref<1x1xf32, #tpu.memory_space<any>>, %arg13: memref<2x1xf32, #tpu.memory_space<vmem>>, %arg14: memref<128x1xf32, #tpu.memory_space<vmem>>, %arg15: memref<7x64xf32, #tpu.memory_space<vmem>>, %arg16: memref<1x64xf32, #tpu.memory_space<vmem>>, %arg17: memref<384x64xbf16, #tpu.memory_space<vmem>>, %arg18: memref<2x64xf32, #tpu.memory_space<vmem>>, %arg19: memref<640x128xbf16, #tpu.memory_space<vmem>>, %arg20: memref<3x128xf32, #tpu.memory_space<vmem>>, %arg21: memref<1280x256xbf16, #tpu.memory_space<vmem>>, %arg22: memref<3x256xf32, #tpu.memory_space<vmem>>, %arg23: memref<2560x512xbf16, #tpu.memory_space<vmem>>, %arg24: memref<3x512xf32, #tpu.memory_space<vmem>>, %arg25: memref<1x512xf32, #tpu.memory_space<vmem>>, %arg26: memref<1x1xf32, #tpu.memory_space<vmem>>, %arg27: memref<13x!tpu.dma_semaphore, #tpu.memory_space<semaphore_mem>>) attributes {dimension_semantics = [], scalar_prefetch = 0 : i64, scratch_operands = 14 : i64, tpu.core_type = #tpu.core_type<tc>} {
    %c0_i32 = arith.constant 0 : i32
    %0 = tpu.memref_slice %arg27[%c0_i32] : memref<13x!tpu.dma_semaphore, #tpu.memory_space<semaphore_mem>> -> memref<1x!tpu.dma_semaphore, #tpu.memory_space<semaphore_mem>>
    %1 = tpu.memref_squeeze %0 : memref<1x!tpu.dma_semaphore, #tpu.memory_space<semaphore_mem>> -> memref<!tpu.dma_semaphore, #tpu.memory_space<semaphore_mem>>
    tpu.enqueue_dma source(%arg0 : memref<128x1xf32, #tpu.memory_space<any>>) target(%arg14 : memref<128x1xf32, #tpu.memory_space<vmem>>) target_semaphore(%1 : memref<!tpu.dma_semaphore, #tpu.memory_space<semaphore_mem>>)
    %c1_i32 = arith.constant 1 : i32
    %2 = tpu.memref_slice %arg27[%c1_i32] : memref<13x!tpu.dma_semaphore, #tpu.memory_space<semaphore_mem>> -> memref<1x!tpu.dma_semaphore, #tpu.memory_space<semaphore_mem>>
    %3 = tpu.memref_squeeze %2 : memref<1x!tpu.dma_semaphore, #tpu.memory_space<semaphore_mem>> -> memref<!tpu.dma_semaphore, #tpu.memory_space<semaphore_mem>>
    tpu.enqueue_dma source(%arg1 : memref<7x64xf32, #tpu.memory_space<any>>) target(%arg15 : memref<7x64xf32, #tpu.memory_space<vmem>>) target_semaphore(%3 : memref<!tpu.dma_semaphore, #tpu.memory_space<semaphore_mem>>)
    %c2_i32 = arith.constant 2 : i32
    %4 = tpu.memref_slice %arg27[%c2_i32] : memref<13x!tpu.dma_semaphore, #tpu.memory_space<semaphore_mem>> -> memref<1x!tpu.dma_semaphore, #tpu.memory_space<semaphore_mem>>
    %5 = tpu.memref_squeeze %4 : memref<1x!tpu.dma_semaphore, #tpu.memory_space<semaphore_mem>> -> memref<!tpu.dma_semaphore, #tpu.memory_space<semaphore_mem>>
    tpu.enqueue_dma source(%arg2 : memref<1x64xf32, #tpu.memory_space<any>>) target(%arg16 : memref<1x64xf32, #tpu.memory_space<vmem>>) target_semaphore(%5 : memref<!tpu.dma_semaphore, #tpu.memory_space<semaphore_mem>>)
    %c3_i32 = arith.constant 3 : i32
    %6 = tpu.memref_slice %arg27[%c3_i32] : memref<13x!tpu.dma_semaphore, #tpu.memory_space<semaphore_mem>> -> memref<1x!tpu.dma_semaphore, #tpu.memory_space<semaphore_mem>>
    %7 = tpu.memref_squeeze %6 : memref<1x!tpu.dma_semaphore, #tpu.memory_space<semaphore_mem>> -> memref<!tpu.dma_semaphore, #tpu.memory_space<semaphore_mem>>
    tpu.enqueue_dma source(%arg3 : memref<384x64xbf16, #tpu.memory_space<any>>) target(%arg17 : memref<384x64xbf16, #tpu.memory_space<vmem>>) target_semaphore(%7 : memref<!tpu.dma_semaphore, #tpu.memory_space<semaphore_mem>>)
    %c4_i32 = arith.constant 4 : i32
    %8 = tpu.memref_slice %arg27[%c4_i32] : memref<13x!tpu.dma_semaphore, #tpu.memory_space<semaphore_mem>> -> memref<1x!tpu.dma_semaphore, #tpu.memory_space<semaphore_mem>>
    %9 = tpu.memref_squeeze %8 : memref<1x!tpu.dma_semaphore, #tpu.memory_space<semaphore_mem>> -> memref<!tpu.dma_semaphore, #tpu.memory_space<semaphore_mem>>
    tpu.enqueue_dma source(%arg4 : memref<2x64xf32, #tpu.memory_space<any>>) target(%arg18 : memref<2x64xf32, #tpu.memory_space<vmem>>) target_semaphore(%9 : memref<!tpu.dma_semaphore, #tpu.memory_space<semaphore_mem>>)
    %c5_i32 = arith.constant 5 : i32
    %10 = tpu.memref_slice %arg27[%c5_i32] : memref<13x!tpu.dma_semaphore, #tpu.memory_space<semaphore_mem>> -> memref<1x!tpu.dma_semaphore, #tpu.memory_space<semaphore_mem>>
    %11 = tpu.memref_squeeze %10 : memref<1x!tpu.dma_semaphore, #tpu.memory_space<semaphore_mem>> -> memref<!tpu.dma_semaphore, #tpu.memory_space<semaphore_mem>>
    tpu.enqueue_dma source(%arg5 : memref<640x128xbf16, #tpu.memory_space<any>>) target(%arg19 : memref<640x128xbf16, #tpu.memory_space<vmem>>) target_semaphore(%11 : memref<!tpu.dma_semaphore, #tpu.memory_space<semaphore_mem>>)
    %c6_i32 = arith.constant 6 : i32
    %12 = tpu.memref_slice %arg27[%c6_i32] : memref<13x!tpu.dma_semaphore, #tpu.memory_space<semaphore_mem>> -> memref<1x!tpu.dma_semaphore, #tpu.memory_space<semaphore_mem>>
    %13 = tpu.memref_squeeze %12 : memref<1x!tpu.dma_semaphore, #tpu.memory_space<semaphore_mem>> -> memref<!tpu.dma_semaphore, #tpu.memory_space<semaphore_mem>>
    tpu.enqueue_dma source(%arg6 : memref<3x128xf32, #tpu.memory_space<any>>) target(%arg20 : memref<3x128xf32, #tpu.memory_space<vmem>>) target_semaphore(%13 : memref<!tpu.dma_semaphore, #tpu.memory_space<semaphore_mem>>)
    %c7_i32 = arith.constant 7 : i32
    %14 = tpu.memref_slice %arg27[%c7_i32] : memref<13x!tpu.dma_semaphore, #tpu.memory_space<semaphore_mem>> -> memref<1x!tpu.dma_semaphore, #tpu.memory_space<semaphore_mem>>
    %15 = tpu.memref_squeeze %14 : memref<1x!tpu.dma_semaphore, #tpu.memory_space<semaphore_mem>> -> memref<!tpu.dma_semaphore, #tpu.memory_space<semaphore_mem>>
    tpu.enqueue_dma source(%arg7 : memref<1280x256xbf16, #tpu.memory_space<any>>) target(%arg21 : memref<1280x256xbf16, #tpu.memory_space<vmem>>) target_semaphore(%15 : memref<!tpu.dma_semaphore, #tpu.memory_space<semaphore_mem>>)
    %c8_i32 = arith.constant 8 : i32
    %16 = tpu.memref_slice %arg27[%c8_i32] : memref<13x!tpu.dma_semaphore, #tpu.memory_space<semaphore_mem>> -> memref<1x!tpu.dma_semaphore, #tpu.memory_space<semaphore_mem>>
    %17 = tpu.memref_squeeze %16 : memref<1x!tpu.dma_semaphore, #tpu.memory_space<semaphore_mem>> -> memref<!tpu.dma_semaphore, #tpu.memory_space<semaphore_mem>>
    tpu.enqueue_dma source(%arg8 : memref<3x256xf32, #tpu.memory_space<any>>) target(%arg22 : memref<3x256xf32, #tpu.memory_space<vmem>>) target_semaphore(%17 : memref<!tpu.dma_semaphore, #tpu.memory_space<semaphore_mem>>)
    %c9_i32 = arith.constant 9 : i32
    %18 = tpu.memref_slice %arg27[%c9_i32] : memref<13x!tpu.dma_semaphore, #tpu.memory_space<semaphore_mem>> -> memref<1x!tpu.dma_semaphore, #tpu.memory_space<semaphore_mem>>
    %19 = tpu.memref_squeeze %18 : memref<1x!tpu.dma_semaphore, #tpu.memory_space<semaphore_mem>> -> memref<!tpu.dma_semaphore, #tpu.memory_space<semaphore_mem>>
    tpu.enqueue_dma source(%arg9 : memref<2560x512xbf16, #tpu.memory_space<any>>) target(%arg23 : memref<2560x512xbf16, #tpu.memory_space<vmem>>) target_semaphore(%19 : memref<!tpu.dma_semaphore, #tpu.memory_space<semaphore_mem>>)
    %c10_i32 = arith.constant 10 : i32
    %20 = tpu.memref_slice %arg27[%c10_i32] : memref<13x!tpu.dma_semaphore, #tpu.memory_space<semaphore_mem>> -> memref<1x!tpu.dma_semaphore, #tpu.memory_space<semaphore_mem>>
    %21 = tpu.memref_squeeze %20 : memref<1x!tpu.dma_semaphore, #tpu.memory_space<semaphore_mem>> -> memref<!tpu.dma_semaphore, #tpu.memory_space<semaphore_mem>>
    tpu.enqueue_dma source(%arg10 : memref<3x512xf32, #tpu.memory_space<any>>) target(%arg24 : memref<3x512xf32, #tpu.memory_space<vmem>>) target_semaphore(%21 : memref<!tpu.dma_semaphore, #tpu.memory_space<semaphore_mem>>)
    %c11_i32 = arith.constant 11 : i32
    %22 = tpu.memref_slice %arg27[%c11_i32] : memref<13x!tpu.dma_semaphore, #tpu.memory_space<semaphore_mem>> -> memref<1x!tpu.dma_semaphore, #tpu.memory_space<semaphore_mem>>
    %23 = tpu.memref_squeeze %22 : memref<1x!tpu.dma_semaphore, #tpu.memory_space<semaphore_mem>> -> memref<!tpu.dma_semaphore, #tpu.memory_space<semaphore_mem>>
    tpu.enqueue_dma source(%arg11 : memref<1x512xf32, #tpu.memory_space<any>>) target(%arg25 : memref<1x512xf32, #tpu.memory_space<vmem>>) target_semaphore(%23 : memref<!tpu.dma_semaphore, #tpu.memory_space<semaphore_mem>>)
    %c12_i32 = arith.constant 12 : i32
    %24 = tpu.memref_slice %arg27[%c12_i32] : memref<13x!tpu.dma_semaphore, #tpu.memory_space<semaphore_mem>> -> memref<1x!tpu.dma_semaphore, #tpu.memory_space<semaphore_mem>>
    %25 = tpu.memref_squeeze %24 : memref<1x!tpu.dma_semaphore, #tpu.memory_space<semaphore_mem>> -> memref<!tpu.dma_semaphore, #tpu.memory_space<semaphore_mem>>
    tpu.enqueue_dma source(%arg12 : memref<1x1xf32, #tpu.memory_space<any>>) target(%arg26 : memref<1x1xf32, #tpu.memory_space<vmem>>) target_semaphore(%25 : memref<!tpu.dma_semaphore, #tpu.memory_space<semaphore_mem>>)
    %c0_i32_0 = arith.constant 0 : i32
    %26 = tpu.memref_slice %arg27[%c0_i32_0] : memref<13x!tpu.dma_semaphore, #tpu.memory_space<semaphore_mem>> -> memref<1x!tpu.dma_semaphore, #tpu.memory_space<semaphore_mem>>
    %27 = tpu.memref_squeeze %26 : memref<1x!tpu.dma_semaphore, #tpu.memory_space<semaphore_mem>> -> memref<!tpu.dma_semaphore, #tpu.memory_space<semaphore_mem>>
    tpu.wait_dma2 semaphore(%27 : memref<!tpu.dma_semaphore, #tpu.memory_space<semaphore_mem>>) src(%arg0 : memref<128x1xf32, #tpu.memory_space<any>>) dst(%arg14 : memref<128x1xf32, #tpu.memory_space<vmem>>)
    %c0 = arith.constant 0 : index
    %c0_1 = arith.constant 0 : index
    %28 = vector.load %arg14[%c0, %c0_1] : memref<128x1xf32, #tpu.memory_space<vmem>>, vector<128x1xf32>
    %c1_i32_2 = arith.constant 1 : i32
    %29 = tpu.memref_slice %arg27[%c1_i32_2] : memref<13x!tpu.dma_semaphore, #tpu.memory_space<semaphore_mem>> -> memref<1x!tpu.dma_semaphore, #tpu.memory_space<semaphore_mem>>
    %30 = tpu.memref_squeeze %29 : memref<1x!tpu.dma_semaphore, #tpu.memory_space<semaphore_mem>> -> memref<!tpu.dma_semaphore, #tpu.memory_space<semaphore_mem>>
    tpu.wait_dma2 semaphore(%30 : memref<!tpu.dma_semaphore, #tpu.memory_space<semaphore_mem>>) src(%arg1 : memref<7x64xf32, #tpu.memory_space<any>>) dst(%arg15 : memref<7x64xf32, #tpu.memory_space<vmem>>)
    %c0_3 = arith.constant 0 : index
    %c0_4 = arith.constant 0 : index
    %31 = vector.load %arg15[%c0_3, %c0_4] : memref<7x64xf32, #tpu.memory_space<vmem>>, vector<7x64xf32>
    %c2_i32_5 = arith.constant 2 : i32
    %32 = tpu.memref_slice %arg27[%c2_i32_5] : memref<13x!tpu.dma_semaphore, #tpu.memory_space<semaphore_mem>> -> memref<1x!tpu.dma_semaphore, #tpu.memory_space<semaphore_mem>>
    %33 = tpu.memref_squeeze %32 : memref<1x!tpu.dma_semaphore, #tpu.memory_space<semaphore_mem>> -> memref<!tpu.dma_semaphore, #tpu.memory_space<semaphore_mem>>
    tpu.wait_dma2 semaphore(%33 : memref<!tpu.dma_semaphore, #tpu.memory_space<semaphore_mem>>) src(%arg2 : memref<1x64xf32, #tpu.memory_space<any>>) dst(%arg16 : memref<1x64xf32, #tpu.memory_space<vmem>>)
    %c0_6 = arith.constant 0 : index
    %c0_7 = arith.constant 0 : index
    %34 = vector.load %arg16[%c0_6, %c0_7] : memref<1x64xf32, #tpu.memory_space<vmem>>, vector<1x64xf32>
    %cst = arith.constant 0.000000e+00 : f32
    %35 = vector.broadcast %cst : f32 to vector<128x64xf32>
    %36 = tpu.iota {dimensions = array<i32: 0>} : vector<128x1xi32>
    %c64_i32 = arith.constant 64 : i32
    %c0_i32_8 = arith.constant 0 : i32
    %37 = arith.cmpi eq, %c64_i32, %c0_i32_8 : i32
    %c1_i32_9 = arith.constant 1 : i32
    %38 = arith.select %37, %c1_i32_9, %c64_i32 : i32
    %39 = vector.broadcast %38 : i32 to vector<128x1xi32>
    %40 = arith.remsi %36, %39 : vector<128x1xi32>
    %c0_i32_10 = arith.constant 0 : i32
    %41 = vector.broadcast %c0_i32_10 : i32 to vector<128x1xi32>
    %42 = arith.cmpi ne, %40, %41 : vector<128x1xi32>
    %c0_i32_11 = arith.constant 0 : i32
    %43 = vector.broadcast %c0_i32_11 : i32 to vector<128x1xi32>
    %44 = arith.cmpi slt, %40, %43 : vector<128x1xi32>
    %c0_i32_12 = arith.constant 0 : i32
    %45 = arith.cmpi slt, %38, %c0_i32_12 : i32
    %46 = vector.broadcast %45 : i1 to vector<128x1xi1>
    %47 = vector.broadcast %46 : vector<128x1xi1> to vector<128x1xi1>
    %48 = arith.xori %44, %47 : vector<128x1xi1>
    %49 = arith.andi %48, %42 : vector<128x1xi1>
    %50 = vector.broadcast %38 : i32 to vector<128x1xi32>
    %51 = arith.addi %40, %50 : vector<128x1xi32>
    %52 = arith.select %49, %51, %40 : vector<128x1xi1>, vector<128x1xi32>
    %c3_i32_13 = arith.constant 3 : i32
    %53 = tpu.dynamic_rotate %28 by %c3_i32_13 dim 0 : vector<128x1xf32>, i32 -> vector<128x1xf32>
    %c3_i32_14 = arith.constant 3 : i32
    %54 = vector.broadcast %c3_i32_14 : i32 to vector<128x1xi32>
    %55 = arith.cmpi slt, %52, %54 : vector<128x1xi32>
    %cst_15 = arith.constant 0.000000e+00 : f32
    %56 = vector.broadcast %cst_15 : f32 to vector<128x1xf32>
    %57 = arith.select %55, %56, %53 : vector<128x1xi1>, vector<128x1xf32>
    %58 = vector.extract_strided_slice %31 {offsets = [0, 0], sizes = [1, 64], strides = [1, 1]} : vector<7x64xf32> to vector<1x64xf32>
    %59 = vector.broadcast %57 : vector<128x1xf32> to vector<128x64xf32>
    %60 = vector.broadcast %58 : vector<1x64xf32> to vector<128x64xf32>
    %61 = arith.mulf %59, %60 : vector<128x64xf32>
    %62 = arith.addf %35, %61 : vector<128x64xf32>
    %63 = tpu.iota {dimensions = array<i32: 0>} : vector<128x1xi32>
    %c64_i32_16 = arith.constant 64 : i32
    %c0_i32_17 = arith.constant 0 : i32
    %64 = arith.cmpi eq, %c64_i32_16, %c0_i32_17 : i32
    %c1_i32_18 = arith.constant 1 : i32
    %65 = arith.select %64, %c1_i32_18, %c64_i32_16 : i32
    %66 = vector.broadcast %65 : i32 to vector<128x1xi32>
    %67 = arith.remsi %63, %66 : vector<128x1xi32>
    %c0_i32_19 = arith.constant 0 : i32
    %68 = vector.broadcast %c0_i32_19 : i32 to vector<128x1xi32>
    %69 = arith.cmpi ne, %67, %68 : vector<128x1xi32>
    %c0_i32_20 = arith.constant 0 : i32
    %70 = vector.broadcast %c0_i32_20 : i32 to vector<128x1xi32>
    %71 = arith.cmpi slt, %67, %70 : vector<128x1xi32>
    %c0_i32_21 = arith.constant 0 : i32
    %72 = arith.cmpi slt, %65, %c0_i32_21 : i32
    %73 = vector.broadcast %72 : i1 to vector<128x1xi1>
    %74 = vector.broadcast %73 : vector<128x1xi1> to vector<128x1xi1>
    %75 = arith.xori %71, %74 : vector<128x1xi1>
    %76 = arith.andi %75, %69 : vector<128x1xi1>
    %77 = vector.broadcast %65 : i32 to vector<128x1xi32>
    %78 = arith.addi %67, %77 : vector<128x1xi32>
    %79 = arith.select %76, %78, %67 : vector<128x1xi1>, vector<128x1xi32>
    %c2_i32_22 = arith.constant 2 : i32
    %80 = tpu.dynamic_rotate %28 by %c2_i32_22 dim 0 : vector<128x1xf32>, i32 -> vector<128x1xf32>
    %c2_i32_23 = arith.constant 2 : i32
    %81 = vector.broadcast %c2_i32_23 : i32 to vector<128x1xi32>
    %82 = arith.cmpi slt, %79, %81 : vector<128x1xi32>
    %cst_24 = arith.constant 0.000000e+00 : f32
    %83 = vector.broadcast %cst_24 : f32 to vector<128x1xf32>
    %84 = arith.select %82, %83, %80 : vector<128x1xi1>, vector<128x1xf32>
    %85 = vector.extract_strided_slice %31 {offsets = [1, 0], sizes = [1, 64], strides = [1, 1]} : vector<7x64xf32> to vector<1x64xf32>
    %86 = vector.broadcast %84 : vector<128x1xf32> to vector<128x64xf32>
    %87 = vector.broadcast %85 : vector<1x64xf32> to vector<128x64xf32>
    %88 = arith.mulf %86, %87 : vector<128x64xf32>
    %89 = arith.addf %62, %88 : vector<128x64xf32>
    %90 = tpu.iota {dimensions = array<i32: 0>} : vector<128x1xi32>
    %c64_i32_25 = arith.constant 64 : i32
    %c0_i32_26 = arith.constant 0 : i32
    %91 = arith.cmpi eq, %c64_i32_25, %c0_i32_26 : i32
    %c1_i32_27 = arith.constant 1 : i32
    %92 = arith.select %91, %c1_i32_27, %c64_i32_25 : i32
    %93 = vector.broadcast %92 : i32 to vector<128x1xi32>
    %94 = arith.remsi %90, %93 : vector<128x1xi32>
    %c0_i32_28 = arith.constant 0 : i32
    %95 = vector.broadcast %c0_i32_28 : i32 to vector<128x1xi32>
    %96 = arith.cmpi ne, %94, %95 : vector<128x1xi32>
    %c0_i32_29 = arith.constant 0 : i32
    %97 = vector.broadcast %c0_i32_29 : i32 to vector<128x1xi32>
    %98 = arith.cmpi slt, %94, %97 : vector<128x1xi32>
    %c0_i32_30 = arith.constant 0 : i32
    %99 = arith.cmpi slt, %92, %c0_i32_30 : i32
    %100 = vector.broadcast %99 : i1 to vector<128x1xi1>
    %101 = vector.broadcast %100 : vector<128x1xi1> to vector<128x1xi1>
    %102 = arith.xori %98, %101 : vector<128x1xi1>
    %103 = arith.andi %102, %96 : vector<128x1xi1>
    %104 = vector.broadcast %92 : i32 to vector<128x1xi32>
    %105 = arith.addi %94, %104 : vector<128x1xi32>
    %106 = arith.select %103, %105, %94 : vector<128x1xi1>, vector<128x1xi32>
    %c1_i32_31 = arith.constant 1 : i32
    %107 = tpu.dynamic_rotate %28 by %c1_i32_31 dim 0 : vector<128x1xf32>, i32 -> vector<128x1xf32>
    %c1_i32_32 = arith.constant 1 : i32
    %108 = vector.broadcast %c1_i32_32 : i32 to vector<128x1xi32>
    %109 = arith.cmpi slt, %106, %108 : vector<128x1xi32>
    %cst_33 = arith.constant 0.000000e+00 : f32
    %110 = vector.broadcast %cst_33 : f32 to vector<128x1xf32>
    %111 = arith.select %109, %110, %107 : vector<128x1xi1>, vector<128x1xf32>
    %112 = vector.extract_strided_slice %31 {offsets = [2, 0], sizes = [1, 64], strides = [1, 1]} : vector<7x64xf32> to vector<1x64xf32>
    %113 = vector.broadcast %111 : vector<128x1xf32> to vector<128x64xf32>
    %114 = vector.broadcast %112 : vector<1x64xf32> to vector<128x64xf32>
    %115 = arith.mulf %113, %114 : vector<128x64xf32>
    %116 = arith.addf %89, %115 : vector<128x64xf32>
    %117 = vector.extract_strided_slice %31 {offsets = [3, 0], sizes = [1, 64], strides = [1, 1]} : vector<7x64xf32> to vector<1x64xf32>
    %118 = vector.broadcast %28 : vector<128x1xf32> to vector<128x64xf32>
    %119 = vector.broadcast %117 : vector<1x64xf32> to vector<128x64xf32>
    %120 = arith.mulf %118, %119 : vector<128x64xf32>
    %121 = arith.addf %116, %120 : vector<128x64xf32>
    %122 = tpu.iota {dimensions = array<i32: 0>} : vector<128x1xi32>
    %c64_i32_34 = arith.constant 64 : i32
    %c0_i32_35 = arith.constant 0 : i32
    %123 = arith.cmpi eq, %c64_i32_34, %c0_i32_35 : i32
    %c1_i32_36 = arith.constant 1 : i32
    %124 = arith.select %123, %c1_i32_36, %c64_i32_34 : i32
    %125 = vector.broadcast %124 : i32 to vector<128x1xi32>
    %126 = arith.remsi %122, %125 : vector<128x1xi32>
    %c0_i32_37 = arith.constant 0 : i32
    %127 = vector.broadcast %c0_i32_37 : i32 to vector<128x1xi32>
    %128 = arith.cmpi ne, %126, %127 : vector<128x1xi32>
    %c0_i32_38 = arith.constant 0 : i32
    %129 = vector.broadcast %c0_i32_38 : i32 to vector<128x1xi32>
    %130 = arith.cmpi slt, %126, %129 : vector<128x1xi32>
    %c0_i32_39 = arith.constant 0 : i32
    %131 = arith.cmpi slt, %124, %c0_i32_39 : i32
    %132 = vector.broadcast %131 : i1 to vector<128x1xi1>
    %133 = vector.broadcast %132 : vector<128x1xi1> to vector<128x1xi1>
    %134 = arith.xori %130, %133 : vector<128x1xi1>
    %135 = arith.andi %134, %128 : vector<128x1xi1>
    %136 = vector.broadcast %124 : i32 to vector<128x1xi32>
    %137 = arith.addi %126, %136 : vector<128x1xi32>
    %138 = arith.select %135, %137, %126 : vector<128x1xi1>, vector<128x1xi32>
    %c127_i32 = arith.constant 127 : i32
    %139 = tpu.dynamic_rotate %28 by %c127_i32 dim 0 : vector<128x1xf32>, i32 -> vector<128x1xf32>
    %c63_i32 = arith.constant 63 : i32
    %140 = vector.broadcast %c63_i32 : i32 to vector<128x1xi32>
    %141 = arith.cmpi sge, %138, %140 : vector<128x1xi32>
    %cst_40 = arith.constant 0.000000e+00 : f32
    %142 = vector.broadcast %cst_40 : f32 to vector<128x1xf32>
    %143 = arith.select %141, %142, %139 : vector<128x1xi1>, vector<128x1xf32>
    %144 = vector.extract_strided_slice %31 {offsets = [4, 0], sizes = [1, 64], strides = [1, 1]} : vector<7x64xf32> to vector<1x64xf32>
    %145 = vector.broadcast %143 : vector<128x1xf32> to vector<128x64xf32>
    %146 = vector.broadcast %144 : vector<1x64xf32> to vector<128x64xf32>
    %147 = arith.mulf %145, %146 : vector<128x64xf32>
    %148 = arith.addf %121, %147 : vector<128x64xf32>
    %149 = tpu.iota {dimensions = array<i32: 0>} : vector<128x1xi32>
    %c64_i32_41 = arith.constant 64 : i32
    %c0_i32_42 = arith.constant 0 : i32
    %150 = arith.cmpi eq, %c64_i32_41, %c0_i32_42 : i32
    %c1_i32_43 = arith.constant 1 : i32
    %151 = arith.select %150, %c1_i32_43, %c64_i32_41 : i32
    %152 = vector.broadcast %151 : i32 to vector<128x1xi32>
    %153 = arith.remsi %149, %152 : vector<128x1xi32>
    %c0_i32_44 = arith.constant 0 : i32
    %154 = vector.broadcast %c0_i32_44 : i32 to vector<128x1xi32>
    %155 = arith.cmpi ne, %153, %154 : vector<128x1xi32>
    %c0_i32_45 = arith.constant 0 : i32
    %156 = vector.broadcast %c0_i32_45 : i32 to vector<128x1xi32>
    %157 = arith.cmpi slt, %153, %156 : vector<128x1xi32>
    %c0_i32_46 = arith.constant 0 : i32
    %158 = arith.cmpi slt, %151, %c0_i32_46 : i32
    %159 = vector.broadcast %158 : i1 to vector<128x1xi1>
    %160 = vector.broadcast %159 : vector<128x1xi1> to vector<128x1xi1>
    %161 = arith.xori %157, %160 : vector<128x1xi1>
    %162 = arith.andi %161, %155 : vector<128x1xi1>
    %163 = vector.broadcast %151 : i32 to vector<128x1xi32>
    %164 = arith.addi %153, %163 : vector<128x1xi32>
    %165 = arith.select %162, %164, %153 : vector<128x1xi1>, vector<128x1xi32>
    %c126_i32 = arith.constant 126 : i32
    %166 = tpu.dynamic_rotate %28 by %c126_i32 dim 0 : vector<128x1xf32>, i32 -> vector<128x1xf32>
    %c62_i32 = arith.constant 62 : i32
    %167 = vector.broadcast %c62_i32 : i32 to vector<128x1xi32>
    %168 = arith.cmpi sge, %165, %167 : vector<128x1xi32>
    %cst_47 = arith.constant 0.000000e+00 : f32
    %169 = vector.broadcast %cst_47 : f32 to vector<128x1xf32>
    %170 = arith.select %168, %169, %166 : vector<128x1xi1>, vector<128x1xf32>
    %171 = vector.extract_strided_slice %31 {offsets = [5, 0], sizes = [1, 64], strides = [1, 1]} : vector<7x64xf32> to vector<1x64xf32>
    %172 = vector.broadcast %170 : vector<128x1xf32> to vector<128x64xf32>
    %173 = vector.broadcast %171 : vector<1x64xf32> to vector<128x64xf32>
    %174 = arith.mulf %172, %173 : vector<128x64xf32>
    %175 = arith.addf %148, %174 : vector<128x64xf32>
    %176 = tpu.iota {dimensions = array<i32: 0>} : vector<128x1xi32>
    %c64_i32_48 = arith.constant 64 : i32
    %c0_i32_49 = arith.constant 0 : i32
    %177 = arith.cmpi eq, %c64_i32_48, %c0_i32_49 : i32
    %c1_i32_50 = arith.constant 1 : i32
    %178 = arith.select %177, %c1_i32_50, %c64_i32_48 : i32
    %179 = vector.broadcast %178 : i32 to vector<128x1xi32>
    %180 = arith.remsi %176, %179 : vector<128x1xi32>
    %c0_i32_51 = arith.constant 0 : i32
    %181 = vector.broadcast %c0_i32_51 : i32 to vector<128x1xi32>
    %182 = arith.cmpi ne, %180, %181 : vector<128x1xi32>
    %c0_i32_52 = arith.constant 0 : i32
    %183 = vector.broadcast %c0_i32_52 : i32 to vector<128x1xi32>
    %184 = arith.cmpi slt, %180, %183 : vector<128x1xi32>
    %c0_i32_53 = arith.constant 0 : i32
    %185 = arith.cmpi slt, %178, %c0_i32_53 : i32
    %186 = vector.broadcast %185 : i1 to vector<128x1xi1>
    %187 = vector.broadcast %186 : vector<128x1xi1> to vector<128x1xi1>
    %188 = arith.xori %184, %187 : vector<128x1xi1>
    %189 = arith.andi %188, %182 : vector<128x1xi1>
    %190 = vector.broadcast %178 : i32 to vector<128x1xi32>
    %191 = arith.addi %180, %190 : vector<128x1xi32>
    %192 = arith.select %189, %191, %180 : vector<128x1xi1>, vector<128x1xi32>
    %c125_i32 = arith.constant 125 : i32
    %193 = tpu.dynamic_rotate %28 by %c125_i32 dim 0 : vector<128x1xf32>, i32 -> vector<128x1xf32>
    %c61_i32 = arith.constant 61 : i32
    %194 = vector.broadcast %c61_i32 : i32 to vector<128x1xi32>
    %195 = arith.cmpi sge, %192, %194 : vector<128x1xi32>
    %cst_54 = arith.constant 0.000000e+00 : f32
    %196 = vector.broadcast %cst_54 : f32 to vector<128x1xf32>
    %197 = arith.select %195, %196, %193 : vector<128x1xi1>, vector<128x1xf32>
    %198 = vector.extract_strided_slice %31 {offsets = [6, 0], sizes = [1, 64], strides = [1, 1]} : vector<7x64xf32> to vector<1x64xf32>
    %199 = vector.broadcast %197 : vector<128x1xf32> to vector<128x64xf32>
    %200 = vector.broadcast %198 : vector<1x64xf32> to vector<128x64xf32>
    %201 = arith.mulf %199, %200 : vector<128x64xf32>
    %202 = arith.addf %175, %201 : vector<128x64xf32>
    %203 = vector.broadcast %34 : vector<1x64xf32> to vector<128x64xf32>
    %204 = arith.addf %202, %203 : vector<128x64xf32>
    %cst_55 = arith.constant 0.000000e+00 : f32
    %205 = vector.broadcast %cst_55 : f32 to vector<128x64xf32>
    %206 = arith.maximumf %204, %205 : vector<128x64xf32>
    %c3_i32_56 = arith.constant 3 : i32
    %207 = tpu.memref_slice %arg27[%c3_i32_56] : memref<13x!tpu.dma_semaphore, #tpu.memory_space<semaphore_mem>> -> memref<1x!tpu.dma_semaphore, #tpu.memory_space<semaphore_mem>>
    %208 = tpu.memref_squeeze %207 : memref<1x!tpu.dma_semaphore, #tpu.memory_space<semaphore_mem>> -> memref<!tpu.dma_semaphore, #tpu.memory_space<semaphore_mem>>
    tpu.wait_dma2 semaphore(%208 : memref<!tpu.dma_semaphore, #tpu.memory_space<semaphore_mem>>) src(%arg3 : memref<384x64xbf16, #tpu.memory_space<any>>) dst(%arg17 : memref<384x64xbf16, #tpu.memory_space<vmem>>)
    %c4_i32_57 = arith.constant 4 : i32
    %209 = tpu.memref_slice %arg27[%c4_i32_57] : memref<13x!tpu.dma_semaphore, #tpu.memory_space<semaphore_mem>> -> memref<1x!tpu.dma_semaphore, #tpu.memory_space<semaphore_mem>>
    %210 = tpu.memref_squeeze %209 : memref<1x!tpu.dma_semaphore, #tpu.memory_space<semaphore_mem>> -> memref<!tpu.dma_semaphore, #tpu.memory_space<semaphore_mem>>
    tpu.wait_dma2 semaphore(%210 : memref<!tpu.dma_semaphore, #tpu.memory_space<semaphore_mem>>) src(%arg4 : memref<2x64xf32, #tpu.memory_space<any>>) dst(%arg18 : memref<2x64xf32, #tpu.memory_space<vmem>>)
    %c0_58 = arith.constant 0 : index
    %c0_59 = arith.constant 0 : index
    %211 = vector.load %arg18[%c0_58, %c0_59] : memref<2x64xf32, #tpu.memory_space<vmem>>, vector<2x64xf32>
    %c0_60 = arith.constant 0 : index
    %c0_61 = arith.constant 0 : index
    %212 = vector.load %arg17[%c0_60, %c0_61] : memref<384x64xbf16, #tpu.memory_space<vmem>>, vector<192x64xbf16>
    %c192 = arith.constant 192 : index
    %c0_62 = arith.constant 0 : index
    %213 = vector.load %arg17[%c192, %c0_62] : memref<384x64xbf16, #tpu.memory_space<vmem>>, vector<192x64xbf16>
    %214 = vector.extract_strided_slice %211 {offsets = [0, 0], sizes = [1, 64], strides = [1, 1]} : vector<2x64xf32> to vector<1x64xf32>
    %215 = vector.extract_strided_slice %211 {offsets = [1, 0], sizes = [1, 64], strides = [1, 1]} : vector<2x64xf32> to vector<1x64xf32>
    %216 = tpu.iota {dimensions = array<i32: 0>} : vector<128x1xi32>
    %c64_i32_63 = arith.constant 64 : i32
    %c0_i32_64 = arith.constant 0 : i32
    %217 = arith.cmpi eq, %c64_i32_63, %c0_i32_64 : i32
    %c1_i32_65 = arith.constant 1 : i32
    %218 = arith.select %217, %c1_i32_65, %c64_i32_63 : i32
    %219 = vector.broadcast %218 : i32 to vector<128x1xi32>
    %220 = arith.remsi %216, %219 : vector<128x1xi32>
    %c0_i32_66 = arith.constant 0 : i32
    %221 = vector.broadcast %c0_i32_66 : i32 to vector<128x1xi32>
    %222 = arith.cmpi ne, %220, %221 : vector<128x1xi32>
    %c0_i32_67 = arith.constant 0 : i32
    %223 = vector.broadcast %c0_i32_67 : i32 to vector<128x1xi32>
    %224 = arith.cmpi slt, %220, %223 : vector<128x1xi32>
    %c0_i32_68 = arith.constant 0 : i32
    %225 = arith.cmpi slt, %218, %c0_i32_68 : i32
    %226 = vector.broadcast %225 : i1 to vector<128x1xi1>
    %227 = vector.broadcast %226 : vector<128x1xi1> to vector<128x1xi1>
    %228 = arith.xori %224, %227 : vector<128x1xi1>
    %229 = arith.andi %228, %222 : vector<128x1xi1>
    %230 = vector.broadcast %218 : i32 to vector<128x1xi32>
    %231 = arith.addi %220, %230 : vector<128x1xi32>
    %232 = arith.select %229, %231, %220 : vector<128x1xi1>, vector<128x1xi32>
    %c1_i32_69 = arith.constant 1 : i32
    %233 = tpu.dynamic_rotate %206 by %c1_i32_69 dim 0 : vector<128x64xf32>, i32 -> vector<128x64xf32>
    %c1_i32_70 = arith.constant 1 : i32
    %234 = vector.broadcast %c1_i32_70 : i32 to vector<128x1xi32>
    %235 = arith.cmpi slt, %232, %234 : vector<128x1xi32>
    %cst_71 = arith.constant 0.000000e+00 : f32
    %236 = vector.shape_cast %235 : vector<128x1xi1> to vector<128x1xi1>
    %237 = vector.broadcast %236 : vector<128x1xi1> to vector<128x64xi1>
    %238 = vector.broadcast %cst_71 : f32 to vector<128x64xf32>
    %239 = arith.select %237, %238, %233 : vector<128x64xi1>, vector<128x64xf32>
    %240 = tpu.iota {dimensions = array<i32: 0>} : vector<128x1xi32>
    %c64_i32_72 = arith.constant 64 : i32
    %c0_i32_73 = arith.constant 0 : i32
    %241 = arith.cmpi eq, %c64_i32_72, %c0_i32_73 : i32
    %c1_i32_74 = arith.constant 1 : i32
    %242 = arith.select %241, %c1_i32_74, %c64_i32_72 : i32
    %243 = vector.broadcast %242 : i32 to vector<128x1xi32>
    %244 = arith.remsi %240, %243 : vector<128x1xi32>
    %c0_i32_75 = arith.constant 0 : i32
    %245 = vector.broadcast %c0_i32_75 : i32 to vector<128x1xi32>
    %246 = arith.cmpi ne, %244, %245 : vector<128x1xi32>
    %c0_i32_76 = arith.constant 0 : i32
    %247 = vector.broadcast %c0_i32_76 : i32 to vector<128x1xi32>
    %248 = arith.cmpi slt, %244, %247 : vector<128x1xi32>
    %c0_i32_77 = arith.constant 0 : i32
    %249 = arith.cmpi slt, %242, %c0_i32_77 : i32
    %250 = vector.broadcast %249 : i1 to vector<128x1xi1>
    %251 = vector.broadcast %250 : vector<128x1xi1> to vector<128x1xi1>
    %252 = arith.xori %248, %251 : vector<128x1xi1>
    %253 = arith.andi %252, %246 : vector<128x1xi1>
    %254 = vector.broadcast %242 : i32 to vector<128x1xi32>
    %255 = arith.addi %244, %254 : vector<128x1xi32>
    %256 = arith.select %253, %255, %244 : vector<128x1xi1>, vector<128x1xi32>
    %c127_i32_78 = arith.constant 127 : i32
    %257 = tpu.dynamic_rotate %206 by %c127_i32_78 dim 0 : vector<128x64xf32>, i32 -> vector<128x64xf32>
    %c63_i32_79 = arith.constant 63 : i32
    %258 = vector.broadcast %c63_i32_79 : i32 to vector<128x1xi32>
    %259 = arith.cmpi sge, %256, %258 : vector<128x1xi32>
    %cst_80 = arith.constant 0.000000e+00 : f32
    %260 = vector.shape_cast %259 : vector<128x1xi1> to vector<128x1xi1>
    %261 = vector.broadcast %260 : vector<128x1xi1> to vector<128x64xi1>
    %262 = vector.broadcast %cst_80 : f32 to vector<128x64xf32>
    %263 = arith.select %261, %262, %257 : vector<128x64xi1>, vector<128x64xf32>
    %264 = tpu.concatenate %239, %206, %263 in 1 : vector<128x64xf32>, vector<128x64xf32>, vector<128x64xf32> -> vector<128x192xf32>
    %265 = arith.truncf %264 : vector<128x192xf32> to vector<128x192xbf16>
    %cst_81 = arith.constant dense<0.000000e+00> : vector<128x64xf32>
    %266 = tpu.matmul %265, %212, %cst_81 {dimension_numbers = #tpu.dot_dimension_numbers<[1], [0], [0], [1], [0, 0, 1, 1], [], []>} : vector<128x192xbf16>, vector<192x64xbf16>, vector<128x64xf32> -> vector<128x64xf32>
    %267 = vector.broadcast %214 : vector<1x64xf32> to vector<128x64xf32>
    %268 = arith.addf %266, %267 : vector<128x64xf32>
    %cst_82 = arith.constant 0.000000e+00 : f32
    %269 = vector.broadcast %cst_82 : f32 to vector<128x64xf32>
    %270 = arith.maximumf %268, %269 : vector<128x64xf32>
    %271 = tpu.iota {dimensions = array<i32: 0>} : vector<128x1xi32>
    %c64_i32_83 = arith.constant 64 : i32
    %c0_i32_84 = arith.constant 0 : i32
    %272 = arith.cmpi eq, %c64_i32_83, %c0_i32_84 : i32
    %c1_i32_85 = arith.constant 1 : i32
    %273 = arith.select %272, %c1_i32_85, %c64_i32_83 : i32
    %274 = vector.broadcast %273 : i32 to vector<128x1xi32>
    %275 = arith.remsi %271, %274 : vector<128x1xi32>
    %c0_i32_86 = arith.constant 0 : i32
    %276 = vector.broadcast %c0_i32_86 : i32 to vector<128x1xi32>
    %277 = arith.cmpi ne, %275, %276 : vector<128x1xi32>
    %c0_i32_87 = arith.constant 0 : i32
    %278 = vector.broadcast %c0_i32_87 : i32 to vector<128x1xi32>
    %279 = arith.cmpi slt, %275, %278 : vector<128x1xi32>
    %c0_i32_88 = arith.constant 0 : i32
    %280 = arith.cmpi slt, %273, %c0_i32_88 : i32
    %281 = vector.broadcast %280 : i1 to vector<128x1xi1>
    %282 = vector.broadcast %281 : vector<128x1xi1> to vector<128x1xi1>
    %283 = arith.xori %279, %282 : vector<128x1xi1>
    %284 = arith.andi %283, %277 : vector<128x1xi1>
    %285 = vector.broadcast %273 : i32 to vector<128x1xi32>
    %286 = arith.addi %275, %285 : vector<128x1xi32>
    %287 = arith.select %284, %286, %275 : vector<128x1xi1>, vector<128x1xi32>
    %c1_i32_89 = arith.constant 1 : i32
    %288 = tpu.dynamic_rotate %270 by %c1_i32_89 dim 0 : vector<128x64xf32>, i32 -> vector<128x64xf32>
    %c1_i32_90 = arith.constant 1 : i32
    %289 = vector.broadcast %c1_i32_90 : i32 to vector<128x1xi32>
    %290 = arith.cmpi slt, %287, %289 : vector<128x1xi32>
    %cst_91 = arith.constant 0.000000e+00 : f32
    %291 = vector.shape_cast %290 : vector<128x1xi1> to vector<128x1xi1>
    %292 = vector.broadcast %291 : vector<128x1xi1> to vector<128x64xi1>
    %293 = vector.broadcast %cst_91 : f32 to vector<128x64xf32>
    %294 = arith.select %292, %293, %288 : vector<128x64xi1>, vector<128x64xf32>
    %295 = tpu.iota {dimensions = array<i32: 0>} : vector<128x1xi32>
    %c64_i32_92 = arith.constant 64 : i32
    %c0_i32_93 = arith.constant 0 : i32
    %296 = arith.cmpi eq, %c64_i32_92, %c0_i32_93 : i32
    %c1_i32_94 = arith.constant 1 : i32
    %297 = arith.select %296, %c1_i32_94, %c64_i32_92 : i32
    %298 = vector.broadcast %297 : i32 to vector<128x1xi32>
    %299 = arith.remsi %295, %298 : vector<128x1xi32>
    %c0_i32_95 = arith.constant 0 : i32
    %300 = vector.broadcast %c0_i32_95 : i32 to vector<128x1xi32>
    %301 = arith.cmpi ne, %299, %300 : vector<128x1xi32>
    %c0_i32_96 = arith.constant 0 : i32
    %302 = vector.broadcast %c0_i32_96 : i32 to vector<128x1xi32>
    %303 = arith.cmpi slt, %299, %302 : vector<128x1xi32>
    %c0_i32_97 = arith.constant 0 : i32
    %304 = arith.cmpi slt, %297, %c0_i32_97 : i32
    %305 = vector.broadcast %304 : i1 to vector<128x1xi1>
    %306 = vector.broadcast %305 : vector<128x1xi1> to vector<128x1xi1>
    %307 = arith.xori %303, %306 : vector<128x1xi1>
    %308 = arith.andi %307, %301 : vector<128x1xi1>
    %309 = vector.broadcast %297 : i32 to vector<128x1xi32>
    %310 = arith.addi %299, %309 : vector<128x1xi32>
    %311 = arith.select %308, %310, %299 : vector<128x1xi1>, vector<128x1xi32>
    %c127_i32_98 = arith.constant 127 : i32
    %312 = tpu.dynamic_rotate %270 by %c127_i32_98 dim 0 : vector<128x64xf32>, i32 -> vector<128x64xf32>
    %c63_i32_99 = arith.constant 63 : i32
    %313 = vector.broadcast %c63_i32_99 : i32 to vector<128x1xi32>
    %314 = arith.cmpi sge, %311, %313 : vector<128x1xi32>
    %cst_100 = arith.constant 0.000000e+00 : f32
    %315 = vector.shape_cast %314 : vector<128x1xi1> to vector<128x1xi1>
    %316 = vector.broadcast %315 : vector<128x1xi1> to vector<128x64xi1>
    %317 = vector.broadcast %cst_100 : f32 to vector<128x64xf32>
    %318 = arith.select %316, %317, %312 : vector<128x64xi1>, vector<128x64xf32>
    %319 = tpu.concatenate %294, %270, %318 in 1 : vector<128x64xf32>, vector<128x64xf32>, vector<128x64xf32> -> vector<128x192xf32>
    %320 = arith.truncf %319 : vector<128x192xf32> to vector<128x192xbf16>
    %cst_101 = arith.constant dense<0.000000e+00> : vector<128x64xf32>
    %321 = tpu.matmul %320, %213, %cst_101 {dimension_numbers = #tpu.dot_dimension_numbers<[1], [0], [0], [1], [0, 0, 1, 1], [], []>} : vector<128x192xbf16>, vector<192x64xbf16>, vector<128x64xf32> -> vector<128x64xf32>
    %322 = vector.broadcast %215 : vector<1x64xf32> to vector<128x64xf32>
    %323 = arith.addf %321, %322 : vector<128x64xf32>
    %324 = arith.addf %323, %206 : vector<128x64xf32>
    %cst_102 = arith.constant 0.000000e+00 : f32
    %325 = vector.broadcast %cst_102 : f32 to vector<128x64xf32>
    %326 = arith.maximumf %324, %325 : vector<128x64xf32>
    %c5_i32_103 = arith.constant 5 : i32
    %327 = tpu.memref_slice %arg27[%c5_i32_103] : memref<13x!tpu.dma_semaphore, #tpu.memory_space<semaphore_mem>> -> memref<1x!tpu.dma_semaphore, #tpu.memory_space<semaphore_mem>>
    %328 = tpu.memref_squeeze %327 : memref<1x!tpu.dma_semaphore, #tpu.memory_space<semaphore_mem>> -> memref<!tpu.dma_semaphore, #tpu.memory_space<semaphore_mem>>
    tpu.wait_dma2 semaphore(%328 : memref<!tpu.dma_semaphore, #tpu.memory_space<semaphore_mem>>) src(%arg5 : memref<640x128xbf16, #tpu.memory_space<any>>) dst(%arg19 : memref<640x128xbf16, #tpu.memory_space<vmem>>)
    %c6_i32_104 = arith.constant 6 : i32
    %329 = tpu.memref_slice %arg27[%c6_i32_104] : memref<13x!tpu.dma_semaphore, #tpu.memory_space<semaphore_mem>> -> memref<1x!tpu.dma_semaphore, #tpu.memory_space<semaphore_mem>>
    %330 = tpu.memref_squeeze %329 : memref<1x!tpu.dma_semaphore, #tpu.memory_space<semaphore_mem>> -> memref<!tpu.dma_semaphore, #tpu.memory_space<semaphore_mem>>
    tpu.wait_dma2 semaphore(%330 : memref<!tpu.dma_semaphore, #tpu.memory_space<semaphore_mem>>) src(%arg6 : memref<3x128xf32, #tpu.memory_space<any>>) dst(%arg20 : memref<3x128xf32, #tpu.memory_space<vmem>>)
    %c0_105 = arith.constant 0 : index
    %c0_106 = arith.constant 0 : index
    %331 = vector.load %arg20[%c0_105, %c0_106] : memref<3x128xf32, #tpu.memory_space<vmem>>, vector<3x128xf32>
    %c0_107 = arith.constant 0 : index
    %c0_108 = arith.constant 0 : index
    %332 = vector.load %arg19[%c0_107, %c0_108] : memref<640x128xbf16, #tpu.memory_space<vmem>>, vector<192x128xbf16>
    %c192_109 = arith.constant 192 : index
    %c0_110 = arith.constant 0 : index
    %333 = vector.load %arg19[%c192_109, %c0_110] : memref<640x128xbf16, #tpu.memory_space<vmem>>, vector<384x128xbf16>
    %334 = vector.extract_strided_slice %331 {offsets = [0, 0], sizes = [1, 128], strides = [1, 1]} : vector<3x128xf32> to vector<1x128xf32>
    %335 = vector.extract_strided_slice %331 {offsets = [1, 0], sizes = [1, 128], strides = [1, 1]} : vector<3x128xf32> to vector<1x128xf32>
    %c576 = arith.constant 576 : index
    %c0_111 = arith.constant 0 : index
    %336 = vector.load %arg19[%c576, %c0_111] : memref<640x128xbf16, #tpu.memory_space<vmem>>, vector<64x128xbf16>
    %337 = vector.extract_strided_slice %331 {offsets = [2, 0], sizes = [1, 128], strides = [1, 1]} : vector<3x128xf32> to vector<1x128xf32>
    %338 = tpu.iota {dimensions = array<i32: 0>} : vector<128x1xi32>
    %c64_i32_112 = arith.constant 64 : i32
    %c0_i32_113 = arith.constant 0 : i32
    %339 = arith.cmpi eq, %c64_i32_112, %c0_i32_113 : i32
    %c1_i32_114 = arith.constant 1 : i32
    %340 = arith.select %339, %c1_i32_114, %c64_i32_112 : i32
    %341 = vector.broadcast %340 : i32 to vector<128x1xi32>
    %342 = arith.remsi %338, %341 : vector<128x1xi32>
    %c0_i32_115 = arith.constant 0 : i32
    %343 = vector.broadcast %c0_i32_115 : i32 to vector<128x1xi32>
    %344 = arith.cmpi ne, %342, %343 : vector<128x1xi32>
    %c0_i32_116 = arith.constant 0 : i32
    %345 = vector.broadcast %c0_i32_116 : i32 to vector<128x1xi32>
    %346 = arith.cmpi slt, %342, %345 : vector<128x1xi32>
    %c0_i32_117 = arith.constant 0 : i32
    %347 = arith.cmpi slt, %340, %c0_i32_117 : i32
    %348 = vector.broadcast %347 : i1 to vector<128x1xi1>
    %349 = vector.broadcast %348 : vector<128x1xi1> to vector<128x1xi1>
    %350 = arith.xori %346, %349 : vector<128x1xi1>
    %351 = arith.andi %350, %344 : vector<128x1xi1>
    %352 = vector.broadcast %340 : i32 to vector<128x1xi32>
    %353 = arith.addi %342, %352 : vector<128x1xi32>
    %354 = arith.select %351, %353, %342 : vector<128x1xi1>, vector<128x1xi32>
    %c1_i32_118 = arith.constant 1 : i32
    %355 = tpu.dynamic_rotate %326 by %c1_i32_118 dim 0 : vector<128x64xf32>, i32 -> vector<128x64xf32>
    %c1_i32_119 = arith.constant 1 : i32
    %356 = vector.broadcast %c1_i32_119 : i32 to vector<128x1xi32>
    %357 = arith.cmpi slt, %354, %356 : vector<128x1xi32>
    %cst_120 = arith.constant 0.000000e+00 : f32
    %358 = vector.shape_cast %357 : vector<128x1xi1> to vector<128x1xi1>
    %359 = vector.broadcast %358 : vector<128x1xi1> to vector<128x64xi1>
    %360 = vector.broadcast %cst_120 : f32 to vector<128x64xf32>
    %361 = arith.select %359, %360, %355 : vector<128x64xi1>, vector<128x64xf32>
    %362 = tpu.iota {dimensions = array<i32: 0>} : vector<128x1xi32>
    %c64_i32_121 = arith.constant 64 : i32
    %c0_i32_122 = arith.constant 0 : i32
    %363 = arith.cmpi eq, %c64_i32_121, %c0_i32_122 : i32
    %c1_i32_123 = arith.constant 1 : i32
    %364 = arith.select %363, %c1_i32_123, %c64_i32_121 : i32
    %365 = vector.broadcast %364 : i32 to vector<128x1xi32>
    %366 = arith.remsi %362, %365 : vector<128x1xi32>
    %c0_i32_124 = arith.constant 0 : i32
    %367 = vector.broadcast %c0_i32_124 : i32 to vector<128x1xi32>
    %368 = arith.cmpi ne, %366, %367 : vector<128x1xi32>
    %c0_i32_125 = arith.constant 0 : i32
    %369 = vector.broadcast %c0_i32_125 : i32 to vector<128x1xi32>
    %370 = arith.cmpi slt, %366, %369 : vector<128x1xi32>
    %c0_i32_126 = arith.constant 0 : i32
    %371 = arith.cmpi slt, %364, %c0_i32_126 : i32
    %372 = vector.broadcast %371 : i1 to vector<128x1xi1>
    %373 = vector.broadcast %372 : vector<128x1xi1> to vector<128x1xi1>
    %374 = arith.xori %370, %373 : vector<128x1xi1>
    %375 = arith.andi %374, %368 : vector<128x1xi1>
    %376 = vector.broadcast %364 : i32 to vector<128x1xi32>
    %377 = arith.addi %366, %376 : vector<128x1xi32>
    %378 = arith.select %375, %377, %366 : vector<128x1xi1>, vector<128x1xi32>
    %c127_i32_127 = arith.constant 127 : i32
    %379 = tpu.dynamic_rotate %326 by %c127_i32_127 dim 0 : vector<128x64xf32>, i32 -> vector<128x64xf32>
    %c63_i32_128 = arith.constant 63 : i32
    %380 = vector.broadcast %c63_i32_128 : i32 to vector<128x1xi32>
    %381 = arith.cmpi sge, %378, %380 : vector<128x1xi32>
    %cst_129 = arith.constant 0.000000e+00 : f32
    %382 = vector.shape_cast %381 : vector<128x1xi1> to vector<128x1xi1>
    %383 = vector.broadcast %382 : vector<128x1xi1> to vector<128x64xi1>
    %384 = vector.broadcast %cst_129 : f32 to vector<128x64xf32>
    %385 = arith.select %383, %384, %379 : vector<128x64xi1>, vector<128x64xf32>
    %386 = tpu.concatenate %361, %326, %385 in 1 : vector<128x64xf32>, vector<128x64xf32>, vector<128x64xf32> -> vector<128x192xf32>
    %387 = arith.truncf %386 : vector<128x192xf32> to vector<128x192xbf16>
    %cst_130 = arith.constant dense<0.000000e+00> : vector<128x128xf32>
    %388 = tpu.matmul %387, %332, %cst_130 {dimension_numbers = #tpu.dot_dimension_numbers<[1], [0], [0], [1], [0, 0, 1, 1], [], []>} : vector<128x192xbf16>, vector<192x128xbf16>, vector<128x128xf32> -> vector<128x128xf32>
    %389 = vector.broadcast %334 : vector<1x128xf32> to vector<128x128xf32>
    %390 = arith.addf %388, %389 : vector<128x128xf32>
    %cst_131 = arith.constant 0.000000e+00 : f32
    %391 = vector.broadcast %cst_131 : f32 to vector<128x128xf32>
    %392 = arith.maximumf %390, %391 : vector<128x128xf32>
    %393 = tpu.iota {dimensions = array<i32: 0>} : vector<64x128xi32>
    %394 = tpu.iota {dimensions = array<i32: 1>} : vector<64x128xi32>
    %c2_i32_132 = arith.constant 2 : i32
    %395 = vector.broadcast %c2_i32_132 : i32 to vector<64x128xi32>
    %396 = arith.muli %395, %393 : vector<64x128xi32>
    %397 = arith.cmpi eq, %394, %396 : vector<64x128xi32>
    %398 = arith.extui %397 : vector<64x128xi1> to vector<64x128xi32>
    %399 = arith.sitofp %398 : vector<64x128xi32> to vector<64x128xf32>
    %400 = arith.truncf %399 : vector<64x128xf32> to vector<64x128xbf16>
    %401 = arith.truncf %392 : vector<128x128xf32> to vector<128x128xbf16>
    %cst_133 = arith.constant dense<0.000000e+00> : vector<64x128xf32>
    %402 = tpu.matmul %400, %401, %cst_133 {dimension_numbers = #tpu.dot_dimension_numbers<[1], [0], [0], [1], [0, 0, 1, 1], [], []>} : vector<64x128xbf16>, vector<128x128xbf16>, vector<64x128xf32> -> vector<64x128xf32>
    %403 = tpu.iota {dimensions = array<i32: 0>} : vector<64x1xi32>
    %c32_i32 = arith.constant 32 : i32
    %c0_i32_134 = arith.constant 0 : i32
    %404 = arith.cmpi eq, %c32_i32, %c0_i32_134 : i32
    %c1_i32_135 = arith.constant 1 : i32
    %405 = arith.select %404, %c1_i32_135, %c32_i32 : i32
    %406 = vector.broadcast %405 : i32 to vector<64x1xi32>
    %407 = arith.remsi %403, %406 : vector<64x1xi32>
    %c0_i32_136 = arith.constant 0 : i32
    %408 = vector.broadcast %c0_i32_136 : i32 to vector<64x1xi32>
    %409 = arith.cmpi ne, %407, %408 : vector<64x1xi32>
    %c0_i32_137 = arith.constant 0 : i32
    %410 = vector.broadcast %c0_i32_137 : i32 to vector<64x1xi32>
    %411 = arith.cmpi slt, %407, %410 : vector<64x1xi32>
    %c0_i32_138 = arith.constant 0 : i32
    %412 = arith.cmpi slt, %405, %c0_i32_138 : i32
    %413 = vector.broadcast %412 : i1 to vector<64x1xi1>
    %414 = vector.broadcast %413 : vector<64x1xi1> to vector<64x1xi1>
    %415 = arith.xori %411, %414 : vector<64x1xi1>
    %416 = arith.andi %415, %409 : vector<64x1xi1>
    %417 = vector.broadcast %405 : i32 to vector<64x1xi32>
    %418 = arith.addi %407, %417 : vector<64x1xi32>
    %419 = arith.select %416, %418, %407 : vector<64x1xi1>, vector<64x1xi32>
    %c1_i32_139 = arith.constant 1 : i32
    %420 = tpu.dynamic_rotate %402 by %c1_i32_139 dim 0 : vector<64x128xf32>, i32 -> vector<64x128xf32>
    %c1_i32_140 = arith.constant 1 : i32
    %421 = vector.broadcast %c1_i32_140 : i32 to vector<64x1xi32>
    %422 = arith.cmpi slt, %419, %421 : vector<64x1xi32>
    %cst_141 = arith.constant 0.000000e+00 : f32
    %423 = vector.shape_cast %422 : vector<64x1xi1> to vector<64x1xi1>
    %424 = vector.broadcast %423 : vector<64x1xi1> to vector<64x128xi1>
    %425 = vector.broadcast %cst_141 : f32 to vector<64x128xf32>
    %426 = arith.select %424, %425, %420 : vector<64x128xi1>, vector<64x128xf32>
    %427 = tpu.iota {dimensions = array<i32: 0>} : vector<64x1xi32>
    %c32_i32_142 = arith.constant 32 : i32
    %c0_i32_143 = arith.constant 0 : i32
    %428 = arith.cmpi eq, %c32_i32_142, %c0_i32_143 : i32
    %c1_i32_144 = arith.constant 1 : i32
    %429 = arith.select %428, %c1_i32_144, %c32_i32_142 : i32
    %430 = vector.broadcast %429 : i32 to vector<64x1xi32>
    %431 = arith.remsi %427, %430 : vector<64x1xi32>
    %c0_i32_145 = arith.constant 0 : i32
    %432 = vector.broadcast %c0_i32_145 : i32 to vector<64x1xi32>
    %433 = arith.cmpi ne, %431, %432 : vector<64x1xi32>
    %c0_i32_146 = arith.constant 0 : i32
    %434 = vector.broadcast %c0_i32_146 : i32 to vector<64x1xi32>
    %435 = arith.cmpi slt, %431, %434 : vector<64x1xi32>
    %c0_i32_147 = arith.constant 0 : i32
    %436 = arith.cmpi slt, %429, %c0_i32_147 : i32
    %437 = vector.broadcast %436 : i1 to vector<64x1xi1>
    %438 = vector.broadcast %437 : vector<64x1xi1> to vector<64x1xi1>
    %439 = arith.xori %435, %438 : vector<64x1xi1>
    %440 = arith.andi %439, %433 : vector<64x1xi1>
    %441 = vector.broadcast %429 : i32 to vector<64x1xi32>
    %442 = arith.addi %431, %441 : vector<64x1xi32>
    %443 = arith.select %440, %442, %431 : vector<64x1xi1>, vector<64x1xi32>
    %c63_i32_148 = arith.constant 63 : i32
    %444 = tpu.dynamic_rotate %402 by %c63_i32_148 dim 0 : vector<64x128xf32>, i32 -> vector<64x128xf32>
    %c31_i32 = arith.constant 31 : i32
    %445 = vector.broadcast %c31_i32 : i32 to vector<64x1xi32>
    %446 = arith.cmpi sge, %443, %445 : vector<64x1xi32>
    %cst_149 = arith.constant 0.000000e+00 : f32
    %447 = vector.shape_cast %446 : vector<64x1xi1> to vector<64x1xi1>
    %448 = vector.broadcast %447 : vector<64x1xi1> to vector<64x128xi1>
    %449 = vector.broadcast %cst_149 : f32 to vector<64x128xf32>
    %450 = arith.select %448, %449, %444 : vector<64x128xi1>, vector<64x128xf32>
    %451 = tpu.concatenate %426, %402, %450 in 1 : vector<64x128xf32>, vector<64x128xf32>, vector<64x128xf32> -> vector<64x384xf32>
    %452 = arith.truncf %451 : vector<64x384xf32> to vector<64x384xbf16>
    %cst_150 = arith.constant dense<0.000000e+00> : vector<64x128xf32>
    %453 = tpu.matmul %452, %333, %cst_150 {dimension_numbers = #tpu.dot_dimension_numbers<[1], [0], [0], [1], [0, 0, 1, 1], [], []>} : vector<64x384xbf16>, vector<384x128xbf16>, vector<64x128xf32> -> vector<64x128xf32>
    %454 = vector.broadcast %335 : vector<1x128xf32> to vector<64x128xf32>
    %455 = arith.addf %453, %454 : vector<64x128xf32>
    %456 = tpu.iota {dimensions = array<i32: 0>} : vector<64x128xi32>
    %457 = tpu.iota {dimensions = array<i32: 1>} : vector<64x128xi32>
    %c2_i32_151 = arith.constant 2 : i32
    %458 = vector.broadcast %c2_i32_151 : i32 to vector<64x128xi32>
    %459 = arith.muli %458, %456 : vector<64x128xi32>
    %460 = arith.cmpi eq, %457, %459 : vector<64x128xi32>
    %461 = arith.extui %460 : vector<64x128xi1> to vector<64x128xi32>
    %462 = arith.sitofp %461 : vector<64x128xi32> to vector<64x128xf32>
    %463 = arith.truncf %462 : vector<64x128xf32> to vector<64x128xbf16>
    %464 = arith.truncf %326 : vector<128x64xf32> to vector<128x64xbf16>
    %cst_152 = arith.constant dense<0.000000e+00> : vector<64x64xf32>
    %465 = tpu.matmul %463, %464, %cst_152 {dimension_numbers = #tpu.dot_dimension_numbers<[1], [0], [0], [1], [0, 0, 1, 1], [], []>} : vector<64x128xbf16>, vector<128x64xbf16>, vector<64x64xf32> -> vector<64x64xf32>
    %466 = arith.truncf %465 : vector<64x64xf32> to vector<64x64xbf16>
    %cst_153 = arith.constant dense<0.000000e+00> : vector<64x128xf32>
    %467 = tpu.matmul %466, %336, %cst_153 {dimension_numbers = #tpu.dot_dimension_numbers<[1], [0], [0], [1], [0, 0, 1, 1], [], []>} : vector<64x64xbf16>, vector<64x128xbf16>, vector<64x128xf32> -> vector<64x128xf32>
    %468 = vector.broadcast %337 : vector<1x128xf32> to vector<64x128xf32>
    %469 = arith.addf %467, %468 : vector<64x128xf32>
    %470 = arith.addf %455, %469 : vector<64x128xf32>
    %cst_154 = arith.constant 0.000000e+00 : f32
    %471 = vector.broadcast %cst_154 : f32 to vector<64x128xf32>
    %472 = arith.maximumf %470, %471 : vector<64x128xf32>
    %c7_i32_155 = arith.constant 7 : i32
    %473 = tpu.memref_slice %arg27[%c7_i32_155] : memref<13x!tpu.dma_semaphore, #tpu.memory_space<semaphore_mem>> -> memref<1x!tpu.dma_semaphore, #tpu.memory_space<semaphore_mem>>
    %474 = tpu.memref_squeeze %473 : memref<1x!tpu.dma_semaphore, #tpu.memory_space<semaphore_mem>> -> memref<!tpu.dma_semaphore, #tpu.memory_space<semaphore_mem>>
    tpu.wait_dma2 semaphore(%474 : memref<!tpu.dma_semaphore, #tpu.memory_space<semaphore_mem>>) src(%arg7 : memref<1280x256xbf16, #tpu.memory_space<any>>) dst(%arg21 : memref<1280x256xbf16, #tpu.memory_space<vmem>>)
    %c8_i32_156 = arith.constant 8 : i32
    %475 = tpu.memref_slice %arg27[%c8_i32_156] : memref<13x!tpu.dma_semaphore, #tpu.memory_space<semaphore_mem>> -> memref<1x!tpu.dma_semaphore, #tpu.memory_space<semaphore_mem>>
    %476 = tpu.memref_squeeze %475 : memref<1x!tpu.dma_semaphore, #tpu.memory_space<semaphore_mem>> -> memref<!tpu.dma_semaphore, #tpu.memory_space<semaphore_mem>>
    tpu.wait_dma2 semaphore(%476 : memref<!tpu.dma_semaphore, #tpu.memory_space<semaphore_mem>>) src(%arg8 : memref<3x256xf32, #tpu.memory_space<any>>) dst(%arg22 : memref<3x256xf32, #tpu.memory_space<vmem>>)
    %c0_157 = arith.constant 0 : index
    %c0_158 = arith.constant 0 : index
    %477 = vector.load %arg22[%c0_157, %c0_158] : memref<3x256xf32, #tpu.memory_space<vmem>>, vector<3x256xf32>
    %c0_159 = arith.constant 0 : index
    %c0_160 = arith.constant 0 : index
    %478 = vector.load %arg21[%c0_159, %c0_160] : memref<1280x256xbf16, #tpu.memory_space<vmem>>, vector<384x256xbf16>
    %c384 = arith.constant 384 : index
    %c0_161 = arith.constant 0 : index
    %479 = vector.load %arg21[%c384, %c0_161] : memref<1280x256xbf16, #tpu.memory_space<vmem>>, vector<768x256xbf16>
    %480 = vector.extract_strided_slice %477 {offsets = [0, 0], sizes = [1, 256], strides = [1, 1]} : vector<3x256xf32> to vector<1x256xf32>
    %481 = vector.extract_strided_slice %477 {offsets = [1, 0], sizes = [1, 256], strides = [1, 1]} : vector<3x256xf32> to vector<1x256xf32>
    %c1152 = arith.constant 1152 : index
    %c0_162 = arith.constant 0 : index
    %482 = vector.load %arg21[%c1152, %c0_162] : memref<1280x256xbf16, #tpu.memory_space<vmem>>, vector<128x256xbf16>
    %483 = vector.extract_strided_slice %477 {offsets = [2, 0], sizes = [1, 256], strides = [1, 1]} : vector<3x256xf32> to vector<1x256xf32>
    %484 = tpu.iota {dimensions = array<i32: 0>} : vector<64x1xi32>
    %c32_i32_163 = arith.constant 32 : i32
    %c0_i32_164 = arith.constant 0 : i32
    %485 = arith.cmpi eq, %c32_i32_163, %c0_i32_164 : i32
    %c1_i32_165 = arith.constant 1 : i32
    %486 = arith.select %485, %c1_i32_165, %c32_i32_163 : i32
    %487 = vector.broadcast %486 : i32 to vector<64x1xi32>
    %488 = arith.remsi %484, %487 : vector<64x1xi32>
    %c0_i32_166 = arith.constant 0 : i32
    %489 = vector.broadcast %c0_i32_166 : i32 to vector<64x1xi32>
    %490 = arith.cmpi ne, %488, %489 : vector<64x1xi32>
    %c0_i32_167 = arith.constant 0 : i32
    %491 = vector.broadcast %c0_i32_167 : i32 to vector<64x1xi32>
    %492 = arith.cmpi slt, %488, %491 : vector<64x1xi32>
    %c0_i32_168 = arith.constant 0 : i32
    %493 = arith.cmpi slt, %486, %c0_i32_168 : i32
    %494 = vector.broadcast %493 : i1 to vector<64x1xi1>
    %495 = vector.broadcast %494 : vector<64x1xi1> to vector<64x1xi1>
    %496 = arith.xori %492, %495 : vector<64x1xi1>
    %497 = arith.andi %496, %490 : vector<64x1xi1>
    %498 = vector.broadcast %486 : i32 to vector<64x1xi32>
    %499 = arith.addi %488, %498 : vector<64x1xi32>
    %500 = arith.select %497, %499, %488 : vector<64x1xi1>, vector<64x1xi32>
    %c1_i32_169 = arith.constant 1 : i32
    %501 = tpu.dynamic_rotate %472 by %c1_i32_169 dim 0 : vector<64x128xf32>, i32 -> vector<64x128xf32>
    %c1_i32_170 = arith.constant 1 : i32
    %502 = vector.broadcast %c1_i32_170 : i32 to vector<64x1xi32>
    %503 = arith.cmpi slt, %500, %502 : vector<64x1xi32>
    %cst_171 = arith.constant 0.000000e+00 : f32
    %504 = vector.shape_cast %503 : vector<64x1xi1> to vector<64x1xi1>
    %505 = vector.broadcast %504 : vector<64x1xi1> to vector<64x128xi1>
    %506 = vector.broadcast %cst_171 : f32 to vector<64x128xf32>
    %507 = arith.select %505, %506, %501 : vector<64x128xi1>, vector<64x128xf32>
    %508 = tpu.iota {dimensions = array<i32: 0>} : vector<64x1xi32>
    %c32_i32_172 = arith.constant 32 : i32
    %c0_i32_173 = arith.constant 0 : i32
    %509 = arith.cmpi eq, %c32_i32_172, %c0_i32_173 : i32
    %c1_i32_174 = arith.constant 1 : i32
    %510 = arith.select %509, %c1_i32_174, %c32_i32_172 : i32
    %511 = vector.broadcast %510 : i32 to vector<64x1xi32>
    %512 = arith.remsi %508, %511 : vector<64x1xi32>
    %c0_i32_175 = arith.constant 0 : i32
    %513 = vector.broadcast %c0_i32_175 : i32 to vector<64x1xi32>
    %514 = arith.cmpi ne, %512, %513 : vector<64x1xi32>
    %c0_i32_176 = arith.constant 0 : i32
    %515 = vector.broadcast %c0_i32_176 : i32 to vector<64x1xi32>
    %516 = arith.cmpi slt, %512, %515 : vector<64x1xi32>
    %c0_i32_177 = arith.constant 0 : i32
    %517 = arith.cmpi slt, %510, %c0_i32_177 : i32
    %518 = vector.broadcast %517 : i1 to vector<64x1xi1>
    %519 = vector.broadcast %518 : vector<64x1xi1> to vector<64x1xi1>
    %520 = arith.xori %516, %519 : vector<64x1xi1>
    %521 = arith.andi %520, %514 : vector<64x1xi1>
    %522 = vector.broadcast %510 : i32 to vector<64x1xi32>
    %523 = arith.addi %512, %522 : vector<64x1xi32>
    %524 = arith.select %521, %523, %512 : vector<64x1xi1>, vector<64x1xi32>
    %c63_i32_178 = arith.constant 63 : i32
    %525 = tpu.dynamic_rotate %472 by %c63_i32_178 dim 0 : vector<64x128xf32>, i32 -> vector<64x128xf32>
    %c31_i32_179 = arith.constant 31 : i32
    %526 = vector.broadcast %c31_i32_179 : i32 to vector<64x1xi32>
    %527 = arith.cmpi sge, %524, %526 : vector<64x1xi32>
    %cst_180 = arith.constant 0.000000e+00 : f32
    %528 = vector.shape_cast %527 : vector<64x1xi1> to vector<64x1xi1>
    %529 = vector.broadcast %528 : vector<64x1xi1> to vector<64x128xi1>
    %530 = vector.broadcast %cst_180 : f32 to vector<64x128xf32>
    %531 = arith.select %529, %530, %525 : vector<64x128xi1>, vector<64x128xf32>
    %532 = tpu.concatenate %507, %472, %531 in 1 : vector<64x128xf32>, vector<64x128xf32>, vector<64x128xf32> -> vector<64x384xf32>
    %533 = arith.truncf %532 : vector<64x384xf32> to vector<64x384xbf16>
    %cst_181 = arith.constant dense<0.000000e+00> : vector<64x256xf32>
    %534 = tpu.matmul %533, %478, %cst_181 {dimension_numbers = #tpu.dot_dimension_numbers<[1], [0], [0], [1], [0, 0, 1, 1], [], []>} : vector<64x384xbf16>, vector<384x256xbf16>, vector<64x256xf32> -> vector<64x256xf32>
    %535 = vector.broadcast %480 : vector<1x256xf32> to vector<64x256xf32>
    %536 = arith.addf %534, %535 : vector<64x256xf32>
    %cst_182 = arith.constant 0.000000e+00 : f32
    %537 = vector.broadcast %cst_182 : f32 to vector<64x256xf32>
    %538 = arith.maximumf %536, %537 : vector<64x256xf32>
    %539 = tpu.iota {dimensions = array<i32: 0>} : vector<32x64xi32>
    %540 = tpu.iota {dimensions = array<i32: 1>} : vector<32x64xi32>
    %c2_i32_183 = arith.constant 2 : i32
    %541 = vector.broadcast %c2_i32_183 : i32 to vector<32x64xi32>
    %542 = arith.muli %541, %539 : vector<32x64xi32>
    %543 = arith.cmpi eq, %540, %542 : vector<32x64xi32>
    %544 = arith.extui %543 : vector<32x64xi1> to vector<32x64xi32>
    %545 = arith.sitofp %544 : vector<32x64xi32> to vector<32x64xf32>
    %546 = arith.truncf %545 : vector<32x64xf32> to vector<32x64xbf16>
    %547 = arith.truncf %538 : vector<64x256xf32> to vector<64x256xbf16>
    %cst_184 = arith.constant dense<0.000000e+00> : vector<32x256xf32>
    %548 = tpu.matmul %546, %547, %cst_184 {dimension_numbers = #tpu.dot_dimension_numbers<[1], [0], [0], [1], [0, 0, 1, 1], [], []>} : vector<32x64xbf16>, vector<64x256xbf16>, vector<32x256xf32> -> vector<32x256xf32>
    %549 = tpu.iota {dimensions = array<i32: 0>} : vector<32x1xi32>
    %c16_i32 = arith.constant 16 : i32
    %c0_i32_185 = arith.constant 0 : i32
    %550 = arith.cmpi eq, %c16_i32, %c0_i32_185 : i32
    %c1_i32_186 = arith.constant 1 : i32
    %551 = arith.select %550, %c1_i32_186, %c16_i32 : i32
    %552 = vector.broadcast %551 : i32 to vector<32x1xi32>
    %553 = arith.remsi %549, %552 : vector<32x1xi32>
    %c0_i32_187 = arith.constant 0 : i32
    %554 = vector.broadcast %c0_i32_187 : i32 to vector<32x1xi32>
    %555 = arith.cmpi ne, %553, %554 : vector<32x1xi32>
    %c0_i32_188 = arith.constant 0 : i32
    %556 = vector.broadcast %c0_i32_188 : i32 to vector<32x1xi32>
    %557 = arith.cmpi slt, %553, %556 : vector<32x1xi32>
    %c0_i32_189 = arith.constant 0 : i32
    %558 = arith.cmpi slt, %551, %c0_i32_189 : i32
    %559 = vector.broadcast %558 : i1 to vector<32x1xi1>
    %560 = vector.broadcast %559 : vector<32x1xi1> to vector<32x1xi1>
    %561 = arith.xori %557, %560 : vector<32x1xi1>
    %562 = arith.andi %561, %555 : vector<32x1xi1>
    %563 = vector.broadcast %551 : i32 to vector<32x1xi32>
    %564 = arith.addi %553, %563 : vector<32x1xi32>
    %565 = arith.select %562, %564, %553 : vector<32x1xi1>, vector<32x1xi32>
    %c1_i32_190 = arith.constant 1 : i32
    %566 = tpu.dynamic_rotate %548 by %c1_i32_190 dim 0 : vector<32x256xf32>, i32 -> vector<32x256xf32>
    %c1_i32_191 = arith.constant 1 : i32
    %567 = vector.broadcast %c1_i32_191 : i32 to vector<32x1xi32>
    %568 = arith.cmpi slt, %565, %567 : vector<32x1xi32>
    %cst_192 = arith.constant 0.000000e+00 : f32
    %569 = vector.shape_cast %568 : vector<32x1xi1> to vector<32x1xi1>
    %570 = vector.broadcast %569 : vector<32x1xi1> to vector<32x256xi1>
    %571 = vector.broadcast %cst_192 : f32 to vector<32x256xf32>
    %572 = arith.select %570, %571, %566 : vector<32x256xi1>, vector<32x256xf32>
    %573 = tpu.iota {dimensions = array<i32: 0>} : vector<32x1xi32>
    %c16_i32_193 = arith.constant 16 : i32
    %c0_i32_194 = arith.constant 0 : i32
    %574 = arith.cmpi eq, %c16_i32_193, %c0_i32_194 : i32
    %c1_i32_195 = arith.constant 1 : i32
    %575 = arith.select %574, %c1_i32_195, %c16_i32_193 : i32
    %576 = vector.broadcast %575 : i32 to vector<32x1xi32>
    %577 = arith.remsi %573, %576 : vector<32x1xi32>
    %c0_i32_196 = arith.constant 0 : i32
    %578 = vector.broadcast %c0_i32_196 : i32 to vector<32x1xi32>
    %579 = arith.cmpi ne, %577, %578 : vector<32x1xi32>
    %c0_i32_197 = arith.constant 0 : i32
    %580 = vector.broadcast %c0_i32_197 : i32 to vector<32x1xi32>
    %581 = arith.cmpi slt, %577, %580 : vector<32x1xi32>
    %c0_i32_198 = arith.constant 0 : i32
    %582 = arith.cmpi slt, %575, %c0_i32_198 : i32
    %583 = vector.broadcast %582 : i1 to vector<32x1xi1>
    %584 = vector.broadcast %583 : vector<32x1xi1> to vector<32x1xi1>
    %585 = arith.xori %581, %584 : vector<32x1xi1>
    %586 = arith.andi %585, %579 : vector<32x1xi1>
    %587 = vector.broadcast %575 : i32 to vector<32x1xi32>
    %588 = arith.addi %577, %587 : vector<32x1xi32>
    %589 = arith.select %586, %588, %577 : vector<32x1xi1>, vector<32x1xi32>
    %c31_i32_199 = arith.constant 31 : i32
    %590 = tpu.dynamic_rotate %548 by %c31_i32_199 dim 0 : vector<32x256xf32>, i32 -> vector<32x256xf32>
    %c15_i32 = arith.constant 15 : i32
    %591 = vector.broadcast %c15_i32 : i32 to vector<32x1xi32>
    %592 = arith.cmpi sge, %589, %591 : vector<32x1xi32>
    %cst_200 = arith.constant 0.000000e+00 : f32
    %593 = vector.shape_cast %592 : vector<32x1xi1> to vector<32x1xi1>
    %594 = vector.broadcast %593 : vector<32x1xi1> to vector<32x256xi1>
    %595 = vector.broadcast %cst_200 : f32 to vector<32x256xf32>
    %596 = arith.select %594, %595, %590 : vector<32x256xi1>, vector<32x256xf32>
    %597 = tpu.concatenate %572, %548, %596 in 1 : vector<32x256xf32>, vector<32x256xf32>, vector<32x256xf32> -> vector<32x768xf32>
    %598 = arith.truncf %597 : vector<32x768xf32> to vector<32x768xbf16>
    %cst_201 = arith.constant dense<0.000000e+00> : vector<32x256xf32>
    %599 = tpu.matmul %598, %479, %cst_201 {dimension_numbers = #tpu.dot_dimension_numbers<[1], [0], [0], [1], [0, 0, 1, 1], [], []>} : vector<32x768xbf16>, vector<768x256xbf16>, vector<32x256xf32> -> vector<32x256xf32>
    %600 = vector.broadcast %481 : vector<1x256xf32> to vector<32x256xf32>
    %601 = arith.addf %599, %600 : vector<32x256xf32>
    %602 = tpu.iota {dimensions = array<i32: 0>} : vector<32x64xi32>
    %603 = tpu.iota {dimensions = array<i32: 1>} : vector<32x64xi32>
    %c2_i32_202 = arith.constant 2 : i32
    %604 = vector.broadcast %c2_i32_202 : i32 to vector<32x64xi32>
    %605 = arith.muli %604, %602 : vector<32x64xi32>
    %606 = arith.cmpi eq, %603, %605 : vector<32x64xi32>
    %607 = arith.extui %606 : vector<32x64xi1> to vector<32x64xi32>
    %608 = arith.sitofp %607 : vector<32x64xi32> to vector<32x64xf32>
    %609 = arith.truncf %608 : vector<32x64xf32> to vector<32x64xbf16>
    %610 = arith.truncf %472 : vector<64x128xf32> to vector<64x128xbf16>
    %cst_203 = arith.constant dense<0.000000e+00> : vector<32x128xf32>
    %611 = tpu.matmul %609, %610, %cst_203 {dimension_numbers = #tpu.dot_dimension_numbers<[1], [0], [0], [1], [0, 0, 1, 1], [], []>} : vector<32x64xbf16>, vector<64x128xbf16>, vector<32x128xf32> -> vector<32x128xf32>
    %612 = arith.truncf %611 : vector<32x128xf32> to vector<32x128xbf16>
    %cst_204 = arith.constant dense<0.000000e+00> : vector<32x256xf32>
    %613 = tpu.matmul %612, %482, %cst_204 {dimension_numbers = #tpu.dot_dimension_numbers<[1], [0], [0], [1], [0, 0, 1, 1], [], []>} : vector<32x128xbf16>, vector<128x256xbf16>, vector<32x256xf32> -> vector<32x256xf32>
    %614 = vector.broadcast %483 : vector<1x256xf32> to vector<32x256xf32>
    %615 = arith.addf %613, %614 : vector<32x256xf32>
    %616 = arith.addf %601, %615 : vector<32x256xf32>
    %cst_205 = arith.constant 0.000000e+00 : f32
    %617 = vector.broadcast %cst_205 : f32 to vector<32x256xf32>
    %618 = arith.maximumf %616, %617 : vector<32x256xf32>
    %c9_i32_206 = arith.constant 9 : i32
    %619 = tpu.memref_slice %arg27[%c9_i32_206] : memref<13x!tpu.dma_semaphore, #tpu.memory_space<semaphore_mem>> -> memref<1x!tpu.dma_semaphore, #tpu.memory_space<semaphore_mem>>
    %620 = tpu.memref_squeeze %619 : memref<1x!tpu.dma_semaphore, #tpu.memory_space<semaphore_mem>> -> memref<!tpu.dma_semaphore, #tpu.memory_space<semaphore_mem>>
    tpu.wait_dma2 semaphore(%620 : memref<!tpu.dma_semaphore, #tpu.memory_space<semaphore_mem>>) src(%arg9 : memref<2560x512xbf16, #tpu.memory_space<any>>) dst(%arg23 : memref<2560x512xbf16, #tpu.memory_space<vmem>>)
    %c10_i32_207 = arith.constant 10 : i32
    %621 = tpu.memref_slice %arg27[%c10_i32_207] : memref<13x!tpu.dma_semaphore, #tpu.memory_space<semaphore_mem>> -> memref<1x!tpu.dma_semaphore, #tpu.memory_space<semaphore_mem>>
    %622 = tpu.memref_squeeze %621 : memref<1x!tpu.dma_semaphore, #tpu.memory_space<semaphore_mem>> -> memref<!tpu.dma_semaphore, #tpu.memory_space<semaphore_mem>>
    tpu.wait_dma2 semaphore(%622 : memref<!tpu.dma_semaphore, #tpu.memory_space<semaphore_mem>>) src(%arg10 : memref<3x512xf32, #tpu.memory_space<any>>) dst(%arg24 : memref<3x512xf32, #tpu.memory_space<vmem>>)
    %c0_208 = arith.constant 0 : index
    %c0_209 = arith.constant 0 : index
    %623 = vector.load %arg24[%c0_208, %c0_209] : memref<3x512xf32, #tpu.memory_space<vmem>>, vector<3x512xf32>
    %c0_210 = arith.constant 0 : index
    %c0_211 = arith.constant 0 : index
    %624 = vector.load %arg23[%c0_210, %c0_211] : memref<2560x512xbf16, #tpu.memory_space<vmem>>, vector<768x512xbf16>
    %c768 = arith.constant 768 : index
    %c0_212 = arith.constant 0 : index
    %625 = vector.load %arg23[%c768, %c0_212] : memref<2560x512xbf16, #tpu.memory_space<vmem>>, vector<1536x512xbf16>
    %626 = vector.extract_strided_slice %623 {offsets = [0, 0], sizes = [1, 512], strides = [1, 1]} : vector<3x512xf32> to vector<1x512xf32>
    %627 = vector.extract_strided_slice %623 {offsets = [1, 0], sizes = [1, 512], strides = [1, 1]} : vector<3x512xf32> to vector<1x512xf32>
    %c2304 = arith.constant 2304 : index
    %c0_213 = arith.constant 0 : index
    %628 = vector.load %arg23[%c2304, %c0_213] : memref<2560x512xbf16, #tpu.memory_space<vmem>>, vector<256x512xbf16>
    %629 = vector.extract_strided_slice %623 {offsets = [2, 0], sizes = [1, 512], strides = [1, 1]} : vector<3x512xf32> to vector<1x512xf32>
    %630 = tpu.iota {dimensions = array<i32: 0>} : vector<32x1xi32>
    %c16_i32_214 = arith.constant 16 : i32
    %c0_i32_215 = arith.constant 0 : i32
    %631 = arith.cmpi eq, %c16_i32_214, %c0_i32_215 : i32
    %c1_i32_216 = arith.constant 1 : i32
    %632 = arith.select %631, %c1_i32_216, %c16_i32_214 : i32
    %633 = vector.broadcast %632 : i32 to vector<32x1xi32>
    %634 = arith.remsi %630, %633 : vector<32x1xi32>
    %c0_i32_217 = arith.constant 0 : i32
    %635 = vector.broadcast %c0_i32_217 : i32 to vector<32x1xi32>
    %636 = arith.cmpi ne, %634, %635 : vector<32x1xi32>
    %c0_i32_218 = arith.constant 0 : i32
    %637 = vector.broadcast %c0_i32_218 : i32 to vector<32x1xi32>
    %638 = arith.cmpi slt, %634, %637 : vector<32x1xi32>
    %c0_i32_219 = arith.constant 0 : i32
    %639 = arith.cmpi slt, %632, %c0_i32_219 : i32
    %640 = vector.broadcast %639 : i1 to vector<32x1xi1>
    %641 = vector.broadcast %640 : vector<32x1xi1> to vector<32x1xi1>
    %642 = arith.xori %638, %641 : vector<32x1xi1>
    %643 = arith.andi %642, %636 : vector<32x1xi1>
    %644 = vector.broadcast %632 : i32 to vector<32x1xi32>
    %645 = arith.addi %634, %644 : vector<32x1xi32>
    %646 = arith.select %643, %645, %634 : vector<32x1xi1>, vector<32x1xi32>
    %c1_i32_220 = arith.constant 1 : i32
    %647 = tpu.dynamic_rotate %618 by %c1_i32_220 dim 0 : vector<32x256xf32>, i32 -> vector<32x256xf32>
    %c1_i32_221 = arith.constant 1 : i32
    %648 = vector.broadcast %c1_i32_221 : i32 to vector<32x1xi32>
    %649 = arith.cmpi slt, %646, %648 : vector<32x1xi32>
    %cst_222 = arith.constant 0.000000e+00 : f32
    %650 = vector.shape_cast %649 : vector<32x1xi1> to vector<32x1xi1>
    %651 = vector.broadcast %650 : vector<32x1xi1> to vector<32x256xi1>
    %652 = vector.broadcast %cst_222 : f32 to vector<32x256xf32>
    %653 = arith.select %651, %652, %647 : vector<32x256xi1>, vector<32x256xf32>
    %654 = tpu.iota {dimensions = array<i32: 0>} : vector<32x1xi32>
    %c16_i32_223 = arith.constant 16 : i32
    %c0_i32_224 = arith.constant 0 : i32
    %655 = arith.cmpi eq, %c16_i32_223, %c0_i32_224 : i32
    %c1_i32_225 = arith.constant 1 : i32
    %656 = arith.select %655, %c1_i32_225, %c16_i32_223 : i32
    %657 = vector.broadcast %656 : i32 to vector<32x1xi32>
    %658 = arith.remsi %654, %657 : vector<32x1xi32>
    %c0_i32_226 = arith.constant 0 : i32
    %659 = vector.broadcast %c0_i32_226 : i32 to vector<32x1xi32>
    %660 = arith.cmpi ne, %658, %659 : vector<32x1xi32>
    %c0_i32_227 = arith.constant 0 : i32
    %661 = vector.broadcast %c0_i32_227 : i32 to vector<32x1xi32>
    %662 = arith.cmpi slt, %658, %661 : vector<32x1xi32>
    %c0_i32_228 = arith.constant 0 : i32
    %663 = arith.cmpi slt, %656, %c0_i32_228 : i32
    %664 = vector.broadcast %663 : i1 to vector<32x1xi1>
    %665 = vector.broadcast %664 : vector<32x1xi1> to vector<32x1xi1>
    %666 = arith.xori %662, %665 : vector<32x1xi1>
    %667 = arith.andi %666, %660 : vector<32x1xi1>
    %668 = vector.broadcast %656 : i32 to vector<32x1xi32>
    %669 = arith.addi %658, %668 : vector<32x1xi32>
    %670 = arith.select %667, %669, %658 : vector<32x1xi1>, vector<32x1xi32>
    %c31_i32_229 = arith.constant 31 : i32
    %671 = tpu.dynamic_rotate %618 by %c31_i32_229 dim 0 : vector<32x256xf32>, i32 -> vector<32x256xf32>
    %c15_i32_230 = arith.constant 15 : i32
    %672 = vector.broadcast %c15_i32_230 : i32 to vector<32x1xi32>
    %673 = arith.cmpi sge, %670, %672 : vector<32x1xi32>
    %cst_231 = arith.constant 0.000000e+00 : f32
    %674 = vector.shape_cast %673 : vector<32x1xi1> to vector<32x1xi1>
    %675 = vector.broadcast %674 : vector<32x1xi1> to vector<32x256xi1>
    %676 = vector.broadcast %cst_231 : f32 to vector<32x256xf32>
    %677 = arith.select %675, %676, %671 : vector<32x256xi1>, vector<32x256xf32>
    %678 = tpu.concatenate %653, %618, %677 in 1 : vector<32x256xf32>, vector<32x256xf32>, vector<32x256xf32> -> vector<32x768xf32>
    %679 = arith.truncf %678 : vector<32x768xf32> to vector<32x768xbf16>
    %cst_232 = arith.constant dense<0.000000e+00> : vector<32x512xf32>
    %680 = tpu.matmul %679, %624, %cst_232 {dimension_numbers = #tpu.dot_dimension_numbers<[1], [0], [0], [1], [0, 0, 1, 1], [], []>} : vector<32x768xbf16>, vector<768x512xbf16>, vector<32x512xf32> -> vector<32x512xf32>
    %681 = vector.broadcast %626 : vector<1x512xf32> to vector<32x512xf32>
    %682 = arith.addf %680, %681 : vector<32x512xf32>
    %cst_233 = arith.constant 0.000000e+00 : f32
    %683 = vector.broadcast %cst_233 : f32 to vector<32x512xf32>
    %684 = arith.maximumf %682, %683 : vector<32x512xf32>
    %685 = tpu.iota {dimensions = array<i32: 0>} : vector<16x32xi32>
    %686 = tpu.iota {dimensions = array<i32: 1>} : vector<16x32xi32>
    %c2_i32_234 = arith.constant 2 : i32
    %687 = vector.broadcast %c2_i32_234 : i32 to vector<16x32xi32>
    %688 = arith.muli %687, %685 : vector<16x32xi32>
    %689 = arith.cmpi eq, %686, %688 : vector<16x32xi32>
    %690 = arith.extui %689 : vector<16x32xi1> to vector<16x32xi32>
    %691 = arith.sitofp %690 : vector<16x32xi32> to vector<16x32xf32>
    %692 = arith.truncf %691 : vector<16x32xf32> to vector<16x32xbf16>
    %693 = arith.truncf %684 : vector<32x512xf32> to vector<32x512xbf16>
    %cst_235 = arith.constant dense<0.000000e+00> : vector<16x512xf32>
    %694 = tpu.matmul %692, %693, %cst_235 {dimension_numbers = #tpu.dot_dimension_numbers<[1], [0], [0], [1], [0, 0, 1, 1], [], []>} : vector<16x32xbf16>, vector<32x512xbf16>, vector<16x512xf32> -> vector<16x512xf32>
    %695 = tpu.iota {dimensions = array<i32: 0>} : vector<16x1xi32>
    %c8_i32_236 = arith.constant 8 : i32
    %c0_i32_237 = arith.constant 0 : i32
    %696 = arith.cmpi eq, %c8_i32_236, %c0_i32_237 : i32
    %c1_i32_238 = arith.constant 1 : i32
    %697 = arith.select %696, %c1_i32_238, %c8_i32_236 : i32
    %698 = vector.broadcast %697 : i32 to vector<16x1xi32>
    %699 = arith.remsi %695, %698 : vector<16x1xi32>
    %c0_i32_239 = arith.constant 0 : i32
    %700 = vector.broadcast %c0_i32_239 : i32 to vector<16x1xi32>
    %701 = arith.cmpi ne, %699, %700 : vector<16x1xi32>
    %c0_i32_240 = arith.constant 0 : i32
    %702 = vector.broadcast %c0_i32_240 : i32 to vector<16x1xi32>
    %703 = arith.cmpi slt, %699, %702 : vector<16x1xi32>
    %c0_i32_241 = arith.constant 0 : i32
    %704 = arith.cmpi slt, %697, %c0_i32_241 : i32
    %705 = vector.broadcast %704 : i1 to vector<16x1xi1>
    %706 = vector.broadcast %705 : vector<16x1xi1> to vector<16x1xi1>
    %707 = arith.xori %703, %706 : vector<16x1xi1>
    %708 = arith.andi %707, %701 : vector<16x1xi1>
    %709 = vector.broadcast %697 : i32 to vector<16x1xi32>
    %710 = arith.addi %699, %709 : vector<16x1xi32>
    %711 = arith.select %708, %710, %699 : vector<16x1xi1>, vector<16x1xi32>
    %c1_i32_242 = arith.constant 1 : i32
    %712 = tpu.dynamic_rotate %694 by %c1_i32_242 dim 0 : vector<16x512xf32>, i32 -> vector<16x512xf32>
    %c1_i32_243 = arith.constant 1 : i32
    %713 = vector.broadcast %c1_i32_243 : i32 to vector<16x1xi32>
    %714 = arith.cmpi slt, %711, %713 : vector<16x1xi32>
    %cst_244 = arith.constant 0.000000e+00 : f32
    %715 = vector.shape_cast %714 : vector<16x1xi1> to vector<16x1xi1>
    %716 = vector.broadcast %715 : vector<16x1xi1> to vector<16x512xi1>
    %717 = vector.broadcast %cst_244 : f32 to vector<16x512xf32>
    %718 = arith.select %716, %717, %712 : vector<16x512xi1>, vector<16x512xf32>
    %719 = tpu.iota {dimensions = array<i32: 0>} : vector<16x1xi32>
    %c8_i32_245 = arith.constant 8 : i32
    %c0_i32_246 = arith.constant 0 : i32
    %720 = arith.cmpi eq, %c8_i32_245, %c0_i32_246 : i32
    %c1_i32_247 = arith.constant 1 : i32
    %721 = arith.select %720, %c1_i32_247, %c8_i32_245 : i32
    %722 = vector.broadcast %721 : i32 to vector<16x1xi32>
    %723 = arith.remsi %719, %722 : vector<16x1xi32>
    %c0_i32_248 = arith.constant 0 : i32
    %724 = vector.broadcast %c0_i32_248 : i32 to vector<16x1xi32>
    %725 = arith.cmpi ne, %723, %724 : vector<16x1xi32>
    %c0_i32_249 = arith.constant 0 : i32
    %726 = vector.broadcast %c0_i32_249 : i32 to vector<16x1xi32>
    %727 = arith.cmpi slt, %723, %726 : vector<16x1xi32>
    %c0_i32_250 = arith.constant 0 : i32
    %728 = arith.cmpi slt, %721, %c0_i32_250 : i32
    %729 = vector.broadcast %728 : i1 to vector<16x1xi1>
    %730 = vector.broadcast %729 : vector<16x1xi1> to vector<16x1xi1>
    %731 = arith.xori %727, %730 : vector<16x1xi1>
    %732 = arith.andi %731, %725 : vector<16x1xi1>
    %733 = vector.broadcast %721 : i32 to vector<16x1xi32>
    %734 = arith.addi %723, %733 : vector<16x1xi32>
    %735 = arith.select %732, %734, %723 : vector<16x1xi1>, vector<16x1xi32>
    %c15_i32_251 = arith.constant 15 : i32
    %736 = tpu.dynamic_rotate %694 by %c15_i32_251 dim 0 : vector<16x512xf32>, i32 -> vector<16x512xf32>
    %c7_i32_252 = arith.constant 7 : i32
    %737 = vector.broadcast %c7_i32_252 : i32 to vector<16x1xi32>
    %738 = arith.cmpi sge, %735, %737 : vector<16x1xi32>
    %cst_253 = arith.constant 0.000000e+00 : f32
    %739 = vector.shape_cast %738 : vector<16x1xi1> to vector<16x1xi1>
    %740 = vector.broadcast %739 : vector<16x1xi1> to vector<16x512xi1>
    %741 = vector.broadcast %cst_253 : f32 to vector<16x512xf32>
    %742 = arith.select %740, %741, %736 : vector<16x512xi1>, vector<16x512xf32>
    %743 = tpu.concatenate %718, %694, %742 in 1 : vector<16x512xf32>, vector<16x512xf32>, vector<16x512xf32> -> vector<16x1536xf32>
    %744 = arith.truncf %743 : vector<16x1536xf32> to vector<16x1536xbf16>
    %cst_254 = arith.constant dense<0.000000e+00> : vector<16x512xf32>
    %745 = tpu.matmul %744, %625, %cst_254 {dimension_numbers = #tpu.dot_dimension_numbers<[1], [0], [0], [1], [0, 0, 1, 1], [], []>} : vector<16x1536xbf16>, vector<1536x512xbf16>, vector<16x512xf32> -> vector<16x512xf32>
    %746 = vector.broadcast %627 : vector<1x512xf32> to vector<16x512xf32>
    %747 = arith.addf %745, %746 : vector<16x512xf32>
    %748 = tpu.iota {dimensions = array<i32: 0>} : vector<16x32xi32>
    %749 = tpu.iota {dimensions = array<i32: 1>} : vector<16x32xi32>
    %c2_i32_255 = arith.constant 2 : i32
    %750 = vector.broadcast %c2_i32_255 : i32 to vector<16x32xi32>
    %751 = arith.muli %750, %748 : vector<16x32xi32>
    %752 = arith.cmpi eq, %749, %751 : vector<16x32xi32>
    %753 = arith.extui %752 : vector<16x32xi1> to vector<16x32xi32>
    %754 = arith.sitofp %753 : vector<16x32xi32> to vector<16x32xf32>
    %755 = arith.truncf %754 : vector<16x32xf32> to vector<16x32xbf16>
    %756 = arith.truncf %618 : vector<32x256xf32> to vector<32x256xbf16>
    %cst_256 = arith.constant dense<0.000000e+00> : vector<16x256xf32>
    %757 = tpu.matmul %755, %756, %cst_256 {dimension_numbers = #tpu.dot_dimension_numbers<[1], [0], [0], [1], [0, 0, 1, 1], [], []>} : vector<16x32xbf16>, vector<32x256xbf16>, vector<16x256xf32> -> vector<16x256xf32>
    %758 = arith.truncf %757 : vector<16x256xf32> to vector<16x256xbf16>
    %cst_257 = arith.constant dense<0.000000e+00> : vector<16x512xf32>
    %759 = tpu.matmul %758, %628, %cst_257 {dimension_numbers = #tpu.dot_dimension_numbers<[1], [0], [0], [1], [0, 0, 1, 1], [], []>} : vector<16x256xbf16>, vector<256x512xbf16>, vector<16x512xf32> -> vector<16x512xf32>
    %760 = vector.broadcast %629 : vector<1x512xf32> to vector<16x512xf32>
    %761 = arith.addf %759, %760 : vector<16x512xf32>
    %762 = arith.addf %747, %761 : vector<16x512xf32>
    %cst_258 = arith.constant 0.000000e+00 : f32
    %763 = vector.broadcast %cst_258 : f32 to vector<16x512xf32>
    %764 = arith.maximumf %762, %763 : vector<16x512xf32>
    %c11_i32_259 = arith.constant 11 : i32
    %765 = tpu.memref_slice %arg27[%c11_i32_259] : memref<13x!tpu.dma_semaphore, #tpu.memory_space<semaphore_mem>> -> memref<1x!tpu.dma_semaphore, #tpu.memory_space<semaphore_mem>>
    %766 = tpu.memref_squeeze %765 : memref<1x!tpu.dma_semaphore, #tpu.memory_space<semaphore_mem>> -> memref<!tpu.dma_semaphore, #tpu.memory_space<semaphore_mem>>
    tpu.wait_dma2 semaphore(%766 : memref<!tpu.dma_semaphore, #tpu.memory_space<semaphore_mem>>) src(%arg11 : memref<1x512xf32, #tpu.memory_space<any>>) dst(%arg25 : memref<1x512xf32, #tpu.memory_space<vmem>>)
    %c0_260 = arith.constant 0 : index
    %c0_261 = arith.constant 0 : index
    %767 = vector.load %arg25[%c0_260, %c0_261] : memref<1x512xf32, #tpu.memory_space<vmem>>, vector<1x512xf32>
    %c12_i32_262 = arith.constant 12 : i32
    %768 = tpu.memref_slice %arg27[%c12_i32_262] : memref<13x!tpu.dma_semaphore, #tpu.memory_space<semaphore_mem>> -> memref<1x!tpu.dma_semaphore, #tpu.memory_space<semaphore_mem>>
    %769 = tpu.memref_squeeze %768 : memref<1x!tpu.dma_semaphore, #tpu.memory_space<semaphore_mem>> -> memref<!tpu.dma_semaphore, #tpu.memory_space<semaphore_mem>>
    tpu.wait_dma2 semaphore(%769 : memref<!tpu.dma_semaphore, #tpu.memory_space<semaphore_mem>>) src(%arg12 : memref<1x1xf32, #tpu.memory_space<any>>) dst(%arg26 : memref<1x1xf32, #tpu.memory_space<vmem>>)
    %c0_263 = arith.constant 0 : index
    %c0_264 = arith.constant 0 : index
    %770 = vector.load %arg26[%c0_263, %c0_264] : memref<1x1xf32, #tpu.memory_space<vmem>>, vector<1x1xf32>
    %771 = vector.extract_strided_slice %764 {offsets = [0, 0], sizes = [8, 512], strides = [1, 1]} : vector<16x512xf32> to vector<8x512xf32>
    %cst_265 = arith.constant dense<0xFF800000> : vector<512xf32>
    %772 = vector.multi_reduction <maximumf>, %771, %cst_265 [0] : vector<8x512xf32> to vector<512xf32>
    %773 = vector.shape_cast %772 : vector<512xf32> to vector<1x512xf32>
    %774 = vector.extract_strided_slice %764 {offsets = [8, 0], sizes = [8, 512], strides = [1, 1]} : vector<16x512xf32> to vector<8x512xf32>
    %cst_266 = arith.constant dense<0xFF800000> : vector<512xf32>
    %775 = vector.multi_reduction <maximumf>, %774, %cst_266 [0] : vector<8x512xf32> to vector<512xf32>
    %776 = vector.shape_cast %775 : vector<512xf32> to vector<1x512xf32>
    %777 = tpu.concatenate %773, %776 in 0 : vector<1x512xf32>, vector<1x512xf32> -> vector<2x512xf32>
    %778 = vector.shape_cast %777 : vector<2x512xf32> to vector<2x1x512xf32>
    %779 = vector.shape_cast %767 : vector<1x512xf32> to vector<1x1x512xf32>
    %780 = vector.broadcast %779 : vector<1x1x512xf32> to vector<2x1x512xf32>
    %781 = arith.mulf %778, %780 : vector<2x1x512xf32>
    %cst_267 = arith.constant dense<0.000000e+00> : vector<2x1xf32>
    %782 = vector.multi_reduction <add>, %781, %cst_267 [2] : vector<2x1x512xf32> to vector<2x1xf32>
    %783 = vector.broadcast %770 : vector<1x1xf32> to vector<2x1xf32>
    %784 = arith.addf %782, %783 : vector<2x1xf32>
    %c0_268 = arith.constant 0 : index
    %c0_269 = arith.constant 0 : index
    %785 = vector.load %arg13[%c0_268, %c0_269] : memref<2x1xf32, #tpu.memory_space<vmem>>, vector<2x1xf32>
    tpu.vector_store %arg13[%c0_268, %c0_269], %784 {strides = array<i32>} : memref<2x1xf32, #tpu.memory_space<vmem>>, vector<2x1xf32>,
    return
  }
}

</mosaic_0001>

<bundles_post_ra>
// kernel: _lambda_.1
= control target key start
LH: loop header
LB: loop body
LE: loop exit
PB: predicated region body
PF: predicated region fallthrough
CT: control target
= control target key end

     0   :  { %s16876_s0 = inlined_call_operand.vmem [shape: f32[128,1], index: 0, kind: input, shape index: {}]   ;;  %s16877_s1 = inlined_call_operand.hbm [shape: f32[7,64], index: 1, kind: input, shape index: {}]   ;;  %s16878_s2 = inlined_call_operand.hbm [shape: f32[1,64], index: 2, kind: input, shape index: {}]   ;;  %s16879_s3 = inlined_call_operand.hbm [shape: bf16[384,64], index: 3, kind: input, shape index: {}]   ;;  %s16880_s4 = inlined_call_operand.hbm [shape: f32[2,64], index: 4, kind: input, shape index: {}]   ;;  %s16881_s5 = inlined_call_operand.hbm [shape: bf16[640,128], index: 5, kind: input, shape index: {}]   ;;  %s16882_s6 = inlined_call_operand.hbm [shape: f32[3,128], index: 6, kind: input, shape index: {}]   ;;  %s16883_s7 = inlined_call_operand.hbm [shape: bf16[1280,256], index: 7, kind: input, shape index: {}]   ;;  %s16884_s8 = inlined_call_operand.hbm [shape: f32[3,256], index: 8, kind: input, shape index: {}]   ;;  %s16885_s9 = inlined_call_operand.hbm [shape: bf16[2560,512], index: 9, kind: input, shape index: {}]   ;;  %s16886_s10 = inlined_call_operand.hbm [shape: f32[3,512], index: 10, kind: input, shape index: {}]   ;;  %s16887_s11 = inlined_call_operand.hbm [shape: f32[1,512], index: 11, kind: input, shape index: {}]   ;;  %s16888_s12 = inlined_call_operand.<no memory space> [shape: f32[1,1], index: 12, kind: input, shape index: {}]   ;;  %s16889_s13 = inlined_call_operand.vmem [shape: f32[2,1], index: 13, kind: output, shape index: {}]  }
   0x1   :  { %v18_v0 = vstv %s16888_s12  ;;  %v14296_v1 = vld [vmem:[%s16876_s0] sm:$0xff]  ;;  %v14301_v2 = vld [vmem:[%s16876_s0 + $0x8] sm:$0xff]  ;;  %v14306_v3 = vld [vmem:[%s16876_s0 + $0x10] sm:$0xff] }
   0x2   :  { %19 = vst [vmem:[#allocation16] sm:$0x1] %v18_v0  ;;  %v14311_v4 = vld [vmem:[%s16876_s0 + $0x18] sm:$0xff]  ;;  %v14316_v5 = vld [vmem:[%s16876_s0 + $0x20] sm:$0xff]  ;;  %v14321_v6 = vld [vmem:[%s16876_s0 + $0x28] sm:$0xff] }
   0x3   :  { %v14326_v7 = vld [vmem:[%s16876_s0 + $0x30] sm:$0xff]  ;;  %v14331_v8 = vld [vmem:[%s16876_s0 + $0x38] sm:$0xff]  ;;  %v14336_v9 = vld [vmem:[%s16876_s0 + $0x40] sm:$0xff] }
   0x4   :  { %v14341_v10 = vld [vmem:[%s16876_s0 + $0x48] sm:$0xff]  ;;  %v14346_v11 = vld [vmem:[%s16876_s0 + $0x50] sm:$0xff]  ;;  %v14351_v12 = vld [vmem:[%s16876_s0 + $0x58] sm:$0xff] }
   0x5   :  { %v14356_v13 = vld [vmem:[%s16876_s0 + $0x60] sm:$0xff]  ;;  %v14361_v14 = vld [vmem:[%s16876_s0 + $0x68] sm:$0xff]  ;;  %v14366_v15 = vld [vmem:[%s16876_s0 + $0x70] sm:$0xff] }
   0x6   :  { %v14371_v16 = vld [vmem:[%s16876_s0 + $0x78] sm:$0xff] }
   0x7   :  { %16937 = vst [vmem:[#allocation56_spill] sm:$0xff] %v14371_v16 }
   0x8   :  { %93 = vsyncadd [#allocation15], 2048  ;;  %s14203_s23 = smov [#allocation3]   ;;  %s14204_s25 = smov [#allocation4]  }
   0x9   :  { %v245_v17 = vld [vmem:[#allocation16] sm:$0x1]  ;;  %s102_s24 = sshll.u32 %s14203_s23, 4  ;;  %s114_s26 = sshll.u32 %s14204_s25, 4  ;;  %s103_s24 = int_to_ptr.vmem [resolvable:$true] %s102_s24  ;;  %s115_s26 = int_to_ptr.vmem [resolvable:$true] %s114_s26 }
   0xa   :  { %246 = vst [vmem:[#allocation14] sm:$0x1] %v245_v17  ;;  %s13965_s27 = scalar_lea.vmem %s103_s24, 112  ;;  %s13969_s28 = scalar_lea.vmem %s103_s24, 128 }
   0xb   :  { %p13966_p0 = scmp.ne.s32.totalorder %s103_s24, %s13965_s27  ;;  %p13970_p1 = scmp.lt.s32.totalorder %s103_s24, %s103_s24 }
   0xc   :  { %p13971_p2 = scmp.lt.s32.totalorder %s13969_s28, %s13965_s27 }
   0xe   :  { %p13972_p3 = por %p13971_p2, %p13970_p1 }
  0x10   :  { %p13973_p4 = pnand %p13972_p3, %p13966_p0 }
  0x12   :  { %13976 = shalt.err (!%p13973_p4)  }
  0x13   :  { %105 = dma.hbm_to_vmem [thread:$0]  %s16877_s1, 112, %s103_s24, [#allocation15 + $0x1] }
  0x14   :  { %s13985_s30 = scalar_lea.vmem %s115_s26, 16  ;;  %p13990_p6 = scmp.lt.s32.totalorder %s115_s26, %s115_s26 }
  0x15   :  { %p13986_p5 = scmp.ne.s32.totalorder %s115_s26, %s13985_s30  ;;  %p13991_p7 = scmp.lt.s32.totalorder %s13985_s30, %s13985_s30 }
  0x17   :  { %p13992_p8 = por %p13991_p7, %p13990_p6 }
  0x19   :  { %p13993_p9 = pnand %p13992_p8, %p13986_p5 }
  0x1b   :  { %13996 = shalt.err (!%p13993_p9)  }
  0x1c   :  { %117 = dma.hbm_to_vmem [thread:$0]  %s16878_s2, 16, %s115_s26, [#allocation15 + $0x2] }
  0x1d   :  { %s14205_s16 = smov [#allocation5]   ;;  %s14206_s12 = smov [#allocation6]  }
  0x1e   :  { %s126_s17 = sshll.u32 %s14205_s16, 4  ;;  %s138_s18 = sshll.u32 %s14206_s12, 4  ;;  %s127_s17 = int_to_ptr.vmem [resolvable:$true] %s126_s17  ;;  %s139_s18 = int_to_ptr.vmem [resolvable:$true] %s138_s18 }
  0x1f   :  { %s14005_s19 = scalar_lea.vmem %s127_s17, 3072  ;;  %p14010_p11 = scmp.lt.s32.totalorder %s127_s17, %s127_s17 }
  0x20   :  { %p14006_p10 = scmp.ne.s32.totalorder %s127_s17, %s14005_s19  ;;  %p14011_p12 = scmp.lt.s32.totalorder %s14005_s19, %s14005_s19 }
  0x22   :  { %p14012_p13 = por %p14011_p12, %p14010_p11 }
  0x24   :  { %p14013_p0 = pnand %p14012_p13, %p14006_p10 }
  0x26   :  { %14016 = shalt.err (!%p14013_p0)  }
  0x27   :  { %129 = dma.hbm_to_vmem [thread:$0]  %s16879_s3, 3072, %s127_s17, [#allocation15 + $0x3] }
  0x28   :  { %s14025_s21 = scalar_lea.vmem %s139_s18, 32  ;;  %p14030_p2 = scmp.lt.s32.totalorder %s139_s18, %s139_s18 }
  0x29   :  { %p14026_p1 = scmp.ne.s32.totalorder %s139_s18, %s14025_s21  ;;  %p14031_p3 = scmp.lt.s32.totalorder %s14025_s21, %s14025_s21 }
  0x2b   :  { %p14032_p4 = por %p14031_p3, %p14030_p2 }
  0x2d   :  { %p14033_p5 = pnand %p14032_p4, %p14026_p1 }
  0x2f   :  { %14036 = shalt.err (!%p14033_p5)  }
  0x30   :  { %141 = dma.hbm_to_vmem [thread:$0]  %s16880_s4, 32, %s139_s18, [#allocation15 + $0x4] }
  0x31   :  { %s14207_s23 = smov [#allocation7]   ;;  %s14208_s25 = smov [#allocation8]  }
  0x32   :  { %s150_s24 = sshll.u32 %s14207_s23, 4  ;;  %s162_s26 = sshll.u32 %s14208_s25, 4  ;;  %s151_s24 = int_to_ptr.vmem [resolvable:$true] %s150_s24  ;;  %s163_s26 = int_to_ptr.vmem [resolvable:$true] %s162_s26 }
  0x33   :  { %s14045_s27 = scalar_lea.vmem %s151_s24, 5120  ;;  %p14050_p7 = scmp.lt.s32.totalorder %s151_s24, %s151_s24 }
  0x34   :  { %p14046_p6 = scmp.ne.s32.totalorder %s151_s24, %s14045_s27  ;;  %p14051_p8 = scmp.lt.s32.totalorder %s14045_s27, %s14045_s27 }
  0x36   :  { %p14052_p9 = por %p14051_p8, %p14050_p7 }
  0x38   :  { %p14053_p10 = pnand %p14052_p9, %p14046_p6 }
  0x3a   :  { %14056 = shalt.err (!%p14053_p10)  }
  0x3b   :  { %153 = dma.hbm_to_vmem [thread:$0]  %s16881_s5, 5120, %s151_s24, [#allocation15 + $0x5] }
  0x3c   :  { %s14065_s29 = scalar_lea.vmem %s163_s26, 48  ;;  %s14069_s4 = scalar_lea.vmem %s163_s26, 64 }
  0x3d   :  { %p14066_p11 = scmp.ne.s32.totalorder %s163_s26, %s14065_s29  ;;  %p14070_p12 = scmp.lt.s32.totalorder %s163_s26, %s163_s26 }
  0x3e   :  { %p14071_p13 = scmp.lt.s32.totalorder %s14069_s4, %s14065_s29 }
  0x40   :  { %p14072_p0 = por %p14071_p13, %p14070_p12 }
  0x42   :  { %p14073_p1 = pnand %p14072_p0, %p14066_p11 }
  0x44   :  { %14076 = shalt.err (!%p14073_p1)  }
  0x45   :  { %165 = dma.hbm_to_vmem [thread:$0]  %s16882_s6, 48, %s163_s26, [#allocation15 + $0x6] }
  0x46   :  { %s14209_s14 = smov [#allocation9]   ;;  %s14210_s16 = smov [#allocation10]  }
  0x47   :  { %s174_s15 = sshll.u32 %s14209_s14, 4  ;;  %s186_s17 = sshll.u32 %s14210_s16, 4  ;;  %s175_s15 = int_to_ptr.vmem [resolvable:$true] %s174_s15  ;;  %s187_s17 = int_to_ptr.vmem [resolvable:$true] %s186_s17 }
  0x48   :  { %s14085_s12 = scalar_lea.vmem %s175_s15, 20480  ;;  %p14090_p3 = scmp.lt.s32.totalorder %s175_s15, %s175_s15 }
  0x49   :  { %p14086_p2 = scmp.ne.s32.totalorder %s175_s15, %s14085_s12  ;;  %p14091_p4 = scmp.lt.s32.totalorder %s14085_s12, %s14085_s12 }
  0x4b   :  { %p14092_p5 = por %p14091_p4, %p14090_p3 }
  0x4d   :  { %p14093_p6 = pnand %p14092_p5, %p14086_p2 }
  0x4f   :  { %14096 = shalt.err (!%p14093_p6)  }
  0x50   :  { %177 = dma.hbm_to_vmem [thread:$0]  %s16883_s7, 20480, %s175_s15, [#allocation15 + $0x7] }
  0x51   :  { %s14105_s19 = scalar_lea.vmem %s187_s17, 128  ;;  %p14110_p8 = scmp.lt.s32.totalorder %s187_s17, %s187_s17 }
  0x52   :  { %p14106_p7 = scmp.ne.s32.totalorder %s187_s17, %s14105_s19  ;;  %p14111_p9 = scmp.lt.s32.totalorder %s14105_s19, %s14105_s19 }
  0x54   :  { %p14112_p10 = por %p14111_p9, %p14110_p8 }
  0x56   :  { %p14113_p11 = pnand %p14112_p10, %p14106_p7 }
  0x58   :  { %14116 = shalt.err (!%p14113_p11)  }
  0x59   :  { %189 = dma.hbm_to_vmem [thread:$0]  %s16884_s8, 128, %s187_s17, [#allocation15 + $0x8] }
  0x5a   :  { %s14211_s20 = smov [#allocation11]   ;;  %s14212_s2 = smov [#allocation12]  }
  0x5b   :  { %s198_s21 = sshll.u32 %s14211_s20, 4  ;;  %s210_s22 = sshll.u32 %s14212_s2, 4  ;;  %s199_s21 = int_to_ptr.vmem [resolvable:$true] %s198_s21  ;;  %s211_s22 = int_to_ptr.vmem [resolvable:$true] %s210_s22 }
  0x5c   :  { %s14125_s23 = scalar_lea.vmem %s199_s21, 81920  ;;  %p14130_p13 = scmp.lt.s32.totalorder %s199_s21, %s199_s21 }
  0x5d   :  { %p14126_p12 = scmp.ne.s32.totalorder %s199_s21, %s14125_s23  ;;  %p14131_p0 = scmp.lt.s32.totalorder %s14125_s23, %s14125_s23 }
  0x5f   :  { %p14132_p1 = por %p14131_p0, %p14130_p13 }
  0x61   :  { %p14133_p2 = pnand %p14132_p1, %p14126_p12 }
  0x63   :  { %14136 = shalt.err (!%p14133_p2)  }
  0x64   :  { %201 = dma.hbm_to_vmem [thread:$0]  %s16885_s9, 81920, %s199_s21, [#allocation15 + $0x9] }
  0x65   :  { %s14145_s25 = scalar_lea.vmem %s211_s22, 256  ;;  %p14150_p4 = scmp.lt.s32.totalorder %s211_s22, %s211_s22 }
  0x66   :  { %p14146_p3 = scmp.ne.s32.totalorder %s211_s22, %s14145_s25  ;;  %p14151_p5 = scmp.lt.s32.totalorder %s14145_s25, %s14145_s25 }
  0x68   :  { %p14152_p6 = por %p14151_p5, %p14150_p4 }
  0x6a   :  { %p14153_p7 = pnand %p14152_p6, %p14146_p3 }
  0x6c   :  { %14156 = shalt.err (!%p14153_p7)  }
  0x6d   :  { %213 = dma.hbm_to_vmem [thread:$0]  %s16886_s10, 256, %s211_s22, [#allocation15 + $0xa] }
  0x6e   :  { %s14213_s27 = smov [#allocation13]  }
  0x6f   :  { %s222_s3 = sshll.u32 %s14213_s27, 4  ;;  %s223_s3 = int_to_ptr.vmem [resolvable:$true] %s222_s3 }
  0x70   :  { %s14165_s28 = scalar_lea.vmem %s223_s3, 64  ;;  %p14170_p9 = scmp.lt.s32.totalorder %s223_s3, %s223_s3 }
  0x71   :  { %p14166_p8 = scmp.ne.s32.totalorder %s223_s3, %s14165_s28  ;;  %p14171_p10 = scmp.lt.s32.totalorder %s14165_s28, %s14165_s28 }
  0x73   :  { %p14172_p11 = por %p14171_p10, %p14170_p9 }
  0x75   :  { %p14173_p12 = pnand %p14172_p11, %p14166_p8 }
  0x77   :  { %14176 = shalt.err (!%p14173_p12)  }
  0x78   :  { %225 = dma.hbm_to_vmem [thread:$0]  %s16887_s11, 64, %s223_s3, [#allocation15 + $0xb] }
  0x79   :  { %272 = vsyncadd [#allocation15 + $0xc], 16 }
  0x7a   :  { %14177 = dma.done.wait [#allocation15], 2048 }
  0x7b   :  { %14178 = vsyncadd [#allocation15], 4294965248 }
  0x7c   :  { %14179 = dma.done.wait [#allocation15 + $0x1], 112 }
  0x7d   :  { %14180 = vsyncadd [#allocation15 + $0x1], 4294967184  ;;  %v14406_v18 = vld [vmem:[#allocation3] sm:$0x7f]  ;;  %v16890_v19 = vlaneseq }
  0x7e   :  { %16938 = vst [vmem:[#allocation57_spill] sm:$0xff] %v14406_v18 }
  0x7f   :  { %14181 = dma.done.wait [#allocation15 + $0x2], 16 }
  0x80   :  { %14182 = vsyncadd [#allocation15 + $0x2], 4294967280  ;;  %v16891_v20 = vmov 0   ;;  %v509_v21 = vrot.slane %v14296_v1, 5  ;;  %v510_v22 = vrot.slane %v14301_v2, 5  ;;  %v511_v23 = vrot.slane %v14306_v3, 5 }
  0x81   :  { %12570 = vset.pattern.permute.xlu1 %v16891_v20  ;;  %12569 = vset.pattern.permute.xlu0 %v16891_v20  ;;  %v14414_v24 = vshrl.u32 %v16890_v19, 7  ;;  %v512_v25 = vrot.slane %v14311_v4, 5  ;;  %v513_v26 = vrot.slane %v14316_v5, 5  ;;  %v524_v28 = vrot.slane %v14371_v16, 5 }
  0x82   :  { %v514_v33 = vrot.slane %v14321_v6, 5  ;;  %v515_v38 = vrot.slane %v14326_v7, 5  ;;  %v516_v39 = vrot.slane %v14331_v8, 5  ;;  %v517_v40 = vrot.slane %v14336_v9, 5 }
  0x83   :  { %vm525_vm0 = vcmp.lt.s32.totalorder %v14414_v24, 3  ;;  %v14420_v27 = vand.u32 63, %v14414_v24  ;;  %v309_v35 = vadd.s32 64, %v14414_v24  ;;  %v518_v44 = vrot.slane %v14341_v10, 5 }
  0x84   :  { %v540_v29 = vsel %vm525_vm0, %v509_v21, %v510_v22  ;;  %v539_v30 = vsel %vm525_vm0, %v510_v22, %v511_v23  ;;  %v538_v31 = vsel %vm525_vm0, %v511_v23, %v512_v25  ;;  %v537_v32 = vsel %vm525_vm0, %v512_v25, %v513_v26 }
  0x85   :  { %16939 = vst [vmem:[#allocation58_spill] sm:$0xff] %v14420_v27  ;;  %581 = vperm.xlu0 %12569, %v540_v29   ;;  %586 = vperm.xlu1 %12570, %v539_v30   ;;  %v541_v34 = vsel %vm525_vm0, %v524_v28, %v509_v21  ;;  %vm542_vm1 = vcmp.lt.s32.totalorder %v14420_v27, 3  ;;  %v536_v36 = vsel %vm525_vm0, %v513_v26, %v514_v33  ;;  %v14441_v41 = vand.u32 63, %v309_v35 }
  0x86   :  { %v558_v37 = vsel %vm542_vm1, 0.0, %v541_v34  ;;  %v534_v42 = vsel %vm525_vm0, %v515_v38, %v516_v39  ;;  %v535_v43 = vsel %vm525_vm0, %v514_v33, %v515_v38  ;;  %v533_v45 = vsel %vm525_vm0, %v516_v39, %v517_v40 }
  0x87   :  { %16940 = vst [vmem:[#allocation59_spill] sm:$0xff] %v14441_v41  ;;  %vm550_vm2 = vcmp.lt.s32.totalorder %v14441_v41, 3  ;;  %v532_v46 = vsel %vm525_vm0, %v517_v40, %v518_v44  ;;  %v519_v48 = vrot.slane %v14346_v11, 5  ;;  %v520_v49 = vrot.slane %v14351_v12, 5 }
  0x88   :  { %v566_v47 = vsel %vm550_vm2, 0.0, %v533_v45  ;;  %v521_v52 = vrot.slane %v14356_v13, 5  ;;  %v522_v53 = vrot.slane %v14361_v14, 5  ;;  %v523_v56 = vrot.slane %v14366_v15, 5 }
  0x89   :  { %591 = vperm.xlu1 %12570, %v538_v31   ;;  %596 = vperm.xlu0 %12569, %v537_v32   ;;  %v530_v50 = vsel %vm525_vm0, %v519_v48, %v520_v49  ;;  %v531_v51 = vsel %vm525_vm0, %v518_v44, %v519_v48  ;;  %v690_v57 = vrot.slane %v14296_v1, 6  ;;  %v705_v58 = vrot.slane %v14371_v16, 6 }
  0x8a   :  { %v528_v54 = vsel %vm525_vm0, %v521_v52, %v522_v53  ;;  %v529_v55 = vsel %vm525_vm0, %v520_v49, %v521_v52  ;;  %vm706_vm3 = vcmp.lt.s32.totalorder %v14414_v24, 2  ;;  %v526_v59 = vsel %vm525_vm0, %v523_v56, %v524_v28 }
  0x8b   :  { %v527_v60 = vsel %vm525_vm0, %v522_v53, %v523_v56  ;;  %v691_v61 = vrot.slane %v14301_v2, 6  ;;  %v722_v62 = vsel %vm706_vm3, %v705_v58, %v690_v57  ;;  %vm723_vm4 = vcmp.lt.s32.totalorder %v14420_v27, 2 }
  0x8c   :  { %v739_v0 = vsel %vm723_vm4, 0.0, %v722_v62  ;;  %v692_v17 = vrot.slane %v14306_v3, 6  ;;  %v693_v21 = vrot.slane %v14311_v4, 6  ;;  %v694_v25 = vrot.slane %v14316_v5, 6 }
  0x8d   :  { %601 = vperm.xlu1 %12570, %v536_v36   ;;  %576 = vperm.xlu0 %12569, %v558_v37   ;;  %v721_v63 = vsel %vm706_vm3, %v690_v57, %v691_v61  ;;  %v695_v26 = vrot.slane %v14321_v6, 6  ;;  %v696_v30 = vrot.slane %v14326_v7, 6  ;;  %v697_v31 = vrot.slane %v14331_v8, 6 }
  0x8e   :  { %v719_v22 = vsel %vm706_vm3, %v692_v17, %v693_v21  ;;  %v720_v23 = vsel %vm706_vm3, %v691_v61, %v692_v17  ;;  %v718_v29 = vsel %vm706_vm3, %v693_v21, %v694_v25  ;;  %v698_v32 = vrot.slane %v14336_v9, 6 }
  0x8f   :  { %v717_v28 = vsel %vm706_vm3, %v694_v25, %v695_v26  ;;  %v715_v33 = vsel %vm706_vm3, %v696_v30, %v697_v31  ;;  %v716_v34 = vsel %vm706_vm3, %v695_v26, %v696_v30  ;;  %v699_v35 = vrot.slane %v14341_v10, 6 }
  0x90   :  { %v714_v36 = vsel %vm706_vm3, %v697_v31, %v698_v32  ;;  %vm731_vm5 = vcmp.lt.s32.totalorder %v14441_v41, 2  ;;  %v700_v39 = vrot.slane %v14346_v11, 6  ;;  %v701_v40 = vrot.slane %v14351_v12, 6 }
  0x91   :  { %611 = vperm.xlu1 %12570, %v534_v42   ;;  %606 = vperm.xlu0 %12569, %v535_v43   ;;  %v713_v37 = vsel %vm706_vm3, %v698_v32, %v699_v35  ;;  %v747_v38 = vsel %vm731_vm5, 0.0, %v714_v36  ;;  %v702_v44 = vrot.slane %v14356_v13, 6  ;;  %v703_v45 = vrot.slane %v14361_v14, 6 }
  0x92   :  { %v711_v42 = vsel %vm706_vm3, %v700_v39, %v701_v40  ;;  %v712_v43 = vsel %vm706_vm3, %v699_v35, %v700_v39  ;;  %v704_v48 = vrot.slane %v14366_v15, 6  ;;  %v871_v49 = vrot.slane %v14296_v1, 7 }
  0x93   :  { %vm887_vm6 = vcmp.lt.s32.totalorder %v14414_v24, 1  ;;  %v872_v53 = vrot.slane %v14301_v2, 7  ;;  %vm904_vm7 = vcmp.lt.s32.totalorder %v14420_v27, 1  ;;  %v873_v57 = vrot.slane %v14306_v3, 7 }
  0x94   :  { %v708_v52 = vsel %vm706_vm3, %v703_v45, %v704_v48  ;;  %v875_v61 = vrot.slane %v14316_v5, 7  ;;  %v876_v62 = vrot.slane %v14321_v6, 7  ;;  %v877_v17 = vrot.slane %v14326_v7, 7 }
  0x95   :  { %621 = vperm.xlu1 %12570, %v532_v46   ;;  %616 = vperm.xlu0 %12569, %v566_v47   ;;  %v709_v46 = vsel %vm706_vm3, %v702_v44, %v703_v45  ;;  %v710_v47 = vsel %vm706_vm3, %v701_v40, %v702_v44  ;;  %v878_v21 = vrot.slane %v14331_v8, 7  ;;  %v880_v26 = vrot.slane %v14341_v10, 7 }
  0x96   :  { %v897_v25 = vsel %vm887_vm6, %v876_v62, %v877_v17  ;;  %vm912_vm8 = vcmp.lt.s32.totalorder %v14441_v41, 1  ;;  %v881_v31 = vrot.slane %v14346_v11, 7  ;;  %v882_v32 = vrot.slane %v14351_v12, 7 }
  0x97   :  { %v883_v35 = vrot.slane %v14356_v13, 7  ;;  %v884_v36 = vrot.slane %v14361_v14, 7  ;;  %v885_v39 = vrot.slane %v14366_v15, 7  ;;  %v1170_v44 = vrot.slane %v14306_v3, 1 }
  0x98   :  { %v1168_v45 = vrot.slane %v14296_v1, 1  ;;  %vm16930_vm9 = vcmp.lt.s32.totalorder %v14414_v24, 7  ;;  %vm1365_vm12 = vcmp.lt.s32.totalorder %v14414_v24, 6  ;;  %v1362_v19 = vrot.slane %v14361_v14, 2 }
  0x99   :  { %631 = vperm.xlu1 %12570, %v530_v50   ;;  %626 = vperm.xlu0 %12569, %v531_v51   ;;  %v886_v50 = vrot.slane %v14371_v16, 7  ;;  %v707_v51 = vsel %vm706_vm3, %v704_v48, %v705_v58  ;;  %v874_v58 = vrot.slane %v14311_v4, 7  ;;  %v1363_v20 = vrot.slane %v14366_v15, 2 }
  0x9a   :  { %vm1546_vm15 = vcmp.lt.s32.totalorder %v14414_v24, 5 }
  0x9b   :  { %v888_v40 = vsel %vm887_vm6, %v885_v39, %v886_v50  ;;  %v1367_v27 = vsel %vm1365_vm12, %v1362_v19, %v1363_v20 }
  0x9d   :  { %641 = vperm.xlu1 %12570, %v528_v54   ;;  %636 = vperm.xlu0 %12569, %v529_v55   ;;  %v903_v54 = vsel %vm887_vm6, %v886_v50, %v871_v49  ;;  %v902_v55 = vsel %vm887_vm6, %v871_v49, %v872_v53  ;;  %v1171_v50 = vrot.slane %v14311_v4, 1 }
  0x9e   :  { %v920_v56 = vsel %vm904_vm7, 0.0, %v903_v54 }
  0xa1   :  { %651 = vperm.xlu1 %12570, %v526_v59   ;;  %646 = vperm.xlu0 %12569, %v527_v60   ;;  %v900_v59 = vsel %vm887_vm6, %v873_v57, %v874_v58  ;;  %v901_v60 = vsel %vm887_vm6, %v872_v53, %v873_v57  ;;  %v1173_v57 = vrot.slane %v14321_v6, 1 }
  0xa5   :  { %762 = vperm.xlu1 %12570, %v721_v63   ;;  %757 = vperm.xlu0 %12569, %v739_v0   ;;  %v898_v63 = vsel %vm887_vm6, %v875_v61, %v876_v62  ;;  %v899_v0 = vsel %vm887_vm6, %v874_v58, %v875_v61  ;;  %v1174_v58 = vrot.slane %v14326_v7, 1  ;;  %v1176_v61 = vrot.slane %v14336_v9, 1 }
  0xa9   :  { %772 = vperm.xlu1 %12570, %v719_v22   ;;  %767 = vperm.xlu0 %12569, %v720_v23   ;;  %v879_v22 = vrot.slane %v14336_v9, 7  ;;  %v896_v23 = vsel %vm887_vm6, %v877_v17, %v878_v21 }
  0xad   :  { %782 = vperm.xlu1 %12570, %v717_v28   ;;  %777 = vperm.xlu0 %12569, %v718_v29   ;;  %v895_v28 = vsel %vm887_vm6, %v878_v21, %v879_v22  ;;  %v894_v29 = vsel %vm887_vm6, %v879_v22, %v880_v26 }
  0xae   :  { %v928_v30 = vsel %vm912_vm8, 0.0, %v895_v28  ;;  %v1177_v28 = vrot.slane %v14341_v10, 1 }
  0xb1   :  { %792 = vperm.xlu1 %12570, %v715_v33   ;;  %787 = vperm.xlu0 %12569, %v716_v34   ;;  %v892_v33 = vsel %vm887_vm6, %v881_v31, %v882_v32  ;;  %v893_v34 = vsel %vm887_vm6, %v880_v26, %v881_v31 }
  0xb5   :  { %802 = vperm.xlu1 %12570, %v713_v37   ;;  %797 = vperm.xlu0 %12569, %v747_v38   ;;  %v890_v37 = vsel %vm887_vm6, %v883_v35, %v884_v36  ;;  %v891_v38 = vsel %vm887_vm6, %v882_v32, %v883_v35  ;;  %v1191_v32 = vsel %vm16930_vm9, %v1176_v61, %v1177_v28  ;;  %v1180_v35 = vrot.slane %v14356_v13, 1 }
  0xb9   :  { %812 = vperm.xlu1 %12570, %v711_v42   ;;  %807 = vperm.xlu0 %12569, %v712_v43   ;;  %v889_v42 = vsel %vm887_vm6, %v884_v36, %v885_v39  ;;  %v1169_v43 = vrot.slane %v14301_v2, 1  ;;  %v316_v36 = vadd.s32 120, %v14414_v24 }
  0xbb   :  { %v1198_v48 = vsel %vm16930_vm9, %v1169_v43, %v1170_v44  ;;  %v1199_v49 = vsel %vm16930_vm9, %v1168_v45, %v1169_v43  ;;  %v1182_v43 = vrot.slane %v14366_v15, 1 }
  0xbd   :  { %822 = vperm.xlu1 %12570, %v709_v46   ;;  %817 = vperm.xlu0 %12569, %v710_v47  }
  0xc1   :  { %832 = vperm.xlu1 %12570, %v707_v51   ;;  %827 = vperm.xlu0 %12569, %v708_v52   ;;  %v1172_v51 = vrot.slane %v14316_v5, 1  ;;  %v14609_v52 = vadd.s32 56, %v14414_v24 }
  0xc3   :  { %16941 = vst [vmem:[#allocation60_spill] sm:$0xff] %v14609_v52  ;;  %v1195_v17 = vsel %vm16930_vm9, %v1172_v51, %v1173_v57 }
  0xc5   :  { %943 = vperm.xlu1 %12570, %v902_v55   ;;  %938 = vperm.xlu0 %12569, %v920_v56   ;;  %v1196_v55 = vsel %vm16930_vm9, %v1171_v50, %v1172_v51  ;;  %v1197_v56 = vsel %vm16930_vm9, %v1170_v44, %v1171_v50  ;;  %v1183_v44 = vrot.slane %v14371_v16, 1 }
  0xc9   :  { %953 = vperm.xlu1 %12570, %v900_v59   ;;  %948 = vperm.xlu0 %12569, %v901_v60   ;;  %v1175_v59 = vrot.slane %v14331_v8, 1  ;;  %v14623_v60 = vand.u32 63, %v14609_v52 }
  0xcb   :  { %v1192_v21 = vsel %vm16930_vm9, %v1175_v59, %v1176_v61  ;;  %vm1208_vm10 = vcmp.ge.s32.totalorder %v14623_v60, 63  ;;  %v1185_v61 = vsel %vm16930_vm9, %v1182_v43, %v1183_v44  ;;  %vm1389_vm13 = vcmp.ge.s32.totalorder %v14623_v60, 62 }
  0xcc   :  { %v1224_v26 = vsel %vm1208_vm10, 0.0, %v1192_v21  ;;  %vm1570_vm0 = vcmp.ge.s32.totalorder %v14623_v60, 61 }
  0xcd   :  { %963 = vperm.xlu1 %12570, %v898_v63   ;;  %958 = vperm.xlu0 %12569, %v899_v0   ;;  %v1194_v0 = vsel %vm16930_vm9, %v1173_v57, %v1174_v58 }
  0xd1   :  { %973 = vperm.xlu1 %12570, %v896_v23   ;;  %968 = vperm.xlu0 %12569, %v897_v25   ;;  %v1193_v25 = vsel %vm16930_vm9, %v1174_v58, %v1175_v59  ;;  %v16893_v59 = vrot.slane %v14296_v1, 2 }
  0xd5   :  { %983 = vperm.xlu1 %12570, %v894_v29   ;;  %978 = vperm.xlu0 %12569, %v928_v30   ;;  %v1178_v29 = vrot.slane %v14346_v11, 1 }
  0xd9   :  { %993 = vperm.xlu1 %12570, %v892_v33   ;;  %988 = vperm.xlu0 %12569, %v893_v34   ;;  %v1190_v33 = vsel %vm16930_vm9, %v1177_v28, %v1178_v29  ;;  %v1179_v34 = vrot.slane %v14351_v12, 1 }
  0xdb   :  { %v1189_v39 = vsel %vm16930_vm9, %v1178_v29, %v1179_v34  ;;  %v1352_v29 = vrot.slane %v14311_v4, 2 }
  0xdd   :  { %1003 = vperm.xlu1 %12570, %v890_v37   ;;  %998 = vperm.xlu0 %12569, %v891_v38  }
  0xe1   :  { %1013 = vperm.xlu1 %12570, %v888_v40   ;;  %1008 = vperm.xlu0 %12569, %v889_v42   ;;  %v1188_v40 = vsel %vm16930_vm9, %v1179_v34, %v1180_v35  ;;  %v1181_v42 = vrot.slane %v14361_v14, 1 }
  0xe3   :  { %v1187_v51 = vsel %vm16930_vm9, %v1180_v35, %v1181_v42 }
  0xe5   :  { %1059 = vperm.xlu1 %12570, %v14301_v2   ;;  %1054 = vperm.xlu0 %12569, %v14296_v1  }
  0xe9   :  { %1069 = vperm.xlu1 %12570, %v14311_v4   ;;  %1064 = vperm.xlu0 %12569, %v14306_v3  }
  0xed   :  { %1079 = vperm.xlu1 %12570, %v14321_v6   ;;  %1074 = vperm.xlu0 %12569, %v14316_v5  }
  0xf1   :  { %1089 = vperm.xlu1 %12570, %v14331_v8   ;;  %1084 = vperm.xlu0 %12569, %v14326_v7  }
  0xf5   :  { %1099 = vperm.xlu1 %12570, %v14341_v10   ;;  %1094 = vperm.xlu0 %12569, %v14336_v9  }
  0xf9   :  { %1109 = vperm.xlu1 %12570, %v14351_v12   ;;  %1104 = vperm.xlu0 %12569, %v14346_v11  }
  0xfd   :  { %1119 = vperm.xlu1 %12570, %v14361_v14   ;;  %1114 = vperm.xlu0 %12569, %v14356_v13  }
 0x100   :  { %v14594_v46 = vpop.permute.xlu0 %581  ;;  %v14596_v47 = vpop.permute.xlu1 %586 }
 0x101   :  { %1129 = vperm.xlu1 %12570, %v14371_v16   ;;  %1124 = vperm.xlu0 %12569, %v14366_v15  }
 0x104   :  { %v14611_v53 = vpop.permute.xlu1 %591  ;;  %v14613_v54 = vpop.permute.xlu0 %596 }
 0x105   :  { %1240 = vperm.xlu1 %12570, %v1198_v48   ;;  %1235 = vperm.xlu0 %12569, %v1199_v49   ;;  %v14669_v48 = vand.u32 63, %v316_v36 }
 0x107   :  { %16942 = vst [vmem:[#allocation61_spill] sm:$0xff] %v14669_v48  ;;  %vm1216_vm11 = vcmp.ge.s32.totalorder %v14669_v48, 63  ;;  %vm1397_vm14 = vcmp.ge.s32.totalorder %v14669_v48, 62 }
 0x108   :  { %v14626_v62 = vpop.permute.xlu1 %601  ;;  %v14628_v63 = vpop.permute.xlu0 %576 }
 0x109   :  { %1250 = vperm.xlu1 %12570, %v1196_v55   ;;  %1245 = vperm.xlu0 %12569, %v1197_v56   ;;  %v1186_v55 = vsel %vm16930_vm9, %v1181_v42, %v1182_v43  ;;  %v1200_v56 = vsel %vm16930_vm9, %v1183_v44, %v1168_v45  ;;  %v1351_v45 = vrot.slane %v14306_v3, 2  ;;  %v1356_v42 = vrot.slane %v14331_v8, 2 }
 0x10a   :  { %v1357_v43 = vrot.slane %v14336_v9, 2 }
 0x10b   :  { %v1378_v35 = vsel %vm1365_vm12, %v1351_v45, %v1352_v29 }
 0x10c   :  { %v14637_v22 = vpop.permute.xlu1 %611  ;;  %v14639_v23 = vpop.permute.xlu0 %606 }
 0x10d   :  { %1260 = vperm.xlu1 %12570, %v1194_v0   ;;  %1255 = vperm.xlu0 %12569, %v1195_v17   ;;  %v1232_v0 = vsel %vm1216_vm11, 0.0, %v1200_v56  ;;  %v1350_v17 = vrot.slane %v14301_v2, 2 }
 0x10f   :  { %v1379_v28 = vsel %vm1365_vm12, %v1350_v17, %v1351_v45 }
 0x110   :  { %v14647_v30 = vpop.permute.xlu1 %621  ;;  %v14649_v31 = vpop.permute.xlu0 %616 }
 0x111   :  { %1265 = vperm.xlu0 %12569, %v1193_v25   ;;  %1270 = vperm.xlu1 %12570, %v1224_v26   ;;  %v1380_v26 = vsel %vm1365_vm12, %v16893_v59, %v1350_v17  ;;  %v14767_v59 = vsub.s32 2, %v14414_v24 }
 0x113   :  { %16946 = vst [vmem:[#allocation65_spill] sm:$0xff] %v14767_v59 }
 0x114   :  { %v14658_v37 = vpop.permute.xlu1 %631  ;;  %v14660_v38 = vpop.permute.xlu0 %626 }
 0x115   :  { %1275 = vperm.xlu0 %12569, %v1191_v32   ;;  %1280 = vperm.xlu1 %12570, %v1190_v33   ;;  %v1353_v32 = vrot.slane %v14316_v5, 2 }
 0x117   :  { %v1377_v36 = vsel %vm1365_vm12, %v1352_v29, %v1353_v32  ;;  %v1359_v29 = vrot.slane %v14346_v11, 2 }
 0x118   :  { %v14671_v49 = vpop.permute.xlu1 %641  ;;  %v14673_v50 = vpop.permute.xlu0 %636 }
 0x119   :  { %16943 = vst [vmem:[#allocation62_spill] sm:$0xff] %v14673_v50  ;;  %1285 = vperm.xlu0 %12569, %v1189_v39   ;;  %1290 = vperm.xlu1 %12570, %v1188_v40   ;;  %v1354_v39 = vrot.slane %v14321_v6, 2  ;;  %v1355_v40 = vrot.slane %v14326_v7, 2 }
 0x11b   :  { %v1375_v56 = vsel %vm1365_vm12, %v1354_v39, %v1355_v40  ;;  %v1374_v45 = vsel %vm1365_vm12, %v1355_v40, %v1356_v42  ;;  %v1361_v40 = vrot.slane %v14356_v13, 2 }
 0x11c   :  { %v14684_v57 = vpop.permute.xlu1 %651  ;;  %v14686_v58 = vpop.permute.xlu0 %646 }
 0x11d   :  { %1295 = vperm.xlu0 %12569, %v1187_v51   ;;  %1300 = vperm.xlu1 %12570, %v1186_v55   ;;  %v1376_v55 = vsel %vm1365_vm12, %v1353_v32, %v1354_v39 }
 0x120   :  { %v14696_v21 = vpop.permute.xlu1 %762  ;;  %v14698_v25 = vpop.permute.xlu0 %757 }
 0x121   :  { %1305 = vperm.xlu0 %12569, %v1185_v61   ;;  %1310 = vperm.xlu1 %12570, %v1232_v0   ;;  %v1373_v61 = vsel %vm1365_vm12, %v1356_v42, %v1357_v43  ;;  %v14750_v42 = vsub.s32 1, %v14414_v24 }
 0x123   :  { %16944 = vst [vmem:[#allocation63_spill] sm:$0xff] %v14750_v42  ;;  %v14771_v52 = vrot.slane %v14406_v18, %v14750_v42  ;;  %v1368_v42 = vsel %vm1365_vm12, %v1361_v40, %v1362_v19 }
 0x124   :  { %v14708_v33 = vpop.permute.xlu1 %772  ;;  %v14710_v34 = vpop.permute.xlu0 %767 }
 0x125   :  { %1416 = vperm.xlu0 %12569, %v1380_v26   ;;  %1421 = vperm.xlu1 %12570, %v1379_v28   ;;  %v1405_v26 = vsel %vm1389_vm13, 0.0, %v1373_v61  ;;  %v1358_v28 = vrot.slane %v14341_v10, 2 }
 0x127   :  { %v1371_v39 = vsel %vm1365_vm12, %v1358_v28, %v1359_v29 }
 0x128   :  { %v14720_v44 = vpop.permute.xlu1 %782  ;;  %v14722_v51 = vpop.permute.xlu0 %777 }
 0x129   :  { %1426 = vperm.xlu0 %12569, %v1378_v35   ;;  %1431 = vperm.xlu1 %12570, %v1377_v36   ;;  %v1372_v36 = vsel %vm1365_vm12, %v1357_v43, %v1358_v28 }
 0x12c   :  { %v14731_v0 = vpop.permute.xlu1 %792  ;;  %v14733_v17 = vpop.permute.xlu0 %787 }
 0x12d   :  { %1436 = vperm.xlu0 %12569, %v1376_v55   ;;  %1441 = vperm.xlu1 %12570, %v1375_v56   ;;  %v1360_v55 = vrot.slane %v14351_v12, 2 }
 0x12f   :  { %v1370_v43 = vsel %vm1365_vm12, %v1359_v29, %v1360_v55  ;;  %v1369_v28 = vsel %vm1365_vm12, %v1360_v55, %v1361_v40  ;;  %v16947_v29 = vrot.slane %v14296_v1, 2  ;;  %v840_v40 = vmul.f32 %v14771_v52, %v14696_v21 }
 0x130   :  { %v14739_v32 = vpop.permute.xlu1 %802  ;;  %v14741_v35 = vpop.permute.xlu0 %797  ;;  %v1532_v21 = vrot.slane %v14306_v3, 3 }
 0x131   :  { %1446 = vperm.xlu0 %12569, %v1374_v45   ;;  %1451 = vperm.xlu1 %12570, %v1405_v26   ;;  %v1364_v45 = vrot.slane %v14371_v16, 2  ;;  %v14758_v26 = vsub.s32 0, %v14414_v24  ;;  %v14792_v16 = vrot.slane %v14406_v18, %v14767_v59  ;;  %v839_v59 = vmul.f32 %v14771_v52, %v14698_v25 }
 0x133   :  { %16945 = vst [vmem:[#allocation64_spill] sm:$0xff] %v14758_v26  ;;  %v14784_v55 = vrot.slane %v14406_v18, %v14758_v26 }
 0x134   :  { %v14752_v56 = vpop.permute.xlu1 %812  ;;  %v14754_v61 = vpop.permute.xlu0 %807 }
 0x135   :  { %1456 = vperm.xlu0 %12569, %v1372_v36   ;;  %1461 = vperm.xlu1 %12570, %v1371_v39   ;;  %v1381_v39 = vsel %vm1365_vm12, %v1364_v45, %v16947_v29  ;;  %v1366_v29 = vsel %vm1365_vm12, %v1363_v20, %v1364_v45  ;;  %v1533_v45 = vrot.slane %v14311_v4, 3  ;;  %v658_v25 = vmul.f32 %v14784_v55, %v14628_v63 }
 0x136   :  { %v1413_v48 = vsel %vm1397_vm14, 0.0, %v1381_v39 }
 0x137   :  { %v855_v19 = vadd.f32 %v839_v59, %v658_v25  ;;  %v1535_v25 = vrot.slane %v14321_v6, 3  ;;  %v662_v6 = vmul.f32 %v14784_v55, %v14613_v54 }
 0x138   :  { %v14773_v41 = vpop.permute.xlu1 %822  ;;  %v14775_v36 = vpop.permute.xlu0 %817 }
 0x139   :  { %1466 = vperm.xlu0 %12569, %v1370_v43   ;;  %1471 = vperm.xlu1 %12570, %v1369_v28   ;;  %v673_v43 = vmul.f32 %v14784_v55, %v14684_v57  ;;  %v672_v28 = vmul.f32 %v14784_v55, %v14686_v58  ;;  %v1531_v57 = vrot.slane %v14301_v2, 3  ;;  %v659_v58 = vmul.f32 %v14784_v55, %v14594_v46 }
 0x13a   :  { %v842_v2 = vmul.f32 %v14771_v52, %v14708_v33  ;;  %v841_v46 = vmul.f32 %v14771_v52, %v14710_v34  ;;  %v16948_v33 = vrot.slane %v14296_v1, 3 }
 0x13b   :  { %v1560_v59 = vsel %vm1546_vm15, %v1531_v57, %v1532_v21 }
 0x13c   :  { %v833_v26 = vpop.permute.xlu1 %832  ;;  %v828_v50 = vpop.permute.xlu0 %827  ;;  %v1561_v34 = vsel %vm1546_vm15, %v16948_v33, %v1531_v57  ;;  %v843_v57 = vmul.f32 %v14771_v52, %v14722_v51 }
 0x13d   :  { %v854_v18 = vmul.f32 %v14771_v52, %v833_v26  ;;  %v853_v20 = vmul.f32 %v14771_v52, %v828_v50  ;;  %1476 = vperm.xlu0 %12569, %v1368_v42   ;;  %1481 = vperm.xlu1 %12570, %v1367_v27   ;;  %v1534_v27 = vrot.slane %v14316_v5, 3  ;;  %v856_v50 = vadd.f32 %v840_v40, %v659_v58 }
 0x13e   :  { %v661_v5 = vmul.f32 %v14784_v55, %v14611_v53  ;;  %v844_v40 = vmul.f32 %v14771_v52, %v14720_v44  ;;  %v1537_v44 = vrot.slane %v14331_v8, 3 }
 0x13f   :  { %v14815_v39 = vadd.f32 %v854_v18, %v673_v43  ;;  %v14817_v26 = vadd.f32 %v853_v20, %v672_v28  ;;  %v660_v18 = vmul.f32 %v14784_v55, %v14596_v47  ;;  %v1558_v47 = vsel %vm1546_vm15, %v1533_v45, %v1534_v27 }
 0x140   :  { %v944_v42 = vpop.permute.xlu1 %943  ;;  %v939_v3 = vpop.permute.xlu0 %938  ;;  %v1557_v8 = vsel %vm1546_vm15, %v1534_v27, %v1535_v25 }
 0x141   :  { %v1021_v4 = vmul.f32 %v14792_v16, %v944_v42  ;;  %v1020_v63 = vmul.f32 %v14792_v16, %v939_v3  ;;  %1486 = vperm.xlu0 %12569, %v1366_v29   ;;  %1491 = vperm.xlu1 %12570, %v1413_v48   ;;  %v1559_v48 = vsel %vm1546_vm15, %v1532_v21, %v1533_v45  ;;  %v1536_v45 = vrot.slane %v14326_v7, 3 }
 0x142   :  { %v858_v29 = vadd.f32 %v842_v2, %v661_v5  ;;  %v857_v53 = vadd.f32 %v841_v46, %v660_v18  ;;  %v663_v21 = vmul.f32 %v14784_v55, %v14626_v62  ;;  %v1538_v2 = vrot.slane %v14336_v9, 3 }
 0x143   :  { %v14836_v43 = vadd.f32 %v1021_v4, %v856_v50  ;;  %v14838_v28 = vadd.f32 %v1020_v63, %v855_v19  ;;  %v846_v3 = vmul.f32 %v14771_v52, %v14731_v0  ;;  %v845_v62 = vmul.f32 %v14771_v52, %v14733_v17 }
 0x144   :  { %v954_v20 = vpop.permute.xlu1 %953  ;;  %v949_v58 = vpop.permute.xlu0 %948  ;;  %v860_v42 = vadd.f32 %v844_v40, %v663_v21  ;;  %v859_v9 = vadd.f32 %v843_v57, %v662_v6  ;;  %v665_v18 = vmul.f32 %v14784_v55, %v14637_v22  ;;  %v664_v0 = vmul.f32 %v14784_v55, %v14639_v23 }
 0x145   :  { %v1023_v19 = vmul.f32 %v14792_v16, %v954_v20  ;;  %v1022_v50 = vmul.f32 %v14792_v16, %v949_v58  ;;  %1597 = vperm.xlu0 %12569, %v1561_v34   ;;  %1602 = vperm.xlu1 %12570, %v1560_v59   ;;  %v1556_v17 = vsel %vm1546_vm15, %v1535_v25, %v1536_v45  ;;  %v1539_v34 = vrot.slane %v14341_v10, 3 }
 0x146   :  { %v1554_v5 = vsel %vm1546_vm15, %v1537_v44, %v1538_v2  ;;  %v862_v59 = vadd.f32 %v846_v3, %v665_v18  ;;  %v848_v22 = vmul.f32 %v14771_v52, %v14739_v32  ;;  %v667_v20 = vmul.f32 %v14784_v55, %v14647_v30 }
 0x147   :  { %v14858_v46 = vadd.f32 %v1023_v19, %v858_v29  ;;  %v14860_v51 = vadd.f32 %v1022_v50, %v857_v53  ;;  %v847_v29 = vmul.f32 %v14771_v52, %v14741_v35  ;;  %v1555_v10 = vsel %vm1546_vm15, %v1536_v45, %v1537_v44 }
 0x148   :  { %v964_v4 = vpop.permute.xlu1 %963  ;;  %v959_v7 = vpop.permute.xlu0 %958  ;;  %v1586_v58 = vsel %vm1570_vm0, 0.0, %v1554_v5  ;;  %v1540_v32 = vrot.slane %v14346_v11, 3  ;;  %v666_v25 = vmul.f32 %v14784_v55, %v14649_v31  ;;  %v1553_v19 = vsel %vm1546_vm15, %v1538_v2, %v1539_v34  ;;  %v16949_v5 = vld [vmem:[#allocation62_spill] sm:$0xff] }
 0x149   :  { %v1025_v63 = vmul.f32 %v14792_v16, %v964_v4  ;;  %v1024_v54 = vmul.f32 %v14792_v16, %v959_v7  ;;  %1607 = vperm.xlu0 %12569, %v1559_v48   ;;  %1612 = vperm.xlu1 %12570, %v1558_v47   ;;  %v861_v48 = vadd.f32 %v845_v62, %v664_v0  ;;  %v1541_v11 = vrot.slane %v14351_v12, 3 }
 0x14a   :  { %v864_v50 = vadd.f32 %v848_v22, %v667_v20  ;;  %v850_v30 = vmul.f32 %v14771_v52, %v14752_v56  ;;  %v849_v21 = vmul.f32 %v14771_v52, %v14754_v61  ;;  %v863_v6 = vadd.f32 %v847_v29, %v666_v25 }
 0x14b   :  { %v14878_v27 = vadd.f32 %v1025_v63, %v860_v42  ;;  %v14880_v33 = vadd.f32 %v1024_v54, %v859_v9  ;;  %v669_v2 = vmul.f32 %v14784_v55, %v14658_v37  ;;  %v668_v56 = vmul.f32 %v14784_v55, %v14660_v38 }
 0x14c   :  { %v974_v23 = vpop.permute.xlu1 %973  ;;  %v969_v47 = vpop.permute.xlu0 %968  ;;  %v1552_v61 = vsel %vm1546_vm15, %v1539_v34, %v1540_v32  ;;  %v1542_v3 = vrot.slane %v14356_v13, 3  ;;  %v1551_v37 = vsel %vm1546_vm15, %v1540_v32, %v1541_v11  ;;  %v851_v38 = vmul.f32 %v14771_v52, %v14775_v36  ;;  %v16953_v32 = vld [vmem:[#allocation61_spill] sm:$0xff] }
 0x14d   :  { %v1027_v53 = vmul.f32 %v14792_v16, %v974_v23  ;;  %v1026_v40 = vmul.f32 %v14792_v16, %v969_v47  ;;  %1617 = vperm.xlu0 %12569, %v1557_v8   ;;  %1622 = vperm.xlu1 %12570, %v1556_v17   ;;  %v866_v4 = vadd.f32 %v850_v30, %v669_v2  ;;  %v1543_v0 = vrot.slane %v14361_v14, 3 }
 0x14e   :  { %v865_v7 = vadd.f32 %v849_v21, %v668_v56  ;;  %v852_v8 = vmul.f32 %v14771_v52, %v14773_v41  ;;  %v671_v18 = vmul.f32 %v14784_v55, %v14671_v49  ;;  %v1550_v41 = vsel %vm1546_vm15, %v1541_v11, %v1542_v3  ;;  %v16954_v21 = vld [vmem:[#allocation57_spill] sm:$0xff] }
 0x14f   :  { %v14897_v57 = vadd.f32 %v1027_v53, %v862_v59  ;;  %v14899_v35 = vadd.f32 %v1026_v40, %v861_v48  ;;  %v1544_v17 = vrot.slane %v14366_v15, 3  ;;  %v670_v34 = vmul.f32 %v14784_v55, %v16949_v5  ;;  %v16950_v59 = vld [vmem:[#allocation56_spill] sm:$0xff] }
 0x150   :  { %v984_v45 = vpop.permute.xlu1 %983  ;;  %v979_v44 = vpop.permute.xlu0 %978  ;;  %v1545_v48 = vrot.slane %v16950_v59, 3  ;;  %v868_v22 = vadd.f32 %v852_v8, %v671_v18  ;;  %v14945_v14 = vsub.s32 3, %v14414_v24  ;;  %v1549_v15 = vsel %vm1546_vm15, %v1542_v3, %v1543_v0 }
 0x151   :  { %v1029_v31 = vmul.f32 %v14792_v16, %v984_v45  ;;  %v1028_v42 = vmul.f32 %v14792_v16, %v979_v44  ;;  %1627 = vperm.xlu0 %12569, %v1555_v10   ;;  %1632 = vperm.xlu1 %12570, %v1586_v58   ;;  %v867_v49 = vadd.f32 %v851_v38, %v670_v34  ;;  %v16952_v10 = vrot.slane %v14296_v1, 3 }
 0x152   :  { %16951 = vst [vmem:[#allocation62_spill] sm:$0xff] %v14945_v14  ;;  %v1548_v55 = vsel %vm1546_vm15, %v1543_v0, %v1544_v17  ;;  %vm1578_vm1 = vcmp.ge.s32.totalorder %v16953_v32, 61  ;;  %v1135_v45 = vrot.slane %v16954_v21, %v14945_v14  ;;  %v1547_v44 = vsel %vm1546_vm15, %v1544_v17, %v1545_v48 }
 0x153   :  { %v14917_v62 = vadd.f32 %v1029_v31, %v864_v50  ;;  %v14919_v12 = vadd.f32 %v1028_v42, %v863_v6  ;;  %v1562_v58 = vsel %vm1546_vm15, %v1545_v48, %v16952_v10  ;;  %v14971_v3 = vadd.s32 8, %v14414_v24 }
 0x154   :  { %v994_v9 = vpop.permute.xlu1 %993  ;;  %v989_v63 = vpop.permute.xlu0 %988  ;;  %v1594_v1 = vsel %vm1578_vm1, 0.0, %v1562_v58  ;;  %v14980_v8 = vadd.s32 32, %v14414_v24 }
 0x155   :  { %v1031_v54 = vmul.f32 %v14792_v16, %v994_v9  ;;  %v1030_v13 = vmul.f32 %v14792_v16, %v989_v63  ;;  %1637 = vperm.xlu0 %12569, %v1553_v19   ;;  %1642 = vperm.xlu1 %12570, %v1552_v61   ;;  %16955 = vst [vmem:[#allocation56_spill] sm:$0xff] %v14971_v3  ;;  %v14983_v9 = vadd.s32 40, %v14414_v24 }
 0x156   :  { %16958 = vst [vmem:[#allocation66_spill] sm:$0xff] %v14980_v8 }
 0x157   :  { %v14937_v52 = vadd.f32 %v1031_v54, %v866_v4  ;;  %v14939_v36 = vadd.f32 %v1030_v13, %v865_v7  ;;  %v14974_v4 = vadd.s32 16, %v14414_v24  ;;  %16959 = vst [vmem:[#allocation67_spill] sm:$0xff] %v14983_v9 }
 0x158   :  { %v1004_v23 = vpop.permute.xlu1 %1003  ;;  %v999_v47 = vpop.permute.xlu0 %998 }
 0x159   :  { %v1033_v29 = vmul.f32 %v14792_v16, %v1004_v23  ;;  %v1032_v53 = vmul.f32 %v14792_v16, %v999_v47  ;;  %1647 = vperm.xlu0 %12569, %v1551_v37   ;;  %1652 = vperm.xlu1 %12570, %v1550_v41   ;;  %16956 = vst [vmem:[#allocation61_spill] sm:$0xff] %v14974_v4 }
 0x15b   :  { %v14951_v40 = vadd.f32 %v1033_v29, %v868_v22  ;;  %v14953_v20 = vadd.f32 %v1032_v53, %v867_v49 }
 0x15c   :  { %v1014_v25 = vpop.permute.xlu1 %1013  ;;  %v1009_v19 = vpop.permute.xlu0 %1008 }
 0x15d   :  { %v1035_v50 = vmul.f32 %v14792_v16, %v1014_v25  ;;  %v1034_v30 = vmul.f32 %v14792_v16, %v1009_v19  ;;  %1657 = vperm.xlu0 %12569, %v1549_v15   ;;  %1662 = vperm.xlu1 %12570, %v1548_v55  }
 0x15f   :  { %v1051_v11 = vadd.f32 %v1035_v50, %v14815_v39  ;;  %v1050_v6 = vadd.f32 %v1034_v30, %v14817_v26  ;;  %v14977_v26 = vadd.s32 24, %v14414_v24  ;;  %v14999_v50 = vsub.s32 4, %v14414_v24 }
 0x160   :  { %v1060_v31 = vpop.permute.xlu1 %1059  ;;  %v1055_v42 = vpop.permute.xlu0 %1054 }
 0x161   :  { %v1137_v2 = vmul.f32 %v1135_v45, %v1060_v31  ;;  %v1136_v56 = vmul.f32 %v1135_v45, %v1055_v42  ;;  %1667 = vperm.xlu0 %12569, %v1547_v44   ;;  %1672 = vperm.xlu1 %12570, %v1594_v1   ;;  %16957 = vst [vmem:[#allocation57_spill] sm:$0xff] %v14977_v26  ;;  %16961 = vst [vmem:[#allocation69_spill] sm:$0xff] %v14999_v50 }
 0x163   :  { %v1153_v16 = vadd.f32 %v1137_v2, %v14836_v43  ;;  %v1152_v61 = vadd.f32 %v1136_v56, %v14838_v28  ;;  %v14986_v43 = vadd.s32 48, %v14414_v24 }
 0x164   :  { %v1070_v7 = vpop.permute.xlu1 %1069  ;;  %v1065_v39 = vpop.permute.xlu0 %1064 }
 0x165   :  { %16960 = vst [vmem:[#allocation68_spill] sm:$0xff] %v14986_v43  ;;  %v1139_v28 = vmul.f32 %v1135_v45, %v1070_v7  ;;  %v1138_v63 = vmul.f32 %v1135_v45, %v1065_v39 }
 0x167   :  { %v1155_v37 = vadd.f32 %v1139_v28, %v14858_v46  ;;  %v1154_v38 = vadd.f32 %v1138_v63, %v14860_v51 }
 0x168   :  { %v1080_v54 = vpop.permute.xlu1 %1079  ;;  %v1075_v13 = vpop.permute.xlu0 %1074 }
 0x169   :  { %v1141_v18 = vmul.f32 %v1135_v45, %v1080_v54  ;;  %v1140_v41 = vmul.f32 %v1135_v45, %v1075_v13 }
 0x16b   :  { %v1157_v0 = vadd.f32 %v1141_v18, %v14878_v27  ;;  %v1156_v17 = vadd.f32 %v1140_v41, %v14880_v33 }
 0x16c   :  { %v1090_v5 = vpop.permute.xlu1 %1089  ;;  %v1085_v34 = vpop.permute.xlu0 %1084 }
 0x16d   :  { %v1143_v59 = vmul.f32 %v1135_v45, %v1090_v5  ;;  %v1142_v48 = vmul.f32 %v1135_v45, %v1085_v34 }
 0x16f   :  { %v1159_v22 = vadd.f32 %v1143_v59, %v14897_v57  ;;  %v1158_v23 = vadd.f32 %v1142_v48, %v14899_v35 }
 0x170   :  { %v1100_v47 = vpop.permute.xlu1 %1099  ;;  %v1095_v46 = vpop.permute.xlu0 %1094 }
 0x171   :  { %v1145_v49 = vmul.f32 %v1135_v45, %v1100_v47  ;;  %v1144_v51 = vmul.f32 %v1135_v45, %v1095_v46 }
 0x173   :  { %v1161_v29 = vadd.f32 %v1145_v49, %v14917_v62  ;;  %v1160_v53 = vadd.f32 %v1144_v51, %v14919_v12 }
 0x174   :  { %v1110_v15 = vpop.permute.xlu1 %1109  ;;  %v1105_v27 = vpop.permute.xlu0 %1104 }
 0x175   :  { %v1147_v55 = vmul.f32 %v1135_v45, %v1110_v15  ;;  %v1146_v33 = vmul.f32 %v1135_v45, %v1105_v27 }
 0x177   :  { %v1163_v10 = vadd.f32 %v1147_v55, %v14937_v52  ;;  %v1162_v58 = vadd.f32 %v1146_v33, %v14939_v36  ;;  %v15005_v52 = vrot.slane %v16954_v21, %v14999_v50 }
 0x178   :  { %v1120_v25 = vpop.permute.xlu1 %1119  ;;  %v1115_v57 = vpop.permute.xlu0 %1114 }
 0x179   :  { %v1149_v19 = vmul.f32 %v1135_v45, %v1120_v25  ;;  %v1148_v35 = vmul.f32 %v1135_v45, %v1115_v57 }
 0x17b   :  { %v1165_v30 = vadd.f32 %v1149_v19, %v14951_v40  ;;  %v1164_v62 = vadd.f32 %v1148_v35, %v14953_v20 }
 0x17c   :  { %v1130_v12 = vpop.permute.xlu1 %1129  ;;  %v1125_v44 = vpop.permute.xlu0 %1124 }
 0x17d   :  { %v1151_v1 = vmul.f32 %v1135_v45, %v1130_v12  ;;  %v1150_v31 = vmul.f32 %v1135_v45, %v1125_v44 }
 0x17f   :  { %v15007_v36 = vadd.f32 %v1151_v1, %v1051_v11  ;;  %v15009_v42 = vadd.f32 %v1150_v31, %v1050_v6 }
 0x180   :  { %v1241_v2 = vpop.permute.xlu1 %1240  ;;  %v1236_v56 = vpop.permute.xlu0 %1235 }
 0x181   :  { %v1318_v7 = vmul.f32 %v15005_v52, %v1241_v2  ;;  %v1317_v40 = vmul.f32 %v15005_v52, %v1236_v56 }
 0x183   :  { %v15013_v39 = vadd.f32 %v1318_v7, %v1153_v16  ;;  %v15015_v20 = vadd.f32 %v1317_v40, %v1152_v61 }
 0x184   :  { %v1251_v28 = vpop.permute.xlu1 %1250  ;;  %v1246_v45 = vpop.permute.xlu0 %1245 }
 0x185   :  { %v1320_v63 = vmul.f32 %v15005_v52, %v1251_v28  ;;  %v1319_v54 = vmul.f32 %v15005_v52, %v1246_v45 }
 0x187   :  { %v15019_v11 = vadd.f32 %v1320_v63, %v1155_v37  ;;  %v15021_v6 = vadd.f32 %v1319_v54, %v1154_v38 }
 0x188   :  { %v1261_v13 = vpop.permute.xlu1 %1260  ;;  %v1256_v18 = vpop.permute.xlu0 %1255 }
 0x189   :  { %v1322_v41 = vmul.f32 %v15005_v52, %v1261_v13  ;;  %v1321_v5 = vmul.f32 %v15005_v52, %v1256_v18 }
 0x18b   :  { %v15025_v16 = vadd.f32 %v1322_v41, %v1157_v0  ;;  %v15027_v61 = vadd.f32 %v1321_v5, %v1156_v17  ;;  %v15073_v5 = vsub.s32 6, %v14414_v24 }
 0x18c   :  { %v1266_v34 = vpop.permute.xlu0 %1265  ;;  %v1271_v59 = vpop.permute.xlu1 %1270 }
 0x18d   :  { %v1323_v48 = vmul.f32 %v15005_v52, %v1266_v34  ;;  %v1324_v47 = vmul.f32 %v15005_v52, %v1271_v59  ;;  %16963 = vst [vmem:[#allocation71_spill] sm:$0xff] %v15073_v5 }
 0x18f   :  { %v15031_v37 = vadd.f32 %v1323_v48, %v1158_v23  ;;  %v15033_v38 = vadd.f32 %v1324_v47, %v1159_v22 }
 0x190   :  { %v1276_v46 = vpop.permute.xlu0 %1275  ;;  %v1281_v49 = vpop.permute.xlu1 %1280 }
 0x191   :  { %v1325_v51 = vmul.f32 %v15005_v52, %v1276_v46  ;;  %v1326_v15 = vmul.f32 %v15005_v52, %v1281_v49  ;;  %v15083_v46 = vrot.slane %v16954_v21, %v15073_v5 }
 0x193   :  { %v15037_v0 = vadd.f32 %v1325_v51, %v1160_v53  ;;  %v15039_v17 = vadd.f32 %v1326_v15, %v1161_v29 }
 0x194   :  { %v1286_v27 = vpop.permute.xlu0 %1285  ;;  %v1291_v55 = vpop.permute.xlu1 %1290 }
 0x195   :  { %v1327_v33 = vmul.f32 %v15005_v52, %v1286_v27  ;;  %v1328_v25 = vmul.f32 %v15005_v52, %v1291_v55 }
 0x197   :  { %v15043_v23 = vadd.f32 %v1327_v33, %v1162_v58  ;;  %v15045_v22 = vadd.f32 %v1328_v25, %v1163_v10 }
 0x198   :  { %v1296_v57 = vpop.permute.xlu0 %1295  ;;  %v1301_v19 = vpop.permute.xlu1 %1300 }
 0x199   :  { %v1329_v35 = vmul.f32 %v15005_v52, %v1296_v57  ;;  %v1330_v12 = vmul.f32 %v15005_v52, %v1301_v19  ;;  %v15091_v19 = vld [vmem:[#allocation4] ss:$0 sm:$0xff] }
 0x19b   :  { %v15049_v53 = vadd.f32 %v1329_v35, %v1164_v62  ;;  %v15051_v29 = vadd.f32 %v1330_v12, %v1165_v30  ;;  %v15062_v30 = vsub.s32 5, %v14414_v24 }
 0x19c   :  { %v15053_v44 = vpop.permute.xlu0 %1305  ;;  %v15055_v1 = vpop.permute.xlu1 %1310 }
 0x19d   :  { %16962 = vst [vmem:[#allocation70_spill] sm:$0xff] %v15062_v30  ;;  %v15070_v41 = vrot.slane %v16954_v21, %v15062_v30 }
 0x1a0   :  { %v1417_v31 = vpop.permute.xlu0 %1416  ;;  %v1422_v2 = vpop.permute.xlu1 %1421 }
 0x1a1   :  { %v1498_v48 = vmul.f32 %v15070_v41, %v1417_v31  ;;  %v1499_v47 = vmul.f32 %v15070_v41, %v1422_v2 }
 0x1a3   :  { %v1514_v55 = vadd.f32 %v1498_v48, %v15015_v20  ;;  %v1515_v33 = vadd.f32 %v1499_v47, %v15013_v39 }
 0x1a4   :  { %v1427_v58 = vpop.permute.xlu0 %1426  ;;  %v1432_v56 = vpop.permute.xlu1 %1431 }
 0x1a5   :  { %v1500_v49 = vmul.f32 %v15070_v41, %v1427_v58  ;;  %v1501_v51 = vmul.f32 %v15070_v41, %v1432_v56 }
 0x1a7   :  { %v1516_v21 = vadd.f32 %v1500_v49, %v15021_v6  ;;  %v1517_v31 = vadd.f32 %v1501_v51, %v15019_v11 }
 0x1a8   :  { %v1437_v10 = vpop.permute.xlu0 %1436  ;;  %v1442_v7 = vpop.permute.xlu1 %1441 }
 0x1a9   :  { %v1502_v2 = vmul.f32 %v15070_v41, %v1437_v10  ;;  %v1503_v58 = vmul.f32 %v15070_v41, %v1442_v7 }
 0x1ab   :  { %v1518_v10 = vadd.f32 %v1502_v2, %v15027_v61  ;;  %v1519_v7 = vadd.f32 %v1503_v58, %v15025_v16 }
 0x1ac   :  { %v1447_v40 = vpop.permute.xlu0 %1446  ;;  %v1452_v28 = vpop.permute.xlu1 %1451 }
 0x1ad   :  { %v1504_v49 = vmul.f32 %v15070_v41, %v1447_v40  ;;  %v1505_v51 = vmul.f32 %v15070_v41, %v1452_v28 }
 0x1af   :  { %v1520_v40 = vadd.f32 %v1504_v49, %v15031_v37  ;;  %v1521_v28 = vadd.f32 %v1505_v51, %v15033_v38 }
 0x1b0   :  { %v1457_v45 = vpop.permute.xlu0 %1456  ;;  %v1462_v63 = vpop.permute.xlu1 %1461 }
 0x1b1   :  { %v1506_v2 = vmul.f32 %v15070_v41, %v1457_v45  ;;  %v1507_v58 = vmul.f32 %v15070_v41, %v1462_v63 }
 0x1b3   :  { %v1522_v45 = vadd.f32 %v1506_v2, %v15037_v0  ;;  %v1523_v63 = vadd.f32 %v1507_v58, %v15039_v17 }
 0x1b4   :  { %v15057_v54 = vpop.permute.xlu0 %1466  ;;  %v15059_v62 = vpop.permute.xlu1 %1471 }
 0x1b5   :  { %v1509_v49 = vmul.f32 %v15070_v41, %v15059_v62 }
 0x1b7   :  { %v1525_v62 = vadd.f32 %v1509_v49, %v15045_v22  ;;  %v1332_v22 = vmul.f32 %v15005_v52, %v15055_v1 }
 0x1b8   :  { %v15064_v13 = vpop.permute.xlu0 %1476  ;;  %v15066_v18 = vpop.permute.xlu1 %1481 }
 0x1bc   :  { %v15075_v34 = vpop.permute.xlu0 %1486  ;;  %v15077_v59 = vpop.permute.xlu1 %1491 }
 0x1c0   :  { %v1598_v15 = vpop.permute.xlu0 %1597  ;;  %v1603_v27 = vpop.permute.xlu1 %1602 }
 0x1c1   :  { %v1679_v25 = vmul.f32 %v15083_v46, %v1598_v15  ;;  %v1680_v57 = vmul.f32 %v15083_v46, %v1603_v27 }
 0x1c3   :  { %v1695_v35 = vadd.f32 %v1679_v25, %v1514_v55  ;;  %v1696_v12 = vadd.f32 %v1680_v57, %v1515_v33 }
 0x1c4   :  { %v1608_v56 = vpop.permute.xlu0 %1607  ;;  %v1613_v20 = vpop.permute.xlu1 %1612 }
 0x1c5   :  { %v1717_v39 = vadd.f32 %v15091_v19, %v1695_v35  ;;  %v1718_v48 = vadd.f32 %v15091_v19, %v1696_v12  ;;  %v1681_v47 = vmul.f32 %v15083_v46, %v1608_v56  ;;  %v1682_v15 = vmul.f32 %v15083_v46, %v1613_v20 }
 0x1c7   :  { %v15101_v27 = vmax.f32 %v1717_v39, 0.0  ;;  %v15103_v55 = vmax.f32 %v1718_v48, 0.0  ;;  %v1697_v6 = vadd.f32 %v1681_v47, %v1516_v21  ;;  %v1698_v11 = vadd.f32 %v1682_v15, %v1517_v31 }
 0x1c8   :  { %v1618_v33 = vpop.permute.xlu0 %1617  ;;  %v1623_v25 = vpop.permute.xlu1 %1622 }
 0x1c9   :  { %v1719_v57 = vadd.f32 %v15091_v19, %v1697_v6  ;;  %v1720_v35 = vadd.f32 %v15091_v19, %v1698_v11  ;;  %v1683_v12 = vmul.f32 %v15083_v46, %v1618_v33  ;;  %v1684_v56 = vmul.f32 %v15083_v46, %v1623_v25 }
 0x1cb   :  { %v15113_v21 = vmax.f32 %v1719_v57, 0.0  ;;  %v15115_v31 = vmax.f32 %v1720_v35, 0.0  ;;  %v1699_v61 = vadd.f32 %v1683_v12, %v1518_v10  ;;  %v1700_v16 = vadd.f32 %v1684_v56, %v1519_v7 }
 0x1cc   :  { %v1628_v20 = vpop.permute.xlu0 %1627  ;;  %v1633_v39 = vpop.permute.xlu1 %1632  ;;  %v1508_v7 = vmul.f32 %v15070_v41, %v15057_v54 }
 0x1cd   :  { %v1721_v48 = vadd.f32 %v15091_v19, %v1699_v61  ;;  %v1722_v47 = vadd.f32 %v15091_v19, %v1700_v16  ;;  %v1685_v15 = vmul.f32 %v15083_v46, %v1628_v20  ;;  %v1686_v6 = vmul.f32 %v15083_v46, %v1633_v39 }
 0x1ce   :  { %v1524_v54 = vadd.f32 %v1508_v7, %v15043_v23  ;;  %v1510_v16 = vmul.f32 %v15070_v41, %v15064_v13  ;;  %v1331_v23 = vmul.f32 %v15005_v52, %v15053_v44 }
 0x1cf   :  { %v15125_v11 = vmax.f32 %v1721_v48, 0.0  ;;  %v15127_v10 = vmax.f32 %v1722_v47, 0.0  ;;  %v1701_v37 = vadd.f32 %v1685_v15, %v1520_v40  ;;  %v1702_v38 = vadd.f32 %v1686_v6, %v1521_v28 }
 0x1d0   :  { %v1638_v51 = vpop.permute.xlu0 %1637  ;;  %v1643_v33 = vpop.permute.xlu1 %1642  ;;  %v1511_v40 = vmul.f32 %v15070_v41, %v15066_v18  ;;  %v1526_v6 = vadd.f32 %v1510_v16, %v15049_v53  ;;  %v1347_v53 = vadd.f32 %v1331_v23, %v15009_v42 }
 0x1d1   :  { %v1723_v25 = vadd.f32 %v15091_v19, %v1701_v37  ;;  %v1724_v57 = vadd.f32 %v15091_v19, %v1702_v38  ;;  %v1687_v35 = vmul.f32 %v15083_v46, %v1638_v51  ;;  %v1688_v12 = vmul.f32 %v15083_v46, %v1643_v33 }
 0x1d2   :  { %v1527_v37 = vadd.f32 %v1511_v40, %v15051_v29  ;;  %v1512_v38 = vmul.f32 %v15070_v41, %v15075_v34  ;;  %v1348_v29 = vadd.f32 %v1332_v22, %v15007_v36 }
 0x1d3   :  { %v15139_v56 = vmax.f32 %v1723_v25, 0.0  ;;  %v15141_v0 = vmax.f32 %v1724_v57, 0.0  ;;  %v1703_v17 = vadd.f32 %v1687_v35, %v1522_v45  ;;  %v1704_v61 = vadd.f32 %v1688_v12, %v1523_v63 }
 0x1d4   :  { %v1648_v28 = vpop.permute.xlu0 %1647  ;;  %v1653_v2 = vpop.permute.xlu1 %1652  ;;  %v1513_v45 = vmul.f32 %v15070_v41, %v15077_v59  ;;  %v1528_v59 = vadd.f32 %v1512_v38, %v1347_v53 }
 0x1d5   :  { %v1725_v58 = vadd.f32 %v15091_v19, %v1703_v17  ;;  %v1726_v20 = vadd.f32 %v15091_v19, %v1704_v61  ;;  %v1689_v39 = vmul.f32 %v15083_v46, %v1648_v28  ;;  %v1690_v48 = vmul.f32 %v15083_v46, %v1653_v2 }
 0x1d6   :  { %v1529_v25 = vadd.f32 %v1513_v45, %v1348_v29 }
 0x1d7   :  { %v15157_v13 = vmax.f32 %v1725_v58, 0.0  ;;  %v15159_v47 = vmax.f32 %v1726_v20, 0.0  ;;  %v1705_v18 = vadd.f32 %v1689_v39, %v1524_v54  ;;  %v1706_v15 = vadd.f32 %v1690_v48, %v1525_v62 }
 0x1d8   :  { %v1658_v44 = vpop.permute.xlu0 %1657  ;;  %v1663_v63 = vpop.permute.xlu1 %1662 }
 0x1d9   :  { %v1727_v52 = vadd.f32 %v15091_v19, %v1705_v18  ;;  %v1728_v1 = vadd.f32 %v15091_v19, %v1706_v15  ;;  %v1691_v7 = vmul.f32 %v15083_v46, %v1658_v44  ;;  %v1692_v49 = vmul.f32 %v15083_v46, %v1663_v63 }
 0x1db   :  { %v15173_v51 = vmax.f32 %v1727_v52, 0.0  ;;  %v15175_v34 = vmax.f32 %v1728_v1, 0.0  ;;  %v1707_v33 = vadd.f32 %v1691_v7, %v1526_v6  ;;  %v1708_v41 = vadd.f32 %v1692_v49, %v1527_v37 }
 0x1dc   :  { %v1668_v57 = vpop.permute.xlu0 %1667  ;;  %v1673_v35 = vpop.permute.xlu1 %1672 }
 0x1dd   :  { %v1729_v12 = vadd.f32 %v15091_v19, %v1707_v33  ;;  %v1730_v17 = vadd.f32 %v15091_v19, %v1708_v41  ;;  %v1693_v61 = vmul.f32 %v15083_v46, %v1668_v57  ;;  %v1694_v42 = vmul.f32 %v15083_v46, %v1673_v35 }
 0x1df   :  { %v15181_v54 = vmax.f32 %v1729_v12, 0.0  ;;  %v15183_v36 = vmax.f32 %v1730_v17, 0.0  ;;  %v1709_v62 = vadd.f32 %v1693_v61, %v1528_v59  ;;  %v1710_v16 = vadd.f32 %v1694_v42, %v1529_v25 }
 0x1e1   :  { %v1731_v40 = vadd.f32 %v15091_v19, %v1709_v62  ;;  %v1732_v28 = vadd.f32 %v15091_v19, %v1710_v16 }
 0x1e3   :  { %v15187_v2 = vmax.f32 %v1731_v40, 0.0  ;;  %v15189_v58 = vmax.f32 %v1732_v28, 0.0 }
 0x1e4   :  { %14183 = dma.done.wait [#allocation15 + $0x3], 3072 }
 0x1e5   :  { %14184 = vsyncadd [#allocation15 + $0x3], 4294964224  ;;  %v12571_v20 = vpack.i.bf16 %v15103_v55, %v15101_v27  ;;  %v12581_v46 = vpack.i.bf16 %v15127_v10, %v15125_v11 }
 0x1e6   :  { %14185 = dma.done.wait [#allocation15 + $0x4], 32 }
 0x1e7   :  { %14186 = vsyncadd [#allocation15 + $0x4], 4294967264  ;;  %v16964_v39 = vmov 0   ;;  %v12576_v48 = vpack.i.bf16 %v15115_v31, %v15113_v21  ;;  %s14215_s10 = smov 64   ;;  %v12586_v19 = vpack.i.bf16 %v15141_v0, %v15139_v56  ;;  %v1885_v23 = vrot.slane %v15101_v27, 1  ;;  %v12651_v44 = vld [vmem:[#allocation5 + $0x38] sm:$0xff]  }
 0x1e8   :  { %2162 = vmatprep.subr.bf16.mxu0 %v16964_v39  ;;  %2567 = vmatprep.subr.bf16.mxu1 %v16964_v39  ;;  %v1886_v22 = vrot.slane %v15103_v55, 1  ;;  %v1887_v18 = vrot.slane %v15113_v21, 1  ;;  %v12591_v38 = vpack.i.bf16 %v15159_v47, %v15157_v13  ;;  %v12596_v45 = vpack.i.bf16 %v15175_v34, %v15173_v51  ;;  %v12652_v63 = vld [vmem:[#allocation5 + $0x30] sm:$0xff]   ;;  %v12653_v7 = vld [vmem:[#allocation5 + $0x28] sm:$0xff]   ;;  %v12654_v49 = vld [vmem:[#allocation5 + $0x20] sm:$0xff]  }
 0x1e9   :  { %12572 = vrot.lane.b32.xlu0 %v12571_v20, %s14215_s10  ;;  %12582 = vrot.lane.b32.xlu1 %v12581_v46, %s14215_s10  ;;  %vm16926_vm2 = vcmask 523264   ;;  %v12601_v52 = vpack.i.bf16 %v15183_v36, %v15181_v54  ;;  %v12606_v1 = vpack.i.bf16 %v15189_v58, %v15187_v2  ;;  %v12655_v53 = vld [vmem:[#allocation5 + $0x18] sm:$0xff]   ;;  %v12656_v29 = vld [vmem:[#allocation5 + $0x10] sm:$0xff]   ;;  %v12657_v33 = vld [vmem:[#allocation5 + $0x8] sm:$0xff]   ;;  %v1805_v12 = vrot.slane %v15101_v27, 7 }
 0x1ea   :  { %v1914_v15 = vsel %vm16930_vm9, %v1886_v22, %v1887_v18  ;;  %v1915_v6 = vsel %vm16930_vm9, %v1885_v23, %v1886_v22  ;;  %2163 = vmatpush1.bf16.msra.mxu0 %v12651_v44  ;;  %v12658_v41 = vld [vmem:[#allocation5] sm:$0xff]   ;;  %v12659_v59 = vld [vmem:[#allocation5 + $0x58] sm:$0xff]   ;;  %v12660_v25 = vld [vmem:[#allocation5 + $0x50] sm:$0xff]   ;;  %v1820_v17 = vrot.slane %v15189_v58, 7  ;;  %v1888_v61 = vrot.slane %v15115_v31, 1 }
 0x1eb   :  { %v2047_v37 = vpack.c.bf16 %v1914_v15, %v1915_v6  ;;  %2164 = vmatprep.subr.bf16.mxu0 %v16964_v39  ;;  %v12661_v57 = vld [vmem:[#allocation5 + $0x48] sm:$0xff]   ;;  %v12662_v35 = vld [vmem:[#allocation5 + $0x40] sm:$0xff]   ;;  %v1806_v42 = vrot.slane %v15103_v55, 7  ;;  %v1889_v62 = vrot.slane %v15125_v11, 1  ;;  %v1807_v40 = vrot.slane %v15113_v21, 7 }
 0x1ec   :  { %v1836_v16 = vsel %vm887_vm6, %v1820_v17, %v1805_v12  ;;  %v1808_v28 = vrot.slane %v15115_v31, 7  ;;  %v1913_v46 = vsel %vm16930_vm9, %v1887_v18, %v1888_v61 }
 0x1ed   :  { %12577 = vrot.lane.b32.xlu0 %v12576_v48, %s14215_s10  ;;  %12587 = vrot.lane.b32.xlu1 %v12586_v19, %s14215_s10  ;;  %v1835_v48 = vsel %vm887_vm6, %v1805_v12, %v1806_v42  ;;  %v1869_v22 = vsel %vm904_vm7, 0.0, %v1836_v16  ;;  %v1912_v15 = vsel %vm16930_vm9, %v1888_v61, %v1889_v62  ;;  %v1810_v12 = vrot.slane %v15127_v10, 7 }
 0x1ee   :  { %11217 = vmatprep.mubr.msk.bf16.mxu0 %vm16926_vm2, %v2047_v37  ;;  %2165 = vmatpush1.bf16.msra.mxu0 %v12652_v63  ;;  %v2049_v44 = vpack.c.bf16 %v1912_v15, %v1913_v46  ;;  %v1833_v63 = vsel %vm887_vm6, %v1807_v40, %v1808_v28  ;;  %v1892_v61 = vrot.slane %v15141_v0, 1 }
 0x1ef   :  { %2166 = vmatprep.subr.bf16.mxu0 %v16964_v39 }
 0x1f1   :  { %12592 = vrot.lane.b32.xlu0 %v12591_v38, %s14215_s10  ;;  %12597 = vrot.lane.b32.xlu1 %v12596_v45, %s14215_s10 }
 0x1f2   :  { %2167 = vmatpush1.bf16.msra.mxu0 %v12653_v7  ;;  %v1890_v7 = vrot.slane %v15127_v10, 1 }
 0x1f3   :  { %2168 = vmatprep.subr.bf16.mxu0 %v16964_v39 }
 0x1f5   :  { %12602 = vrot.lane.b32.xlu0 %v12601_v52, %s14215_s10  ;;  %12607 = vrot.lane.b32.xlu1 %v12606_v1, %s14215_s10  ;;  %v1834_v1 = vsel %vm887_vm6, %v1806_v42, %v1807_v40  ;;  %v1893_v42 = vrot.slane %v15157_v13, 1 }
 0x1f6   :  { %2169 = vmatpush1.bf16.msra.mxu0 %v12654_v49  ;;  %v1891_v49 = vrot.slane %v15139_v56, 1 }
 0x1f7   :  { %2170 = vmatprep.subr.bf16.mxu0 %v16964_v39 }
 0x1fa   :  { %2171 = vmatpush1.bf16.msra.mxu0 %v12655_v53 }
 0x1fb   :  { %2172 = vmatprep.subr.bf16.mxu0 %v16964_v39 }
 0x1fe   :  { %2173 = vmatpush1.bf16.msra.mxu0 %v12656_v29 }
 0x1ff   :  { %2174 = vmatprep.subr.bf16.mxu0 %v16964_v39 }
 0x202   :  { %2175 = vmatpush1.bf16.msra.mxu0 %v12657_v33 }
 0x203   :  { %2176 = vmatprep.subr.bf16.mxu0 %v16964_v39 }
 0x206   :  { %2177 = vmatpush1.bf16.msra.mxu0 %v12658_v41 }
 0x207   :  { %2186 = vmatprep.subr.bf16.mxu0 %v16964_v39 }
 0x20a   :  { %2187 = vmatpush2.bf16.msra.mxu0 %v12659_v59 }
 0x20b   :  { %2188 = vmatprep.subr.bf16.mxu0 %v16964_v39 }
 0x20e   :  { %2189 = vmatpush2.bf16.msra.mxu0 %v12660_v25  ;;  %v1910_v25 = vsel %vm16930_vm9, %v1890_v7, %v1891_v49 }
 0x20f   :  { %2190 = vmatprep.subr.bf16.mxu0 %v16964_v39 }
 0x212   :  { %2191 = vmatpush2.bf16.msra.mxu0 %v12661_v57  ;;  %v1911_v57 = vsel %vm16930_vm9, %v1889_v62, %v1890_v7  ;;  %v1908_v62 = vsel %vm16930_vm9, %v1892_v61, %v1893_v42 }
 0x213   :  { %2192 = vmatprep.subr.bf16.mxu0 %v16964_v39  ;;  %v2051_v46 = vpack.c.bf16 %v1910_v25, %v1911_v57 }
 0x216   :  { %2193 = vmatpush2.bf16.msra.mxu0 %v12662_v35  ;;  %v1809_v35 = vrot.slane %v15125_v11, 7 }
 0x25b   :  { %v12573_v20 = vpop.permute.xlu0 %12572  ;;  %v12583_v59 = vpop.permute.xlu1 %12582 }
 0x25c   :  { %v12575_v6 = vunpack.i.h.bf16 %v12573_v20  ;;  %v12574_v37 = vunpack.i.l.bf16 %v12573_v20  ;;  %v12585_v40 = vunpack.i.h.bf16 %v12583_v59  ;;  %v12584_v20 = vunpack.i.l.bf16 %v12583_v59 }
 0x25e   :  { %v2030_v38 = vsel %vm16926_vm2, %v1869_v22, %v12574_v37  ;;  %v2031_v45 = vsel %vm16926_vm2, %v1835_v48, %v12575_v6  ;;  %v1831_v48 = vsel %vm887_vm6, %v1809_v35, %v1810_v12  ;;  %v1832_v22 = vsel %vm887_vm6, %v1808_v28, %v1809_v35 }
 0x25f   :  { %v2046_v18 = vpack.c.bf16 %v2031_v45, %v2030_v38  ;;  %v12578_v52 = vpop.permute.xlu0 %12577  ;;  %v2034_v15 = vsel %vm16926_vm2, %v1832_v22, %v12584_v20  ;;  %v2035_v6 = vsel %vm16926_vm2, %v1831_v48, %v12585_v40  ;;  %v12588_v37 = vpop.permute.xlu1 %12587  ;;  %v1909_v38 = vsel %vm16930_vm9, %v1891_v49, %v1892_v61 }
 0x260   :  { %v12580_v53 = vunpack.i.h.bf16 %v12578_v52  ;;  %v12579_v29 = vunpack.i.l.bf16 %v12578_v52  ;;  %v1956_v45 = vsel %vm1208_vm10, 0.0, %v1908_v62  ;;  %v1812_v28 = vrot.slane %v15141_v0, 7 }
 0x261   :  { %2195 = vmatmul.mubr.bf16.vlgmr.msra.gmra.mxu0 %v2046_v18  ;;  %v12590_v18 = vunpack.i.h.bf16 %v12588_v37  ;;  %v12589_v52 = vunpack.i.l.bf16 %v12588_v37  ;;  %v1895_v49 = vrot.slane %v15173_v51, 1 }
 0x262   :  { %11218 = vmatprep.mubr.msk.bf16.mxu0 %vm16926_vm2, %v2049_v44  ;;  %v2032_v33 = vsel %vm16926_vm2, %v1834_v1, %v12579_v29  ;;  %v2033_v41 = vsel %vm16926_vm2, %v1833_v63, %v12580_v53  ;;  %v1811_v44 = vrot.slane %v15139_v56, 7  ;;  %v2050_v63 = vpack.c.bf16 %v2035_v6, %v2034_v15 }
 0x263   :  { %v2048_v16 = vpack.c.bf16 %v2033_v41, %v2032_v33  ;;  %v2053_v1 = vpack.c.bf16 %v1956_v45, %v1909_v38  ;;  %v1894_v29 = vrot.slane %v15159_v47, 1  ;;  %v1813_v33 = vrot.slane %v15157_v13, 7  ;;  %v12593_v25 = vpop.permute.xlu0 %12592  ;;  %v12598_v38 = vpop.permute.xlu1 %12597 }
 0x264   :  { %v1829_v7 = vsel %vm887_vm6, %v1811_v44, %v1812_v28  ;;  %v1830_v53 = vsel %vm887_vm6, %v1810_v12, %v1811_v44  ;;  %v1814_v12 = vrot.slane %v15159_v47, 7  ;;  %v12595_v40 = vunpack.i.h.bf16 %v12593_v25 }
 0x265   :  { %v2036_v41 = vsel %vm16926_vm2, %v1830_v53, %v12589_v52  ;;  %v2037_v59 = vsel %vm16926_vm2, %v1829_v7, %v12590_v18  ;;  %v1906_v57 = vsel %vm16930_vm9, %v1894_v29, %v1895_v49  ;;  %v1907_v35 = vsel %vm16930_vm9, %v1893_v42, %v1894_v29 }
 0x266   :  { %v1828_v61 = vsel %vm887_vm6, %v1812_v28, %v1813_v33  ;;  %v12594_v20 = vunpack.i.l.bf16 %v12593_v25  ;;  %v1827_v48 = vsel %vm887_vm6, %v1813_v33, %v1814_v12  ;;  %v1896_v15 = vrot.slane %v15175_v34, 1 }
 0x267   :  { %v1877_v62 = vsel %vm912_vm8, 0.0, %v1828_v61  ;;  %v1897_v6 = vrot.slane %v15181_v54, 1  ;;  %v2039_v37 = vsel %vm16926_vm2, %v1827_v48, %v12595_v40  ;;  %v1815_v28 = vrot.slane %v15173_v51, 7  ;;  %v12603_v25 = vpop.permute.xlu0 %12602 }
 0x268   :  { %v2038_v42 = vsel %vm16926_vm2, %v1877_v62, %v12594_v20  ;;  %v1905_v44 = vsel %vm16930_vm9, %v1895_v49, %v1896_v15  ;;  %v12600_v52 = vunpack.i.h.bf16 %v12598_v38  ;;  %v1898_v33 = vrot.slane %v15183_v36, 1 }
 0x269   :  { %2203 = vmatmul.mubr.bf16.gmra.mxu0 %v2048_v16  ;;  %v2052_v16 = vpack.c.bf16 %v2037_v59, %v2036_v41  ;;  %v1904_v45 = vsel %vm16930_vm9, %v1896_v15, %v1897_v6  ;;  %v2054_v18 = vpack.c.bf16 %v2039_v37, %v2038_v42  ;;  %v1826_v29 = vsel %vm887_vm6, %v1814_v12, %v1815_v28 }
 0x26a   :  { %11219 = vmatprep.mubr.msk.bf16.mxu0 %vm16926_vm2, %v2051_v46  ;;  %v2055_v46 = vpack.c.bf16 %v1906_v57, %v1907_v35  ;;  %v2057_v7 = vpack.c.bf16 %v1904_v45, %v1905_v44  ;;  %v1899_v41 = vrot.slane %v15187_v2, 1  ;;  %v1903_v35 = vsel %vm16930_vm9, %v1897_v6, %v1898_v33  ;;  %v12608_v45 = vpop.permute.xlu1 %12607 }
 0x26b   :  { %v1817_v12 = vrot.slane %v15181_v54, 7  ;;  %v1818_v61 = vrot.slane %v15183_v36, 7  ;;  %v12605_v20 = vunpack.i.h.bf16 %v12603_v25 }
 0x26c   :  { %v1902_v57 = vsel %vm16930_vm9, %v1898_v33, %v1899_v41 }
 0x26d   :  { %v2059_v48 = vpack.c.bf16 %v1902_v57, %v1903_v35  ;;  %v1823_v62 = vsel %vm887_vm6, %v1817_v12, %v1818_v61  ;;  %v12668_v57 = vld [vmem:[#allocation5 + $0x70] sm:$0xff]   ;;  %v12669_v35 = vld [vmem:[#allocation5 + $0x68] sm:$0xff]  }
 0x26e   :  { %v2043_v37 = vsel %vm16926_vm2, %v1823_v62, %v12605_v20  ;;  %v15375_v20 = vld [vmem:[#allocation6] sm:$0x3] }
 0x26f   :  { %v12674_v62 = vld [vmem:[#allocation5 + $0xa0] sm:$0xff]  }
 0x271   :  { %2211 = vmatmul.mubr.bf16.gmra.mxu0 %v2050_v63  ;;  %v1816_v63 = vrot.slane %v15175_v34, 7 }
 0x272   :  { %11220 = vmatprep.mubr.msk.bf16.mxu0 %vm16926_vm2, %v2053_v1  ;;  %v12599_v1 = vunpack.i.l.bf16 %v12598_v38 }
 0x273   :  { %v1825_v53 = vsel %vm887_vm6, %v1815_v28, %v1816_v63  ;;  %v1824_v15 = vsel %vm887_vm6, %v1816_v63, %v1817_v12  ;;  %v1819_v28 = vrot.slane %v15187_v2, 7  ;;  %v12670_v12 = vld [vmem:[#allocation5 + $0x60] sm:$0xff]  }
 0x274   :  { %v2040_v49 = vsel %vm16926_vm2, %v1826_v29, %v12599_v1  ;;  %v2041_v59 = vsel %vm16926_vm2, %v1825_v53, %v12600_v52  ;;  %v12609_v52 = vunpack.i.l.bf16 %v12608_v45 }
 0x275   :  { %v2056_v40 = vpack.c.bf16 %v2041_v59, %v2040_v49  ;;  %v1821_v1 = vsel %vm887_vm6, %v1819_v28, %v1820_v17  ;;  %v12664_v49 = vld [vmem:[#allocation5 + $0x90] sm:$0xff]   ;;  %v12665_v59 = vld [vmem:[#allocation5 + $0x88] sm:$0xff]   ;;  %v12666_v17 = vld [vmem:[#allocation5 + $0x80] sm:$0xff]  }
 0x279   :  { %2219 = vmatmul.mubr.bf16.gmra.mxu0 %v2052_v16  ;;  %v1900_v16 = vrot.slane %v15189_v58, 1 }
 0x27a   :  { %11221 = vmatprep.mubr.msk.bf16.mxu0 %vm16926_vm2, %v2055_v46  ;;  %v12604_v46 = vunpack.i.l.bf16 %v12603_v25  ;;  %v12667_v25 = vld [vmem:[#allocation5 + $0x78] sm:$0xff]  }
 0x27b   :  { %v1916_v6 = vsel %vm16930_vm9, %v1900_v16, %v1885_v23  ;;  %v1901_v44 = vsel %vm16930_vm9, %v1899_v41, %v1900_v16  ;;  %v12663_v41 = vld [vmem:[#allocation5 + $0x98] sm:$0xff]   ;;  %v12672_v16 = vld [vmem:[#allocation5 + $0xb0] sm:$0xff]  }
 0x27c   :  { %v2042_v42 = vsel %vm16926_vm2, %v1824_v15, %v12604_v46  ;;  %v1964_v38 = vsel %vm1216_vm11, 0.0, %v1916_v6  ;;  %2568 = vmatpush1.bf16.msra.mxu1 %v12663_v41  ;;  %v16967_v46 = vld [vmem:[#allocation64_spill] sm:$0xff] }
 0x27d   :  { %v2058_v63 = vpack.c.bf16 %v2043_v37, %v2042_v42  ;;  %v2061_v23 = vpack.c.bf16 %v1964_v38, %v1901_v44  ;;  %2569 = vmatprep.subr.bf16.mxu1 %v16964_v39 }
 0x280   :  { %2570 = vmatpush1.bf16.msra.mxu1 %v12664_v49 }
 0x281   :  { %2227 = vmatmul.mubr.bf16.gmra.mxu0 %v2054_v18  ;;  %v12610_v18 = vunpack.i.h.bf16 %v12608_v45  ;;  %2571 = vmatprep.subr.bf16.mxu1 %v16964_v39 }
 0x282   :  { %11222 = vmatprep.mubr.msk.bf16.mxu0 %vm16926_vm2, %v2057_v7  ;;  %v1822_v7 = vsel %vm887_vm6, %v1818_v61, %v1819_v28  ;;  %v12671_v61 = vld [vmem:[#allocation5 + $0xb8] sm:$0xff]  }
 0x283   :  { %v2044_v53 = vsel %vm16926_vm2, %v1822_v7, %v12609_v52  ;;  %v2045_v29 = vsel %vm16926_vm2, %v1821_v1, %v12610_v18 }
 0x284   :  { %v2060_v33 = vpack.c.bf16 %v2045_v29, %v2044_v53  ;;  %2572 = vmatpush1.bf16.msra.mxu1 %v12665_v59 }
 0x285   :  { %2573 = vmatprep.subr.bf16.mxu1 %v16964_v39 }
 0x288   :  { %2574 = vmatpush1.bf16.msra.mxu1 %v12666_v17 }
 0x289   :  { %2235 = vmatmul.mubr.bf16.gmra.mxu0 %v2056_v40  ;;  %2575 = vmatprep.subr.bf16.mxu1 %v16964_v39  ;;  %v12673_v40 = vld [vmem:[#allocation5 + $0xa8] sm:$0xff]  }
 0x28a   :  { %11223 = vmatprep.mubr.msk.bf16.mxu0 %vm16926_vm2, %v2059_v48  ;;  %v15379_v48 = vrot.slane %v15375_v20, %v16967_v46 }
 0x28c   :  { %2576 = vmatpush1.bf16.msra.mxu1 %v12667_v25 }
 0x28d   :  { %2577 = vmatprep.subr.bf16.mxu1 %v16964_v39 }
 0x290   :  { %2578 = vmatpush1.bf16.msra.mxu1 %v12668_v57 }
 0x291   :  { %2243 = vmatmul.mubr.bf16.gmra.mxu0 %v2058_v63  ;;  %2579 = vmatprep.subr.bf16.mxu1 %v16964_v39 }
 0x292   :  { %11224 = vmatprep.mubr.msk.bf16.mxu0 %vm16926_vm2, %v2061_v23 }
 0x294   :  { %2580 = vmatpush1.bf16.msra.mxu1 %v12669_v35 }
 0x295   :  { %2581 = vmatprep.subr.bf16.mxu1 %v16964_v39 }
 0x298   :  { %2582 = vmatpush1.bf16.msra.mxu1 %v12670_v12 }
 0x299   :  { %2251 = vmatmul.mubr.bf16.gmra.mxu0 %v2060_v33  ;;  %2591 = vmatprep.subr.bf16.mxu1 %v16964_v39 }
 0x29c   :  { %2592 = vmatpush2.bf16.msra.mxu1 %v12671_v61 }
 0x29d   :  { %2593 = vmatprep.subr.bf16.mxu1 %v16964_v39 }
 0x2a0   :  { %2594 = vmatpush2.bf16.msra.mxu1 %v12672_v16 }
 0x2a1   :  { %2595 = vmatprep.subr.bf16.mxu1 %v16964_v39 }
 0x2a4   :  { %2596 = vmatpush2.bf16.msra.mxu1 %v12673_v40 }
 0x2a5   :  { %2597 = vmatprep.subr.bf16.mxu1 %v16964_v39 }
 0x2a8   :  { %2598 = vmatpush2.bf16.msra.mxu1 %v12674_v62 }
 0x321   :  { %v2196_v15 = vpop.f32.mrf.mxu0 }
 0x322   :  { %v2197_v6 = vadd.f32 %v2196_v15, %v15379_v48 }
 0x323   :  { %v2198_v42 = vpop.f32.mrf.mxu0 }
 0x324   :  { %v15382_v38 = vmax.f32 %v2197_v6, 0.0 }
 0x325   :  { %v2199_v37 = vpop.f32.mrf.mxu0 }
 0x326   :  { %v2200_v45 = vadd.f32 %v2199_v37, %v15379_v48  ;;  %v16911_v18 = vrot.slane %v15382_v38, 7  ;;  %v16912_v17 = vrot.slane %v15382_v38, 1 }
 0x327   :  { %v2201_v44 = vpop.f32.mrf.mxu0 }
 0x328   :  { %v2260_v28 = vmax.f32 %v2200_v45, 0.0 }
 0x329   :  { %v2204_v63 = vpop.f32.mrf.mxu0 }
 0x32a   :  { %v2276_v52 = vrot.slane %v2260_v28, 7  ;;  %v2205_v23 = vadd.f32 %v2204_v63, %v15379_v48  ;;  %v12611_v1 = vpack.i.bf16 %v2260_v28, %v15382_v38  ;;  %v2324_v29 = vrot.slane %v2260_v28, 1 }
 0x32b   :  { %v2206_v7 = vpop.f32.mrf.mxu0 }
 0x32c   :  { %v2261_v53 = vmax.f32 %v2205_v23, 0.0  ;;  %12612 = vrot.lane.b32.xlu0 %v12611_v1, %s14215_s10  ;;  %v15393_v33 = vsel %vm887_vm6, %v16911_v18, %v2276_v52  ;;  %v2353_v61 = vsel %vm16930_vm9, %v16912_v17, %v2324_v29 }
 0x32d   :  { %v2207_v41 = vpop.f32.mrf.mxu0 }
 0x32e   :  { %v2277_v49 = vrot.slane %v2261_v53, 7  ;;  %v2208_v59 = vadd.f32 %v2207_v41, %v15379_v48  ;;  %v2325_v25 = vrot.slane %v2261_v53, 1 }
 0x32f   :  { %v2209_v57 = vpop.f32.mrf.mxu0 }
 0x330   :  { %v2262_v35 = vmax.f32 %v2208_v59, 0.0  ;;  %v2352_v12 = vsel %vm16930_vm9, %v2324_v29, %v2325_v25  ;;  %v15405_v16 = vsel %vm887_vm6, %v2276_v52, %v2277_v49 }
 0x331   :  { %v2212_v40 = vpop.f32.mrf.mxu0  ;;  %v2452_v62 = vpack.c.bf16 %v2352_v12, %v2353_v61 }
 0x332   :  { %v2278_v15 = vrot.slane %v2262_v35, 7  ;;  %v2326_v6 = vrot.slane %v2262_v35, 1  ;;  %v2213_v42 = vadd.f32 %v2212_v40, %v15379_v48  ;;  %v12616_v37 = vpack.i.bf16 %v2262_v35, %v2261_v53 }
 0x333   :  { %v2214_v45 = vpop.f32.mrf.mxu0  ;;  %11237 = vmatprep.mubr.msk.bf16.mxu1 %vm16926_vm2, %v2452_v62 }
 0x334   :  { %v2263_v44 = vmax.f32 %v2213_v42, 0.0  ;;  %v15411_v28 = vsel %vm16930_vm9, %v2325_v25, %v2326_v6  ;;  %12617 = vrot.lane.b32.xlu1 %v12616_v37, %s14215_s10  ;;  %v15416_v63 = vsel %vm887_vm6, %v2277_v49, %v2278_v15 }
 0x335   :  { %v2215_v52 = vpop.f32.mrf.mxu0 }
 0x336   :  { %v2279_v23 = vrot.slane %v2263_v44, 7  ;;  %v2327_v1 = vrot.slane %v2263_v44, 1  ;;  %v2216_v7 = vadd.f32 %v2215_v52, %v15379_v48 }
 0x337   :  { %v2217_v53 = vpop.f32.mrf.mxu0 }
 0x338   :  { %v15421_v29 = vsel %vm16930_vm9, %v2326_v6, %v2327_v1  ;;  %v2264_v41 = vmax.f32 %v2216_v7, 0.0  ;;  %v15425_v59 = vsel %vm887_vm6, %v2278_v15, %v2279_v23 }
 0x339   :  { %v2220_v25 = vpop.f32.mrf.mxu0 }
 0x33a   :  { %v2280_v57 = vrot.slane %v2264_v41, 7  ;;  %v2328_v35 = vrot.slane %v2264_v41, 1  ;;  %v2221_v12 = vadd.f32 %v2220_v25, %v15379_v48  ;;  %v12621_v61 = vpack.i.bf16 %v2264_v41, %v2263_v44 }
 0x33b   :  { %v2222_v40 = vpop.f32.mrf.mxu0 }
 0x33c   :  { %v15432_v62 = vsel %vm16930_vm9, %v2327_v1, %v2328_v35  ;;  %v2265_v6 = vmax.f32 %v2221_v12, 0.0  ;;  %12622 = vrot.lane.b32.xlu0 %v12621_v61, %s14215_s10  ;;  %v15437_v15 = vsel %vm887_vm6, %v2279_v23, %v2280_v57 }
 0x33d   :  { %v2223_v42 = vpop.f32.mrf.mxu0 }
 0x33e   :  { %v2281_v37 = vrot.slane %v2265_v6, 7  ;;  %v2329_v45 = vrot.slane %v2265_v6, 1  ;;  %v2224_v52 = vadd.f32 %v2223_v42, %v15379_v48 }
 0x33f   :  { %v2225_v7 = vpop.f32.mrf.mxu0 }
 0x340   :  { %v15442_v44 = vsel %vm16930_vm9, %v2328_v35, %v2329_v45  ;;  %v2266_v53 = vmax.f32 %v2224_v52, 0.0  ;;  %v15446_v1 = vsel %vm887_vm6, %v2280_v57, %v2281_v37 }
 0x341   :  { %v2228_v41 = vpop.f32.mrf.mxu0 }
 0x342   :  { %v2282_v25 = vrot.slane %v2266_v53, 7  ;;  %v2330_v12 = vrot.slane %v2266_v53, 1  ;;  %v2229_v61 = vadd.f32 %v2228_v41, %v15379_v48  ;;  %v12626_v40 = vpack.i.bf16 %v2266_v53, %v2265_v6 }
 0x343   :  { %v2230_v42 = vpop.f32.mrf.mxu0 }
 0x344   :  { %v15453_v7 = vsel %vm16930_vm9, %v2329_v45, %v2330_v12  ;;  %v2267_v35 = vmax.f32 %v2229_v61, 0.0  ;;  %12627 = vrot.lane.b32.xlu1 %v12626_v40, %s14215_s10  ;;  %v15458_v57 = vsel %vm887_vm6, %v2281_v37, %v2282_v25 }
 0x345   :  { %v2231_v52 = vpop.f32.mrf.mxu0 }
 0x346   :  { %v2283_v49 = vrot.slane %v2267_v35, 7  ;;  %v2331_v23 = vrot.slane %v2267_v35, 1  ;;  %v2232_v18 = vadd.f32 %v2231_v52, %v15379_v48 }
 0x347   :  { %v2233_v17 = vpop.f32.mrf.mxu0 }
 0x348   :  { %v2346_v6 = vsel %vm16930_vm9, %v2330_v12, %v2331_v23  ;;  %v2268_v53 = vmax.f32 %v2232_v18, 0.0  ;;  %v15465_v45 = vsel %vm887_vm6, %v2282_v25, %v2283_v49 }
 0x349   :  { %v15469_v41 = vsel %vm1208_vm10, 0.0, %v2346_v6  ;;  %v2236_v37 = vpop.f32.mrf.mxu0 }
 0x34a   :  { %v2284_v61 = vrot.slane %v2268_v53, 7  ;;  %v2332_v40 = vrot.slane %v2268_v53, 1  ;;  %v2237_v42 = vadd.f32 %v2236_v37, %v15379_v48  ;;  %v12631_v14 = vpack.i.bf16 %v2268_v53, %v2267_v35 }
 0x34b   :  { %v2238_v52 = vpop.f32.mrf.mxu0 }
 0x34c   :  { %v15476_v18 = vsel %vm16930_vm9, %v2331_v23, %v2332_v40  ;;  %v2269_v25 = vmax.f32 %v2237_v42, 0.0  ;;  %12632 = vrot.lane.b32.xlu0 %v12631_v14, %s14215_s10  ;;  %v15481_v12 = vsel %vm887_vm6, %v2283_v49, %v2284_v61 }
 0x34d   :  { %v2239_v6 = vpop.f32.mrf.mxu0 }
 0x34e   :  { %v2285_v5 = vrot.slane %v2269_v25, 7  ;;  %v2333_v30 = vrot.slane %v2269_v25, 1  ;;  %v2240_v35 = vadd.f32 %v2239_v6, %v15379_v48 }
 0x34f   :  { %v2241_v53 = vpop.f32.mrf.mxu0 }
 0x350   :  { %v15486_v37 = vsel %vm16930_vm9, %v2332_v40, %v2333_v30  ;;  %v2270_v52 = vmax.f32 %v2240_v35, 0.0  ;;  %v15490_v23 = vsel %vm887_vm6, %v2284_v61, %v2285_v5 }
 0x351   :  { %v2244_v14 = vpop.f32.mrf.mxu0 }
 0x352   :  { %v2286_v42 = vrot.slane %v2270_v52, 7  ;;  %v2334_v17 = vrot.slane %v2270_v52, 1  ;;  %v2245_v50 = vadd.f32 %v2244_v14, %v15379_v48  ;;  %v12636_v43 = vpack.i.bf16 %v2270_v52, %v2269_v25 }
 0x353   :  { %v2246_v6 = vpop.f32.mrf.mxu0 }
 0x354   :  { %v15497_v53 = vsel %vm16930_vm9, %v2333_v30, %v2334_v17  ;;  %v2271_v40 = vmax.f32 %v2245_v50, 0.0  ;;  %12637 = vrot.lane.b32.xlu1 %v12636_v43, %s14215_s10  ;;  %v15502_v61 = vsel %vm887_vm6, %v2285_v5, %v2286_v42 }
 0x355   :  { %v2247_v35 = vpop.f32.mrf.mxu0 }
 0x356   :  { %v2287_v9 = vrot.slane %v2271_v40, 7  ;;  %v2335_v49 = vrot.slane %v2271_v40, 1  ;;  %v2248_v8 = vadd.f32 %v2247_v35, %v15379_v48 }
 0x357   :  { %v2249_v46 = vpop.f32.mrf.mxu0 }
 0x358   :  { %v15507_v25 = vsel %vm16930_vm9, %v2334_v17, %v2335_v49  ;;  %v2272_v52 = vmax.f32 %v2248_v8, 0.0  ;;  %v15511_v50 = vsel %vm887_vm6, %v2286_v42, %v2287_v9 }
 0x359   :  { %v2252_v43 = vpop.f32.mrf.mxu0 }
 0x35a   :  { %v2288_v5 = vrot.slane %v2272_v52, 7  ;;  %v2336_v14 = vrot.slane %v2272_v52, 1  ;;  %v2253_v6 = vadd.f32 %v2252_v43, %v15379_v48  ;;  %v12641_v26 = vpack.i.bf16 %v2272_v52, %v2271_v40 }
 0x35b   :  { %v2254_v35 = vpop.f32.mrf.mxu0 }
 0x35c   :  { %v15518_v46 = vsel %vm16930_vm9, %v2335_v49, %v2336_v14  ;;  %v15520_v17 = vmax.f32 %v2253_v6, 0.0  ;;  %12642 = vrot.lane.b32.xlu0 %v12641_v26, %s14215_s10  ;;  %v15525_v8 = vsel %vm887_vm6, %v2287_v9, %v2288_v5  ;;  %v16968_v35 = vrot.slane %v15382_v38, 1 }
 0x35d   :  { %v2255_v42 = vpop.f32.mrf.mxu0 }
 0x35e   :  { %v16924_v30 = vrot.slane %v15520_v17, 7  ;;  %v2337_v4 = vrot.slane %v15520_v17, 1  ;;  %v2256_v40 = vadd.f32 %v2255_v42, %v15379_v48 }
 0x35f   :  { %v2257_v52 = vpop.f32.mrf.mxu0 }
 0x360   :  { %v15532_v49 = vsel %vm16930_vm9, %v2336_v14, %v2337_v4  ;;  %v15534_v43 = vmax.f32 %v2256_v40, 0.0  ;;  %v15540_v26 = vsel %vm887_vm6, %v2288_v5, %v16924_v30  ;;  %v16969_v52 = vrot.slane %v15382_v38, 7 }
 0x361   :  { %v2464_v9 = vpack.c.bf16 %v15532_v49, %v15518_v46  ;;  %v16970_v38 = vpack.c.bf16 %v15421_v29, %v15411_v28 }
 0x362   :  { %v2338_v6 = vrot.slane %v15534_v43, 1  ;;  %v12646_v48 = vpack.i.bf16 %v15534_v43, %v15520_v17  ;;  %v2290_v40 = vrot.slane %v15534_v43, 7 }
 0x364   :  { %v15549_v14 = vsel %vm16930_vm9, %v2337_v4, %v2338_v6  ;;  %v2354_v42 = vsel %vm16930_vm9, %v2338_v6, %v16968_v35  ;;  %12647 = vrot.lane.b32.xlu1 %v12646_v48, %s14215_s10  ;;  %v2306_v4 = vsel %vm887_vm6, %v2290_v40, %v16969_v52 }
 0x365   :  { %v2370_v5 = vsel %vm1216_vm11, 0.0, %v2354_v42  ;;  %v2307_v6 = vsel %vm904_vm7, 0.0, %v2306_v4 }
 0x366   :  { %v2466_v46 = vpack.c.bf16 %v2370_v5, %v15549_v14 }
 0x39e   :  { %v12613_v49 = vpop.permute.xlu0 %12612 }
 0x39f   :  { %v12615_v30 = vunpack.i.h.bf16 %v12613_v49  ;;  %v12614_v3 = vunpack.i.l.bf16 %v12613_v49 }
 0x3a1   :  { %v2435_v48 = vsel %vm16926_vm2, %v2307_v6, %v12614_v3  ;;  %v2436_v14 = vsel %vm16926_vm2, %v15393_v33, %v12615_v30  ;;  %v16971_v33 = vpack.c.bf16 %v15442_v44, %v15432_v62 }
 0x3a2   :  { %v2451_v35 = vpack.c.bf16 %v2436_v14, %v2435_v48 }
 0x3a4   :  { %2600 = vmatmul.mubr.bf16.vlgmr.msra.gmra.mxu1 %v2451_v35 }
 0x3a5   :  { %11238 = vmatprep.mubr.msk.bf16.mxu1 %vm16926_vm2, %v16970_v38 }
 0x3a6   :  { %v12618_v42 = vpop.permute.xlu1 %12617 }
 0x3a7   :  { %v12620_v5 = vunpack.i.h.bf16 %v12618_v42  ;;  %v12619_v52 = vunpack.i.l.bf16 %v12618_v42 }
 0x3a9   :  { %v2437_v49 = vsel %vm16926_vm2, %v15405_v16, %v12619_v52  ;;  %v2438_v4 = vsel %vm16926_vm2, %v15416_v63, %v12620_v5  ;;  %v16972_v63 = vpack.c.bf16 %v15469_v41, %v15453_v7  ;;  %v2315_v5 = vsel %vm912_vm8, 0.0, %v15465_v45 }
 0x3aa   :  { %v2453_v3 = vpack.c.bf16 %v2438_v4, %v2437_v49  ;;  %v16974_v49 = vpack.c.bf16 %v15507_v25, %v15497_v53 }
 0x3ac   :  { %2608 = vmatmul.mubr.bf16.gmra.mxu1 %v2453_v3 }
 0x3ad   :  { %11239 = vmatprep.mubr.msk.bf16.mxu1 %vm16926_vm2, %v16971_v33 }
 0x3ae   :  { %v12623_v30 = vpop.permute.xlu0 %12622 }
 0x3af   :  { %v12625_v28 = vunpack.i.h.bf16 %v12623_v30  ;;  %v12624_v29 = vunpack.i.l.bf16 %v12623_v30 }
 0x3b1   :  { %v2439_v6 = vsel %vm16926_vm2, %v15425_v59, %v12624_v29  ;;  %v2440_v48 = vsel %vm16926_vm2, %v15437_v15, %v12625_v28  ;;  %v16973_v15 = vpack.c.bf16 %v15486_v37, %v15476_v18 }
 0x3b2   :  { %v2455_v16 = vpack.c.bf16 %v2440_v48, %v2439_v6 }
 0x3b4   :  { %2616 = vmatmul.mubr.bf16.gmra.mxu1 %v2455_v16 }
 0x3b5   :  { %11240 = vmatprep.mubr.msk.bf16.mxu1 %vm16926_vm2, %v16972_v63  ;;  %v16976_v63 = vld [vmem:[#allocation63_spill] sm:$0xff] }
 0x3b6   :  { %v12628_v14 = vpop.permute.xlu1 %12627 }
 0x3b7   :  { %v12630_v62 = vunpack.i.h.bf16 %v12628_v14  ;;  %v12629_v44 = vunpack.i.l.bf16 %v12628_v14 }
 0x3b9   :  { %v2441_v35 = vsel %vm16926_vm2, %v15446_v1, %v12629_v44  ;;  %v2442_v38 = vsel %vm16926_vm2, %v15458_v57, %v12630_v62 }
 0x3ba   :  { %v2457_v59 = vpack.c.bf16 %v2442_v38, %v2441_v35 }
 0x3bc   :  { %2624 = vmatmul.mubr.bf16.gmra.mxu1 %v2457_v59 }
 0x3bd   :  { %11241 = vmatprep.mubr.msk.bf16.mxu1 %vm16926_vm2, %v16973_v15 }
 0x3be   :  { %v12633_v42 = vpop.permute.xlu0 %12632 }
 0x3bf   :  { %v12635_v7 = vunpack.i.h.bf16 %v12633_v42  ;;  %v12634_v41 = vunpack.i.l.bf16 %v12633_v42 }
 0x3c1   :  { %v2443_v52 = vsel %vm16926_vm2, %v2315_v5, %v12634_v41  ;;  %v2444_v1 = vsel %vm16926_vm2, %v15481_v12, %v12635_v7 }
 0x3c2   :  { %v2459_v57 = vpack.c.bf16 %v2444_v1, %v2443_v52 }
 0x3c4   :  { %2632 = vmatmul.mubr.bf16.gmra.mxu1 %v2459_v57 }
 0x3c5   :  { %11242 = vmatprep.mubr.msk.bf16.mxu1 %vm16926_vm2, %v16974_v49 }
 0x3c6   :  { %v12638_v18 = vpop.permute.xlu1 %12637 }
 0x3c7   :  { %v12640_v37 = vunpack.i.h.bf16 %v12638_v18  ;;  %v12639_v4 = vunpack.i.l.bf16 %v12638_v18 }
 0x3c9   :  { %v2445_v3 = vsel %vm16926_vm2, %v15490_v23, %v12639_v4  ;;  %v2446_v45 = vsel %vm16926_vm2, %v15502_v61, %v12640_v37 }
 0x3ca   :  { %v2461_v33 = vpack.c.bf16 %v2446_v45, %v2445_v3 }
 0x3cc   :  { %2640 = vmatmul.mubr.bf16.gmra.mxu1 %v2461_v33 }
 0x3cd   :  { %11243 = vmatprep.mubr.msk.bf16.mxu1 %vm16926_vm2, %v2464_v9  ;;  %v16975_v9 = vrot.slane %v15520_v17, 7 }
 0x3ce   :  { %v12643_v12 = vpop.permute.xlu0 %12642 }
 0x3cf   :  { %v12645_v30 = vunpack.i.h.bf16 %v12643_v12  ;;  %v12644_v28 = vunpack.i.l.bf16 %v12643_v12  ;;  %v2291_v48 = vsel %vm887_vm6, %v16975_v9, %v2290_v40 }
 0x3d1   :  { %v2447_v53 = vsel %vm16926_vm2, %v15511_v50, %v12644_v28  ;;  %v2448_v25 = vsel %vm16926_vm2, %v15525_v8, %v12645_v30 }
 0x3d2   :  { %v2463_v29 = vpack.c.bf16 %v2448_v25, %v2447_v53 }
 0x3d4   :  { %2648 = vmatmul.mubr.bf16.gmra.mxu1 %v2463_v29 }
 0x3d5   :  { %11244 = vmatprep.mubr.msk.bf16.mxu1 %vm16926_vm2, %v2466_v46  ;;  %v15630_v46 = vrot.slane %v15375_v20, %v16976_v63 }
 0x3d6   :  { %v12648_v23 = vpop.permute.xlu1 %12647 }
 0x3d7   :  { %v12650_v6 = vunpack.i.h.bf16 %v12648_v23  ;;  %v12649_v61 = vunpack.i.l.bf16 %v12648_v23 }
 0x3d9   :  { %v2449_v50 = vsel %vm16926_vm2, %v15540_v26, %v12649_v61  ;;  %v2450_v16 = vsel %vm16926_vm2, %v2291_v48, %v12650_v6 }
 0x3da   :  { %v2465_v8 = vpack.c.bf16 %v2450_v16, %v2449_v50 }
 0x3dc   :  { %2656 = vmatmul.mubr.bf16.gmra.mxu1 %v2465_v8 }
 0x464   :  { %v2601_v14 = vpop.f32.mrf.mxu1 }
 0x465   :  { %v2602_v62 = vadd.f32 %v2601_v14, %v15630_v46 }
 0x466   :  { %v2603_v43 = vpop.f32.mrf.mxu1 }
 0x467   :  { %v2664_v17 = vadd.f32 %v2602_v62, %v15101_v27 }
 0x468   :  { %v2604_v44 = vpop.f32.mrf.mxu1 }
 0x469   :  { %v15634_v35 = vmax.f32 %v2664_v17, 0.0  ;;  %v2605_v40 = vadd.f32 %v2604_v44, %v15630_v46 }
 0x46a   :  { %v2606_v26 = vpop.f32.mrf.mxu1 }
 0x46b   :  { %v2665_v38 = vadd.f32 %v2605_v40, %v15103_v55 }
 0x46c   :  { %v2609_v59 = vpop.f32.mrf.mxu1 }
 0x46d   :  { %v15638_v15 = vmax.f32 %v2665_v38, 0.0  ;;  %v2610_v20 = vadd.f32 %v2609_v59, %v15630_v46 }
 0x46e   :  { %v2611_v42 = vpop.f32.mrf.mxu1 }
 0x46f   :  { %v2666_v7 = vadd.f32 %v2610_v20, %v15113_v21 }
 0x470   :  { %v2612_v41 = vpop.f32.mrf.mxu1 }
 0x471   :  { %v15642_v5 = vmax.f32 %v2666_v7, 0.0  ;;  %v2613_v27 = vadd.f32 %v2612_v41, %v15630_v46 }
 0x472   :  { %v2614_v52 = vpop.f32.mrf.mxu1 }
 0x473   :  { %v2667_v1 = vadd.f32 %v2613_v27, %v15115_v31 }
 0x474   :  { %v2617_v57 = vpop.f32.mrf.mxu1 }
 0x475   :  { %v15646_v49 = vmax.f32 %v2667_v1, 0.0  ;;  %v2618_v55 = vadd.f32 %v2617_v57, %v15630_v46 }
 0x476   :  { %v2619_v18 = vpop.f32.mrf.mxu1 }
 0x477   :  { %v2668_v37 = vadd.f32 %v2618_v55, %v15125_v11 }
 0x478   :  { %v2620_v4 = vpop.f32.mrf.mxu1 }
 0x479   :  { %v15650_v3 = vmax.f32 %v2668_v37, 0.0  ;;  %v2621_v21 = vadd.f32 %v2620_v4, %v15630_v46 }
 0x47a   :  { %v2622_v45 = vpop.f32.mrf.mxu1 }
 0x47b   :  { %v2669_v33 = vadd.f32 %v2621_v21, %v15127_v10 }
 0x47c   :  { %v2625_v12 = vpop.f32.mrf.mxu1 }
 0x47d   :  { %v15654_v30 = vmax.f32 %v2669_v33, 0.0  ;;  %v2626_v31 = vadd.f32 %v2625_v12, %v15630_v46 }
 0x47e   :  { %v2627_v28 = vpop.f32.mrf.mxu1 }
 0x47f   :  { %v2670_v53 = vadd.f32 %v2626_v31, %v15139_v56 }
 0x480   :  { %v2628_v25 = vpop.f32.mrf.mxu1 }
 0x481   :  { %v15658_v29 = vmax.f32 %v2670_v53, 0.0  ;;  %v2629_v11 = vadd.f32 %v2628_v25, %v15630_v46 }
 0x482   :  { %v2630_v23 = vpop.f32.mrf.mxu1 }
 0x483   :  { %v2671_v6 = vadd.f32 %v2629_v11, %v15141_v0 }
 0x484   :  { %v2633_v61 = vpop.f32.mrf.mxu1 }
 0x485   :  { %v15662_v9 = vmax.f32 %v2671_v6, 0.0  ;;  %v2634_v10 = vadd.f32 %v2633_v61, %v15630_v46 }
 0x486   :  { %v2635_v48 = vpop.f32.mrf.mxu1 }
 0x487   :  { %v2672_v50 = vadd.f32 %v2634_v10, %v15157_v13 }
 0x488   :  { %v2636_v16 = vpop.f32.mrf.mxu1 }
 0x489   :  { %v15666_v8 = vmax.f32 %v2672_v50, 0.0  ;;  %v2637_v56 = vadd.f32 %v2636_v16, %v15630_v46 }
 0x48a   :  { %v2638_v14 = vpop.f32.mrf.mxu1 }
 0x48b   :  { %v2673_v62 = vadd.f32 %v2637_v56, %v15159_v47 }
 0x48c   :  { %v2641_v43 = vpop.f32.mrf.mxu1 }
 0x48d   :  { %v15670_v17 = vmax.f32 %v2673_v62, 0.0  ;;  %v2642_v0 = vadd.f32 %v2641_v43, %v15630_v46 }
 0x48e   :  { %v2643_v44 = vpop.f32.mrf.mxu1 }
 0x48f   :  { %v2674_v40 = vadd.f32 %v2642_v0, %v15173_v51 }
 0x490   :  { %v2644_v26 = vpop.f32.mrf.mxu1 }
 0x491   :  { %v15674_v38 = vmax.f32 %v2674_v40, 0.0  ;;  %v2645_v13 = vadd.f32 %v2644_v26, %v15630_v46 }
 0x492   :  { %v2646_v59 = vpop.f32.mrf.mxu1 }
 0x493   :  { %v2675_v20 = vadd.f32 %v2645_v13, %v15175_v34 }
 0x494   :  { %v2649_v42 = vpop.f32.mrf.mxu1 }
 0x495   :  { %v15678_v7 = vmax.f32 %v2675_v20, 0.0  ;;  %v2650_v47 = vadd.f32 %v2649_v42, %v15630_v46 }
 0x496   :  { %v2651_v41 = vpop.f32.mrf.mxu1 }
 0x497   :  { %v2676_v27 = vadd.f32 %v2650_v47, %v15181_v54 }
 0x498   :  { %v2652_v52 = vpop.f32.mrf.mxu1 }
 0x499   :  { %v15682_v1 = vmax.f32 %v2676_v27, 0.0  ;;  %v2653_v51 = vadd.f32 %v2652_v52, %v15630_v46 }
 0x49a   :  { %v2654_v57 = vpop.f32.mrf.mxu1 }
 0x49b   :  { %v2677_v55 = vadd.f32 %v2653_v51, %v15183_v36 }
 0x49c   :  { %v2657_v18 = vpop.f32.mrf.mxu1 }
 0x49d   :  { %v15686_v37 = vmax.f32 %v2677_v55, 0.0  ;;  %v2658_v34 = vadd.f32 %v2657_v18, %v15630_v46 }
 0x49e   :  { %v2659_v4 = vpop.f32.mrf.mxu1 }
 0x49f   :  { %v2678_v21 = vadd.f32 %v2658_v34, %v15187_v2 }
 0x4a0   :  { %v2660_v45 = vpop.f32.mrf.mxu1 }
 0x4a1   :  { %v15690_v33 = vmax.f32 %v2678_v21, 0.0  ;;  %v2661_v54 = vadd.f32 %v2660_v45, %v15630_v46 }
 0x4a2   :  { %v2662_v12 = vpop.f32.mrf.mxu1 }
 0x4a3   :  { %v2679_v31 = vadd.f32 %v2661_v54, %v15189_v58 }
 0x4a5   :  { %v15694_v28 = vmax.f32 %v2679_v31, 0.0 }
 0x4a6   :  { %14187 = dma.done.wait [#allocation15 + $0x5], 5120 }
 0x4a7   :  { %14188 = vsyncadd [#allocation15 + $0x5], 4294962176  ;;  %v12675_v36 = vpack.i.bf16 %v15638_v15, %v15634_v35  ;;  %v12685_v53 = vpack.i.bf16 %v15654_v30, %v15650_v3 }
 0x4a8   :  { %14189 = dma.done.wait [#allocation15 + $0x6], 48 }
 0x4a9   :  { %14190 = vsyncadd [#allocation15 + $0x6], 4294967248  ;;  %3076 = vmatprep.subr.bf16.mxu0 %v16964_v39  ;;  %12676 = vrot.lane.b32.xlu0 %v12675_v36, %s14215_s10  ;;  %v12680_v2 = vpack.i.bf16 %v15646_v49, %v15642_v5  ;;  %v12690_v58 = vpack.i.bf16 %v15662_v9, %v15658_v29  ;;  %v2832_v46 = vrot.slane %v15634_v35, 1  ;;  %v2833_v25 = vrot.slane %v15638_v15, 1  ;;  %v12715_v50 = vld [vmem:[#allocation7 + $0x38] sm:$0xff]   ;;  %v12716_v16 = vld [vmem:[#allocation7 + $0x30] sm:$0xff]  }
 0x4aa   :  { %12686 = vrot.lane.b32.xlu1 %v12685_v53, %s14215_s10  ;;  %v2834_v11 = vrot.slane %v15642_v5, 1  ;;  %v12695_v61 = vpack.i.bf16 %v15670_v17, %v15666_v8  ;;  %v12700_v10 = vpack.i.bf16 %v15678_v7, %v15674_v38  ;;  %3077 = vmatpush1.bf16.msra.mxu0 %v12715_v50  ;;  %v12705_v56 = vpack.i.bf16 %v15686_v37, %v15682_v1  ;;  %v12717_v62 = vld [vmem:[#allocation7 + $0x28] sm:$0xff]   ;;  %v12718_v43 = vld [vmem:[#allocation7 + $0x20] sm:$0xff]   ;;  %v12719_v0 = vld [vmem:[#allocation7 + $0x18] sm:$0xff]  }
 0x4ab   :  { %v2862_v6 = vsel %vm16930_vm9, %v2832_v46, %v2833_v25  ;;  %v12710_v14 = vpack.i.bf16 %v15694_v28, %v15690_v33  ;;  %3078 = vmatprep.subr.bf16.mxu0 %v16964_v39  ;;  %v12720_v44 = vld [vmem:[#allocation7 + $0x10] sm:$0xff]   ;;  %v12721_v40 = vld [vmem:[#allocation7 + $0x8] sm:$0xff]   ;;  %v12722_v26 = vld [vmem:[#allocation7] sm:$0xff]   ;;  %v2784_v47 = vrot.slane %v15634_v35, 7  ;;  %v2799_v41 = vrot.slane %v15694_v28, 7 }
 0x4ac   :  { %v2861_v23 = vsel %vm16930_vm9, %v2833_v25, %v2834_v11  ;;  %v12723_v13 = vld [vmem:[#allocation7 + $0x58] sm:$0xff]   ;;  %v12724_v59 = vld [vmem:[#allocation7 + $0x50] sm:$0xff]   ;;  %v12725_v20 = vld [vmem:[#allocation7 + $0x48] sm:$0xff]   ;;  %v2785_v27 = vrot.slane %v15638_v15, 7  ;;  %v2835_v52 = vrot.slane %v15646_v49, 1  ;;  %v2836_v51 = vrot.slane %v15650_v3, 1 }
 0x4ad   :  { %12681 = vrot.lane.b32.xlu0 %v12680_v2, %s14215_s10  ;;  %v2961_v48 = vpack.c.bf16 %v2861_v23, %v2862_v6  ;;  %v12726_v42 = vld [vmem:[#allocation7 + $0x40] sm:$0xff]   ;;  %v2815_v57 = vsel %vm887_vm6, %v2799_v41, %v2784_v47  ;;  %v2786_v55 = vrot.slane %v15642_v5, 7  ;;  %v2787_v18 = vrot.slane %v15646_v49, 7 }
 0x4ae   :  { %12691 = vrot.lane.b32.xlu1 %v12690_v58, %s14215_s10  ;;  %3079 = vmatpush1.bf16.msra.mxu0 %v12716_v16  ;;  %v2814_v4 = vsel %vm887_vm6, %v2784_v47, %v2785_v27  ;;  %v2816_v21 = vsel %vm904_vm7, 0.0, %v2815_v57  ;;  %v2859_v45 = vsel %vm16930_vm9, %v2835_v52, %v2836_v51  ;;  %v2860_v54 = vsel %vm16930_vm9, %v2834_v11, %v2835_v52 }
 0x4af   :  { %11257 = vmatprep.mubr.msk.bf16.mxu0 %vm16926_vm2, %v2961_v48  ;;  %3080 = vmatprep.subr.bf16.mxu0 %v16964_v39  ;;  %v2812_v2 = vsel %vm887_vm6, %v2786_v55, %v2787_v18  ;;  %v2963_v58 = vpack.c.bf16 %v2859_v45, %v2860_v54  ;;  %v2813_v23 = vsel %vm887_vm6, %v2785_v27, %v2786_v55  ;;  %v2837_v6 = vrot.slane %v15654_v30, 1 }
 0x4b0   :  { %v2790_v57 = vrot.slane %v15658_v29, 7  ;;  %v2791_v55 = vrot.slane %v15662_v9, 7 }
 0x4b1   :  { %12696 = vrot.lane.b32.xlu0 %v12695_v61, %s14215_s10  ;;  %v2838_v61 = vrot.slane %v15658_v29, 1 }
 0x4b2   :  { %12701 = vrot.lane.b32.xlu1 %v12700_v10, %s14215_s10  ;;  %3081 = vmatpush1.bf16.msra.mxu0 %v12717_v62 }
 0x4b3   :  { %3082 = vmatprep.subr.bf16.mxu0 %v16964_v39  ;;  %v2857_v62 = vsel %vm16930_vm9, %v2837_v6, %v2838_v61 }
 0x4b5   :  { %12706 = vrot.lane.b32.xlu0 %v12705_v56, %s14215_s10  ;;  %v2788_v56 = vrot.slane %v15650_v3, 7 }
 0x4b6   :  { %12711 = vrot.lane.b32.xlu1 %v12710_v14, %s14215_s10  ;;  %3083 = vmatpush1.bf16.msra.mxu0 %v12718_v43  ;;  %v2789_v14 = vrot.slane %v15654_v30, 7  ;;  %v2858_v43 = vsel %vm16930_vm9, %v2836_v51, %v2837_v6 }
 0x4b7   :  { %3084 = vmatprep.subr.bf16.mxu0 %v16964_v39 }
 0x4ba   :  { %3085 = vmatpush1.bf16.msra.mxu0 %v12719_v0  ;;  %v2839_v0 = vrot.slane %v15662_v9, 1 }
 0x4bb   :  { %3086 = vmatprep.subr.bf16.mxu0 %v16964_v39 }
 0x4be   :  { %3087 = vmatpush1.bf16.msra.mxu0 %v12720_v44  ;;  %v2840_v44 = vrot.slane %v15666_v8, 1 }
 0x4bf   :  { %3088 = vmatprep.subr.bf16.mxu0 %v16964_v39 }
 0x4c0   :  { %v2855_v47 = vsel %vm16930_vm9, %v2839_v0, %v2840_v44 }
 0x4c2   :  { %3089 = vmatpush1.bf16.msra.mxu0 %v12721_v40 }
 0x4c3   :  { %3090 = vmatprep.subr.bf16.mxu0 %v16964_v39 }
 0x4c6   :  { %3091 = vmatpush1.bf16.msra.mxu0 %v12722_v26 }
 0x4c7   :  { %3100 = vmatprep.subr.bf16.mxu0 %v16964_v39 }
 0x4ca   :  { %3101 = vmatpush2.bf16.msra.mxu0 %v12723_v13 }
 0x4cb   :  { %3102 = vmatprep.subr.bf16.mxu0 %v16964_v39 }
 0x4ce   :  { %3103 = vmatpush2.bf16.msra.mxu0 %v12724_v59  ;;  %v2965_v59 = vpack.c.bf16 %v2857_v62, %v2858_v43  ;;  %v2844_v62 = vrot.slane %v15682_v1, 1 }
 0x4cf   :  { %3104 = vmatprep.subr.bf16.mxu0 %v16964_v39 }
 0x4d2   :  { %3105 = vmatpush2.bf16.msra.mxu0 %v12725_v20  ;;  %v2810_v20 = vsel %vm887_vm6, %v2788_v56, %v2789_v14 }
 0x4d3   :  { %3106 = vmatprep.subr.bf16.mxu0 %v16964_v39 }
 0x4d6   :  { %3107 = vmatpush2.bf16.msra.mxu0 %v12726_v42  ;;  %v2811_v42 = vsel %vm887_vm6, %v2787_v18, %v2788_v56  ;;  %v2871_v18 = vsel %vm1208_vm10, 0.0, %v2855_v47 }
 0x51b   :  { %v12677_v34 = vpop.permute.xlu0 %12676 }
 0x51c   :  { %v12679_v12 = vunpack.i.h.bf16 %v12677_v34  ;;  %v12678_v31 = vunpack.i.l.bf16 %v12677_v34  ;;  %v12687_v16 = vpop.permute.xlu1 %12686  ;;  %v2856_v34 = vsel %vm16930_vm9, %v2838_v61, %v2839_v0 }
 0x51d   :  { %v12689_v26 = vunpack.i.h.bf16 %v12687_v16  ;;  %v12688_v13 = vunpack.i.l.bf16 %v12687_v16  ;;  %v2967_v54 = vpack.c.bf16 %v2871_v18, %v2856_v34 }
 0x51e   :  { %v2944_v36 = vsel %vm16926_vm2, %v2816_v21, %v12678_v31  ;;  %v2945_v53 = vsel %vm16926_vm2, %v2814_v4, %v12679_v12  ;;  %v2808_v12 = vsel %vm887_vm6, %v2790_v57, %v2791_v55  ;;  %v2809_v31 = vsel %vm887_vm6, %v2789_v14, %v2790_v57 }
 0x51f   :  { %v2960_v19 = vpack.c.bf16 %v2945_v53, %v2944_v36  ;;  %v12682_v25 = vpop.permute.xlu0 %12681  ;;  %v2948_v27 = vsel %vm16926_vm2, %v2811_v42, %v12688_v13  ;;  %v2949_v52 = vsel %vm16926_vm2, %v2810_v20, %v12689_v26  ;;  %v2841_v36 = vrot.slane %v15670_v17, 1 }
 0x520   :  { %v12684_v11 = vunpack.i.h.bf16 %v12682_v25  ;;  %v12683_v10 = vunpack.i.l.bf16 %v12682_v25  ;;  %v12692_v51 = vpop.permute.xlu1 %12691  ;;  %v2964_v4 = vpack.c.bf16 %v2949_v52, %v2948_v27  ;;  %v2842_v53 = vrot.slane %v15674_v38, 1 }
 0x521   :  { %3109 = vmatmul.mubr.bf16.vlgmr.msra.gmra.mxu0 %v2960_v19  ;;  %v12694_v21 = vunpack.i.h.bf16 %v12692_v51  ;;  %v12693_v45 = vunpack.i.l.bf16 %v12692_v51  ;;  %v2793_v25 = vrot.slane %v15670_v17, 7  ;;  %v2854_v6 = vsel %vm16930_vm9, %v2840_v44, %v2841_v36 }
 0x522   :  { %v2946_v48 = vsel %vm16926_vm2, %v2813_v23, %v12683_v10  ;;  %v2947_v50 = vsel %vm16926_vm2, %v2812_v2, %v12684_v11  ;;  %11258 = vmatprep.mubr.msk.bf16.mxu0 %vm16926_vm2, %v2963_v58  ;;  %v2792_v2 = vrot.slane %v15666_v8, 7  ;;  %v2853_v23 = vsel %vm16930_vm9, %v2841_v36, %v2842_v53 }
 0x523   :  { %v2962_v40 = vpack.c.bf16 %v2947_v50, %v2946_v48  ;;  %v2950_v60 = vsel %vm16926_vm2, %v2809_v31, %v12693_v45  ;;  %v2951_v58 = vsel %vm16926_vm2, %v2808_v12, %v12694_v21  ;;  %v12697_v19 = vpop.permute.xlu0 %12696  ;;  %v2969_v50 = vpack.c.bf16 %v2853_v23, %v2854_v6 }
 0x524   :  { %v2807_v61 = vsel %vm887_vm6, %v2791_v55, %v2792_v2  ;;  %v2966_v11 = vpack.c.bf16 %v2951_v58, %v2950_v60  ;;  %v12699_v10 = vunpack.i.h.bf16 %v12697_v19  ;;  %v12698_v48 = vunpack.i.l.bf16 %v12697_v19  ;;  %v12702_v44 = vpop.permute.xlu1 %12701 }
 0x525   :  { %v2806_v16 = vsel %vm887_vm6, %v2792_v2, %v2793_v25  ;;  %v2824_v56 = vsel %vm912_vm8, 0.0, %v2807_v61  ;;  %v2843_v14 = vrot.slane %v15678_v7, 1  ;;  %v2795_v26 = vrot.slane %v15678_v7, 7 }
 0x526   :  { %v2952_v43 = vsel %vm16926_vm2, %v2824_v56, %v12698_v48  ;;  %v2953_v0 = vsel %vm16926_vm2, %v2806_v16, %v12699_v10  ;;  %v12704_v20 = vunpack.i.h.bf16 %v12702_v44  ;;  %v12703_v42 = vunpack.i.l.bf16 %v12702_v44 }
 0x527   :  { %v2851_v22 = vsel %vm16930_vm9, %v2843_v14, %v2844_v62  ;;  %v2852_v13 = vsel %vm16930_vm9, %v2842_v53, %v2843_v14  ;;  %v2845_v51 = vrot.slane %v15686_v37, 1  ;;  %v2846_v57 = vrot.slane %v15690_v33, 1  ;;  %v12707_v18 = vpop.permute.xlu0 %12706 }
 0x528   :  { %v2971_v47 = vpack.c.bf16 %v2851_v22, %v2852_v13  ;;  %v2797_v21 = vrot.slane %v15686_v37, 7  ;;  %v2847_v12 = vrot.slane %v15694_v28, 1  ;;  %v12709_v36 = vunpack.i.h.bf16 %v12707_v18  ;;  %v12712_v6 = vpop.permute.xlu1 %12711 }
 0x529   :  { %3117 = vmatmul.mubr.bf16.gmra.mxu0 %v2962_v40  ;;  %v2794_v40 = vrot.slane %v15674_v38, 7  ;;  %v2849_v45 = vsel %vm16930_vm9, %v2845_v51, %v2846_v57  ;;  %v12708_v53 = vunpack.i.l.bf16 %v12707_v18  ;;  %v2798_v61 = vrot.slane %v15690_v33, 7 }
 0x52a   :  { %11259 = vmatprep.mubr.msk.bf16.mxu0 %vm16926_vm2, %v2965_v59  ;;  %v2968_v59 = vpack.c.bf16 %v2953_v0, %v2952_v43  ;;  %v2863_v19 = vsel %vm16930_vm9, %v2847_v12, %v2832_v46  ;;  %v12713_v16 = vunpack.i.l.bf16 %v12712_v6  ;;  %v16977_v0 = vlaneseq }
 0x52b   :  { %v2804_v27 = vsel %vm887_vm6, %v2794_v40, %v2795_v26  ;;  %v2805_v52 = vsel %vm887_vm6, %v2793_v25, %v2794_v40  ;;  %v2879_v10 = vsel %vm1216_vm11, 0.0, %v2863_v19  ;;  %v2800_v56 = vsel %vm887_vm6, %v2798_v61, %v2799_v41  ;;  %v16979_v41 = vld [vmem:[#allocation61_spill] sm:$0xff] }
 0x52c   :  { %v2954_v55 = vsel %vm16926_vm2, %v2805_v52, %v12703_v42  ;;  %v2955_v34 = vsel %vm16926_vm2, %v2804_v27, %v12704_v20  ;;  %v2801_v14 = vsel %vm887_vm6, %v2797_v21, %v2798_v61  ;;  %v15873_v44 = vand.u32 127, %v16977_v0 }
 0x52d   :  { %v2970_v31 = vpack.c.bf16 %v2955_v34, %v2954_v55  ;;  %v3191_v40 = vmul.u32 2, %v14414_v24  ;;  %v3193_v13 = vmul.u32 2, %v16979_v41  ;;  %v14216_v27 = vmov 0.0  }
 0x52e   :  { %v14217_v18 = vmov 1.0|1.0  }
 0x52f   :  { %vm15880_vm3 = vcmp.eq.s32.totalorder %v15873_v44, %v3191_v40  ;;  %vm15898_vm7 = vcmp.eq.s32.totalorder %v15873_v44, %v3193_v13 }
 0x530   :  { %v11265_v52 = vsel %vm15880_vm3, 1.0, %v14216_v27 }
 0x531   :  { %3125 = vmatmul.mubr.bf16.gmra.mxu0 %v2964_v4  ;;  %v2796_v4 = vrot.slane %v15682_v1, 7 }
 0x532   :  { %11260 = vmatprep.mubr.msk.bf16.mxu0 %vm16926_vm2, %v2967_v54  ;;  %v2850_v54 = vsel %vm16930_vm9, %v2844_v62, %v2845_v51  ;;  %v2958_v62 = vsel %vm16926_vm2, %v2801_v14, %v12713_v16 }
 0x533   :  { %v2973_v2 = vpack.c.bf16 %v2849_v45, %v2850_v54  ;;  %v2802_v60 = vsel %vm887_vm6, %v2796_v4, %v2797_v21  ;;  %v2803_v58 = vsel %vm887_vm6, %v2795_v26, %v2796_v4  ;;  %v16978_v26 = vld [vmem:[#allocation56_spill] sm:$0xff]  ;;  %v11267_v4 = vsel %vm15898_vm7, 1.0, %v14216_v27  ;;  %v12727_v54 = vld [vmem:[#allocation7 + $0x118] sm:$0xff]  }
 0x534   :  { %v2956_v25 = vsel %vm16926_vm2, %v2803_v58, %v12708_v53  ;;  %v2957_v23 = vsel %vm16926_vm2, %v2802_v60, %v12709_v36  ;;  %v3192_v22 = vmul.u32 2, %v16978_v26  ;;  %12476 = vmatprep.subr.bf16.mxu0 %v12727_v54  ;;  %v12736_v36 = vld [vmem:[#allocation7 + $0x100] sm:$0xff]  }
 0x535   :  { %v2972_v48 = vpack.c.bf16 %v2957_v23, %v2956_v25  ;;  %12477 = vmatpush3.bf16.msra.mxu0 %v12727_v54  ;;  %v15921_v53 = vld [vmem:[#allocation8] sm:$0x7] }
 0x536   :  { %vm15885_vm4 = vcmp.eq.s32.totalorder %v15873_v44, %v3192_v22 }
 0x537   :  { %v11266_v51 = vsel %vm15885_vm4, 1.0, %v14216_v27  ;;  %vm11273_vm5 = vmpackc.low %vm15885_vm4, %vm15880_vm3  ;;  %vm17013_vm4 = vcmask 523264  }
 0x538   :  { %v15907_v34 = vpack.c.bf16 %v11266_v51, %v11265_v52  ;;  %12468 = vmatprep.mubr.msk.bf16.mxu1 %vm11273_vm5, %v14217_v18 }
 0x539   :  { %3133 = vmatmul.mubr.bf16.gmra.mxu0 %v2966_v11  ;;  %v2848_v11 = vsel %vm16930_vm9, %v2846_v57, %v2847_v12  ;;  %v12730_v12 = vld [vmem:[#allocation7 + $0x110] sm:$0xff]  }
 0x53a   :  { %11261 = vmatprep.mubr.msk.bf16.mxu0 %vm16926_vm2, %v2969_v50  ;;  %v12714_v50 = vunpack.i.h.bf16 %v12712_v6  ;;  %v2975_v46 = vpack.c.bf16 %v2879_v10, %v2848_v11  ;;  %12478 = vmatprep.subr.bf16.mxu0 %v12730_v12 }
 0x53b   :  { %12479 = vmatpush3.bf16.msra.mxu0 %v12730_v12 }
 0x53c   :  { %v2959_v43 = vsel %vm16926_vm2, %v2800_v56, %v12714_v50 }
 0x53d   :  { %v2974_v32 = vpack.c.bf16 %v2959_v43, %v2958_v62 }
 0x541   :  { %3141 = vmatmul.mubr.bf16.gmra.mxu0 %v2968_v59  ;;  %v16980_v59 = vld [vmem:[#allocation57_spill] sm:$0xff] }
 0x542   :  { %11262 = vmatprep.mubr.msk.bf16.mxu0 %vm16926_vm2, %v2971_v47  ;;  %v3194_v20 = vmul.u32 2, %v16980_v59 }
 0x544   :  { %vm15903_vm8 = vcmp.eq.s32.totalorder %v15873_v44, %v3194_v20 }
 0x545   :  { %v11268_v21 = vsel %vm15903_vm8, 1.0, %v14216_v27  ;;  %vm16929_vm12 = vmpackc.low %vm15903_vm8, %vm15898_vm7 }
 0x546   :  { %v15919_v45 = vpack.c.bf16 %v11268_v21, %v11267_v4 }
 0x549   :  { %3149 = vmatmul.mubr.bf16.gmra.mxu0 %v2970_v31  ;;  %v12733_v31 = vld [vmem:[#allocation7 + $0x108] sm:$0xff]  }
 0x54a   :  { %11263 = vmatprep.mubr.msk.bf16.mxu0 %vm16926_vm2, %v2973_v2  ;;  %12480 = vmatprep.subr.bf16.mxu0 %v12733_v31  ;;  %v16989_v2 = vld [vmem:[#allocation64_spill] sm:$0xff] }
 0x54b   :  { %12481 = vmatpush3.bf16.msra.mxu0 %v12733_v31  ;;  %v15925_v60 = vrot.slane %v15921_v53, %v16989_v2 }
 0x54c   :  { %12482 = vmatprep.subr.bf16.mxu0 %v12736_v36 }
 0x54f   :  { %12483 = vmatpush3.bf16.msra.mxu0 %v12736_v36 }
 0x551   :  { %3157 = vmatmul.mubr.bf16.gmra.mxu0 %v2972_v48 }
 0x552   :  { %11264 = vmatprep.mubr.msk.bf16.mxu0 %vm16926_vm2, %v2975_v46 }
 0x559   :  { %3165 = vmatmul.mubr.bf16.gmra.mxu0 %v2974_v32 }
 0x5e1   :  { %v3110_v58 = vpop.f32.mrf.mxu0 }
 0x5e2   :  { %v3111_v25 = vadd.f32 %v3110_v58, %v15925_v60 }
 0x5e3   :  { %v3112_v19 = vpop.f32.mrf.mxu0 }
 0x5e4   :  { %v3173_v11 = vmax.f32 %v3111_v25, 0.0 }
 0x5e5   :  { %v3113_v23 = vpop.f32.mrf.mxu0 }
 0x5e6   :  { %v3114_v6 = vadd.f32 %v3113_v23, %v15925_v60 }
 0x5e7   :  { %v3115_v61 = vpop.f32.mrf.mxu0 }
 0x5e8   :  { %v3174_v10 = vmax.f32 %v3114_v6, 0.0 }
 0x5e9   :  { %v3118_v48 = vpop.f32.mrf.mxu0 }
 0x5ea   :  { %v15929_v50 = vpack.c.bf16 %v3174_v10, %v3173_v11  ;;  %v3119_v46 = vadd.f32 %v3118_v48, %v15925_v60 }
 0x5eb   :  { %v3120_v16 = vpop.f32.mrf.mxu0 }
 0x5ec   :  { %v3175_v43 = vmax.f32 %v3119_v46, 0.0 }
 0x5ed   :  { %v3121_v56 = vpop.f32.mrf.mxu0 }
 0x5ee   :  { %v3122_v14 = vadd.f32 %v3121_v56, %v15925_v60 }
 0x5ef   :  { %v3123_v62 = vpop.f32.mrf.mxu0 }
 0x5f0   :  { %v3176_v32 = vmax.f32 %v3122_v14, 0.0 }
 0x5f1   :  { %v3126_v0 = vpop.f32.mrf.mxu0 }
 0x5f2   :  { %v15933_v40 = vpack.c.bf16 %v3176_v32, %v3175_v43 }
 0x5f3   :  { %v3128_v22 = vpop.f32.mrf.mxu0 }
 0x5f5   :  { %v3129_v13 = vpop.f32.mrf.mxu0 }
 0x5f7   :  { %v3131_v20 = vpop.f32.mrf.mxu0 }
 0x5f9   :  { %v3134_v27 = vpop.f32.mrf.mxu0 }
 0x5fb   :  { %v3136_v52 = vpop.f32.mrf.mxu0 }
 0x5fd   :  { %v3137_v51 = vpop.f32.mrf.mxu0 }
 0x5ff   :  { %v3139_v4 = vpop.f32.mrf.mxu0 }
 0x601   :  { %v3142_v21 = vpop.f32.mrf.mxu0 }
 0x603   :  { %v3144_v54 = vpop.f32.mrf.mxu0 }
 0x605   :  { %v3145_v12 = vpop.f32.mrf.mxu0 }
 0x607   :  { %v3147_v31 = vpop.f32.mrf.mxu0 }
 0x609   :  { %v3150_v36 = vpop.f32.mrf.mxu0 }
 0x60a   :  { %v3151_v4 = vadd.f32 %v3150_v36, %v15925_v60 }
 0x60b   :  { %v3152_v58 = vpop.f32.mrf.mxu0 }
 0x60c   :  { %v3146_v58 = vadd.f32 %v3145_v12, %v15925_v60 }
 0x60d   :  { %v3153_v19 = vpop.f32.mrf.mxu0 }
 0x60e   :  { %v3154_v32 = vadd.f32 %v3153_v19, %v15925_v60  ;;  %v3182_v19 = vmax.f32 %v3146_v58, 0.0  ;;  %v12731_v58 = vld [vmem:[#allocation7 + $0xd0] sm:$0xff]  }
 0x60f   :  { %v3155_v25 = vpop.f32.mrf.mxu0 }
 0x610   :  { %v3184_v25 = vmax.f32 %v3154_v32, 0.0  ;;  %v16991_v32 = vld [vmem:[#allocation67_spill] sm:$0xff] }
 0x611   :  { %v3158_v23 = vpop.f32.mrf.mxu0 }
 0x612   :  { %v3159_v14 = vadd.f32 %v3158_v23, %v15925_v60  ;;  %v3143_v23 = vadd.f32 %v3142_v21, %v15925_v60 }
 0x613   :  { %v3160_v6 = vpop.f32.mrf.mxu0 }
 0x614   :  { %v3185_v54 = vmax.f32 %v3159_v14, 0.0  ;;  %v3181_v36 = vmax.f32 %v3143_v23, 0.0  ;;  %v12734_v23 = vld [vmem:[#allocation7 + $0xc8] sm:$0xff]  }
 0x615   :  { %v3161_v61 = vpop.f32.mrf.mxu0 }
 0x616   :  { %v3162_v16 = vadd.f32 %v3161_v61, %v15925_v60  ;;  %v3183_v61 = vmax.f32 %v3151_v4, 0.0 }
 0x617   :  { %v3163_v11 = vpop.f32.mrf.mxu0 }
 0x618   :  { %v3186_v22 = vmax.f32 %v3162_v16, 0.0  ;;  %v3138_v11 = vadd.f32 %v3137_v51, %v15925_v60  ;;  %v3130_v16 = vadd.f32 %v3129_v13, %v15925_v60 }
 0x619   :  { %v3166_v10 = vpop.f32.mrf.mxu0 }
 0x61a   :  { %v3167_v46 = vadd.f32 %v3166_v10, %v15925_v60  ;;  %v3233_v6 = vpack.c.bf16 %v3186_v22, %v3185_v54  ;;  %v3232_v10 = vpack.c.bf16 %v3184_v25, %v3183_v61  ;;  %v3180_v12 = vmax.f32 %v3138_v11, 0.0  ;;  %v16997_v54 = vld [vmem:[#allocation60_spill] sm:$0xff] }
 0x61b   :  { %v3168_v48 = vpop.f32.mrf.mxu0  ;;  %v3178_v21 = vmax.f32 %v3130_v16, 0.0  ;;  %v3196_v22 = vmul.u32 2, %v16991_v32  ;;  %v12735_v61 = vld [vmem:[#allocation7 + $0x88] sm:$0xff]   ;;  %v12737_v11 = vld [vmem:[#allocation7 + $0xc0] sm:$0xff]   ;;  %v12743_v16 = vld [vmem:[#allocation7 + $0xb0] sm:$0xff]  }
 0x61c   :  { %v3187_v20 = vmax.f32 %v3167_v46, 0.0  ;;  %v3135_v48 = vadd.f32 %v3134_v27, %v15925_v60  ;;  %v3231_v46 = vpack.c.bf16 %v3182_v19, %v3181_v36  ;;  %v16990_v27 = vld [vmem:[#allocation66_spill] sm:$0xff] }
 0x61d   :  { %v3169_v56 = vpop.f32.mrf.mxu0  ;;  %v3195_v13 = vmul.u32 2, %v16990_v27  ;;  %vm15958_vm11 = vcmp.eq.s32.totalorder %v15873_v44, %v3196_v22  ;;  %v12739_v19 = vld [vmem:[#allocation7 + $0xf8] sm:$0xff]   ;;  %v12742_v36 = vld [vmem:[#allocation7 + $0xf0] sm:$0xff]  }
 0x61e   :  { %v3170_v62 = vadd.f32 %v3169_v56, %v15925_v60  ;;  %v3127_v56 = vadd.f32 %v3126_v0, %v15925_v60  ;;  %v3179_v14 = vmax.f32 %v3135_v48, 0.0  ;;  %v12728_v60 = vld [vmem:[#allocation7 + $0xd8] sm:$0xff]   ;;  %12484 = vmatprep.subr.bf16.mxu0 %v12739_v19 }
 0x61f   :  { %v3171_v43 = vpop.f32.mrf.mxu0  ;;  %vm15953_vm10 = vcmp.eq.s32.totalorder %v15873_v44, %v3195_v13  ;;  %12485 = vmatpush3.bf16.msra.mxu0 %v12739_v19  ;;  %v12741_v48 = vld [vmem:[#allocation7 + $0x78] sm:$0xff]  }
 0x620   :  { %v3188_v52 = vmax.f32 %v3170_v62, 0.0  ;;  %v3230_v62 = vpack.c.bf16 %v3180_v12, %v3179_v14  ;;  %v3177_v51 = vmax.f32 %v3127_v56, 0.0  ;;  %vm16928_vm13 = vmpackc.low %vm15958_vm11, %vm15953_vm10  ;;  %12486 = vmatprep.subr.bf16.mxu0 %v12742_v36  ;;  %v12744_v12 = vld [vmem:[#allocation7 + $0x70] sm:$0xff]   ;;  %v12746_v56 = vld [vmem:[#allocation7 + $0xa8] sm:$0xff]  }
 0x621   :  { %v12747_v14 = vld [vmem:[#allocation7 + $0x68] sm:$0xff]  }
 0x622   :  { %v3234_v31 = vpack.c.bf16 %v3188_v52, %v3187_v20  ;;  %v3229_v43 = vpack.c.bf16 %v3178_v21, %v3177_v51  ;;  %v16996_v52 = vld [vmem:[#allocation68_spill] sm:$0xff] }
 0x623   :  { %v3197_v4 = vmul.u32 2, %v16996_v52  ;;  %12487 = vmatpush3.bf16.msra.mxu0 %v12742_v36  ;;  %v12748_v21 = vld [vmem:[#allocation7 + $0xe0] sm:$0xff]  }
 0x624   :  { %12452 = vmatprep.subr.bf16.mxu1 %v3234_v31  ;;  %v12750_v51 = vld [vmem:[#allocation7 + $0x60] sm:$0xff]  }
 0x625   :  { %12453 = vmatpush3.bf16.msra.mxu1 %v3234_v31  ;;  %v3198_v31 = vmul.u32 2, %v16997_v54  ;;  %vm15986_vm14 = vcmp.eq.s32.totalorder %v15873_v44, %v3197_v4 }
 0x626   :  { %12454 = vmatprep.subr.bf16.mxu1 %v3233_v6 }
 0x627   :  { %vm15991_vm15 = vcmp.eq.s32.totalorder %v15873_v44, %v3198_v31  ;;  %v12738_v44 = vld [vmem:[#allocation7 + $0x80] sm:$0xff]  }
 0x628   :  { %vm16927_vm0 = vmpackc.low %vm15991_vm15, %vm15986_vm14 }
 0x629   :  { %12455 = vmatpush3.bf16.msra.mxu1 %v3233_v6  ;;  %vm17012_vm3 = vmpackc.low %vm15991_vm15, %vm15986_vm14 }
 0x62a   :  { %12456 = vmatprep.subr.bf16.mxu1 %v3232_v10 }
 0x62d   :  { %12457 = vmatpush3.bf16.msra.mxu1 %v3232_v10  ;;  %v12740_v10 = vld [vmem:[#allocation7 + $0xb8] sm:$0xff]  }
 0x62e   :  { %12458 = vmatprep.subr.bf16.mxu1 %v3231_v46 }
 0x631   :  { %12459 = vmatpush3.bf16.msra.mxu1 %v3231_v46  ;;  %v12745_v46 = vld [vmem:[#allocation7 + $0xe8] sm:$0xff]  }
 0x632   :  { %12460 = vmatprep.subr.bf16.mxu1 %v3230_v62  ;;  %12488 = vmatprep.subr.bf16.mxu0 %v12745_v46 }
 0x633   :  { %12489 = vmatpush3.bf16.msra.mxu0 %v12745_v46 }
 0x634   :  { %12490 = vmatprep.subr.bf16.mxu0 %v12748_v21 }
 0x635   :  { %12461 = vmatpush3.bf16.msra.mxu1 %v3230_v62  ;;  %v12749_v62 = vld [vmem:[#allocation7 + $0xa0] sm:$0xff]  }
 0x636   :  { %12462 = vmatprep.subr.bf16.mxu1 %v3229_v43 }
 0x637   :  { %12491 = vmatpush3.bf16.msra.mxu0 %v12748_v21 }
 0x639   :  { %12463 = vmatpush3.bf16.msra.mxu1 %v3229_v43  ;;  %v3789_v43 = vpack.c.bf16 %v15694_v28, %v15690_v33 }
 0x63a   :  { %12464 = vmatprep.subr.bf16.mxu1 %v15933_v40 }
 0x63d   :  { %12465 = vmatpush3.bf16.msra.mxu1 %v15933_v40  ;;  %v12729_v40 = vld [vmem:[#allocation7 + $0x98] sm:$0xff]  }
 0x63e   :  { %12466 = vmatprep.subr.bf16.mxu1 %v15929_v50 }
 0x641   :  { %12467 = vmatpush3.bf16.msra.mxu1 %v15929_v50  ;;  %v12732_v50 = vld [vmem:[#allocation7 + $0x90] sm:$0xff]  }
 0x642   :  { %12374 = vmatprep.subr.bf16.mxu1 %v12728_v60 }
 0x644   :  { %12469 = vmatmul.mubr.msk.bf16.vlgmr.msra.gmra.mxu1 %vm16929_vm12, %v14217_v18 }
 0x645   :  { %12472 = vmatprep.mubr.msk.bf16.mxu1 %vm16928_vm13, %v14217_v18  ;;  %12375 = vmatpush3.bf16.msra.mxu1 %v12729_v40  ;;  %v3325_v40 = vand.u32 31, %v16980_v59 }
 0x646   :  { %12376 = vmatprep.subr.bf16.mxu1 %v12731_v58 }
 0x647   :  { %vm12352_vm1 = vcmp.lt.s32.totalorder %v3325_v40, 31 }
 0x649   :  { %12377 = vmatpush3.bf16.msra.mxu1 %v12732_v50 }
 0x64a   :  { %12378 = vmatprep.subr.bf16.mxu1 %v12734_v23  ;;  %v3304_v23 = vand.u32 31, %v14414_v24 }
 0x64c   :  { %12473 = vmatmul.mubr.msk.bf16.gmra.mxu1 %vm16927_vm0, %v14217_v18  ;;  %vm12350_vm2 = vcmp.ge.s32.totalorder %v3304_v23, 1  ;;  %vm16931_vm0 = vmmov 1  }
 0x64d   :  { %12379 = vmatpush3.bf16.msra.mxu1 %v12735_v61  ;;  %vm16029_vm13 = vmpackc.low %vm12352_vm1, %vm16931_vm0 }
 0x64e   :  { %12380 = vmatprep.subr.bf16.mxu1 %v12737_v11  ;;  %vm16042_vm12 = vmpackc.low %vm16931_vm0, %vm12350_vm2 }
 0x651   :  { %12381 = vmatpush3.bf16.msra.mxu1 %v12738_v44 }
 0x652   :  { %12382 = vmatprep.subr.bf16.mxu1 %v12740_v10 }
 0x655   :  { %12383 = vmatpush3.bf16.msra.mxu1 %v12741_v48 }
 0x656   :  { %12384 = vmatprep.subr.bf16.mxu1 %v12743_v16 }
 0x659   :  { %12385 = vmatpush3.bf16.msra.mxu1 %v12744_v12 }
 0x65a   :  { %12386 = vmatprep.subr.bf16.mxu1 %v12746_v56 }
 0x65d   :  { %12387 = vmatpush3.bf16.msra.mxu1 %v12747_v14 }
 0x65e   :  { %12388 = vmatprep.subr.bf16.mxu1 %v12749_v62  ;;  %v3353_v62 = vand.u32 31, %v16997_v54  ;;  %v3788_v54 = vpack.c.bf16 %v15686_v37, %v15682_v1 }
 0x660   :  { %vm12353_vm2 = vcmp.lt.s32.totalorder %v3353_v62, 31  ;;  %v3785_v62 = vpack.c.bf16 %v15662_v9, %v15658_v29 }
 0x661   :  { %12389 = vmatpush3.bf16.msra.mxu1 %v12750_v51  ;;  %vm16066_vm1 = vmpackc.low %vm12353_vm2, %vm16931_vm0 }
 0x662   :  { %12500 = vmatprep.subr.bf16.mxu1 %v3789_v43 }
 0x704   :  { %v12470_v13 = vpop.f32.mrf.mxu1 }
 0x705   :  { %v3446_v52 = vrot.slane %v12470_v13, 1 }
 0x706   :  { %v3269_v32 = vpop.f32.mrf.mxu1 }
 0x707   :  { %v3444_v58 = vrot.slane %v3269_v32, 1  ;;  %v3396_v36 = vrot.slane %v3269_v32, 7 }
 0x708   :  { %v16007_v22 = vpop.f32.mrf.mxu1 }
 0x709   :  { %v3447_v61 = vrot.slane %v16007_v22, 1  ;;  %v3496_v23 = vpack.c.bf16 %v16007_v22, %v12470_v13 }
 0x70a   :  { %v3272_v60 = vpop.f32.mrf.mxu1 }
 0x70b   :  { %v3445_v4 = vrot.slane %v3272_v60, 1  ;;  %v3493_v31 = vpack.c.bf16 %v3272_v60, %v3269_v32  ;;  %v3397_v44 = vrot.slane %v3272_v60, 7  ;;  %v3456_v16 = vsel %vm16930_vm9, %v3446_v52, %v3447_v61 }
 0x70c   :  { %v16010_v50 = vpop.f32.mrf.mxu1 }
 0x70d   :  { %3684 = vmatprep.mubr.bf16.mxu1 %v3493_v31  ;;  %v3457_v33 = vsel %vm16930_vm9, %v3445_v4, %v3446_v52  ;;  %v3458_v11 = vsel %vm16930_vm9, %v3444_v58, %v3445_v4  ;;  %v3410_v51 = vsel %vm887_vm6, %v3396_v36, %v3397_v44  ;;  %v3450_v52 = vrot.slane %v16010_v50, 1 }
 0x70e   :  { %v16016_v28 = vpop.f32.mrf.mxu1  ;;  %v3494_v10 = vpack.c.bf16 %v3457_v33, %v3458_v11  ;;  %v3402_v9 = vrot.slane %v16010_v50, 7 }
 0x70f   :  { %v3448_v19 = vrot.slane %v16016_v28, 1 }
 0x710   :  { %v16021_v48 = vpop.f32.mrf.mxu1  ;;  %12492 = vmatprep.mubr.bf16.mxu0 %v3494_v10  ;;  %v3399_v10 = vrot.slane %v16007_v22, 7 }
 0x711   :  { %v3455_v12 = vsel %vm16930_vm9, %v3447_v61, %v3448_v19  ;;  %v3403_v46 = vrot.slane %v16021_v48, 7  ;;  %v3451_v60 = vrot.slane %v16021_v48, 1  ;;  %v3398_v61 = vrot.slane %v12470_v13, 7 }
 0x712   :  { %v11315_v14 = vpack.c.bf16 %v3455_v12, %v3456_v16  ;;  %v3288_v21 = vpop.f32.mrf.mxu1  ;;  %v3787_v13 = vpack.c.bf16 %v15678_v7, %v15674_v38  ;;  %v3786_v38 = vpack.c.bf16 %v15670_v17, %v15666_v8  ;;  %v3332_v7 = vand.u32 31, %v16990_v27 }
 0x713   :  { %v3411_v32 = vsel %vm887_vm6, %v3403_v46, %v3396_v36  ;;  %v3449_v31 = vrot.slane %v3288_v21, 1  ;;  %v3452_v36 = vsel %vm16930_vm9, %v3450_v52, %v3451_v60  ;;  %v3459_v1 = vsel %vm16930_vm9, %v3451_v60, %v3444_v58 }
 0x714   :  { %v11307_v4 = vpack.c.bf16 %v3410_v51, %v3411_v32  ;;  %12493 = vmatmul.mubr.msk.bf16.vlgmr.msra.gmra.mxu0 %vm16029_vm13, %v11315_v14  ;;  %v3409_v22 = vsel %vm887_vm6, %v3397_v44, %v3398_v61  ;;  %v11319_v16 = vpack.c.bf16 %v3459_v1, %v3452_v36  ;;  %v3401_v12 = vrot.slane %v3288_v21, 7 }
 0x715   :  { %v3453_v33 = vsel %vm16930_vm9, %v3449_v31, %v3450_v52  ;;  %v3454_v11 = vsel %vm16930_vm9, %v3448_v19, %v3449_v31  ;;  %v3499_v14 = vpack.c.bf16 %v3288_v21, %v16016_v28  ;;  %v3400_v44 = vrot.slane %v16016_v28, 7 }
 0x716   :  { %11308 = vmatmul.mubr.msk.bf16.vlgmr.msra.gmra.mxu1 %vm16042_vm12, %v11307_v4  ;;  %v3500_v37 = vpack.c.bf16 %v3453_v33, %v3454_v11  ;;  %vm12351_vm2 = vcmp.ge.s32.totalorder %v3332_v7, 1  ;;  %v3784_v28 = vpack.c.bf16 %v15654_v30, %v15650_v3  ;;  %v3502_v29 = vpack.c.bf16 %v16021_v48, %v16010_v50 }
 0x717   :  { %12501 = vmatpush3.bf16.msra.mxu1 %v3789_v43  ;;  %3692 = vmatprep.mubr.bf16.mxu1 %v3496_v23  ;;  %v3408_v43 = vsel %vm887_vm6, %v3398_v61, %v3399_v10  ;;  %v3406_v51 = vsel %vm887_vm6, %v3400_v44, %v3401_v12  ;;  %v3407_v8 = vsel %vm887_vm6, %v3399_v10, %v3400_v44  ;;  %vm16088_vm9 = vmpackc.low %vm16931_vm0, %vm12351_vm2 }
 0x718   :  { %12502 = vmatprep.subr.bf16.mxu1 %v3788_v54  ;;  %12496 = vmatprep.mubr.bf16.mxu0 %v3500_v37  ;;  %v3495_v58 = vpack.c.bf16 %v3408_v43, %v3409_v22  ;;  %v11311_v27 = vpack.c.bf16 %v3406_v51, %v3407_v8  ;;  %v3783_v21 = vpack.c.bf16 %v15646_v49, %v15642_v5  ;;  %vm17010_vm2 = vmpackc.low %vm15903_vm8, %vm15898_vm7  ;;  %v12753_v5 = vld [vmem:[#allocation7 + $0x128] sm:$0xff]   ;;  %v12754_v49 = vld [vmem:[#allocation7 + $0x120] sm:$0xff]  }
 0x719   :  { %v3405_v32 = vsel %vm887_vm6, %v3401_v12, %v3402_v9  ;;  %v3404_v3 = vsel %vm887_vm6, %v3402_v9, %v3403_v46  ;;  %v3782_v50 = vpack.c.bf16 %v15638_v15, %v15634_v35  ;;  %vm17011_vm0 = vmpackc.low %vm15958_vm11, %vm15953_vm10  ;;  %v12751_v35 = vld [vmem:[#allocation7 + $0x138] sm:$0xff]   ;;  %v12752_v15 = vld [vmem:[#allocation7 + $0x130] sm:$0xff]  }
 0x71a   :  { %v3501_v30 = vpack.c.bf16 %v3404_v3, %v3405_v32  ;;  %12524 = vmatprep.subr.bf16.mxu0 %v12751_v35  ;;  %vm17015_vm7 = vmmov %vm17013_vm4  ;;  %v3507_v3 = vrot.slane %v15921_v53, %v16976_v63 }
 0x71b   :  { %12503 = vmatpush3.bf16.msra.mxu1 %v3788_v54  ;;  %12525 = vmatpush3.bf16.msra.mxu0 %v12751_v35  ;;  %vm17016_vm8 = vmmov %vm17013_vm4 }
 0x71c   :  { %12497 = vmatmul.mubr.msk.bf16.gmra.mxu0 %vm16066_vm1, %v11319_v16  ;;  %12504 = vmatprep.subr.bf16.mxu1 %v3787_v13 }
 0x71d   :  { %12526 = vmatprep.subr.bf16.mxu0 %v12752_v15 }
 0x71e   :  { %3693 = vmatmul.mubr.bf16.gmra.mxu1 %v3495_v58 }
 0x71f   :  { %12505 = vmatpush3.bf16.msra.mxu1 %v3787_v13  ;;  %3700 = vmatprep.mubr.bf16.mxu1 %v3499_v14 }
 0x720   :  { %12506 = vmatprep.subr.bf16.mxu1 %v3786_v38  ;;  %12527 = vmatpush3.bf16.msra.mxu0 %v12752_v15 }
 0x721   :  { %12528 = vmatprep.subr.bf16.mxu0 %v12753_v5 }
 0x723   :  { %12507 = vmatpush3.bf16.msra.mxu1 %v3786_v38 }
 0x724   :  { %12508 = vmatprep.subr.bf16.mxu1 %v3785_v62  ;;  %12529 = vmatpush3.bf16.msra.mxu0 %v12753_v5 }
 0x725   :  { %12530 = vmatprep.subr.bf16.mxu0 %v12754_v49 }
 0x726   :  { %11312 = vmatmul.mubr.msk.bf16.gmra.mxu1 %vm16088_vm9, %v11311_v27 }
 0x727   :  { %12509 = vmatpush3.bf16.msra.mxu1 %v3785_v62  ;;  %3708 = vmatprep.mubr.bf16.mxu1 %v3502_v29 }
 0x728   :  { %12510 = vmatprep.subr.bf16.mxu1 %v3784_v28  ;;  %12531 = vmatpush3.bf16.msra.mxu0 %v12754_v49 }
 0x72b   :  { %12511 = vmatpush3.bf16.msra.mxu1 %v3784_v28 }
 0x72c   :  { %12512 = vmatprep.subr.bf16.mxu1 %v3783_v21 }
 0x72e   :  { %3709 = vmatmul.mubr.bf16.gmra.mxu1 %v3501_v30 }
 0x72f   :  { %12513 = vmatpush3.bf16.msra.mxu1 %v3783_v21  ;;  %12516 = vmatprep.mubr.msk.bf16.mxu1 %vm11273_vm5, %v14217_v18  ;;  %vm17014_vm5 = vmmov %vm17013_vm4 }
 0x730   :  { %12514 = vmatprep.subr.bf16.mxu1 %v3782_v50 }
 0x733   :  { %12515 = vmatpush3.bf16.msra.mxu1 %v3782_v50  ;;  %v17017_v50 = vld [vmem:[#allocation65_spill] sm:$0xff] }
 0x734   :  { %v3862_v35 = vrot.slane %v15921_v53, %v17017_v50 }
 0x736   :  { %12517 = vmatmul.mubr.msk.bf16.vlgmr.msra.gmra.mxu1 %vm17010_vm2, %v14217_v18 }
 0x737   :  { %12520 = vmatprep.mubr.msk.bf16.mxu1 %vm17011_vm0, %v14217_v18 }
 0x73e   :  { %12521 = vmatmul.mubr.msk.bf16.gmra.mxu1 %vm17012_vm3, %v14217_v18 }
 0x7d4   :  { %v12494_v8 = vpop.f32.mrf.mxu0 }
 0x7d6   :  { %v12390_v42 = vpop.f32.mrf.mxu1  ;;  %v3751_v27 = vpop.f32.mrf.mxu0 }
 0x7d8   :  { %v12391_v47 = vpop.f32.mrf.mxu1  ;;  %v12495_v28 = vpop.f32.mrf.mxu0 }
 0x7d9   :  { %v12392_v57 = vadd.f32 %v12391_v47, %v12390_v42 }
 0x7da   :  { %v12393_v55 = vpop.f32.mrf.mxu1  ;;  %v3754_v29 = vpop.f32.mrf.mxu0 }
 0x7db   :  { %v3687_v5 = vadd.f32 %v12392_v57, %v3507_v3 }
 0x7dc   :  { %v12394_v0 = vpop.f32.mrf.mxu1  ;;  %v12498_v9 = vpop.f32.mrf.mxu0 }
 0x7dd   :  { %v12395_v20 = vadd.f32 %v12394_v0, %v12393_v55 }
 0x7de   :  { %v12396_v25 = vpop.f32.mrf.mxu1  ;;  %v3767_v21 = vpop.f32.mrf.mxu0 }
 0x7e0   :  { %v12397_v18 = vpop.f32.mrf.mxu1  ;;  %v12499_v32 = vpop.f32.mrf.mxu0 }
 0x7e1   :  { %v12398_v6 = vadd.f32 %v12397_v18, %v12396_v25  ;;  %v3690_v25 = vadd.f32 %v12395_v20, %v3507_v3 }
 0x7e2   :  { %v12399_v48 = vpop.f32.mrf.mxu1  ;;  %v3770_v15 = vpop.f32.mrf.mxu0 }
 0x7e3   :  { %v3695_v30 = vadd.f32 %v12398_v6, %v3507_v3 }
 0x7e4   :  { %v12400_v46 = vpop.f32.mrf.mxu1 }
 0x7e5   :  { %v12401_v60 = vadd.f32 %v12400_v46, %v12399_v48  ;;  %v3760_v47 = vadd.f32 %v12494_v8, %v3695_v30  ;;  %v3752_v48 = vadd.f32 %v3751_v27, %v3687_v5 }
 0x7e6   :  { %v12402_v52 = vpop.f32.mrf.mxu1 }
 0x7e7   :  { %v3698_v42 = vadd.f32 %v12401_v60, %v3507_v3  ;;  %v3755_v60 = vadd.f32 %v3754_v29, %v3690_v25 }
 0x7e8   :  { %v12403_v4 = vpop.f32.mrf.mxu1 }
 0x7e9   :  { %v12404_v31 = vadd.f32 %v12403_v4, %v12402_v52  ;;  %v3763_v6 = vadd.f32 %v12495_v28, %v3698_v42 }
 0x7ea   :  { %v12405_v54 = vpop.f32.mrf.mxu1 }
 0x7ec   :  { %v12406_v23 = vpop.f32.mrf.mxu1 }
 0x7ed   :  { %v16133_v61 = vadd.f32 %v12406_v23, %v12405_v54 }
 0x7ee   :  { %v12408_v33 = vpop.f32.mrf.mxu1 }
 0x7f0   :  { %v12409_v11 = vpop.f32.mrf.mxu1 }
 0x7f1   :  { %v12410_v10 = vadd.f32 %v12409_v11, %v12408_v33  ;;  %v3703_v11 = vadd.f32 %v12404_v31, %v3507_v3 }
 0x7f2   :  { %v12411_v36 = vpop.f32.mrf.mxu1 }
 0x7f3   :  { %v3711_v52 = vadd.f32 %v12410_v10, %v3507_v3 }
 0x7f4   :  { %v12412_v1 = vpop.f32.mrf.mxu1 }
 0x7f5   :  { %v12413_v37 = vadd.f32 %v12412_v1, %v12411_v36 }
 0x7f6   :  { %v12518_v13 = vpop.f32.mrf.mxu1 }
 0x7f7   :  { %v3714_v20 = vadd.f32 %v12413_v37, %v3507_v3 }
 0x7f8   :  { %v3824_v22 = vpop.f32.mrf.mxu1 }
 0x7f9   :  { %v3779_v8 = vadd.f32 %v12499_v32, %v3714_v20 }
 0x7fa   :  { %v12519_v16 = vpop.f32.mrf.mxu1 }
 0x7fb   :  { %v3856_v38 = vpack.c.bf16 %v12519_v16, %v12518_v13  ;;  %v3776_v13 = vadd.f32 %v12498_v9, %v3711_v52 }
 0x7fc   :  { %v3827_v43 = vpop.f32.mrf.mxu1 }
 0x7fd   :  { %v3855_v58 = vpack.c.bf16 %v3827_v43, %v3824_v22 }
 0x7fe   :  { %v12522_v7 = vpop.f32.mrf.mxu1 }
 0x7ff   :  { %12532 = vmatprep.mubr.msk.bf16.mxu0 %vm17013_vm4, %v3855_v58  ;;  %v3768_v58 = vadd.f32 %v3767_v21, %v3703_v11 }
 0x800   :  { %v3840_v12 = vpop.f32.mrf.mxu1  ;;  %12533 = vmatmul.mubr.msk.bf16.vlgmr.msra.gmra.mxu0 %vm17014_vm5, %v3856_v38 }
 0x802   :  { %v12523_v14 = vpop.f32.mrf.mxu1 }
 0x803   :  { %v3858_v51 = vpack.c.bf16 %v12523_v14, %v12522_v7  ;;  %v3706_v7 = vadd.f32 %v16133_v61, %v3507_v3 }
 0x804   :  { %v3843_v44 = vpop.f32.mrf.mxu1 }
 0x805   :  { %v3857_v62 = vpack.c.bf16 %v3843_v44, %v3840_v12  ;;  %v3771_v9 = vadd.f32 %v3770_v15, %v3706_v7 }
 0x807   :  { %12536 = vmatprep.mubr.msk.bf16.mxu0 %vm17015_vm7, %v3857_v62 }
 0x808   :  { %12537 = vmatmul.mubr.msk.bf16.gmra.mxu0 %vm17016_vm8, %v3858_v51 }
 0x8c0   :  { %v12534_v49 = vpop.f32.mrf.mxu0 }
 0x8c1   :  { %v3942_v55 = vadd.f32 %v12534_v49, %v3862_v35 }
 0x8c2   :  { %v3933_v0 = vpop.f32.mrf.mxu0 }
 0x8c3   :  { %v3966_v18 = vadd.f32 %v3942_v55, %v3760_v47  ;;  %v3934_v46 = vadd.f32 %v3933_v0, %v3862_v35 }
 0x8c4   :  { %v12535_v4 = vpop.f32.mrf.mxu0 }
 0x8c5   :  { %v16143_v54 = vmax.f32 %v3966_v18, 0.0  ;;  %v3964_v23 = vadd.f32 %v3934_v46, %v3752_v48  ;;  %v3945_v33 = vadd.f32 %v12535_v4, %v3862_v35 }
 0x8c6   :  { %v3936_v53 = vpop.f32.mrf.mxu0 }
 0x8c7   :  { %v16145_v36 = vmax.f32 %v3964_v23, 0.0  ;;  %v3967_v57 = vadd.f32 %v3945_v33, %v3763_v6  ;;  %v3937_v1 = vadd.f32 %v3936_v53, %v3862_v35 }
 0x8c8   :  { %v12538_v22 = vpop.f32.mrf.mxu0 }
 0x8c9   :  { %v16147_v16 = vmax.f32 %v3967_v57, 0.0  ;;  %v3965_v43 = vadd.f32 %v3937_v1, %v3755_v60  ;;  %v3958_v10 = vadd.f32 %v12538_v22, %v3862_v35 }
 0x8ca   :  { %v3949_v38 = vpop.f32.mrf.mxu0 }
 0x8cb   :  { %v16150_v12 = vmax.f32 %v3965_v43, 0.0  ;;  %v3970_v31 = vadd.f32 %v3958_v10, %v3776_v13  ;;  %v3950_v14 = vadd.f32 %v3949_v38, %v3862_v35 }
 0x8cc   :  { %v12539_v44 = vpop.f32.mrf.mxu0 }
 0x8cd   :  { %v16152_v62 = vmax.f32 %v3970_v31, 0.0  ;;  %v3968_v51 = vadd.f32 %v3950_v14, %v3768_v58  ;;  %v3961_v27 = vadd.f32 %v12539_v44, %v3862_v35 }
 0x8ce   :  { %v3952_v28 = vpop.f32.mrf.mxu0 }
 0x8cf   :  { %v16154_v37 = vmax.f32 %v3968_v51, 0.0  ;;  %v3971_v29 = vadd.f32 %v3961_v27, %v3779_v8  ;;  %v3953_v30 = vadd.f32 %v3952_v28, %v3862_v35 }
 0x8d1   :  { %v16156_v21 = vmax.f32 %v3971_v29, 0.0  ;;  %v3969_v5 = vadd.f32 %v3953_v30, %v3771_v9 }
 0x8d3   :  { %v16158_v61 = vmax.f32 %v3969_v5, 0.0 }
 0x8d4   :  { %14191 = dma.done.wait [#allocation15 + $0x7], 20480 }
 0x8d5   :  { %14192 = vsyncadd [#allocation15 + $0x7], 4294946816 }
 0x8d6   :  { %14193 = dma.done.wait [#allocation15 + $0x8], 128 }
 0x8d7   :  { %14194 = vsyncadd [#allocation15 + $0x8], 4294967168  ;;  %4573 = vmatprep.mubr.bf16.mxu0 %v16964_v39  ;;  %v16163_v32 = vpack.c.bf16 %v16150_v12, %v16145_v36  ;;  %v12755_v3 = vld [vmem:[#allocation9 + $0x74] ss:$8 sps:$4 sm:$0xff]   ;;  %v12757_v15 = vld [vmem:[#allocation9 + $0x70] ss:$8 sps:$4 sm:$0xff]  }
 0x8d8   :  { %4468 = vmatprep.subr.bf16.mxu1 %v12755_v3  ;;  %v12758_v35 = vld [vmem:[#allocation9 + $0x64] ss:$8 sps:$4 sm:$0xff]   ;;  %v12760_v49 = vld [vmem:[#allocation9 + $0x60] ss:$8 sps:$4 sm:$0xff]   ;;  %v12761_v42 = vld [vmem:[#allocation9 + $0x54] ss:$8 sps:$4 sm:$0xff]  }
 0x8d9   :  { %4500 = vmatprep.mubr.bf16.mxu1 %v16163_v32  ;;  %4469 = vmatpush1.bf16.msra.mxu1 %v12757_v15  ;;  %v12763_v47 = vld [vmem:[#allocation9 + $0x50] ss:$8 sps:$4 sm:$0xff]   ;;  %v12764_v55 = vld [vmem:[#allocation9 + $0x44] ss:$8 sps:$4 sm:$0xff]   ;;  %v12766_v0 = vld [vmem:[#allocation9 + $0x40] ss:$8 sps:$4 sm:$0xff]  }
 0x8da   :  { %4470 = vmatprep.subr.bf16.mxu1 %v12758_v35  ;;  %v12778_v25 = vld [vmem:[#allocation9 + $0x174] ss:$8 sps:$4 sm:$0xff]   ;;  %v12781_v18 = vld [vmem:[#allocation9 + $0x170] ss:$8 sps:$4 sm:$0xff]   ;;  %v12784_v46 = vld [vmem:[#allocation9 + $0x164] ss:$8 sps:$4 sm:$0xff]  }
 0x8db   :  { %v12767_v48 = vld [vmem:[#allocation9 + $0x34] ss:$8 sps:$4 sm:$0xff]   ;;  %4541 = vmatprep.subr.bf16.mxu0 %v12778_v25  ;;  %v12787_v52 = vld [vmem:[#allocation9 + $0x160] ss:$8 sps:$4 sm:$0xff]   ;;  %v12769_v4 = vld [vmem:[#allocation9 + $0x30] ss:$8 sps:$4 sm:$0xff]  }
 0x8dc   :  { %4542 = vmatpush1.bf16.msra.mxu0 %v12781_v18  ;;  %v12770_v23 = vld [vmem:[#allocation9 + $0x24] ss:$8 sps:$4 sm:$0xff]   ;;  %v12790_v6 = vld [vmem:[#allocation9 + $0x154] ss:$8 sps:$4 sm:$0xff]   ;;  %v12793_v33 = vld [vmem:[#allocation9 + $0x150] ss:$8 sps:$4 sm:$0xff]  }
 0x8dd   :  { %4471 = vmatpush1.bf16.msra.mxu1 %v12760_v49  ;;  %4543 = vmatprep.subr.bf16.mxu0 %v12784_v46  ;;  %v12772_v11 = vld [vmem:[#allocation9 + $0x20] ss:$8 sps:$4 sm:$0xff]   ;;  %v12796_v53 = vld [vmem:[#allocation9 + $0x144] ss:$8 sps:$4 sm:$0xff]   ;;  %v12773_v57 = vld [vmem:[#allocation9 + $0x14] ss:$8 sps:$4 sm:$0xff]  }
 0x8de   :  { %4472 = vmatprep.subr.bf16.mxu1 %v12761_v42  ;;  %v12775_v60 = vld [vmem:[#allocation9 + $0x10] ss:$8 sps:$4 sm:$0xff]   ;;  %v12799_v1 = vld [vmem:[#allocation9 + $0x140] ss:$8 sps:$4 sm:$0xff]   ;;  %v12802_v13 = vld [vmem:[#allocation9 + $0x134] ss:$8 sps:$4 sm:$0xff]  }
 0x8df   :  { %v12776_v22 = vld [vmem:[#allocation9 + $0x4] ss:$8 sps:$4 sm:$0xff]   ;;  %v12805_v20 = vld [vmem:[#allocation9 + $0x130] ss:$8 sps:$4 sm:$0xff]   ;;  %v12780_v43 = vld [vmem:[#allocation9] ss:$8 sps:$4 sm:$0xff]  }
 0x8e0   :  { %4544 = vmatpush1.bf16.msra.mxu0 %v12787_v52  ;;  %v12808_v10 = vld [vmem:[#allocation9 + $0x124] ss:$8 sps:$4 sm:$0xff]   ;;  %v12782_v58 = vld [vmem:[#allocation9 + $0xf4] ss:$8 sps:$4 sm:$0xff]   ;;  %v12786_v38 = vld [vmem:[#allocation9 + $0xf0] ss:$8 sps:$4 sm:$0xff]  }
 0x8e1   :  { %4473 = vmatpush1.bf16.msra.mxu1 %v12763_v47  ;;  %4545 = vmatprep.subr.bf16.mxu0 %v12790_v6  ;;  %v12811_v7 = vld [vmem:[#allocation9 + $0x120] ss:$8 sps:$4 sm:$0xff]   ;;  %v12788_v31 = vld [vmem:[#allocation9 + $0xe4] ss:$8 sps:$4 sm:$0xff]   ;;  %v12814_v14 = vld [vmem:[#allocation9 + $0x114] ss:$8 sps:$4 sm:$0xff]  }
 0x8e2   :  { %4474 = vmatprep.subr.bf16.mxu1 %v12764_v55  ;;  %v12817_v44 = vld [vmem:[#allocation9 + $0x110] ss:$8 sps:$4 sm:$0xff]   ;;  %v12792_v51 = vld [vmem:[#allocation9 + $0xe0] ss:$8 sps:$4 sm:$0xff]   ;;  %v12820_v8 = vld [vmem:[#allocation9 + $0x104] ss:$8 sps:$4 sm:$0xff]  }
 0x8e3   :  { %v12794_v27 = vld [vmem:[#allocation9 + $0xd4] ss:$8 sps:$4 sm:$0xff]   ;;  %v4173_v28 = vrot.slane %v16145_v36, 1  ;;  %v4174_v29 = vrot.slane %v16150_v12, 1  ;;  %v4175_v9 = vrot.slane %v16143_v54, 1  ;;  %vm17018_vm10 = vcmp.lt.s32.totalorder %v14414_v24, 7 }
 0x8e4   :  { %4546 = vmatpush1.bf16.msra.mxu0 %v12793_v33  ;;  %v12823_v30 = vld [vmem:[#allocation9 + $0x100] ss:$8 sps:$4 sm:$0xff]   ;;  %v12798_v5 = vld [vmem:[#allocation9 + $0xd0] ss:$8 sps:$4 sm:$0xff]   ;;  %v12800_v3 = vld [vmem:[#allocation9 + $0xc4] ss:$8 sps:$4 sm:$0xff]  }
 0x8e5   :  { %4475 = vmatpush1.bf16.msra.mxu1 %v12766_v0  ;;  %4547 = vmatprep.subr.bf16.mxu0 %v12796_v53  ;;  %v4186_v15 = vsel %vm17018_vm10, %v4174_v29, %v4175_v9  ;;  %vm17019_vm11 = vmmov %vm17018_vm10  ;;  %v12804_v49 = vld [vmem:[#allocation9 + $0xc0] ss:$8 sps:$4 sm:$0xff]   ;;  %v12806_v47 = vld [vmem:[#allocation9 + $0xb4] ss:$8 sps:$4 sm:$0xff]   ;;  %v4176_v55 = vrot.slane %v16147_v16, 1  ;;  %v4177_v0 = vrot.slane %v16154_v37, 1 }
 0x8e6   :  { %4476 = vmatprep.subr.bf16.mxu1 %v12767_v48  ;;  %v4187_v35 = vsel %vm17019_vm11, %v4173_v28, %v4174_v29  ;;  %v12810_v25 = vld [vmem:[#allocation9 + $0xb0] ss:$8 sps:$4 sm:$0xff]   ;;  %v12812_v18 = vld [vmem:[#allocation9 + $0xa4] ss:$8 sps:$4 sm:$0xff]   ;;  %vm17020_vm14 = vmmov %vm17018_vm10  ;;  %v4178_v6 = vrot.slane %v16158_v61, 1  ;;  %v4179_v33 = vrot.slane %v16152_v62, 1 }
 0x8e7   :  { %v4199_v42 = vpack.c.bf16 %v4186_v15, %v4187_v35  ;;  %v4184_v48 = vsel %vm17020_vm14, %v4176_v55, %v4177_v0  ;;  %vm17021_vm15 = vmmov %vm17018_vm10  ;;  %v12816_v52 = vld [vmem:[#allocation9 + $0xa0] ss:$8 sps:$4 sm:$0xff]   ;;  %v12824_v53 = vld [vmem:[#allocation9 + $0x84] ss:$8 sps:$4 sm:$0xff]   ;;  %v4153_v40 = vrot.slane %v16154_v37, 7  ;;  %vm17036_vm11 = vmmov 1  }
 0x8e8   :  { %4548 = vmatpush1.bf16.msra.mxu0 %v12799_v1  ;;  %v4185_v46 = vsel %vm17021_vm15, %v4175_v9, %v4176_v55  ;;  %vm17022_vm0 = vmmov %vm17018_vm10  ;;  %v4149_v1 = vrot.slane %v16145_v36, 7  ;;  %v16231_v9 = vpack.c.bf16 %v16156_v21, %v16152_v62  ;;  %v12838_v15 = vld [vmem:[#allocation9 + $0x1f4] ss:$8 sps:$4 sm:$0xff]   ;;  %v12844_v35 = vld [vmem:[#allocation9 + $0x1e4] ss:$8 sps:$4 sm:$0xff]  }
 0x8e9   :  { %4477 = vmatpush1.bf16.msra.mxu1 %v12769_v4  ;;  %4549 = vmatprep.subr.bf16.mxu0 %v12802_v13  ;;  %v11395_v4 = vpack.c.bf16 %v4184_v48, %v4185_v46  ;;  %vm17023_vm2 = vmmov %vm17022_vm0  ;;  %v4150_v13 = vrot.slane %v16150_v12, 7  ;;  %v12848_v17 = vld [vmem:[#allocation9 + $0x1d0] ss:$8 sps:$4 sm:$0xff]   ;;  %v12862_v55 = vld [vmem:[#allocation9 + $0x1b4] ss:$8 sps:$4 sm:$0xff]  }
 0x8ea   :  { %4478 = vmatprep.subr.bf16.mxu1 %v12770_v23  ;;  %v12818_v23 = vld [vmem:[#allocation9 + $0x94] ss:$8 sps:$4 sm:$0xff]   ;;  %vm17025_vm3 = vmmov %vm17022_vm0  ;;  %v12878_v46 = vld [vmem:[#allocation9 + $0x180] ss:$8 sps:$4 sm:$0xff]  }
 0x8eb   :  { %v12874_v48 = vld [vmem:[#allocation9 + $0x194] ss:$8 sps:$4 sm:$0xff]   ;;  %vm17034_vm7 = vmmov %vm17022_vm0 }
 0x8ec   :  { %4550 = vmatpush1.bf16.msra.mxu0 %v12805_v20  ;;  %v12826_v20 = vld [vmem:[#allocation9 + $0x80] ss:$8 sps:$4 sm:$0xff]   ;;  %vm17035_vm8 = vmmov %vm17022_vm0 }
 0x8ed   :  { %4479 = vmatpush1.bf16.msra.mxu1 %v12772_v11  ;;  %4551 = vmatprep.subr.bf16.mxu0 %v12808_v10  ;;  %v12822_v11 = vld [vmem:[#allocation9 + $0x90] ss:$8 sps:$4 sm:$0xff]   ;;  %v4163_v10 = vsel %vm887_vm6, %v4149_v1, %v4150_v13 }
 0x8ee   :  { %4480 = vmatprep.subr.bf16.mxu1 %v12773_v57  ;;  %v4182_v57 = vsel %vm17022_vm0, %v4178_v6, %v4179_v33 }
 0x8f0   :  { %4552 = vmatpush1.bf16.msra.mxu0 %v12811_v7  ;;  %v16204_v7 = vpack.c.bf16 %v16147_v16, %v16143_v54 }
 0x8f1   :  { %4481 = vmatpush1.bf16.msra.mxu1 %v12775_v60  ;;  %4553 = vmatprep.subr.bf16.mxu0 %v12814_v14  ;;  %v4183_v60 = vsel %vm17023_vm2, %v4177_v0, %v4178_v6  ;;  %v4152_v14 = vrot.slane %v16147_v16, 7  ;;  %v4154_v16 = vrot.slane %v16158_v61, 7  ;;  %v12866_v0 = vld [vmem:[#allocation9 + $0x1a0] ss:$8 sps:$4 sm:$0xff]  }
 0x8f2   :  { %4482 = vmatprep.subr.bf16.mxu1 %v12776_v22  ;;  %v4156_v22 = vrot.slane %v16156_v21, 7  ;;  %v4205_v56 = vpack.c.bf16 %v4182_v57, %v4183_v60  ;;  %v12890_v6 = vld [vmem:[#allocation9 + $0x260] ss:$8 sps:$4 sm:$0xff]  }
 0x8f3   :  { %v4160_v19 = vsel %vm887_vm6, %v4152_v14, %v4153_v40 }
 0x8f4   :  { %4554 = vmatpush1.bf16.msra.mxu0 %v12817_v44 }
 0x8f5   :  { %4483 = vmatpush1.bf16.msra.mxu1 %v12780_v43  ;;  %4555 = vmatprep.subr.bf16.mxu0 %v12820_v8  ;;  %v4180_v43 = vrot.slane %v16156_v21, 1  ;;  %v12842_v21 = vld [vmem:[#allocation9 + $0x1e0] ss:$8 sps:$4 sm:$0xff]  }
 0x8f6   :  { %4484 = vmatprep.subr.bf16.mxu1 %v12782_v58  ;;  %v4164_v58 = vsel %vm887_vm6, %v4156_v22, %v4149_v1 }
 0x8f7   :  { %v4188_v12 = vsel %vm17025_vm3, %v4180_v43, %v4173_v28  ;;  %v4159_v28 = vsel %vm887_vm6, %v4153_v40, %v4154_v16 }
 0x8f8   :  { %4556 = vmatpush1.bf16.msra.mxu0 %v12823_v30  ;;  %v11391_v29 = vpack.c.bf16 %v4159_v28, %v4160_v19  ;;  %v4155_v30 = vrot.slane %v16152_v62, 7  ;;  %v12850_v62 = vld [vmem:[#allocation9 + $0x1d4] ss:$8 sps:$4 sm:$0xff]   ;;  %v16255_v19 = vld [vmem:[#allocation10] sm:$0x77] }
 0x8f9   :  { %4485 = vmatpush2.bf16.msra.mxu1 %v12786_v38  ;;  %v11387_v38 = vpack.c.bf16 %v4163_v10, %v4164_v58  ;;  %17026 = vst [vmem:[#allocation58_spill] sm:$0xff] %v16255_v19 }
 0x8fa   :  { %4486 = vmatprep.subr.bf16.mxu1 %v12788_v31  ;;  %v4151_v31 = vrot.slane %v16143_v54, 7  ;;  %v16220_v54 = vpack.c.bf16 %v16158_v61, %v16154_v37  ;;  %v4157_v37 = vsel %vm887_vm6, %v4155_v30, %v4156_v22  ;;  %v4158_v61 = vsel %vm887_vm6, %v4154_v16, %v4155_v30 }
 0x8fb   :  { %4574 = vmatmul.mubr.bf16.vlgmr.msra.gmra.mxu0 %v4199_v42  ;;  %v12856_v42 = vld [vmem:[#allocation9 + $0x1c4] ss:$8 sps:$4 sm:$0xff]  }
 0x8fc   :  { %4583 = vmatprep.mubr.bf16.mxu0 %v16964_v39  ;;  %v4162_v8 = vsel %vm887_vm6, %v4150_v13, %v4151_v31 }
 0x8fd   :  { %4487 = vmatpush2.bf16.msra.mxu1 %v12792_v51  ;;  %v4161_v51 = vsel %vm887_vm6, %v4151_v31, %v4152_v14 }
 0x8fe   :  { %4488 = vmatprep.subr.bf16.mxu1 %v12794_v27  ;;  %v4200_v27 = vpack.c.bf16 %v4161_v51, %v4162_v8 }
 0x901   :  { %4489 = vmatpush2.bf16.msra.mxu1 %v12798_v5  ;;  %v4206_v5 = vpack.c.bf16 %v4157_v37, %v4158_v61  ;;  %v17027_v37 = vld [vmem:[#allocation69_spill] sm:$0xff] }
 0x902   :  { %4490 = vmatprep.subr.bf16.mxu1 %v12800_v3  ;;  %v12836_v3 = vld [vmem:[#allocation9 + $0x1f0] ss:$8 sps:$4 sm:$0xff]   ;;  %v4217_v61 = vrot.slane %v16255_v19, %v17027_v37 }
 0x903   :  { %11396 = vmatmul.mubr.msk.bf16.gmra.mxu0 %vm16029_vm13, %v11395_v4  ;;  %vm17024_vm13 = vmmov %vm17022_vm0  ;;  %v12884_v4 = vld [vmem:[#allocation9 + $0x270] ss:$8 sps:$4 sm:$0xff]  }
 0x904   :  { %4593 = vmatprep.mubr.bf16.mxu0 %v16964_v39  ;;  %v4181_v36 = vsel %vm17024_vm13, %v4179_v33, %v4180_v43  ;;  %v12892_v33 = vld [vmem:[#allocation9 + $0x264] ss:$8 sps:$4 sm:$0xff]  }
 0x905   :  { %4491 = vmatpush2.bf16.msra.mxu1 %v12804_v49  ;;  %v11399_v44 = vpack.c.bf16 %v4188_v12, %v4181_v36  ;;  %v12854_v49 = vld [vmem:[#allocation9 + $0x1c0] ss:$8 sps:$4 sm:$0xff]  }
 0x906   :  { %4492 = vmatprep.subr.bf16.mxu1 %v12806_v47  ;;  %v12860_v47 = vld [vmem:[#allocation9 + $0x1b0] ss:$8 sps:$4 sm:$0xff]  }
 0x909   :  { %4493 = vmatpush2.bf16.msra.mxu1 %v12810_v25  ;;  %v12868_v25 = vld [vmem:[#allocation9 + $0x1a4] ss:$8 sps:$4 sm:$0xff]  }
 0x90a   :  { %4494 = vmatprep.subr.bf16.mxu1 %v12812_v18  ;;  %v12872_v18 = vld [vmem:[#allocation9 + $0x190] ss:$8 sps:$4 sm:$0xff]  }
 0x90b   :  { %4594 = vmatmul.mubr.bf16.gmra.mxu0 %v4205_v56 }
 0x90c   :  { %4603 = vmatprep.mubr.bf16.mxu0 %v16964_v39 }
 0x90d   :  { %4495 = vmatpush2.bf16.msra.mxu1 %v12816_v52  ;;  %v12880_v52 = vld [vmem:[#allocation9 + $0x184] ss:$8 sps:$4 sm:$0xff]  }
 0x90e   :  { %4496 = vmatprep.subr.bf16.mxu1 %v12818_v23  ;;  %v12886_v23 = vld [vmem:[#allocation9 + $0x274] ss:$8 sps:$4 sm:$0xff]  }
 0x911   :  { %4497 = vmatpush2.bf16.msra.mxu1 %v12822_v11  ;;  %v12896_v11 = vld [vmem:[#allocation9 + $0x250] ss:$8 sps:$4 sm:$0xff]  }
 0x912   :  { %4498 = vmatprep.subr.bf16.mxu1 %v12824_v53  ;;  %v12898_v53 = vld [vmem:[#allocation9 + $0x254] ss:$8 sps:$4 sm:$0xff]  }
 0x913   :  { %11400 = vmatmul.mubr.msk.bf16.gmra.mxu0 %vm16066_vm1, %v11399_v44  ;;  %vm17030_vm1 = vmmov %vm17022_vm0 }
 0x914   :  { %4676 = vmatprep.mubr.bf16.mxu0 %v16964_v39  ;;  %vm17042_vm13 = vmmov %vm17030_vm1 }
 0x915   :  { %4499 = vmatpush2.bf16.msra.mxu1 %v12826_v20  ;;  %vm17043_vm3 = vmmov %vm17030_vm1 }
 0x916   :  { %5327 = vmatprep.subr.bf16.mxu1 %v12838_v15 }
 0x918   :  { %11388 = vmatmul.mubr.msk.bf16.vlgmr.msra.gmra.mxu1 %vm16042_vm12, %v11387_v38  ;;  %vm17029_vm12 = vmmov %vm17013_vm4 }
 0x919   :  { %4510 = vmatprep.mubr.bf16.mxu1 %v16204_v7  ;;  %5328 = vmatpush1.bf16.msra.mxu1 %v12836_v3 }
 0x91a   :  { %5329 = vmatprep.subr.bf16.mxu1 %v12844_v35  ;;  %v4227_v35 = vrot.slane %v4217_v61, %v16989_v2 }
 0x91d   :  { %5330 = vmatpush1.bf16.msra.mxu1 %v12842_v21 }
 0x91e   :  { %5331 = vmatprep.subr.bf16.mxu1 %v12850_v62 }
 0x920   :  { %4511 = vmatmul.mubr.bf16.gmra.mxu1 %v4200_v27 }
 0x921   :  { %4520 = vmatprep.mubr.bf16.mxu1 %v16220_v54  ;;  %5332 = vmatpush1.bf16.msra.mxu1 %v12848_v17 }
 0x922   :  { %5333 = vmatprep.subr.bf16.mxu1 %v12856_v42 }
 0x925   :  { %5334 = vmatpush1.bf16.msra.mxu1 %v12854_v49 }
 0x926   :  { %5335 = vmatprep.subr.bf16.mxu1 %v12862_v55 }
 0x928   :  { %11392 = vmatmul.mubr.msk.bf16.gmra.mxu1 %vm16088_vm9, %v11391_v29  ;;  %vm17028_vm9 = vmmov %vm17013_vm4 }
 0x929   :  { %4530 = vmatprep.mubr.bf16.mxu1 %v16231_v9  ;;  %5336 = vmatpush1.bf16.msra.mxu1 %v12860_v47  ;;  %vm17031_vm4 = vmmov %vm17022_vm0 }
 0x92a   :  { %5337 = vmatprep.subr.bf16.mxu1 %v12868_v25  ;;  %vm17041_vm0 = vmmov %vm17028_vm9 }
 0x92d   :  { %5338 = vmatpush1.bf16.msra.mxu1 %v12866_v0 }
 0x92e   :  { %5339 = vmatprep.subr.bf16.mxu1 %v12874_v48 }
 0x930   :  { %4531 = vmatmul.mubr.bf16.gmra.mxu1 %v4206_v5  ;;  %v4213_v5 = vrot.slane %v16255_v19, %v16989_v2 }
 0x931   :  { %5340 = vmatpush1.bf16.msra.mxu1 %v12872_v18 }
 0x932   :  { %5341 = vmatprep.subr.bf16.mxu1 %v12880_v52  ;;  %v4223_v17 = vrot.slane %v4213_v5, %v16989_v2 }
 0x935   :  { %5342 = vmatpush1.bf16.msra.mxu1 %v12878_v46 }
 0x936   :  { %5343 = vmatprep.subr.bf16.mxu1 %v12886_v23 }
 0x939   :  { %5344 = vmatpush2.bf16.msra.mxu1 %v12884_v4 }
 0x93a   :  { %5345 = vmatprep.subr.bf16.mxu1 %v12892_v33 }
 0x93d   :  { %5346 = vmatpush2.bf16.msra.mxu1 %v12890_v6 }
 0x93e   :  { %5347 = vmatprep.subr.bf16.mxu1 %v12898_v53 }
 0x941   :  { %5348 = vmatpush2.bf16.msra.mxu1 %v12896_v11 }
 0x9bb   :  { %v16241_v57 = vpop.f32.mrf.mxu0 }
 0x9bd   :  { %v16243_v60 = vpop.f32.mrf.mxu0 }
 0x9bf   :  { %v16245_v1 = vpop.f32.mrf.mxu0 }
 0x9c1   :  { %v16247_v13 = vpop.f32.mrf.mxu0 }
 0x9c3   :  { %v16249_v22 = vpop.f32.mrf.mxu0 }
 0x9c5   :  { %v4587_v20 = vpop.f32.mrf.mxu0 }
 0x9c7   :  { %v16251_v56 = vpop.f32.mrf.mxu0 }
 0x9c9   :  { %v4591_v10 = vpop.f32.mrf.mxu0 }
 0x9cb   :  { %v4595_v36 = vpop.f32.mrf.mxu0 }
 0x9cd   :  { %v4597_v14 = vpop.f32.mrf.mxu0 }
 0x9cf   :  { %v4599_v8 = vpop.f32.mrf.mxu0 }
 0x9d1   :  { %v4601_v16 = vpop.f32.mrf.mxu0 }
 0x9d3   :  { %v4605_v30 = vpop.f32.mrf.mxu0 }
 0x9d5   :  { %v4607_v15 = vpop.f32.mrf.mxu0 }
 0x9d7   :  { %v4609_v55 = vpop.f32.mrf.mxu0 }
 0x9d8   :  { %v16253_v43 = vpop.f32.mrf.mxu1 }
 0x9d9   :  { %v4611_v61 = vpop.f32.mrf.mxu0 }
 0x9da   :  { %v4504_v58 = vpop.f32.mrf.mxu1 }
 0x9dc   :  { %v4506_v38 = vpop.f32.mrf.mxu1 }
 0x9de   :  { %v4508_v12 = vpop.f32.mrf.mxu1 }
 0x9e0   :  { %v4512_v31 = vpop.f32.mrf.mxu1 }
 0x9e2   :  { %v4514_v44 = vpop.f32.mrf.mxu1 }
 0x9e3   :  { %v4515_v37 = vadd.f32 %v4514_v44, %v4227_v35 }
 0x9e4   :  { %v4516_v51 = vpop.f32.mrf.mxu1 }
 0x9e6   :  { %v4518_v27 = vpop.f32.mrf.mxu1 }
 0x9e7   :  { %v4519_v48 = vadd.f32 %v4518_v27, %v4227_v35 }
 0x9e8   :  { %v4522_v40 = vpop.f32.mrf.mxu1 }
 0x9e9   :  { %v4523_v11 = vadd.f32 %v4522_v40, %v4223_v17  ;;  %v4592_v19 = vadd.f32 %v4591_v10, %v4519_v48  ;;  %v12833_v48 = vld [vmem:[#allocation9 + $0x2d0] ss:$8 sps:$4 sm:$0xff]  }
 0x9ea   :  { %v4524_v28 = vpop.f32.mrf.mxu1 }
 0x9eb   :  { %v4525_v25 = vadd.f32 %v4524_v28, %v4227_v35  ;;  %v4596_v63 = vadd.f32 %v4595_v36, %v4523_v11  ;;  %v12859_v11 = vld [vmem:[#allocation9 + $0x294] ss:$8 sps:$4 sm:$0xff]  }
 0x9ec   :  { %v4526_v29 = vpop.f32.mrf.mxu1 }
 0x9ed   :  { %v4527_v46 = vadd.f32 %v4526_v29, %v4223_v17  ;;  %v4598_v5 = vadd.f32 %v4597_v14, %v4525_v25  ;;  %v4513_v29 = vadd.f32 %v4512_v31, %v4223_v17  ;;  %v4622_v36 = vmax.f32 %v4596_v63, 0.0  ;;  %v12832_v25 = vld [vmem:[#allocation9 + $0x2e4] ss:$8 sps:$4 sm:$0xff]  }
 0x9ee   :  { %v4528_v3 = vpop.f32.mrf.mxu1 }
 0x9ef   :  { %v4529_v49 = vadd.f32 %v4528_v3, %v4227_v35  ;;  %v4509_v3 = vadd.f32 %v4508_v12, %v4227_v35 }
 0x9f0   :  { %v4532_v21 = vpop.f32.mrf.mxu1 }
 0x9f1   :  { %v4533_v47 = vadd.f32 %v4532_v21, %v4223_v17  ;;  %v4602_v4 = vadd.f32 %v4601_v16, %v4529_v49  ;;  %v4600_v21 = vadd.f32 %v4599_v8, %v4527_v46  ;;  %v4588_v49 = vadd.f32 %v4587_v20, %v4515_v37  ;;  %v12841_v46 = vld [vmem:[#allocation9 + $0x2c4] ss:$8 sps:$4 sm:$0xff]  }
 0x9f2   :  { %v4534_v62 = vpop.f32.mrf.mxu1  ;;  %v4582_v12 = vadd.f32 %v16247_v13, %v4509_v3  ;;  %v4503_v8 = vadd.f32 %v16253_v43, %v4223_v17  ;;  %v12871_v3 = vld [vmem:[#allocation9 + $0x374] ss:$8 sps:$4 sm:$0xff]  }
 0x9f3   :  { %v4535_v42 = vadd.f32 %v4534_v62, %v4227_v35  ;;  %v4606_v53 = vadd.f32 %v4605_v30, %v4533_v47  ;;  %v4517_v62 = vadd.f32 %v4516_v51, %v4223_v17  ;;  %v4625_v28 = vmax.f32 %v4602_v4, 0.0  ;;  %v12847_v4 = vld [vmem:[#allocation9 + $0x2b4] ss:$8 sps:$4 sm:$0xff]  }
 0x9f4   :  { %v4536_v0 = vpop.f32.mrf.mxu1  ;;  %v4507_v30 = vadd.f32 %v4506_v38, %v4223_v17  ;;  %v4624_v14 = vmax.f32 %v4600_v21, 0.0  ;;  %v4621_v51 = vmax.f32 %v4592_v19, 0.0  ;;  %v4576_v13 = vadd.f32 %v16241_v57, %v4503_v8  ;;  %v12830_v57 = vld [vmem:[#allocation9 + $0x2e0] ss:$8 sps:$4 sm:$0xff]   ;;  %v12877_v21 = vld [vmem:[#allocation9 + $0x364] ss:$8 sps:$4 sm:$0xff]  }
 0x9f5   :  { %v4537_v18 = vadd.f32 %v4536_v0, %v4223_v17  ;;  %v4608_v23 = vadd.f32 %v4607_v15, %v4535_v42  ;;  %v4626_v16 = vmax.f32 %v4606_v53, 0.0  ;;  %v4505_v15 = vadd.f32 %v4504_v58, %v4227_v35  ;;  %v12857_v53 = vld [vmem:[#allocation9 + $0x290] ss:$8 sps:$4 sm:$0xff]   ;;  %v12911_v8 = vld [vmem:[#allocation9 + $0x300] ss:$8 sps:$4 sm:$0xff]  }
 0x9f6   :  { %v4538_v52 = vpop.f32.mrf.mxu1  ;;  %v4623_v42 = vmax.f32 %v4598_v5, 0.0  ;;  %v4590_v44 = vadd.f32 %v16251_v56, %v4517_v62  ;;  %v4619_v58 = vmax.f32 %v4588_v49, 0.0  ;;  %v4580_v38 = vadd.f32 %v16245_v1, %v4507_v30  ;;  %v12827_v1 = vld [vmem:[#allocation9 + $0x2f0] ss:$8 sps:$4 sm:$0xff]   ;;  %v12863_v5 = vld [vmem:[#allocation9 + $0x280] ss:$8 sps:$4 sm:$0xff]  }
 0x9f7   :  { %v4610_v6 = vadd.f32 %v4609_v55, %v4537_v18  ;;  %v4539_v33 = vadd.f32 %v4538_v52, %v4227_v35  ;;  %v4627_v0 = vmax.f32 %v4608_v23, 0.0  ;;  %v4578_v20 = vadd.f32 %v16243_v60, %v4505_v15  ;;  %v12829_v60 = vld [vmem:[#allocation9 + $0x2f4] ss:$8 sps:$4 sm:$0xff]   ;;  %v12839_v52 = vld [vmem:[#allocation9 + $0x2c0] ss:$8 sps:$4 sm:$0xff]  }
 0x9f8   :  { %v4635_v10 = vpack.c.bf16 %v4625_v28, %v4623_v42  ;;  %v4620_v56 = vmax.f32 %v4590_v44, 0.0  ;;  %v4634_v31 = vpack.c.bf16 %v4624_v14, %v4622_v36  ;;  %v4633_v37 = vpack.c.bf16 %v4621_v51, %v4619_v58  ;;  %v12835_v18 = vld [vmem:[#allocation9 + $0x2d4] ss:$8 sps:$4 sm:$0xff]   ;;  %v12845_v23 = vld [vmem:[#allocation9 + $0x2b0] ss:$8 sps:$4 sm:$0xff]  }
 0x9f9   :  { %v4612_v2 = vadd.f32 %v4611_v61, %v4539_v33  ;;  %v4628_v50 = vmax.f32 %v4610_v6, 0.0  ;;  %v4615_v35 = vmax.f32 %v4578_v20, 0.0  ;;  %v4616_v43 = vmax.f32 %v4580_v38, 0.0  ;;  %v12853_v6 = vld [vmem:[#allocation9 + $0x2a4] ss:$8 sps:$4 sm:$0xff]  }
 0x9fa   :  { %v4614_v17 = vmax.f32 %v4576_v13, 0.0  ;;  %v12851_v33 = vld [vmem:[#allocation9 + $0x2a0] ss:$8 sps:$4 sm:$0xff]   ;;  %v12865_v61 = vld [vmem:[#allocation9 + $0x284] ss:$8 sps:$4 sm:$0xff]  }
 0x9fb   :  { %v4629_v27 = vmax.f32 %v4612_v2, 0.0  ;;  %v4636_v47 = vpack.c.bf16 %v4628_v50, %v4626_v16  ;;  %v4586_v2 = vadd.f32 %v16249_v22, %v4513_v29  ;;  %v4617_v50 = vmax.f32 %v4582_v12, 0.0  ;;  %v12869_v62 = vld [vmem:[#allocation9 + $0x370] ss:$8 sps:$4 sm:$0xff]   ;;  %v12875_v28 = vld [vmem:[#allocation9 + $0x360] ss:$8 sps:$4 sm:$0xff]  }
 0x9fc   :  { %v4630_v55 = vpack.c.bf16 %v4616_v43, %v4614_v17  ;;  %v12889_v29 = vld [vmem:[#allocation9 + $0x344] ss:$8 sps:$4 sm:$0xff]   ;;  %v12887_v16 = vld [vmem:[#allocation9 + $0x340] ss:$8 sps:$4 sm:$0xff]   ;;  %v12895_v15 = vld [vmem:[#allocation9 + $0x334] ss:$8 sps:$4 sm:$0xff]  }
 0x9fd   :  { %v4637_v40 = vpack.c.bf16 %v4629_v27, %v4627_v0  ;;  %v4618_v19 = vmax.f32 %v4586_v2, 0.0  ;;  %v4631_v63 = vpack.c.bf16 %v4617_v50, %v4615_v35  ;;  %v12883_v0 = vld [vmem:[#allocation9 + $0x354] ss:$8 sps:$4 sm:$0xff]   ;;  %v12881_v27 = vld [vmem:[#allocation9 + $0x350] ss:$8 sps:$4 sm:$0xff]  }
 0x9fe   :  { %v12893_v49 = vld [vmem:[#allocation9 + $0x330] ss:$8 sps:$4 sm:$0xff]   ;;  %v12901_v42 = vld [vmem:[#allocation9 + $0x324] ss:$8 sps:$4 sm:$0xff]   ;;  %v12902_v44 = vld [vmem:[#allocation9 + $0x240] ss:$8 sps:$4 sm:$0xff]  }
 0x9ff   :  { %4652 = vmatprep.subr.bf16.mxu0 %v4637_v40  ;;  %v4632_v22 = vpack.c.bf16 %v4620_v56, %v4618_v19  ;;  %v12899_v40 = vld [vmem:[#allocation9 + $0x320] ss:$8 sps:$4 sm:$0xff]   ;;  %v12904_v30 = vld [vmem:[#allocation9 + $0x244] ss:$8 sps:$4 sm:$0xff]   ;;  %v12907_v14 = vld [vmem:[#allocation9 + $0x314] ss:$8 sps:$4 sm:$0xff]  }
 0xa00   :  { %4653 = vmatpush1.bf16.msra.mxu0 %v4636_v47  ;;  %5349 = vmatprep.subr.bf16.mxu1 %v12904_v30  ;;  %v12905_v47 = vld [vmem:[#allocation9 + $0x310] ss:$8 sps:$4 sm:$0xff]   ;;  %v12910_v12 = vld [vmem:[#allocation9 + $0x234] ss:$8 sps:$4 sm:$0xff]   ;;  %v12916_v2 = vld [vmem:[#allocation9 + $0x224] ss:$8 sps:$4 sm:$0xff]  }
 0xa01   :  { %4654 = vmatprep.subr.bf16.mxu0 %v4635_v10  ;;  %5350 = vmatpush2.bf16.msra.mxu1 %v12902_v44  ;;  %v12908_v51 = vld [vmem:[#allocation9 + $0x230] ss:$8 sps:$4 sm:$0xff]   ;;  %v12913_v10 = vld [vmem:[#allocation9 + $0x304] ss:$8 sps:$4 sm:$0xff]   ;;  %v12914_v36 = vld [vmem:[#allocation9 + $0x220] ss:$8 sps:$4 sm:$0xff]  }
 0xa02   :  { %5351 = vmatprep.subr.bf16.mxu1 %v12910_v12  ;;  %v12919_v20 = vld [vmem:[#allocation9 + $0x214] ss:$8 sps:$4 sm:$0xff]   ;;  %v12917_v58 = vld [vmem:[#allocation9 + $0x210] ss:$8 sps:$4 sm:$0xff]   ;;  %v12922_v38 = vld [vmem:[#allocation9 + $0x204] ss:$8 sps:$4 sm:$0xff]  }
 0xa03   :  { %v12920_v56 = vld [vmem:[#allocation9 + $0x200] ss:$8 sps:$4 sm:$0xff]   ;;  %v4708_v12 = vand.u32 15, %v16978_v26 }
 0xa04   :  { %4655 = vmatpush1.bf16.msra.mxu0 %v4634_v31  ;;  %v12925_v31 = vld [vmem:[#allocation9 + $0x3f4] ss:$8 sps:$4 sm:$0xff]  }
 0xa05   :  { %4656 = vmatprep.subr.bf16.mxu0 %v4633_v37  ;;  %5352 = vmatpush2.bf16.msra.mxu1 %v12908_v51  ;;  %vm12356_vm2 = vcmp.lt.s32.totalorder %v4708_v12, 15  ;;  %v12968_v12 = vld [vmem:[#allocation9 + $0x400] ss:$8 sps:$4 sm:$0xff]  }
 0xa06   :  { %5353 = vmatprep.subr.bf16.mxu1 %v12916_v2 }
 0xa08   :  { %4657 = vmatpush1.bf16.msra.mxu0 %v4632_v22 }
 0xa09   :  { %4658 = vmatprep.subr.bf16.mxu0 %v4631_v63  ;;  %5354 = vmatpush2.bf16.msra.mxu1 %v12914_v36  ;;  %v12931_v36 = vld [vmem:[#allocation9 + $0x3d4] ss:$8 sps:$4 sm:$0xff]  }
 0xa0a   :  { %5355 = vmatprep.subr.bf16.mxu1 %v12919_v20 }
 0xa0c   :  { %4659 = vmatpush1.bf16.msra.mxu0 %v4630_v55 }
 0xa0d   :  { %5380 = vmatprep.subr.bf16.mxu0 %v12829_v60  ;;  %5356 = vmatpush2.bf16.msra.mxu1 %v12917_v58  ;;  %v12971_v58 = vld [vmem:[#allocation9 + $0x4f0] ss:$8 sps:$4 sm:$0xff]  }
 0xa0e   :  { %5357 = vmatprep.subr.bf16.mxu1 %v12922_v38 }
 0xa0f   :  { %11401 = vmatmul.mubr.msk.bf16.vlgmr.msra.gmra.mxu0 %vm17028_vm9, %v15907_v34  ;;  %vm17044_vm9 = vmmov %vm17041_vm0 }
 0xa10   :  { %4686 = vmatprep.mubr.bf16.mxu0 %v16964_v39  ;;  %5381 = vmatpush1.bf16.msra.mxu0 %v12827_v1 }
 0xa11   :  { %5382 = vmatprep.subr.bf16.mxu0 %v12832_v25  ;;  %5358 = vmatpush2.bf16.msra.mxu1 %v12920_v56  ;;  %v4701_v25 = vand.u32 15, %v14414_v24 }
 0xa12   :  { %5433 = vmatprep.subr.bf16.mxu1 %v12925_v31  ;;  %v12976_v31 = vld [vmem:[#allocation9 + $0x4e4] ss:$8 sps:$4 sm:$0xff]  }
 0xa13   :  { %vm16308_vm5 = vcmp.ge.s32.totalorder %v4701_v25, 1  ;;  %v12940_v25 = vld [vmem:[#allocation9 + $0x3a4] ss:$8 sps:$4 sm:$0xff]  }
 0xa14   :  { %5383 = vmatpush1.bf16.msra.mxu0 %v12830_v57  ;;  %vm16342_vm14 = vmpackc.low %vm17036_vm11, %vm16308_vm5 }
 0xa15   :  { %5384 = vmatprep.subr.bf16.mxu0 %v12835_v18  ;;  %vm17048_vm5 = vmmov %vm17043_vm3 }
 0xa17   :  { %11402 = vmatmul.mubr.msk.bf16.gmra.mxu0 %vm17029_vm12, %v15919_v45  ;;  %vm16386_vm12 = vmpackc.low %vm12356_vm2, %vm17036_vm11 }
 0xa18   :  { %5385 = vmatpush1.bf16.msra.mxu0 %v12833_v48 }
 0xa19   :  { %5386 = vmatprep.subr.bf16.mxu0 %v12841_v46 }
 0xa1c   :  { %5387 = vmatpush1.bf16.msra.mxu0 %v12839_v52 }
 0xa1d   :  { %5388 = vmatprep.subr.bf16.mxu0 %v12847_v4  ;;  %v4715_v4 = vand.u32 15, %v16979_v41 }
 0xa1f   :  { %vm12355_vm10 = vcmp.ge.s32.totalorder %v4715_v4, 1  ;;  %v12946_v4 = vld [vmem:[#allocation9 + $0x384] ss:$8 sps:$4 sm:$0xff]  }
 0xa20   :  { %5389 = vmatpush1.bf16.msra.mxu0 %v12845_v23  ;;  %vm16351_vm15 = vmpackc.low %vm17036_vm11, %vm12355_vm10 }
 0xa21   :  { %5390 = vmatprep.subr.bf16.mxu0 %v12853_v6 }
 0xa24   :  { %5391 = vmatpush1.bf16.msra.mxu0 %v12851_v33  ;;  %v12949_v33 = vld [vmem:[#allocation9 + $0x474] ss:$8 sps:$4 sm:$0xff]  }
 0xa25   :  { %5392 = vmatprep.subr.bf16.mxu0 %v12859_v11 }
 0xa28   :  { %5393 = vmatpush1.bf16.msra.mxu0 %v12857_v53 }
 0xa29   :  { %5394 = vmatprep.subr.bf16.mxu0 %v12865_v61 }
 0xa2c   :  { %5395 = vmatpush1.bf16.msra.mxu0 %v12863_v5 }
 0xa2d   :  { %5396 = vmatprep.subr.bf16.mxu0 %v12871_v3 }
 0xa30   :  { %5397 = vmatpush2.bf16.msra.mxu0 %v12869_v62 }
 0xa31   :  { %5398 = vmatprep.subr.bf16.mxu0 %v12877_v21 }
 0xa34   :  { %5399 = vmatpush2.bf16.msra.mxu0 %v12875_v28 }
 0xa35   :  { %5400 = vmatprep.subr.bf16.mxu0 %v12883_v0 }
 0xa38   :  { %5401 = vmatpush2.bf16.msra.mxu0 %v12881_v27 }
 0xa39   :  { %5402 = vmatprep.subr.bf16.mxu0 %v12889_v29 }
 0xa3c   :  { %5403 = vmatpush2.bf16.msra.mxu0 %v12887_v16 }
 0xa3d   :  { %5404 = vmatprep.subr.bf16.mxu0 %v12895_v15 }
 0xa40   :  { %5405 = vmatpush2.bf16.msra.mxu0 %v12893_v49 }
 0xa41   :  { %5406 = vmatprep.subr.bf16.mxu0 %v12901_v42  ;;  %v12923_v42 = vld [vmem:[#allocation9 + $0x3f0] ss:$8 sps:$4 sm:$0xff]  }
 0xa44   :  { %5407 = vmatpush2.bf16.msra.mxu0 %v12899_v40 }
 0xa45   :  { %5408 = vmatprep.subr.bf16.mxu0 %v12907_v14  ;;  %v12928_v14 = vld [vmem:[#allocation9 + $0x3e4] ss:$8 sps:$4 sm:$0xff]  }
 0xa48   :  { %5409 = vmatpush2.bf16.msra.mxu0 %v12905_v47 }
 0xa49   :  { %5410 = vmatprep.subr.bf16.mxu0 %v12913_v10  ;;  %v12973_v10 = vld [vmem:[#allocation9 + $0x4f4] ss:$8 sps:$4 sm:$0xff]  }
 0xa4c   :  { %5411 = vmatpush2.bf16.msra.mxu0 %v12911_v8 }
 0xa4d   :  { %12540 = vmatprep.subr.bf16.mxu0 %v16231_v9 }
 0xacf   :  { %v4678_v50 = vpop.f32.mrf.mxu0 }
 0xad0   :  { %v4781_v19 = vrot.slane %v4678_v50, 1  ;;  %v4745_v11 = vrot.slane %v4678_v50, 7 }
 0xad1   :  { %v16276_v37 = vpop.f32.mrf.mxu0 }
 0xad2   :  { %v4746_v41 = vrot.slane %v16276_v37, 7  ;;  %v4782_v38 = vrot.slane %v16276_v37, 1 }
 0xad3   :  { %v16278_v13 = vpop.f32.mrf.mxu0 }
 0xad4   :  { %v4783_v35 = vrot.slane %v16278_v13, 1  ;;  %v4819_v60 = vpack.c.bf16 %v16278_v13, %v4678_v50  ;;  %v4747_v53 = vrot.slane %v16278_v13, 7  ;;  %v12929_v13 = vld [vmem:[#allocation9 + $0x3d0] ss:$8 sps:$4 sm:$0xff]  }
 0xad5   :  { %v16281_v43 = vpop.f32.mrf.mxu0 }
 0xad6   :  { %v16285_v22 = vsel %vm17030_vm1, %v4781_v19, %v4783_v35  ;;  %v4820_v63 = vpack.c.bf16 %v16281_v43, %v16276_v37  ;;  %v4748_v23 = vrot.slane %v16281_v43, 7  ;;  %v4757_v15 = vsel %vm887_vm6, %v4745_v11, %v4747_v53  ;;  %v12988_v37 = vld [vmem:[#allocation9 + $0x4a4] ss:$8 sps:$4 sm:$0xff]  }
 0xad7   :  { %v16289_v17 = vpop.f32.mrf.mxu0  ;;  %v4784_v2 = vrot.slane %v16281_v43, 1  ;;  %v12934_v43 = vld [vmem:[#allocation9 + $0x3c4] ss:$8 sps:$4 sm:$0xff]  }
 0xad8   :  { %v4785_v55 = vrot.slane %v16289_v17, 1  ;;  %5412 = vmatprep.mubr.bf16.mxu0 %v4820_v63  ;;  %v4758_v0 = vsel %vm887_vm6, %v4746_v41, %v4748_v23  ;;  %v4749_v8 = vrot.slane %v16289_v17, 7 }
 0xad9   :  { %v16293_v1 = vpop.f32.mrf.mxu0  ;;  %5413 = vmatmul.mubr.bf16.vlgmr.msra.gmra.mxu0 %v4819_v60  ;;  %v12937_v60 = vld [vmem:[#allocation9 + $0x3b4] ss:$8 sps:$4 sm:$0xff]  }
 0xada   :  { %v16298_v57 = vsel %vm17031_vm4, %v4783_v35, %v4785_v55  ;;  %12541 = vmatpush3.bf16.msra.mxu0 %v16231_v9  ;;  %v4750_v5 = vrot.slane %v16293_v1, 7  ;;  %v4786_v51 = vrot.slane %v16293_v1, 1  ;;  %v4755_v50 = vsel %vm887_vm6, %v4747_v53, %v4749_v8  ;;  %v12952_v53 = vld [vmem:[#allocation9 + $0x464] ss:$8 sps:$4 sm:$0xff]   ;;  %vm17047_vm4 = vmmov %vm17043_vm3 }
 0xadb   :  { %v11521_v18 = vpack.c.bf16 %v16298_v57, %v16285_v22  ;;  %v4692_v48 = vpop.f32.mrf.mxu0  ;;  %12542 = vmatprep.subr.bf16.mxu0 %v16220_v54  ;;  %v12994_v22 = vld [vmem:[#allocation9 + $0x484] ss:$8 sps:$4 sm:$0xff]   ;;  %v12992_v57 = vld [vmem:[#allocation9 + $0x480] ss:$8 sps:$4 sm:$0xff]  }
 0xadc   :  { %v4751_v46 = vrot.slane %v4692_v48, 7  ;;  %v4787_v52 = vrot.slane %v4692_v48, 1  ;;  %v4825_v27 = vpack.c.bf16 %v4692_v48, %v16289_v17  ;;  %v4756_v40 = vsel %vm887_vm6, %v4748_v23, %v4750_v5  ;;  %v12974_v17 = vld [vmem:[#allocation9 + $0x4e0] ss:$8 sps:$4 sm:$0xff]  }
 0xadd   :  { %v16306_v6 = vpop.f32.mrf.mxu0  ;;  %v4792_v56 = vsel %vm17042_vm13, %v4784_v2, %v4786_v51  ;;  %v12938_v48 = vld [vmem:[#allocation9 + $0x3a0] ss:$8 sps:$4 sm:$0xff]  }
 0xade   :  { %v16315_v9 = vsel %vm17034_vm7, %v4785_v55, %v4787_v52  ;;  %v16319_v61 = vsel %vm17035_vm8, %v4787_v52, %v4781_v19  ;;  %v4752_v62 = vrot.slane %v16306_v6, 7  ;;  %12543 = vmatpush3.bf16.msra.mxu0 %v16220_v54  ;;  %v4759_v21 = vsel %vm887_vm6, %v4751_v46, %v4745_v11  ;;  %v12935_v55 = vld [vmem:[#allocation9 + $0x3b0] ss:$8 sps:$4 sm:$0xff]   ;;  %v12944_v23 = vld [vmem:[#allocation9 + $0x380] ss:$8 sps:$4 sm:$0xff]  }
 0xadf   :  { %v11529_v3 = vpack.c.bf16 %v16319_v61, %v16315_v9  ;;  %v4826_v28 = vpack.c.bf16 %v16306_v6, %v16293_v1  ;;  %12544 = vmatprep.subr.bf16.mxu0 %v16204_v7  ;;  %v11505_v30 = vpack.c.bf16 %v4757_v15, %v4759_v21  ;;  %v4753_v20 = vsel %vm887_vm6, %v4749_v8, %v4751_v46  ;;  %v12943_v46 = vld [vmem:[#allocation9 + $0x394] ss:$8 sps:$4 sm:$0xff]   ;;  %v12941_v52 = vld [vmem:[#allocation9 + $0x390] ss:$8 sps:$4 sm:$0xff]   ;;  %v12958_v21 = vld [vmem:[#allocation9 + $0x444] ss:$8 sps:$4 sm:$0xff]  }
 0xae0   :  { %v4754_v29 = vsel %vm887_vm6, %v4750_v5, %v4752_v62  ;;  %v4760_v54 = vsel %vm887_vm6, %v4752_v62, %v4746_v41  ;;  %v11513_v19 = vpack.c.bf16 %v4753_v20, %v4755_v50  ;;  %v12947_v11 = vld [vmem:[#allocation9 + $0x470] ss:$8 sps:$4 sm:$0xff]   ;;  %v12950_v41 = vld [vmem:[#allocation9 + $0x460] ss:$8 sps:$4 sm:$0xff]   ;;  %v12955_v5 = vld [vmem:[#allocation9 + $0x454] ss:$8 sps:$4 sm:$0xff]  }
 0xae1   :  { %v11501_v49 = vpack.c.bf16 %v4758_v0, %v4760_v54  ;;  %5422 = vmatprep.mubr.bf16.mxu0 %v4826_v28  ;;  %v11509_v47 = vpack.c.bf16 %v4754_v29, %v4756_v40  ;;  %v12953_v62 = vld [vmem:[#allocation9 + $0x450] ss:$8 sps:$4 sm:$0xff]   ;;  %v12956_v28 = vld [vmem:[#allocation9 + $0x440] ss:$8 sps:$4 sm:$0xff]   ;;  %v12961_v0 = vld [vmem:[#allocation9 + $0x434] ss:$8 sps:$4 sm:$0xff]  }
 0xae2   :  { %5423 = vmatmul.mubr.bf16.gmra.mxu0 %v4825_v27  ;;  %v12959_v27 = vld [vmem:[#allocation9 + $0x430] ss:$8 sps:$4 sm:$0xff]   ;;  %v12964_v29 = vld [vmem:[#allocation9 + $0x424] ss:$8 sps:$4 sm:$0xff]   ;;  %v12962_v54 = vld [vmem:[#allocation9 + $0x420] ss:$8 sps:$4 sm:$0xff]  }
 0xae3   :  { %12545 = vmatpush3.bf16.msra.mxu0 %v16204_v7  ;;  %11502 = vmatprep.mubr.msk.bf16.mxu1 %vm16342_vm14, %v11501_v49  ;;  %v12926_v7 = vld [vmem:[#allocation9 + $0x3e0] ss:$8 sps:$4 sm:$0xff]   ;;  %v12967_v15 = vld [vmem:[#allocation9 + $0x414] ss:$8 sps:$4 sm:$0xff]   ;;  %v12965_v49 = vld [vmem:[#allocation9 + $0x410] ss:$8 sps:$4 sm:$0xff]  }
 0xae4   :  { %11506 = vmatmul.mubr.msk.bf16.vlgmr.msra.gmra.mxu1 %vm16342_vm14, %v11505_v30  ;;  %12546 = vmatprep.subr.bf16.mxu0 %v16163_v32  ;;  %v12979_v40 = vld [vmem:[#allocation9 + $0x4d4] ss:$8 sps:$4 sm:$0xff]   ;;  %v12970_v30 = vld [vmem:[#allocation9 + $0x404] ss:$8 sps:$4 sm:$0xff]   ;;  %v12986_v1 = vld [vmem:[#allocation9 + $0x4a0] ss:$8 sps:$4 sm:$0xff]  }
 0xae5   :  { %5434 = vmatpush1.bf16.msra.mxu1 %v12923_v42  ;;  %11510 = vmatprep.mubr.msk.bf16.mxu1 %vm16351_vm15, %v11509_v47  ;;  %v12977_v42 = vld [vmem:[#allocation9 + $0x4d0] ss:$8 sps:$4 sm:$0xff]   ;;  %v4788_v47 = vrot.slane %v16306_v6, 1  ;;  %v12982_v8 = vld [vmem:[#allocation9 + $0x4c4] ss:$8 sps:$4 sm:$0xff]  }
 0xae6   :  { %5435 = vmatprep.subr.bf16.mxu1 %v12928_v14  ;;  %12548 = vmatprep.mubr.msk.bf16.mxu0 %vm17041_vm0, %v15907_v34  ;;  %v4722_v14 = vand.u32 15, %v16980_v59  ;;  %v12985_v6 = vld [vmem:[#allocation9 + $0x4b4] ss:$8 sps:$4 sm:$0xff]  }
 0xae7   :  { %12547 = vmatpush3.bf16.msra.mxu0 %v16163_v32  ;;  %v4794_v32 = vsel %vm17043_vm3, %v4782_v38, %v4784_v2  ;;  %v4796_v59 = vsel %vm17048_vm5, %v4788_v47, %v4782_v38 }
 0xae8   :  { %5635 = vmatprep.subr.bf16.mxu0 %v12973_v10  ;;  %v11517_v63 = vpack.c.bf16 %v4792_v56, %v4794_v32  ;;  %v12980_v10 = vld [vmem:[#allocation9 + $0x4c0] ss:$8 sps:$4 sm:$0xff]   ;;  %vm12357_vm1 = vcmp.lt.s32.totalorder %v4722_v14, 15 }
 0xae9   :  { %5436 = vmatpush1.bf16.msra.mxu1 %v12926_v7  ;;  %v4790_v7 = vsel %vm17047_vm4, %v4786_v51, %v4788_v47  ;;  %vm16406_vm7 = vmpackc.low %vm12357_vm1, %vm17036_vm11  ;;  %v12991_v51 = vld [vmem:[#allocation9 + $0x494] ss:$8 sps:$4 sm:$0xff]  }
 0xaea   :  { %12549 = vmatmul.mubr.msk.bf16.vlgmr.msra.gmra.mxu0 %vm17044_vm9, %v15919_v45  ;;  %5437 = vmatprep.subr.bf16.mxu1 %v12931_v36  ;;  %v12932_v45 = vld [vmem:[#allocation9 + $0x3c0] ss:$8 sps:$4 sm:$0xff]   ;;  %v12983_v36 = vld [vmem:[#allocation9 + $0x4b0] ss:$8 sps:$4 sm:$0xff]   ;;  %v11525_v20 = vpack.c.bf16 %v4796_v59, %v4790_v7 }
 0xaeb   :  { %5636 = vmatpush1.bf16.msra.mxu0 %v12971_v58  ;;  %5667 = vmatprep.mubr.bf16.mxu0 %v16964_v39  ;;  %v12989_v58 = vld [vmem:[#allocation9 + $0x490] ss:$8 sps:$4 sm:$0xff]  }
 0xaec   :  { %11514 = vmatmul.mubr.msk.bf16.gmra.mxu1 %vm16351_vm15, %v11513_v19  ;;  %5637 = vmatprep.subr.bf16.mxu0 %v12976_v31 }
 0xaed   :  { %5438 = vmatpush1.bf16.msra.mxu1 %v12929_v13  ;;  %11518 = vmatprep.mubr.msk.bf16.mxu1 %vm16386_vm12, %v11517_v63 }
 0xaee   :  { %5439 = vmatprep.subr.bf16.mxu1 %v12934_v43 }
 0xaef   :  { %5638 = vmatpush1.bf16.msra.mxu0 %v12974_v17 }
 0xaf0   :  { %5639 = vmatprep.subr.bf16.mxu0 %v12979_v40 }
 0xaf1   :  { %5440 = vmatpush1.bf16.msra.mxu1 %v12932_v45 }
 0xaf2   :  { %5441 = vmatprep.subr.bf16.mxu1 %v12937_v60 }
 0xaf3   :  { %5640 = vmatpush1.bf16.msra.mxu0 %v12977_v42 }
 0xaf4   :  { %5641 = vmatprep.subr.bf16.mxu0 %v12982_v8 }
 0xaf5   :  { %5442 = vmatpush1.bf16.msra.mxu1 %v12935_v55 }
 0xaf6   :  { %5443 = vmatprep.subr.bf16.mxu1 %v12940_v25 }
 0xaf7   :  { %5642 = vmatpush1.bf16.msra.mxu0 %v12980_v10 }
 0xaf8   :  { %5643 = vmatprep.subr.bf16.mxu0 %v12985_v6 }
 0xaf9   :  { %5444 = vmatpush1.bf16.msra.mxu1 %v12938_v48 }
 0xafa   :  { %5445 = vmatprep.subr.bf16.mxu1 %v12943_v46 }
 0xafb   :  { %5644 = vmatpush1.bf16.msra.mxu0 %v12983_v36 }
 0xafc   :  { %5645 = vmatprep.subr.bf16.mxu0 %v12988_v37 }
 0xafd   :  { %5446 = vmatpush1.bf16.msra.mxu1 %v12941_v52 }
 0xafe   :  { %5447 = vmatprep.subr.bf16.mxu1 %v12946_v4 }
 0xaff   :  { %5646 = vmatpush1.bf16.msra.mxu0 %v12986_v1 }
 0xb00   :  { %5647 = vmatprep.subr.bf16.mxu0 %v12991_v51 }
 0xb01   :  { %5448 = vmatpush1.bf16.msra.mxu1 %v12944_v23 }
 0xb02   :  { %5449 = vmatprep.subr.bf16.mxu1 %v12949_v33  ;;  %v17051_v33 = vld [vmem:[#allocation63_spill] sm:$0xff] }
 0xb03   :  { %5648 = vmatpush1.bf16.msra.mxu0 %v12989_v58 }
 0xb04   :  { %5649 = vmatprep.subr.bf16.mxu0 %v12994_v22 }
 0xb05   :  { %5450 = vmatpush2.bf16.msra.mxu1 %v12947_v11  ;;  %v17052_v11 = vld [vmem:[#allocation58_spill] sm:$0xff] }
 0xb06   :  { %5451 = vmatprep.subr.bf16.mxu1 %v12952_v53  ;;  %v4832_v53 = vrot.slane %v17052_v11, %v17051_v33 }
 0xb07   :  { %5650 = vmatpush1.bf16.msra.mxu0 %v12992_v57 }
 0xb09   :  { %5452 = vmatpush2.bf16.msra.mxu1 %v12950_v41 }
 0xb0a   :  { %5453 = vmatprep.subr.bf16.mxu1 %v12955_v5  ;;  %v17053_v5 = vld [vmem:[#allocation70_spill] sm:$0xff] }
 0xb0d   :  { %5454 = vmatpush2.bf16.msra.mxu1 %v12953_v62  ;;  %v4836_v62 = vrot.slane %v17052_v11, %v17053_v5 }
 0xb0e   :  { %5455 = vmatprep.subr.bf16.mxu1 %v12958_v21  ;;  %v4842_v21 = vrot.slane %v4832_v53, %v17051_v33 }
 0xb11   :  { %5456 = vmatpush2.bf16.msra.mxu1 %v12956_v28 }
 0xb12   :  { %5457 = vmatprep.subr.bf16.mxu1 %v12961_v0  ;;  %v4846_v0 = vrot.slane %v4836_v62, %v17051_v33 }
 0xb15   :  { %5458 = vmatpush2.bf16.msra.mxu1 %v12959_v27  ;;  %v17054_v27 = vld [vmem:[#allocation65_spill] sm:$0xff] }
 0xb16   :  { %5459 = vmatprep.subr.bf16.mxu1 %v12964_v29  ;;  %v5540_v29 = vrot.slane %v17052_v11, %v17054_v27 }
 0xb19   :  { %5460 = vmatpush2.bf16.msra.mxu1 %v12962_v54 }
 0xb1a   :  { %5461 = vmatprep.subr.bf16.mxu1 %v12967_v15  ;;  %v17055_v15 = vld [vmem:[#allocation71_spill] sm:$0xff] }
 0xb1d   :  { %5462 = vmatpush2.bf16.msra.mxu1 %v12965_v49  ;;  %v5544_v49 = vrot.slane %v17052_v11, %v17055_v15 }
 0xb1e   :  { %5463 = vmatprep.subr.bf16.mxu1 %v12970_v30  ;;  %v5550_v30 = vrot.slane %v5540_v29, %v17054_v27 }
 0xb21   :  { %5464 = vmatpush2.bf16.msra.mxu1 %v12968_v12  ;;  %v5554_v12 = vrot.slane %v5544_v49, %v17054_v27 }
 0xb24   :  { %11522 = vmatmul.mubr.msk.bf16.vlgmr.msra.gmra.mxu1 %vm16386_vm12, %v11521_v18 }
 0xb25   :  { %11526 = vmatprep.mubr.msk.bf16.mxu1 %vm16406_vm7, %v11525_v20 }
 0xb2c   :  { %11530 = vmatmul.mubr.msk.bf16.gmra.mxu1 %vm16406_vm7, %v11529_v3 }
 0xb99   :  { %v5414_v18 = vpop.f32.mrf.mxu0 }
 0xb9b   :  { %v5416_v38 = vpop.f32.mrf.mxu0 }
 0xb9d   :  { %v5418_v56 = vpop.f32.mrf.mxu0 }
 0xb9f   :  { %v5420_v31 = vpop.f32.mrf.mxu0 }
 0xba2   :  { %v5424_v50 = vpop.f32.mrf.mxu0 }
 0xba4   :  { %v16422_v13 = vpop.f32.mrf.mxu0  ;;  %v5361_v45 = vpop.f32.mrf.mxu1 }
 0xba5   :  { %v5362_v54 = vadd.f32 %v5361_v45, %v4842_v21 }
 0xba6   :  { %v16424_v32 = vpop.f32.mrf.mxu0  ;;  %v5363_v60 = vpop.f32.mrf.mxu1 }
 0xba7   :  { %v5364_v40 = vadd.f32 %v5363_v60, %v4846_v0  ;;  %v5415_v47 = vadd.f32 %v5414_v18, %v5362_v54 }
 0xba8   :  { %v16426_v19 = vpop.f32.mrf.mxu0  ;;  %v5365_v55 = vpop.f32.mrf.mxu1 }
 0xba9   :  { %v5366_v14 = vadd.f32 %v5365_v55, %v4842_v21  ;;  %v5417_v6 = vadd.f32 %v5416_v38, %v5364_v40 }
 0xbaa   :  { %v12550_v9 = vpop.f32.mrf.mxu0  ;;  %v5367_v25 = vpop.f32.mrf.mxu1 }
 0xbab   :  { %v5368_v10 = vadd.f32 %v5367_v25, %v4846_v0  ;;  %v5419_v51 = vadd.f32 %v5418_v56, %v5366_v14 }
 0xbac   :  { %v5520_v61 = vpop.f32.mrf.mxu0  ;;  %v5371_v48 = vpop.f32.mrf.mxu1 }
 0xbad   :  { %v5372_v20 = vadd.f32 %v5371_v48, %v4842_v21 }
 0xbae   :  { %v12551_v43 = vpop.f32.mrf.mxu0  ;;  %v5373_v46 = vpop.f32.mrf.mxu1 }
 0xbaf   :  { %v5536_v17 = vpack.c.bf16 %v12551_v43, %v12550_v9  ;;  %v5374_v57 = vadd.f32 %v5373_v46, %v4846_v0  ;;  %v5421_v9 = vadd.f32 %v5420_v31, %v5368_v10  ;;  %v5425_v60 = vadd.f32 %v5424_v50, %v5372_v20 }
 0xbb0   :  { %v5523_v3 = vpop.f32.mrf.mxu0  ;;  %v5375_v52 = vpop.f32.mrf.mxu1 }
 0xbb1   :  { %v5535_v63 = vpack.c.bf16 %v5523_v3, %v5520_v61  ;;  %v5376_v45 = vadd.f32 %v5375_v52, %v4842_v21  ;;  %v5427_v11 = vadd.f32 %v16422_v13, %v5374_v57 }
 0xbb2   :  { %v5377_v4 = vpop.f32.mrf.mxu1 }
 0xbb3   :  { %5668 = vmatmul.mubr.bf16.vlgmr.msra.gmra.mxu0 %v5535_v63  ;;  %v5378_v56 = vadd.f32 %v5377_v4, %v4846_v0  ;;  %v5429_v29 = vadd.f32 %v16424_v32, %v5376_v45 }
 0xbb4   :  { %5677 = vmatprep.mubr.bf16.mxu0 %v16964_v39 }
 0xbbb   :  { %5678 = vmatmul.mubr.bf16.gmra.mxu0 %v5536_v17 }
 0xbe4   :  { %v5467_v23 = vpop.f32.mrf.mxu1 }
 0xbe5   :  { %v5468_v59 = vadd.f32 %v5467_v23, %v5415_v47 }
 0xbe6   :  { %v5469_v41 = vpop.f32.mrf.mxu1 }
 0xbe7   :  { %v5470_v1 = vadd.f32 %v5469_v41, %v5417_v6 }
 0xbe8   :  { %v5471_v28 = vpop.f32.mrf.mxu1 }
 0xbe9   :  { %v5472_v3 = vadd.f32 %v5471_v28, %v5419_v51 }
 0xbea   :  { %v5473_v42 = vpop.f32.mrf.mxu1 }
 0xbeb   :  { %v5474_v38 = vadd.f32 %v5473_v42, %v5421_v9  ;;  %v5431_v42 = vadd.f32 %v16426_v19, %v5378_v56 }
 0xbec   :  { %v5477_v8 = vpop.f32.mrf.mxu1 }
 0xbed   :  { %v5478_v53 = vadd.f32 %v5477_v8, %v5425_v60 }
 0xbee   :  { %v5479_v61 = vpop.f32.mrf.mxu1 }
 0xbef   :  { %v5480_v50 = vadd.f32 %v5479_v61, %v5427_v11 }
 0xbf0   :  { %v5481_v46 = vpop.f32.mrf.mxu1 }
 0xbf1   :  { %v5482_v13 = vadd.f32 %v5481_v46, %v5429_v29 }
 0xbf2   :  { %v5483_v4 = vpop.f32.mrf.mxu1 }
 0xbf3   :  { %v5484_v8 = vadd.f32 %v5483_v4, %v5431_v42 }
 0xc73   :  { %v5669_v7 = vpop.f32.mrf.mxu0 }
 0xc74   :  { %v5670_v36 = vadd.f32 %v5669_v7, %v5550_v30 }
 0xc75   :  { %v5671_v37 = vpop.f32.mrf.mxu0 }
 0xc76   :  { %v5688_v58 = vadd.f32 %v5670_v36, %v5468_v59  ;;  %v5672_v22 = vadd.f32 %v5671_v37, %v5554_v12 }
 0xc77   :  { %v5673_v43 = vpop.f32.mrf.mxu0 }
 0xc78   :  { %v16441_v18 = vmax.f32 %v5688_v58, 0.0  ;;  %v5689_v63 = vadd.f32 %v5672_v22, %v5470_v1  ;;  %v5674_v17 = vadd.f32 %v5673_v43, %v5550_v30 }
 0xc79   :  { %v5675_v55 = vpop.f32.mrf.mxu0 }
 0xc7a   :  { %v16443_v25 = vmax.f32 %v5689_v63, 0.0  ;;  %v5690_v48 = vadd.f32 %v5674_v17, %v5472_v3  ;;  %v5676_v23 = vadd.f32 %v5675_v55, %v5554_v12 }
 0xc7b   :  { %v5679_v31 = vpop.f32.mrf.mxu0 }
 0xc7c   :  { %v16446_v41 = vmax.f32 %v5690_v48, 0.0  ;;  %v5691_v62 = vadd.f32 %v5676_v23, %v5474_v38  ;;  %v5680_v28 = vadd.f32 %v5679_v31, %v5550_v30 }
 0xc7d   :  { %v5681_v52 = vpop.f32.mrf.mxu0 }
 0xc7e   :  { %v16449_v21 = vmax.f32 %v5691_v62, 0.0  ;;  %v5692_v54 = vadd.f32 %v5680_v28, %v5478_v53  ;;  %v5682_v49 = vadd.f32 %v5681_v52, %v5554_v12 }
 0xc7f   :  { %v5683_v0 = vpop.f32.mrf.mxu0 }
 0xc80   :  { %v16452_v40 = vmax.f32 %v5692_v54, 0.0  ;;  %v5693_v14 = vadd.f32 %v5682_v49, %v5480_v50  ;;  %v5684_v47 = vadd.f32 %v5683_v0, %v5550_v30 }
 0xc81   :  { %v5685_v10 = vpop.f32.mrf.mxu0 }
 0xc82   :  { %v16454_v7 = vmax.f32 %v5693_v14, 0.0  ;;  %v5694_v32 = vadd.f32 %v5684_v47, %v5482_v13  ;;  %v5686_v59 = vadd.f32 %v5685_v10, %v5554_v12 }
 0xc84   :  { %v16456_v6 = vmax.f32 %v5694_v32, 0.0  ;;  %v5695_v36 = vadd.f32 %v5686_v59, %v5484_v8 }
 0xc86   :  { %v16458_v20 = vmax.f32 %v5695_v36, 0.0 }
 0xc87   :  { %14195 = dma.done.wait [#allocation15 + $0x9], 81920 }
 0xc88   :  { %14196 = vsyncadd [#allocation15 + $0x9], 4294885376 }
 0xc89   :  { %14197 = dma.done.wait [#allocation15 + $0xa], 256 }
 0xc8a   :  { %14198 = vsyncadd [#allocation15 + $0xa], 4294967040  ;;  %v6354_v19 = vrot.slane %v16443_v25, 7  ;;  %v6356_v37 = vrot.slane %v16449_v21, 7  ;;  %v6360_v30 = vrot.slane %v16458_v20, 7  ;;  %v16465_v1 = vpack.c.bf16 %v16449_v21, %v16443_v25 }
 0xc8b   :  { %v6358_v58 = vrot.slane %v16454_v7, 7  ;;  %v12995_v43 = vld [vmem:[#allocation11 + $0xe4] ss:$16 sps:$4 sm:$0xff]   ;;  %v12997_v3 = vld [vmem:[#allocation11 + $0xe0] ss:$16 sps:$4 sm:$0xff]   ;;  %vm17056_vm8 = vmmov %vm17043_vm3 }
 0xc8c   :  { %v6366_v12 = vsel %vm887_vm6, %v6354_v19, %v6356_v37  ;;  %v6368_v51 = vsel %vm887_vm6, %v6360_v30, %v6354_v19  ;;  %7496 = vmatprep.mubr.bf16.mxu1 %v16465_v1  ;;  %7411 = vmatprep.subr.bf16.mxu0 %v12995_v43  ;;  %v12998_v63 = vld [vmem:[#allocation11 + $0x2e4] ss:$16 sps:$4 sm:$0xff]   ;;  %v13000_v17 = vld [vmem:[#allocation11 + $0x2e0] ss:$16 sps:$4 sm:$0xff]   ;;  %vm17057_vm10 = vmmov %vm17043_vm3 }
 0xc8d   :  { %v16472_v22 = vpack.c.bf16 %v6366_v12, %v6368_v51  ;;  %v6362_v57 = vsel %vm887_vm6, %v6358_v58, %v6360_v30  ;;  %v6364_v9 = vsel %vm887_vm6, %v6356_v37, %v6358_v58  ;;  %7412 = vmatpush1.bf16.msra.mxu0 %v12997_v3  ;;  %v13001_v45 = vld [vmem:[#allocation11 + $0xc4] ss:$16 sps:$4 sm:$0xff]   ;;  %v13003_v60 = vld [vmem:[#allocation11 + $0xc0] ss:$16 sps:$4 sm:$0xff]   ;;  %7464 = vmatprep.subr.bf16.mxu1 %v12998_v63  ;;  %vm17058_vm11 = vmmov %vm17043_vm3 }
 0xc8e   :  { %v16482_v61 = vpack.c.bf16 %v6362_v57, %v6364_v9  ;;  %v13004_v55 = vld [vmem:[#allocation11 + $0x2c4] ss:$16 sps:$4 sm:$0xff]   ;;  %7465 = vmatpush1.bf16.msra.mxu1 %v13000_v17  ;;  %7413 = vmatprep.subr.bf16.mxu0 %v13001_v45  ;;  %v13006_v38 = vld [vmem:[#allocation11 + $0x2c0] ss:$16 sps:$4 sm:$0xff]   ;;  %vm17059_vm0 = vmmov %vm17043_vm3 }
 0xc8f   :  { %11744 = vmatprep.mubr.msk.bf16.mxu0 %vm16342_vm14, %v16472_v22  ;;  %7466 = vmatprep.subr.bf16.mxu1 %v13004_v55  ;;  %v13007_v48 = vld [vmem:[#allocation11 + $0xa4] ss:$16 sps:$4 sm:$0xff]   ;;  %v13009_v23 = vld [vmem:[#allocation11 + $0xa0] ss:$16 sps:$4 sm:$0xff]   ;;  %vm17060_vm2 = vmmov %vm17059_vm0 }
 0xc90   :  { %v13010_v56 = vld [vmem:[#allocation11 + $0x2a4] ss:$16 sps:$4 sm:$0xff]   ;;  %v13012_v46 = vld [vmem:[#allocation11 + $0x2a0] ss:$16 sps:$4 sm:$0xff]   ;;  %vm17061_vm13 = vmmov %vm17059_vm0 }
 0xc91   :  { %7414 = vmatpush1.bf16.msra.mxu0 %v13003_v60  ;;  %v13013_v11 = vld [vmem:[#allocation11 + $0x84] ss:$16 sps:$4 sm:$0xff]   ;;  %v13015_v53 = vld [vmem:[#allocation11 + $0x80] ss:$16 sps:$4 sm:$0xff]   ;;  %vm17062_vm3 = vmmov %vm17059_vm0 }
 0xc92   :  { %7415 = vmatprep.subr.bf16.mxu0 %v13007_v48  ;;  %7467 = vmatpush1.bf16.msra.mxu1 %v13006_v38  ;;  %v13016_v31 = vld [vmem:[#allocation11 + $0x284] ss:$16 sps:$4 sm:$0xff]   ;;  %v13018_v28 = vld [vmem:[#allocation11 + $0x280] ss:$16 sps:$4 sm:$0xff]   ;;  %vm17063_vm9 = vmmov %vm17059_vm0 }
 0xc93   :  { %7468 = vmatprep.subr.bf16.mxu1 %v13010_v56  ;;  %v13019_v62 = vld [vmem:[#allocation11 + $0x64] ss:$16 sps:$4 sm:$0xff]   ;;  %v13021_v52 = vld [vmem:[#allocation11 + $0x60] ss:$16 sps:$4 sm:$0xff]   ;;  %v13213_v16 = vld [vmem:[#allocation11 + $0x26c] ss:$16 sps:$4 sm:$0xff]  }
 0xc94   :  { %v13022_v29 = vld [vmem:[#allocation11 + $0x264] ss:$16 sps:$4 sm:$0xff]   ;;  %v13024_v54 = vld [vmem:[#allocation11 + $0x260] ss:$16 sps:$4 sm:$0xff]   ;;  %v13228_v44 = vld [vmem:[#allocation11 + $0x42c] ss:$16 sps:$4 sm:$0xff]  }
 0xc95   :  { %7416 = vmatpush1.bf16.msra.mxu0 %v13009_v23  ;;  %v13025_v50 = vld [vmem:[#allocation11 + $0x44] ss:$16 sps:$4 sm:$0xff]   ;;  %v13027_v42 = vld [vmem:[#allocation11 + $0x40] ss:$16 sps:$4 sm:$0xff]   ;;  %vm17067_vm1 = vmmov %vm17059_vm0 }
 0xc96   :  { %7417 = vmatprep.subr.bf16.mxu0 %v13013_v11  ;;  %7469 = vmatpush1.bf16.msra.mxu1 %v13012_v46  ;;  %v13028_v49 = vld [vmem:[#allocation11 + $0x244] ss:$16 sps:$4 sm:$0xff]   ;;  %v13030_v0 = vld [vmem:[#allocation11 + $0x240] ss:$16 sps:$4 sm:$0xff]  }
 0xc97   :  { %7470 = vmatprep.subr.bf16.mxu1 %v13016_v31  ;;  %v13031_v4 = vld [vmem:[#allocation11 + $0x24] ss:$16 sps:$4 sm:$0xff]   ;;  %v13033_v14 = vld [vmem:[#allocation11 + $0x20] ss:$16 sps:$4 sm:$0xff]  }
 0xc98   :  { %v13034_v13 = vld [vmem:[#allocation11 + $0x224] ss:$16 sps:$4 sm:$0xff]   ;;  %v13036_v10 = vld [vmem:[#allocation11 + $0x220] ss:$16 sps:$4 sm:$0xff]  }
 0xc99   :  { %7418 = vmatpush1.bf16.msra.mxu0 %v13015_v53  ;;  %v13037_v47 = vld [vmem:[#allocation11 + $0x4] ss:$16 sps:$4 sm:$0xff]   ;;  %v13039_v32 = vld [vmem:[#allocation11] ss:$16 sps:$4 sm:$0xff]  }
 0xc9a   :  { %7419 = vmatprep.subr.bf16.mxu0 %v13019_v62  ;;  %7471 = vmatpush1.bf16.msra.mxu1 %v13018_v28  ;;  %v13040_v8 = vld [vmem:[#allocation11 + $0x204] ss:$16 sps:$4 sm:$0xff]   ;;  %v13042_v36 = vld [vmem:[#allocation11 + $0x200] ss:$16 sps:$4 sm:$0xff]  }
 0xc9b   :  { %7472 = vmatprep.subr.bf16.mxu1 %v13022_v29  ;;  %v13043_v59 = vld [vmem:[#allocation11 + $0x1e4] ss:$16 sps:$4 sm:$0xff]   ;;  %v13045_v37 = vld [vmem:[#allocation11 + $0x1e0] ss:$16 sps:$4 sm:$0xff]  }
 0xc9c   :  { %v13046_v19 = vld [vmem:[#allocation11 + $0x3e4] ss:$16 sps:$4 sm:$0xff]   ;;  %v13048_v12 = vld [vmem:[#allocation11 + $0x3e0] ss:$16 sps:$4 sm:$0xff]  }
 0xc9d   :  { %7420 = vmatpush1.bf16.msra.mxu0 %v13021_v52  ;;  %v13049_v30 = vld [vmem:[#allocation11 + $0x1c4] ss:$16 sps:$4 sm:$0xff]   ;;  %v13051_v58 = vld [vmem:[#allocation11 + $0x1c0] ss:$16 sps:$4 sm:$0xff]   ;;  %v6353_v52 = vrot.slane %v16441_v18, 7 }
 0xc9e   :  { %7421 = vmatprep.subr.bf16.mxu0 %v13025_v50  ;;  %7473 = vmatpush1.bf16.msra.mxu1 %v13024_v54  ;;  %v13052_v51 = vld [vmem:[#allocation11 + $0x3c4] ss:$16 sps:$4 sm:$0xff]   ;;  %v13054_v9 = vld [vmem:[#allocation11 + $0x3c0] ss:$16 sps:$4 sm:$0xff]   ;;  %v6355_v50 = vrot.slane %v16446_v41, 7  ;;  %v6359_v54 = vrot.slane %v16456_v6, 7 }
 0xc9f   :  { %7474 = vmatprep.subr.bf16.mxu1 %v13028_v49  ;;  %v13055_v57 = vld [vmem:[#allocation11 + $0x1a4] ss:$16 sps:$4 sm:$0xff]   ;;  %v13057_v3 = vld [vmem:[#allocation11 + $0x1a0] ss:$16 sps:$4 sm:$0xff]  }
 0xca0   :  { %v13058_v43 = vld [vmem:[#allocation11 + $0x3a4] ss:$16 sps:$4 sm:$0xff]   ;;  %v13060_v17 = vld [vmem:[#allocation11 + $0x3a0] ss:$16 sps:$4 sm:$0xff]  }
 0xca1   :  { %7422 = vmatpush1.bf16.msra.mxu0 %v13027_v42  ;;  %v13061_v63 = vld [vmem:[#allocation11 + $0x184] ss:$16 sps:$4 sm:$0xff]   ;;  %v13063_v60 = vld [vmem:[#allocation11 + $0x180] ss:$16 sps:$4 sm:$0xff]  }
 0xca2   :  { %7423 = vmatprep.subr.bf16.mxu0 %v13031_v4  ;;  %7475 = vmatpush1.bf16.msra.mxu1 %v13030_v0  ;;  %v13064_v45 = vld [vmem:[#allocation11 + $0x384] ss:$16 sps:$4 sm:$0xff]   ;;  %v13066_v38 = vld [vmem:[#allocation11 + $0x380] ss:$16 sps:$4 sm:$0xff]  }
 0xca3   :  { %7476 = vmatprep.subr.bf16.mxu1 %v13034_v13  ;;  %v13067_v55 = vld [vmem:[#allocation11 + $0x164] ss:$16 sps:$4 sm:$0xff]   ;;  %v13069_v23 = vld [vmem:[#allocation11 + $0x160] ss:$16 sps:$4 sm:$0xff]   ;;  %v6365_v13 = vsel %vm887_vm6, %v6353_v52, %v6355_v50 }
 0xca4   :  { %v13070_v48 = vld [vmem:[#allocation11 + $0x364] ss:$16 sps:$4 sm:$0xff]   ;;  %v13072_v11 = vld [vmem:[#allocation11 + $0x360] ss:$16 sps:$4 sm:$0xff]  }
 0xca5   :  { %7424 = vmatpush1.bf16.msra.mxu0 %v13033_v14  ;;  %v13073_v56 = vld [vmem:[#allocation11 + $0x144] ss:$16 sps:$4 sm:$0xff]   ;;  %v13075_v31 = vld [vmem:[#allocation11 + $0x140] ss:$16 sps:$4 sm:$0xff]   ;;  %v6367_v14 = vsel %vm887_vm6, %v6359_v54, %v6353_v52 }
 0xca6   :  { %7425 = vmatprep.subr.bf16.mxu0 %v13037_v47  ;;  %7477 = vmatpush1.bf16.msra.mxu1 %v13036_v10  ;;  %v13076_v46 = vld [vmem:[#allocation11 + $0x344] ss:$16 sps:$4 sm:$0xff]   ;;  %v13078_v62 = vld [vmem:[#allocation11 + $0x340] ss:$16 sps:$4 sm:$0xff]  }
 0xca7   :  { %7478 = vmatprep.subr.bf16.mxu1 %v13040_v8  ;;  %v13079_v53 = vld [vmem:[#allocation11 + $0x124] ss:$16 sps:$4 sm:$0xff]   ;;  %v13081_v29 = vld [vmem:[#allocation11 + $0x120] ss:$16 sps:$4 sm:$0xff]   ;;  %v16491_v8 = vpack.c.bf16 %v6365_v13, %v6367_v14  ;;  %v13132_v13 = vld [vmem:[#allocation11 + $0x2c] ss:$16 sps:$4 sm:$0xff]  }
 0xca8   :  { %v13082_v28 = vld [vmem:[#allocation11 + $0x324] ss:$16 sps:$4 sm:$0xff]   ;;  %v13084_v42 = vld [vmem:[#allocation11 + $0x320] ss:$16 sps:$4 sm:$0xff]  }
 0xca9   :  { %7426 = vmatpush1.bf16.msra.mxu0 %v13039_v32  ;;  %v13085_v49 = vld [vmem:[#allocation11 + $0x104] ss:$16 sps:$4 sm:$0xff]   ;;  %v13087_v0 = vld [vmem:[#allocation11 + $0x100] ss:$16 sps:$4 sm:$0xff]   ;;  %v13096_v32 = vld [vmem:[#allocation11 + $0xec] ss:$16 sps:$4 sm:$0xff]  }
 0xcaa   :  { %7427 = vmatprep.subr.bf16.mxu0 %v13043_v59  ;;  %7479 = vmatpush1.bf16.msra.mxu1 %v13042_v36  ;;  %v13088_v4 = vld [vmem:[#allocation11 + $0x304] ss:$16 sps:$4 sm:$0xff]   ;;  %v13090_v10 = vld [vmem:[#allocation11 + $0x300] ss:$16 sps:$4 sm:$0xff]   ;;  %v6357_v36 = vrot.slane %v16452_v40, 7 }
 0xcab   :  { %7480 = vmatprep.subr.bf16.mxu1 %v13046_v19  ;;  %v13093_v47 = vld [vmem:[#allocation11 + $0x4e4] ss:$16 sps:$4 sm:$0xff]   ;;  %v13091_v59 = vld [vmem:[#allocation11 + $0x4e0] ss:$16 sps:$4 sm:$0xff]   ;;  %v6378_v19 = vrot.slane %v16443_v25, 1 }
 0xcac   :  { %v13115_v52 = vld [vmem:[#allocation11 + $0x460] ss:$16 sps:$4 sm:$0xff]   ;;  %v13135_v14 = vld [vmem:[#allocation11 + $0x404] ss:$16 sps:$4 sm:$0xff]   ;;  %v13193_v25 = vld [vmem:[#allocation11 + $0x2c8] ss:$16 sps:$4 sm:$0xff]  }
 0xcad   :  { %7428 = vmatpush2.bf16.msra.mxu0 %v13045_v37  ;;  %v16497_v37 = vpack.c.bf16 %v16446_v41, %v16441_v18 }
 0xcae   :  { %7429 = vmatprep.subr.bf16.mxu0 %v13049_v30  ;;  %7481 = vmatpush2.bf16.msra.mxu1 %v13048_v12  ;;  %v13099_v30 = vld [vmem:[#allocation11 + $0x4c4] ss:$16 sps:$4 sm:$0xff]   ;;  %v6380_v12 = vrot.slane %v16449_v21, 1  ;;  %v6361_v21 = vsel %vm887_vm6, %v6357_v36, %v6359_v54  ;;  %v13118_v54 = vld [vmem:[#allocation11 + $0x68] ss:$16 sps:$4 sm:$0xff]  }
 0xcaf   :  { %7482 = vmatprep.subr.bf16.mxu1 %v13052_v51  ;;  %v6382_v51 = vrot.slane %v16454_v7, 1 }
 0xcb1   :  { %7430 = vmatpush2.bf16.msra.mxu0 %v13051_v58  ;;  %v13094_v58 = vld [vmem:[#allocation11 + $0xe8] ss:$16 sps:$4 sm:$0xff]  }
 0xcb2   :  { %7431 = vmatprep.subr.bf16.mxu0 %v13055_v57  ;;  %7483 = vmatpush2.bf16.msra.mxu1 %v13054_v9  ;;  %v16503_v57 = vpack.c.bf16 %v16458_v20, %v16454_v7  ;;  %v13102_v9 = vld [vmem:[#allocation11 + $0xcc] ss:$16 sps:$4 sm:$0xff]   ;;  %v6383_v7 = vrot.slane %v16456_v6, 1 }
 0xcb3   :  { %7484 = vmatprep.subr.bf16.mxu1 %v13058_v43  ;;  %v13097_v43 = vld [vmem:[#allocation11 + $0x4c0] ss:$16 sps:$4 sm:$0xff]  }
 0xcb5   :  { %7432 = vmatpush2.bf16.msra.mxu0 %v13057_v3  ;;  %v6363_v3 = vsel %vm887_vm6, %v6355_v50, %v6357_v36  ;;  %v13123_v50 = vld [vmem:[#allocation11 + $0x444] ss:$16 sps:$4 sm:$0xff]   ;;  %v13136_v36 = vld [vmem:[#allocation11 + $0x8] ss:$16 sps:$4 sm:$0xff]  }
 0xcb6   :  { %7433 = vmatprep.subr.bf16.mxu0 %v13061_v63  ;;  %7485 = vmatpush2.bf16.msra.mxu1 %v13060_v17  ;;  %v13105_v63 = vld [vmem:[#allocation11 + $0x4a4] ss:$16 sps:$4 sm:$0xff]   ;;  %v6388_v17 = vsel %vm17056_vm8, %v6380_v12, %v6382_v51 }
 0xcb7   :  { %7486 = vmatprep.subr.bf16.mxu1 %v13064_v45  ;;  %v6390_v45 = vsel %vm17057_vm10, %v6378_v19, %v6380_v12  ;;  %v13139_v12 = vld [vmem:[#allocation11 + $0x5e0] ss:$16 sps:$4 sm:$0xff]   ;;  %vm17072_vm10 = vmmov %vm17059_vm0 }
 0xcb9   :  { %7434 = vmatpush2.bf16.msra.mxu0 %v13063_v60  ;;  %v13100_v60 = vld [vmem:[#allocation11 + $0xc8] ss:$16 sps:$4 sm:$0xff]  }
 0xcba   :  { %7435 = vmatprep.subr.bf16.mxu0 %v13067_v55  ;;  %7487 = vmatpush2.bf16.msra.mxu1 %v13066_v38  ;;  %v13108_v55 = vld [vmem:[#allocation11 + $0xac] ss:$16 sps:$4 sm:$0xff]   ;;  %v16525_v38 = vpack.c.bf16 %v6361_v21, %v6363_v3  ;;  %v13145_v21 = vld [vmem:[#allocation11 + $0x5c0] ss:$16 sps:$4 sm:$0xff]   ;;  %v13153_v3 = vld [vmem:[#allocation11 + $0x5a4] ss:$16 sps:$4 sm:$0xff]  }
 0xcbb   :  { %7488 = vmatprep.subr.bf16.mxu1 %v13070_v48  ;;  %v13103_v48 = vld [vmem:[#allocation11 + $0x4a0] ss:$16 sps:$4 sm:$0xff]  }
 0xcbd   :  { %7436 = vmatpush2.bf16.msra.mxu0 %v13069_v23  ;;  %v16527_v23 = vpack.c.bf16 %v6388_v17, %v6390_v45  ;;  %v13156_v17 = vld [vmem:[#allocation11 + $0x1ac] ss:$16 sps:$4 sm:$0xff]   ;;  %v13151_v45 = vld [vmem:[#allocation11 + $0x5a0] ss:$16 sps:$4 sm:$0xff]  }
 0xcbe   :  { %7437 = vmatprep.subr.bf16.mxu0 %v13073_v56  ;;  %7489 = vmatpush2.bf16.msra.mxu1 %v13072_v11  ;;  %v13111_v56 = vld [vmem:[#allocation11 + $0x484] ss:$16 sps:$4 sm:$0xff]   ;;  %v16531_v11 = vpack.c.bf16 %v16456_v6, %v16452_v40 }
 0xcbf   :  { %7490 = vmatprep.subr.bf16.mxu1 %v13076_v46  ;;  %v13106_v46 = vld [vmem:[#allocation11 + $0xa8] ss:$16 sps:$4 sm:$0xff]  }
 0xcc1   :  { %7438 = vmatpush2.bf16.msra.mxu0 %v13075_v31  ;;  %v13114_v31 = vld [vmem:[#allocation11 + $0x8c] ss:$16 sps:$4 sm:$0xff]  }
 0xcc2   :  { %7439 = vmatprep.subr.bf16.mxu0 %v13079_v53  ;;  %7491 = vmatpush2.bf16.msra.mxu1 %v13078_v62  ;;  %v13109_v53 = vld [vmem:[#allocation11 + $0x480] ss:$16 sps:$4 sm:$0xff]   ;;  %v13117_v62 = vld [vmem:[#allocation11 + $0x464] ss:$16 sps:$4 sm:$0xff]  }
 0xcc3   :  { %7492 = vmatprep.subr.bf16.mxu1 %v13082_v28  ;;  %v13112_v28 = vld [vmem:[#allocation11 + $0x88] ss:$16 sps:$4 sm:$0xff]  }
 0xcc5   :  { %7440 = vmatpush2.bf16.msra.mxu0 %v13081_v29  ;;  %v13120_v29 = vld [vmem:[#allocation11 + $0x6c] ss:$16 sps:$4 sm:$0xff]  }
 0xcc6   :  { %7441 = vmatprep.subr.bf16.mxu0 %v13085_v49  ;;  %7493 = vmatpush2.bf16.msra.mxu1 %v13084_v42  ;;  %v13126_v49 = vld [vmem:[#allocation11 + $0x4c] ss:$16 sps:$4 sm:$0xff]   ;;  %v13121_v42 = vld [vmem:[#allocation11 + $0x440] ss:$16 sps:$4 sm:$0xff]  }
 0xcc7   :  { %7494 = vmatprep.subr.bf16.mxu1 %v13088_v4  ;;  %v13129_v4 = vld [vmem:[#allocation11 + $0x424] ss:$16 sps:$4 sm:$0xff]  }
 0xcc9   :  { %7442 = vmatpush2.bf16.msra.mxu0 %v13087_v0  ;;  %v13124_v0 = vld [vmem:[#allocation11 + $0x48] ss:$16 sps:$4 sm:$0xff]  }
 0xcca   :  { %7517 = vmatprep.subr.bf16.mxu0 %v13093_v47  ;;  %7495 = vmatpush2.bf16.msra.mxu1 %v13090_v10  ;;  %v13130_v47 = vld [vmem:[#allocation11 + $0x28] ss:$16 sps:$4 sm:$0xff]   ;;  %v13138_v10 = vld [vmem:[#allocation11 + $0xc] ss:$16 sps:$4 sm:$0xff]  }
 0xccb   :  { %7570 = vmatprep.subr.bf16.mxu1 %v13096_v32  ;;  %v13133_v32 = vld [vmem:[#allocation11 + $0x400] ss:$16 sps:$4 sm:$0xff]  }
 0xccc   :  { %11748 = vmatmul.mubr.msk.bf16.vlgmr.msra.gmra.mxu0 %vm16342_vm14, %v16491_v8 }
 0xccd   :  { %7518 = vmatpush1.bf16.msra.mxu0 %v13091_v59  ;;  %11752 = vmatprep.mubr.msk.bf16.mxu0 %vm16351_vm15, %v16482_v61  ;;  %v13141_v59 = vld [vmem:[#allocation11 + $0x5e4] ss:$16 sps:$4 sm:$0xff]  }
 0xcce   :  { %7497 = vmatmul.mubr.bf16.vlgmr.msra.gmra.mxu1 %v16497_v37  ;;  %7519 = vmatprep.subr.bf16.mxu0 %v13099_v30  ;;  %v13144_v30 = vld [vmem:[#allocation11 + $0x1ec] ss:$16 sps:$4 sm:$0xff]  }
 0xccf   :  { %7571 = vmatpush1.bf16.msra.mxu1 %v13094_v58  ;;  %7506 = vmatprep.mubr.bf16.mxu1 %v16503_v57  ;;  %v13147_v58 = vld [vmem:[#allocation11 + $0x5c4] ss:$16 sps:$4 sm:$0xff]  }
 0xcd0   :  { %7572 = vmatprep.subr.bf16.mxu1 %v13102_v9  ;;  %v13142_v9 = vld [vmem:[#allocation11 + $0x1e8] ss:$16 sps:$4 sm:$0xff]  }
 0xcd1   :  { %7520 = vmatpush1.bf16.msra.mxu0 %v13097_v43  ;;  %v13150_v43 = vld [vmem:[#allocation11 + $0x1cc] ss:$16 sps:$4 sm:$0xff]  }
 0xcd2   :  { %7521 = vmatprep.subr.bf16.mxu0 %v13105_v63  ;;  %v13148_v63 = vld [vmem:[#allocation11 + $0x1c8] ss:$16 sps:$4 sm:$0xff]  }
 0xcd3   :  { %7573 = vmatpush1.bf16.msra.mxu1 %v13100_v60  ;;  %v13159_v60 = vld [vmem:[#allocation11 + $0x584] ss:$16 sps:$4 sm:$0xff]  }
 0xcd4   :  { %7574 = vmatprep.subr.bf16.mxu1 %v13108_v55  ;;  %11756 = vmatmul.mubr.msk.bf16.gmra.mxu0 %vm16351_vm15, %v16525_v38  ;;  %v13154_v55 = vld [vmem:[#allocation11 + $0x1a8] ss:$16 sps:$4 sm:$0xff]  }
 0xcd5   :  { %7522 = vmatpush1.bf16.msra.mxu0 %v13103_v48  ;;  %11760 = vmatprep.mubr.msk.bf16.mxu0 %vm16386_vm12, %v16527_v23  ;;  %v13162_v48 = vld [vmem:[#allocation11 + $0x18c] ss:$16 sps:$4 sm:$0xff]  }
 0xcd6   :  { %7523 = vmatprep.subr.bf16.mxu0 %v13111_v56  ;;  %7507 = vmatmul.mubr.bf16.gmra.mxu1 %v16531_v11  ;;  %v13157_v56 = vld [vmem:[#allocation11 + $0x580] ss:$16 sps:$4 sm:$0xff]  }
 0xcd7   :  { %7575 = vmatpush1.bf16.msra.mxu1 %v13106_v46  ;;  %11776 = vmatprep.mubr.msk.bf16.mxu1 %vm16342_vm14, %v16472_v22  ;;  %v13127_v22 = vld [vmem:[#allocation11 + $0x420] ss:$16 sps:$4 sm:$0xff]   ;;  %v13165_v46 = vld [vmem:[#allocation11 + $0x564] ss:$16 sps:$4 sm:$0xff]  }
 0xcd8   :  { %7576 = vmatprep.subr.bf16.mxu1 %v13114_v31  ;;  %v13160_v31 = vld [vmem:[#allocation11 + $0x188] ss:$16 sps:$4 sm:$0xff]  }
 0xcd9   :  { %7524 = vmatpush1.bf16.msra.mxu0 %v13109_v53  ;;  %v13168_v53 = vld [vmem:[#allocation11 + $0x16c] ss:$16 sps:$4 sm:$0xff]  }
 0xcda   :  { %7525 = vmatprep.subr.bf16.mxu0 %v13117_v62  ;;  %v13163_v62 = vld [vmem:[#allocation11 + $0x560] ss:$16 sps:$4 sm:$0xff]  }
 0xcdb   :  { %7577 = vmatpush1.bf16.msra.mxu1 %v13112_v28  ;;  %v13171_v28 = vld [vmem:[#allocation11 + $0x544] ss:$16 sps:$4 sm:$0xff]  }
 0xcdc   :  { %7578 = vmatprep.subr.bf16.mxu1 %v13120_v29  ;;  %v13166_v29 = vld [vmem:[#allocation11 + $0x168] ss:$16 sps:$4 sm:$0xff]  }
 0xcdd   :  { %7526 = vmatpush1.bf16.msra.mxu0 %v13115_v52  ;;  %v13174_v52 = vld [vmem:[#allocation11 + $0x14c] ss:$16 sps:$4 sm:$0xff]  }
 0xcde   :  { %7527 = vmatprep.subr.bf16.mxu0 %v13123_v50  ;;  %v13169_v50 = vld [vmem:[#allocation11 + $0x540] ss:$16 sps:$4 sm:$0xff]  }
 0xcdf   :  { %7579 = vmatpush1.bf16.msra.mxu1 %v13118_v54  ;;  %v13177_v54 = vld [vmem:[#allocation11 + $0x524] ss:$16 sps:$4 sm:$0xff]  }
 0xce0   :  { %7580 = vmatprep.subr.bf16.mxu1 %v13126_v49  ;;  %v13172_v49 = vld [vmem:[#allocation11 + $0x148] ss:$16 sps:$4 sm:$0xff]  }
 0xce1   :  { %7528 = vmatpush1.bf16.msra.mxu0 %v13121_v42  ;;  %v13180_v42 = vld [vmem:[#allocation11 + $0x12c] ss:$16 sps:$4 sm:$0xff]  }
 0xce2   :  { %7529 = vmatprep.subr.bf16.mxu0 %v13129_v4  ;;  %v13175_v4 = vld [vmem:[#allocation11 + $0x520] ss:$16 sps:$4 sm:$0xff]  }
 0xce3   :  { %7581 = vmatpush1.bf16.msra.mxu1 %v13124_v0  ;;  %v6377_v0 = vrot.slane %v16441_v18, 1 }
 0xce4   :  { %7582 = vmatprep.subr.bf16.mxu1 %v13132_v13  ;;  %v6379_v13 = vrot.slane %v16446_v41, 1  ;;  %v13189_v41 = vld [vmem:[#allocation11 + $0x2ec] ss:$16 sps:$4 sm:$0xff]  }
 0xce5   :  { %7530 = vmatpush1.bf16.msra.mxu0 %v13127_v22  ;;  %v6381_v22 = vrot.slane %v16452_v40, 1  ;;  %v6391_v6 = vsel %vm17063_vm9, %v6383_v7, %v6377_v0 }
 0xce6   :  { %7531 = vmatprep.subr.bf16.mxu0 %v13135_v14  ;;  %v13183_v14 = vld [vmem:[#allocation11 + $0x504] ss:$16 sps:$4 sm:$0xff]   ;;  %v6389_v18 = vsel %vm17059_vm0, %v6377_v0, %v6379_v13  ;;  %v13237_v0 = vld [vmem:[#allocation11 + $0x3ec] ss:$16 sps:$4 sm:$0xff]  }
 0xce7   :  { %7583 = vmatpush1.bf16.msra.mxu1 %v13130_v47  ;;  %v6384_v47 = vrot.slane %v16458_v20, 1 }
 0xce8   :  { %7584 = vmatprep.subr.bf16.mxu1 %v13138_v10  ;;  %v13178_v10 = vld [vmem:[#allocation11 + $0x128] ss:$16 sps:$4 sm:$0xff]  }
 0xce9   :  { %7532 = vmatpush1.bf16.msra.mxu0 %v13133_v32  ;;  %v13186_v32 = vld [vmem:[#allocation11 + $0x10c] ss:$16 sps:$4 sm:$0xff]   ;;  %v6386_v40 = vsel %vm17060_vm2, %v6382_v51, %v6384_v47  ;;  %v6392_v20 = vsel %vm17061_vm13, %v6384_v47, %v6378_v19  ;;  %vm17074_vm2 = vmmov %vm17059_vm0 }
 0xcea   :  { %7533 = vmatprep.subr.bf16.mxu0 %v13141_v59  ;;  %v13181_v59 = vld [vmem:[#allocation11 + $0x500] ss:$16 sps:$4 sm:$0xff]   ;;  %v13198_v51 = vld [vmem:[#allocation11 + $0x4cc] ss:$16 sps:$4 sm:$0xff]  }
 0xceb   :  { %7585 = vmatpush1.bf16.msra.mxu1 %v13136_v36  ;;  %v6387_v36 = vsel %vm17058_vm11, %v6379_v13, %v6381_v22  ;;  %v13201_v19 = vld [vmem:[#allocation11 + $0x2ac] ss:$16 sps:$4 sm:$0xff]   ;;  %v13232_v13 = vld [vmem:[#allocation11 + $0x408] ss:$16 sps:$4 sm:$0xff]   ;;  %vm17073_vm11 = vmmov %vm17059_vm0 }
 0xcec   :  { %7586 = vmatprep.subr.bf16.mxu1 %v13144_v30  ;;  %v13184_v30 = vld [vmem:[#allocation11 + $0x108] ss:$16 sps:$4 sm:$0xff]   ;;  %v13243_v47 = vld [vmem:[#allocation11 + $0x3cc] ss:$16 sps:$4 sm:$0xff]  }
 0xced   :  { %7534 = vmatpush2.bf16.msra.mxu0 %v13139_v12  ;;  %v16559_v12 = vpack.c.bf16 %v6387_v36, %v6389_v18  ;;  %v13249_v36 = vld [vmem:[#allocation11 + $0x3ac] ss:$16 sps:$4 sm:$0xff]   ;;  %v13244_v18 = vld [vmem:[#allocation11 + $0x5c8] ss:$16 sps:$4 sm:$0xff]  }
 0xcee   :  { %7535 = vmatprep.subr.bf16.mxu0 %v13147_v58  ;;  %v13187_v58 = vld [vmem:[#allocation11 + $0x2e8] ss:$16 sps:$4 sm:$0xff]  }
 0xcef   :  { %7587 = vmatpush2.bf16.msra.mxu1 %v13142_v9  ;;  %v13192_v9 = vld [vmem:[#allocation11 + $0x4ec] ss:$16 sps:$4 sm:$0xff]  }
 0xcf0   :  { %7588 = vmatprep.subr.bf16.mxu1 %v13150_v43  ;;  %v13190_v43 = vld [vmem:[#allocation11 + $0x4e8] ss:$16 sps:$4 sm:$0xff]  }
 0xcf1   :  { %7536 = vmatpush2.bf16.msra.mxu0 %v13145_v21  ;;  %v13195_v21 = vld [vmem:[#allocation11 + $0x2cc] ss:$16 sps:$4 sm:$0xff]  }
 0xcf2   :  { %7537 = vmatprep.subr.bf16.mxu0 %v13153_v3  ;;  %v16561_v3 = vpack.c.bf16 %v6392_v20, %v6386_v40  ;;  %v13247_v40 = vld [vmem:[#allocation11 + $0x3a8] ss:$16 sps:$4 sm:$0xff]   ;;  %v13255_v20 = vld [vmem:[#allocation11 + $0x38c] ss:$16 sps:$4 sm:$0xff]  }
 0xcf3   :  { %7589 = vmatpush2.bf16.msra.mxu1 %v13148_v63  ;;  %v13196_v63 = vld [vmem:[#allocation11 + $0x4c8] ss:$16 sps:$4 sm:$0xff]  }
 0xcf4   :  { %7590 = vmatprep.subr.bf16.mxu1 %v13156_v17  ;;  %v6385_v17 = vsel %vm17062_vm3, %v6381_v22, %v6383_v7  ;;  %v13240_v22 = vld [vmem:[#allocation11 + $0x5ec] ss:$16 sps:$4 sm:$0xff]   ;;  %vm17078_vm3 = vmmov %vm17059_vm0 }
 0xcf5   :  { %7538 = vmatpush2.bf16.msra.mxu0 %v13151_v45  ;;  %v13204_v45 = vld [vmem:[#allocation11 + $0x4ac] ss:$16 sps:$4 sm:$0xff]  }
 0xcf6   :  { %7539 = vmatprep.subr.bf16.mxu0 %v13159_v60  ;;  %v13199_v60 = vld [vmem:[#allocation11 + $0x2a8] ss:$16 sps:$4 sm:$0xff]   ;;  %v13264_v7 = vld [vmem:[#allocation11 + $0x56c] ss:$16 sps:$4 sm:$0xff]  }
 0xcf7   :  { %7591 = vmatpush2.bf16.msra.mxu1 %v13154_v55  ;;  %v16580_v55 = vpack.c.bf16 %v6391_v6, %v6385_v17  ;;  %v13265_v17 = vld [vmem:[#allocation11 + $0x348] ss:$16 sps:$4 sm:$0xff]   ;;  %v13273_v6 = vld [vmem:[#allocation11 + $0x32c] ss:$16 sps:$4 sm:$0xff]  }
 0xcf8   :  { %7592 = vmatprep.subr.bf16.mxu1 %v13162_v48  ;;  %v13207_v48 = vld [vmem:[#allocation11 + $0x28c] ss:$16 sps:$4 sm:$0xff]  }
 0xcf9   :  { %7540 = vmatpush2.bf16.msra.mxu0 %v13157_v56  ;;  %v13202_v56 = vld [vmem:[#allocation11 + $0x4a8] ss:$16 sps:$4 sm:$0xff]  }
 0xcfa   :  { %7541 = vmatprep.subr.bf16.mxu0 %v13165_v46  ;;  %v13210_v46 = vld [vmem:[#allocation11 + $0x48c] ss:$16 sps:$4 sm:$0xff]  }
 0xcfb   :  { %7593 = vmatpush2.bf16.msra.mxu1 %v13160_v31  ;;  %v13205_v31 = vld [vmem:[#allocation11 + $0x288] ss:$16 sps:$4 sm:$0xff]  }
 0xcfc   :  { %7594 = vmatprep.subr.bf16.mxu1 %v13168_v53  ;;  %v13211_v53 = vld [vmem:[#allocation11 + $0x268] ss:$16 sps:$4 sm:$0xff]  }
 0xcfd   :  { %7542 = vmatpush2.bf16.msra.mxu0 %v13163_v62  ;;  %v13219_v62 = vld [vmem:[#allocation11 + $0x24c] ss:$16 sps:$4 sm:$0xff]  }
 0xcfe   :  { %7543 = vmatprep.subr.bf16.mxu0 %v13171_v28  ;;  %v13214_v28 = vld [vmem:[#allocation11 + $0x468] ss:$16 sps:$4 sm:$0xff]  }
 0xcff   :  { %7595 = vmatpush2.bf16.msra.mxu1 %v13166_v29  ;;  %v13222_v29 = vld [vmem:[#allocation11 + $0x44c] ss:$16 sps:$4 sm:$0xff]  }
 0xd00   :  { %7596 = vmatprep.subr.bf16.mxu1 %v13174_v52  ;;  %v13217_v52 = vld [vmem:[#allocation11 + $0x248] ss:$16 sps:$4 sm:$0xff]  }
 0xd01   :  { %7544 = vmatpush2.bf16.msra.mxu0 %v13169_v50  ;;  %v13225_v50 = vld [vmem:[#allocation11 + $0x22c] ss:$16 sps:$4 sm:$0xff]  }
 0xd02   :  { %7545 = vmatprep.subr.bf16.mxu0 %v13177_v54  ;;  %v13220_v54 = vld [vmem:[#allocation11 + $0x448] ss:$16 sps:$4 sm:$0xff]  }
 0xd03   :  { %7597 = vmatpush2.bf16.msra.mxu1 %v13172_v49  ;;  %v13231_v49 = vld [vmem:[#allocation11 + $0x20c] ss:$16 sps:$4 sm:$0xff]  }
 0xd04   :  { %7598 = vmatprep.subr.bf16.mxu1 %v13180_v42  ;;  %v13234_v42 = vld [vmem:[#allocation11 + $0x40c] ss:$16 sps:$4 sm:$0xff]  }
 0xd05   :  { %7546 = vmatpush2.bf16.msra.mxu0 %v13175_v4  ;;  %v13229_v4 = vld [vmem:[#allocation11 + $0x208] ss:$16 sps:$4 sm:$0xff]  }
 0xd06   :  { %7547 = vmatprep.subr.bf16.mxu0 %v13183_v14  ;;  %v13235_v14 = vld [vmem:[#allocation11 + $0x3e8] ss:$16 sps:$4 sm:$0xff]  }
 0xd07   :  { %7599 = vmatpush2.bf16.msra.mxu1 %v13178_v10  ;;  %v13238_v10 = vld [vmem:[#allocation11 + $0x5e8] ss:$16 sps:$4 sm:$0xff]  }
 0xd08   :  { %7600 = vmatprep.subr.bf16.mxu1 %v13186_v32  ;;  %v13246_v32 = vld [vmem:[#allocation11 + $0x5cc] ss:$16 sps:$4 sm:$0xff]  }
 0xd09   :  { %7548 = vmatpush2.bf16.msra.mxu0 %v13181_v59  ;;  %v13241_v59 = vld [vmem:[#allocation11 + $0x3c8] ss:$16 sps:$4 sm:$0xff]  }
 0xd0a   :  { %7623 = vmatprep.subr.bf16.mxu0 %v13189_v41  ;;  %v13252_v41 = vld [vmem:[#allocation11 + $0x5ac] ss:$16 sps:$4 sm:$0xff]  }
 0xd0b   :  { %7601 = vmatpush2.bf16.msra.mxu1 %v13184_v30  ;;  %v13250_v30 = vld [vmem:[#allocation11 + $0x5a8] ss:$16 sps:$4 sm:$0xff]  }
 0xd0c   :  { %11764 = vmatmul.mubr.msk.bf16.vlgmr.msra.gmra.mxu0 %vm16386_vm12, %v16559_v12  ;;  %7676 = vmatprep.subr.bf16.mxu1 %v13192_v9  ;;  %v13253_v9 = vld [vmem:[#allocation11 + $0x388] ss:$16 sps:$4 sm:$0xff]  }
 0xd0d   :  { %7624 = vmatpush1.bf16.msra.mxu0 %v13187_v58  ;;  %11768 = vmatprep.mubr.msk.bf16.mxu0 %vm16406_vm7, %v16561_v3  ;;  %v13258_v58 = vld [vmem:[#allocation11 + $0x58c] ss:$16 sps:$4 sm:$0xff]  }
 0xd0e   :  { %11780 = vmatmul.mubr.msk.bf16.vlgmr.msra.gmra.mxu1 %vm16342_vm14, %v16491_v8  ;;  %7625 = vmatprep.subr.bf16.mxu0 %v13195_v21  ;;  %v13208_v8 = vld [vmem:[#allocation11 + $0x488] ss:$16 sps:$4 sm:$0xff]   ;;  %vm7753_vm14 = vcmask 261120  }
 0xd0f   :  { %7677 = vmatpush1.bf16.msra.mxu1 %v13190_v43  ;;  %11784 = vmatprep.mubr.msk.bf16.mxu1 %vm16351_vm15, %v16482_v61  ;;  %v13216_v61 = vld [vmem:[#allocation11 + $0x46c] ss:$16 sps:$4 sm:$0xff]   ;;  %v13256_v21 = vld [vmem:[#allocation11 + $0x588] ss:$16 sps:$4 sm:$0xff]  }
 0xd10   :  { %7678 = vmatprep.subr.bf16.mxu1 %v13198_v51  ;;  %v13261_v43 = vld [vmem:[#allocation11 + $0x36c] ss:$16 sps:$4 sm:$0xff]   ;;  %v13259_v51 = vld [vmem:[#allocation11 + $0x368] ss:$16 sps:$4 sm:$0xff]  }
 0xd11   :  { %7626 = vmatpush1.bf16.msra.mxu0 %v13193_v25  ;;  %v13267_v25 = vld [vmem:[#allocation11 + $0x34c] ss:$16 sps:$4 sm:$0xff]  }
 0xd12   :  { %7627 = vmatprep.subr.bf16.mxu0 %v13201_v19  ;;  %v13262_v19 = vld [vmem:[#allocation11 + $0x568] ss:$16 sps:$4 sm:$0xff]  }
 0xd13   :  { %7679 = vmatpush1.bf16.msra.mxu1 %v13196_v63  ;;  %v13270_v63 = vld [vmem:[#allocation11 + $0x54c] ss:$16 sps:$4 sm:$0xff]  }
 0xd14   :  { %11772 = vmatmul.mubr.msk.bf16.gmra.mxu0 %vm16406_vm7, %v16580_v55  ;;  %7680 = vmatprep.subr.bf16.mxu1 %v13204_v45  ;;  %v13268_v45 = vld [vmem:[#allocation11 + $0x548] ss:$16 sps:$4 sm:$0xff]  }
 0xd15   :  { %7628 = vmatpush1.bf16.msra.mxu0 %v13199_v60  ;;  %7655 = vmatprep.mubr.bf16.mxu0 %v16465_v1  ;;  %v13276_v60 = vld [vmem:[#allocation11 + $0x52c] ss:$16 sps:$4 sm:$0xff]  }
 0xd16   :  { %7629 = vmatprep.subr.bf16.mxu0 %v13207_v48  ;;  %11788 = vmatmul.mubr.msk.bf16.gmra.mxu1 %vm16351_vm15, %v16525_v38  ;;  %v13223_v38 = vld [vmem:[#allocation11 + $0x228] ss:$16 sps:$4 sm:$0xff]  }
 0xd17   :  { %7681 = vmatpush1.bf16.msra.mxu1 %v13202_v56  ;;  %11792 = vmatprep.mubr.msk.bf16.mxu1 %vm16386_vm12, %v16527_v23  ;;  %v13226_v23 = vld [vmem:[#allocation11 + $0x428] ss:$16 sps:$4 sm:$0xff]   ;;  %v13279_v56 = vld [vmem:[#allocation11 + $0x30c] ss:$16 sps:$4 sm:$0xff]  }
 0xd18   :  { %7682 = vmatprep.subr.bf16.mxu1 %v13210_v46  ;;  %v13271_v48 = vld [vmem:[#allocation11 + $0x328] ss:$16 sps:$4 sm:$0xff]  }
 0xd19   :  { %7630 = vmatpush1.bf16.msra.mxu0 %v13205_v31  ;;  %v13274_v46 = vld [vmem:[#allocation11 + $0x528] ss:$16 sps:$4 sm:$0xff]   ;;  %v13282_v31 = vld [vmem:[#allocation11 + $0x50c] ss:$16 sps:$4 sm:$0xff]  }
 0xd1a   :  { %7631 = vmatprep.subr.bf16.mxu0 %v13213_v16  ;;  %v13277_v16 = vld [vmem:[#allocation11 + $0x308] ss:$16 sps:$4 sm:$0xff]  }
 0xd1b   :  { %7683 = vmatpush1.bf16.msra.mxu1 %v13208_v8  ;;  %v13280_v8 = vld [vmem:[#allocation11 + $0x508] ss:$16 sps:$4 sm:$0xff]  }
 0xd1c   :  { %7684 = vmatprep.subr.bf16.mxu1 %v13216_v61 }
 0xd1d   :  { %7632 = vmatpush1.bf16.msra.mxu0 %v13211_v53 }
 0xd1e   :  { %7633 = vmatprep.subr.bf16.mxu0 %v13219_v62 }
 0xd1f   :  { %7685 = vmatpush1.bf16.msra.mxu1 %v13214_v28 }
 0xd20   :  { %7686 = vmatprep.subr.bf16.mxu1 %v13222_v29 }
 0xd21   :  { %7634 = vmatpush1.bf16.msra.mxu0 %v13217_v52 }
 0xd22   :  { %7635 = vmatprep.subr.bf16.mxu0 %v13225_v50 }
 0xd23   :  { %7687 = vmatpush1.bf16.msra.mxu1 %v13220_v54 }
 0xd24   :  { %7688 = vmatprep.subr.bf16.mxu1 %v13228_v44  ;;  %v5711_v44 = vld [vmem:[#allocation12] sm:$0x77] }
 0xd25   :  { %7636 = vmatpush1.bf16.msra.mxu0 %v13223_v38 }
 0xd26   :  { %7637 = vmatprep.subr.bf16.mxu0 %v13231_v49 }
 0xd27   :  { %7689 = vmatpush1.bf16.msra.mxu1 %v13226_v23  ;;  %v17064_v23 = vld [vmem:[#allocation69_spill] sm:$0xff] }
 0xd28   :  { %7690 = vmatprep.subr.bf16.mxu1 %v13234_v42  ;;  %v6422_v42 = vrot.slane %v5711_v44, %v17064_v23 }
 0xd29   :  { %7638 = vmatpush1.bf16.msra.mxu0 %v13229_v4 }
 0xd2a   :  { %7639 = vmatprep.subr.bf16.mxu0 %v13237_v0 }
 0xd2b   :  { %7691 = vmatpush1.bf16.msra.mxu1 %v13232_v13 }
 0xd2c   :  { %7692 = vmatprep.subr.bf16.mxu1 %v13240_v22 }
 0xd2d   :  { %7640 = vmatpush2.bf16.msra.mxu0 %v13235_v14 }
 0xd2e   :  { %7641 = vmatprep.subr.bf16.mxu0 %v13243_v47 }
 0xd2f   :  { %7693 = vmatpush2.bf16.msra.mxu1 %v13238_v10 }
 0xd30   :  { %7694 = vmatprep.subr.bf16.mxu1 %v13246_v32 }
 0xd31   :  { %7642 = vmatpush2.bf16.msra.mxu0 %v13241_v59 }
 0xd32   :  { %7643 = vmatprep.subr.bf16.mxu0 %v13249_v36 }
 0xd33   :  { %7695 = vmatpush2.bf16.msra.mxu1 %v13244_v18 }
 0xd34   :  { %7696 = vmatprep.subr.bf16.mxu1 %v13252_v41 }
 0xd35   :  { %7644 = vmatpush2.bf16.msra.mxu0 %v13247_v40 }
 0xd36   :  { %7645 = vmatprep.subr.bf16.mxu0 %v13255_v20 }
 0xd37   :  { %7697 = vmatpush2.bf16.msra.mxu1 %v13250_v30 }
 0xd38   :  { %7698 = vmatprep.subr.bf16.mxu1 %v13258_v58 }
 0xd39   :  { %7646 = vmatpush2.bf16.msra.mxu0 %v13253_v9 }
 0xd3a   :  { %7647 = vmatprep.subr.bf16.mxu0 %v13261_v43 }
 0xd3b   :  { %7699 = vmatpush2.bf16.msra.mxu1 %v13256_v21 }
 0xd3c   :  { %7700 = vmatprep.subr.bf16.mxu1 %v13264_v7 }
 0xd3d   :  { %7648 = vmatpush2.bf16.msra.mxu0 %v13259_v51 }
 0xd3e   :  { %7649 = vmatprep.subr.bf16.mxu0 %v13267_v25 }
 0xd3f   :  { %7701 = vmatpush2.bf16.msra.mxu1 %v13262_v19 }
 0xd40   :  { %7702 = vmatprep.subr.bf16.mxu1 %v13270_v63 }
 0xd41   :  { %7650 = vmatpush2.bf16.msra.mxu0 %v13265_v17 }
 0xd42   :  { %7651 = vmatprep.subr.bf16.mxu0 %v13273_v6 }
 0xd43   :  { %7703 = vmatpush2.bf16.msra.mxu1 %v13268_v45 }
 0xd44   :  { %7704 = vmatprep.subr.bf16.mxu1 %v13276_v60 }
 0xd45   :  { %7652 = vmatpush2.bf16.msra.mxu0 %v13271_v48 }
 0xd46   :  { %7653 = vmatprep.subr.bf16.mxu0 %v13279_v56 }
 0xd47   :  { %7705 = vmatpush2.bf16.msra.mxu1 %v13274_v46 }
 0xd48   :  { %7706 = vmatprep.subr.bf16.mxu1 %v13282_v31 }
 0xd49   :  { %7654 = vmatpush2.bf16.msra.mxu0 %v13277_v16 }
 0xd4b   :  { %7707 = vmatpush2.bf16.msra.mxu1 %v13280_v8 }
 0xd4c   :  { %7656 = vmatmul.mubr.bf16.vlgmr.msra.gmra.mxu0 %v16497_v37 }
 0xd4d   :  { %7665 = vmatprep.mubr.bf16.mxu0 %v16503_v57 }
 0xd4e   :  { %11796 = vmatmul.mubr.msk.bf16.vlgmr.msra.gmra.mxu1 %vm16386_vm12, %v16559_v12  ;;  %vm17066_vm12 = vmmov %vm17059_vm0 }
 0xd4f   :  { %11800 = vmatprep.mubr.msk.bf16.mxu1 %vm16406_vm7, %v16561_v3 }
 0xd54   :  { %7666 = vmatmul.mubr.bf16.gmra.mxu0 %v16531_v11 }
 0xd55   :  { %7788 = vmatprep.mubr.bf16.mxu0 %v16964_v39 }
 0xd56   :  { %11804 = vmatmul.mubr.msk.bf16.gmra.mxu1 %vm16406_vm7, %v16580_v55  ;;  %v17065_v55 = vld [vmem:[#allocation64_spill] sm:$0xff] }
 0xd57   :  { %7831 = vmatprep.mubr.bf16.mxu1 %v16964_v39  ;;  %v6418_v4 = vrot.slane %v5711_v44, %v17065_v55  ;;  %v6442_v22 = vrot.slane %v6422_v42, %v17065_v55 }
 0xd59   :  { %v6438_v47 = vrot.slane %v6418_v4, %v17065_v55 }
 0xd8c   :  { %v7445_v61 = vpop.f32.mrf.mxu0 }
 0xd8d   :  { %v7446_v25 = vadd.f32 %v7445_v61, %v6438_v47 }
 0xd8e   :  { %v7447_v53 = vpop.f32.mrf.mxu0  ;;  %v7498_v28 = vpop.f32.mrf.mxu1 }
 0xd8f   :  { %v7448_v41 = vadd.f32 %v7447_v53, %v6442_v22  ;;  %v7499_v53 = vadd.f32 %v7498_v28, %v7446_v25  ;;  %v13283_v28 = vld [vmem:[#allocation11 + $0x6e0] ss:$16 sps:$4 sm:$0xff]   ;;  %v13309_v25 = vld [vmem:[#allocation11 + $0x7e4] ss:$16 sps:$4 sm:$0xff]  }
 0xd90   :  { %v7449_v62 = vpop.f32.mrf.mxu0  ;;  %v7500_v29 = vpop.f32.mrf.mxu1 }
 0xd91   :  { %v7450_v58 = vadd.f32 %v7449_v62, %v6438_v47  ;;  %v7501_v19 = vadd.f32 %v7500_v29, %v7448_v41  ;;  %v13295_v41 = vld [vmem:[#allocation11 + $0x660] ss:$16 sps:$4 sm:$0xff]  }
 0xd92   :  { %v7451_v35 = vpop.f32.mrf.mxu0  ;;  %v7502_v50 = vpop.f32.mrf.mxu1 }
 0xd93   :  { %v7452_v59 = vadd.f32 %v7451_v35, %v6442_v22  ;;  %v7503_v56 = vadd.f32 %v7502_v50, %v7450_v58  ;;  %v13285_v50 = vld [vmem:[#allocation11 + $0x6e4] ss:$16 sps:$4 sm:$0xff]  }
 0xd94   :  { %v7455_v12 = vpop.f32.mrf.mxu0  ;;  %v7504_v54 = vpop.f32.mrf.mxu1  ;;  %v13303_v58 = vld [vmem:[#allocation11 + $0x624] ss:$16 sps:$4 sm:$0xff]  }
 0xd95   :  { %v7456_v40 = vadd.f32 %v7455_v12, %v6438_v47  ;;  %v7505_v21 = vadd.f32 %v7504_v54, %v7452_v59  ;;  %v13292_v59 = vld [vmem:[#allocation11 + $0x680] ss:$16 sps:$4 sm:$0xff]  }
 0xd96   :  { %v7457_v52 = vpop.f32.mrf.mxu0  ;;  %v7508_v38 = vpop.f32.mrf.mxu1 }
 0xd97   :  { %v7458_v36 = vadd.f32 %v7457_v52, %v6442_v22  ;;  %v7509_v63 = vadd.f32 %v7508_v38, %v7456_v40  ;;  %v13300_v40 = vld [vmem:[#allocation11 + $0x644] ss:$16 sps:$4 sm:$0xff]  }
 0xd98   :  { %v7459_v3 = vpop.f32.mrf.mxu0  ;;  %v7510_v0 = vpop.f32.mrf.mxu1 }
 0xd99   :  { %v7460_v18 = vadd.f32 %v7459_v3, %v6438_v47  ;;  %v7511_v7 = vadd.f32 %v7510_v0, %v7458_v36  ;;  %v13289_v47 = vld [vmem:[#allocation11 + $0x6a0] ss:$16 sps:$4 sm:$0xff]   ;;  %v13297_v36 = vld [vmem:[#allocation11 + $0x664] ss:$16 sps:$4 sm:$0xff]  }
 0xd9a   :  { %v7461_v49 = vpop.f32.mrf.mxu0  ;;  %v7512_v10 = vpop.f32.mrf.mxu1 }
 0xd9b   :  { %v7462_v30 = vadd.f32 %v7461_v49, %v6442_v22  ;;  %v7513_v51 = vadd.f32 %v7512_v10, %v7460_v18  ;;  %v13291_v22 = vld [vmem:[#allocation11 + $0x6a4] ss:$16 sps:$4 sm:$0xff]  }
 0xd9c   :  { %v7514_v9 = vpop.f32.mrf.mxu1  ;;  %v13294_v10 = vld [vmem:[#allocation11 + $0x684] ss:$16 sps:$4 sm:$0xff]  }
 0xd9d   :  { %v7515_v6 = vadd.f32 %v7514_v9, %v7462_v30  ;;  %v13298_v30 = vld [vmem:[#allocation11 + $0x640] ss:$16 sps:$4 sm:$0xff]  }
 0xdcc   :  { %v7551_v2 = vpop.f32.mrf.mxu0 }
 0xdcd   :  { %v7552_v54 = vadd.f32 %v7551_v2, %v7499_v53  ;;  %v13286_v2 = vld [vmem:[#allocation11 + $0x6c0] ss:$16 sps:$4 sm:$0xff]  }
 0xdce   :  { %v7553_v13 = vpop.f32.mrf.mxu0 }
 0xdcf   :  { %v7554_v16 = vadd.f32 %v7553_v13, %v7501_v19  ;;  %v7729_v4 = vmax.f32 %v7552_v54, 0.0  ;;  %v13288_v13 = vld [vmem:[#allocation11 + $0x6c4] ss:$16 sps:$4 sm:$0xff]   ;;  %v5712_v19 = vld [vmem:[#allocation12 + $0x8] sm:$0x77] }
 0xdd0   :  { %v7555_v14 = vpop.f32.mrf.mxu0 }
 0xdd1   :  { %v7556_v62 = vadd.f32 %v7555_v14, %v7503_v56  ;;  %v7730_v29 = vmax.f32 %v7554_v16, 0.0  ;;  %v16612_v14 = vpop.f32.mrf.mxu1  ;;  %v13310_v56 = vld [vmem:[#allocation11 + $0x7c0] ss:$16 sps:$4 sm:$0xff]  }
 0xdd2   :  { %v7557_v32 = vpop.f32.mrf.mxu0 }
 0xdd3   :  { %v7558_v45 = vadd.f32 %v7557_v32, %v7505_v21  ;;  %v7733_v38 = vmax.f32 %v7556_v62, 0.0  ;;  %v7606_v32 = vpop.f32.mrf.mxu1  ;;  %v13306_v21 = vld [vmem:[#allocation11 + $0x604] ss:$16 sps:$4 sm:$0xff]  }
 0xdd4   :  { %v7561_v20 = vpop.f32.mrf.mxu0 }
 0xdd5   :  { %v7562_v46 = vadd.f32 %v7561_v20, %v7509_v63  ;;  %v7734_v12 = vmax.f32 %v7558_v45, 0.0  ;;  %v7745_v0 = vpack.c.bf16 %v7733_v38, %v7729_v4  ;;  %v7608_v18 = vpop.f32.mrf.mxu1  ;;  %v6426_v45 = vrot.slane %v5712_v19, %v17065_v55  ;;  %v13316_v38 = vld [vmem:[#allocation11 + $0x780] ss:$16 sps:$4 sm:$0xff]  }
 0xdd6   :  { %v7563_v43 = vpop.f32.mrf.mxu0 }
 0xdd7   :  { %v7564_v60 = vadd.f32 %v7563_v43, %v7511_v7  ;;  %v7737_v61 = vmax.f32 %v7562_v46, 0.0  ;;  %v7746_v42 = vpack.c.bf16 %v7734_v12, %v7730_v29  ;;  %v7610_v20 = vpop.f32.mrf.mxu1  ;;  %v13301_v43 = vld [vmem:[#allocation11 + $0x620] ss:$16 sps:$4 sm:$0xff]   ;;  %v13315_v46 = vld [vmem:[#allocation11 + $0x7a4] ss:$16 sps:$4 sm:$0xff]   ;;  %v6446_v16 = vrot.slane %v6426_v45, %v17065_v55 }
 0xdd8   :  { %v7565_v17 = vpop.f32.mrf.mxu0  ;;  %v13318_v12 = vld [vmem:[#allocation11 + $0x784] ss:$16 sps:$4 sm:$0xff]  }
 0xdd9   :  { %v7566_v48 = vadd.f32 %v7565_v17, %v7513_v51  ;;  %v7738_v52 = vmax.f32 %v7564_v60, 0.0  ;;  %v7614_v9 = vpop.f32.mrf.mxu1  ;;  %v13304_v51 = vld [vmem:[#allocation11 + $0x600] ss:$16 sps:$4 sm:$0xff]   ;;  %v6430_v60 = vrot.slane %v5712_v19, %v17064_v23  ;;  %v7605_v4 = vadd.f32 %v16612_v14, %v6446_v16 }
 0xdda   :  { %v7567_v31 = vpop.f32.mrf.mxu0  ;;  %v13307_v17 = vld [vmem:[#allocation11 + $0x7e0] ss:$16 sps:$4 sm:$0xff]  }
 0xddb   :  { %v7568_v8 = vadd.f32 %v7567_v31, %v7515_v6  ;;  %v7741_v35 = vmax.f32 %v7566_v48, 0.0  ;;  %v7616_v7 = vpop.f32.mrf.mxu1  ;;  %v13312_v6 = vld [vmem:[#allocation11 + $0x7c4] ss:$16 sps:$4 sm:$0xff]  }
 0xddd   :  { %v7742_v3 = vmax.f32 %v7568_v8, 0.0  ;;  %v7749_v49 = vpack.c.bf16 %v7741_v35, %v7737_v61  ;;  %v7618_v63 = vpop.f32.mrf.mxu1  ;;  %v6450_v8 = vrot.slane %v6430_v60, %v17065_v55  ;;  %v13313_v35 = vld [vmem:[#allocation11 + $0x7a0] ss:$16 sps:$4 sm:$0xff]   ;;  %v7615_v61 = vadd.f32 %v7614_v9, %v6446_v16 }
 0xddf   :  { %v7750_v44 = vpack.c.bf16 %v7742_v3, %v7738_v52  ;;  %v7620_v48 = vpop.f32.mrf.mxu1  ;;  %v7607_v52 = vadd.f32 %v7606_v32, %v6450_v8  ;;  %v7611_v23 = vadd.f32 %v7610_v20, %v6450_v8 }
 0xde1   :  { %7768 = vmatprep.subr.bf16.mxu0 %v7750_v44 }
 0xde2   :  { %7769 = vmatpush1.bf16.msra.mxu0 %v7749_v49  ;;  %v7617_v49 = vadd.f32 %v7616_v7, %v6450_v8 }
 0xde3   :  { %7770 = vmatprep.subr.bf16.mxu0 %v7746_v42  ;;  %v13321_v42 = vld [vmem:[#allocation11 + $0x764] ss:$16 sps:$4 sm:$0xff]  }
 0xde6   :  { %7771 = vmatpush1.bf16.msra.mxu0 %v7745_v0 }
 0xde7   :  { %9894 = vmatprep.subr.bf16.mxu0 %v13285_v50  ;;  %v7609_v50 = vadd.f32 %v7608_v18, %v6446_v16 }
 0xde9   :  { %11805 = vmatmul.mubr.msk.bf16.vlgmr.msra.gmra.mxu0 %vm7753_vm14, %v15907_v34 }
 0xdea   :  { %9895 = vmatpush1.bf16.msra.mxu0 %v13283_v28 }
 0xdeb   :  { %9896 = vmatprep.subr.bf16.mxu0 %v13288_v13 }
 0xdee   :  { %9897 = vmatpush1.bf16.msra.mxu0 %v13286_v2  ;;  %v7619_v2 = vadd.f32 %v7618_v63, %v6446_v16 }
 0xdef   :  { %9898 = vmatprep.subr.bf16.mxu0 %v13291_v22 }
 0xdf2   :  { %9899 = vmatpush1.bf16.msra.mxu0 %v13289_v47 }
 0xdf3   :  { %9900 = vmatprep.subr.bf16.mxu0 %v13294_v10 }
 0xdf6   :  { %9901 = vmatpush1.bf16.msra.mxu0 %v13292_v59  ;;  %v13319_v59 = vld [vmem:[#allocation11 + $0x760] ss:$16 sps:$4 sm:$0xff]  }
 0xdf7   :  { %9902 = vmatprep.subr.bf16.mxu0 %v13297_v36  ;;  %v7621_v36 = vadd.f32 %v7620_v48, %v6450_v8 }
 0xdfa   :  { %9903 = vmatpush1.bf16.msra.mxu0 %v13295_v41 }
 0xdfb   :  { %9904 = vmatprep.subr.bf16.mxu0 %v13300_v40 }
 0xdfe   :  { %9905 = vmatpush1.bf16.msra.mxu0 %v13298_v30 }
 0xdff   :  { %9906 = vmatprep.subr.bf16.mxu0 %v13303_v58 }
 0xe02   :  { %9907 = vmatpush1.bf16.msra.mxu0 %v13301_v43 }
 0xe03   :  { %9908 = vmatprep.subr.bf16.mxu0 %v13306_v21 }
 0xe06   :  { %9909 = vmatpush1.bf16.msra.mxu0 %v13304_v51 }
 0xe07   :  { %9910 = vmatprep.subr.bf16.mxu0 %v13309_v25 }
 0xe0a   :  { %9911 = vmatpush2.bf16.msra.mxu0 %v13307_v17 }
 0xe0b   :  { %9912 = vmatprep.subr.bf16.mxu0 %v13312_v6 }
 0xe0c   :  { %v7657_v31 = vpop.f32.mrf.mxu0 }
 0xe0d   :  { %v7658_v40 = vadd.f32 %v7657_v31, %v7605_v4  ;;  %v13342_v4 = vld [vmem:[#allocation11 + $0x8c4] ss:$16 sps:$4 sm:$0xff]  }
 0xe0e   :  { %v7659_v53 = vpop.f32.mrf.mxu0  ;;  %v7710_v62 = vpop.f32.mrf.mxu1  ;;  %9913 = vmatpush2.bf16.msra.mxu0 %v13310_v56 }
 0xe0f   :  { %9914 = vmatprep.subr.bf16.mxu0 %v13315_v46  ;;  %v7660_v0 = vadd.f32 %v7659_v53, %v7607_v52  ;;  %v7711_v63 = vadd.f32 %v7710_v62, %v7658_v40  ;;  %v13322_v62 = vld [vmem:[#allocation11 + $0x740] ss:$16 sps:$4 sm:$0xff]  }
 0xe10   :  { %v7661_v3 = vpop.f32.mrf.mxu0  ;;  %v7712_v54 = vpop.f32.mrf.mxu1  ;;  %v13376_v40 = vld [vmem:[#allocation11 + $0x800] ss:$16 sps:$4 sm:$0xff]  }
 0xe11   :  { %v7662_v20 = vadd.f32 %v7661_v3, %v7609_v50  ;;  %v7713_v30 = vadd.f32 %v7712_v54, %v7660_v0  ;;  %v7731_v8 = vmax.f32 %v7711_v63, 0.0  ;;  %v13324_v54 = vld [vmem:[#allocation11 + $0x744] ss:$16 sps:$4 sm:$0xff]   ;;  %v13340_v50 = vld [vmem:[#allocation11 + $0x8c0] ss:$16 sps:$4 sm:$0xff]  }
 0xe12   :  { %v7663_v29 = vpop.f32.mrf.mxu0  ;;  %v7714_v44 = vpop.f32.mrf.mxu1  ;;  %9915 = vmatpush2.bf16.msra.mxu0 %v13313_v35  ;;  %v13348_v0 = vld [vmem:[#allocation11 + $0x8a4] ss:$16 sps:$4 sm:$0xff]  }
 0xe13   :  { %9916 = vmatprep.subr.bf16.mxu0 %v13318_v12  ;;  %v7664_v22 = vadd.f32 %v7663_v29, %v7611_v23  ;;  %v7732_v17 = vmax.f32 %v7713_v30, 0.0  ;;  %v7715_v6 = vadd.f32 %v7714_v44, %v7662_v20  ;;  %v13327_v23 = vld [vmem:[#allocation11 + $0x724] ss:$16 sps:$4 sm:$0xff]   ;;  %v13328_v44 = vld [vmem:[#allocation11 + $0x700] ss:$16 sps:$4 sm:$0xff]  }
 0xe14   :  { %v7667_v28 = vpop.f32.mrf.mxu0  ;;  %v7716_v13 = vpop.f32.mrf.mxu1  ;;  %v13330_v29 = vld [vmem:[#allocation11 + $0x704] ss:$16 sps:$4 sm:$0xff]   ;;  %v13382_v30 = vld [vmem:[#allocation11 + $0x9e0] ss:$16 sps:$4 sm:$0xff]  }
 0xe15   :  { %v7668_v47 = vadd.f32 %v7667_v28, %v7615_v61  ;;  %v7717_v18 = vadd.f32 %v7716_v13, %v7664_v22  ;;  %v7735_v53 = vmax.f32 %v7715_v6, 0.0  ;;  %v13325_v61 = vld [vmem:[#allocation11 + $0x720] ss:$16 sps:$4 sm:$0xff]   ;;  %v13354_v13 = vld [vmem:[#allocation11 + $0x884] ss:$16 sps:$4 sm:$0xff]  }
 0xe16   :  { %v7669_v10 = vpop.f32.mrf.mxu0  ;;  %v7720_v32 = vpop.f32.mrf.mxu1  ;;  %9917 = vmatpush2.bf16.msra.mxu0 %v13316_v38  ;;  %v13333_v38 = vld [vmem:[#allocation11 + $0xae4] ss:$16 sps:$4 sm:$0xff]   ;;  %v13346_v28 = vld [vmem:[#allocation11 + $0x8a0] ss:$16 sps:$4 sm:$0xff]  }
 0xe17   :  { %v7670_v41 = vadd.f32 %v7669_v10, %v7617_v49  ;;  %9918 = vmatprep.subr.bf16.mxu0 %v13321_v42  ;;  %v7721_v58 = vadd.f32 %v7720_v32, %v7668_v47  ;;  %v7736_v48 = vmax.f32 %v7717_v18, 0.0  ;;  %v7747_v3 = vpack.c.bf16 %v7735_v53, %v7731_v8  ;;  %v13336_v49 = vld [vmem:[#allocation11 + $0x8e4] ss:$16 sps:$4 sm:$0xff]   ;;  %v13334_v42 = vld [vmem:[#allocation11 + $0x8e0] ss:$16 sps:$4 sm:$0xff]  }
 0xe18   :  { %v7671_v9 = vpop.f32.mrf.mxu0  ;;  %v7722_v14 = vpop.f32.mrf.mxu1  ;;  %v13360_v22 = vld [vmem:[#allocation11 + $0x864] ss:$16 sps:$4 sm:$0xff]   ;;  %v13358_v47 = vld [vmem:[#allocation11 + $0x860] ss:$16 sps:$4 sm:$0xff]  }
 0xe19   :  { %v7672_v43 = vadd.f32 %v7671_v9, %v7619_v2  ;;  %v7723_v21 = vadd.f32 %v7722_v14, %v7670_v41  ;;  %v7739_v45 = vmax.f32 %v7721_v58, 0.0  ;;  %v7748_v12 = vpack.c.bf16 %v7736_v48, %v7732_v17  ;;  %v13352_v2 = vld [vmem:[#allocation11 + $0x880] ss:$16 sps:$4 sm:$0xff]   ;;  %v13366_v10 = vld [vmem:[#allocation11 + $0x844] ss:$16 sps:$4 sm:$0xff]  }
 0xe1a   :  { %v7673_v7 = vpop.f32.mrf.mxu0  ;;  %v7724_v51 = vpop.f32.mrf.mxu1  ;;  %9919 = vmatpush2.bf16.msra.mxu0 %v13319_v59  ;;  %v13364_v32 = vld [vmem:[#allocation11 + $0x840] ss:$16 sps:$4 sm:$0xff]   ;;  %v13372_v59 = vld [vmem:[#allocation11 + $0x824] ss:$16 sps:$4 sm:$0xff]  }
 0xe1b   :  { %v7674_v25 = vadd.f32 %v7673_v7, %v7621_v36  ;;  %v7725_v19 = vadd.f32 %v7724_v51, %v7672_v43  ;;  %v7740_v56 = vmax.f32 %v7723_v21, 0.0  ;;  %9920 = vmatprep.subr.bf16.mxu0 %v13324_v54  ;;  %v13370_v36 = vld [vmem:[#allocation11 + $0x820] ss:$16 sps:$4 sm:$0xff]   ;;  %v13378_v41 = vld [vmem:[#allocation11 + $0x804] ss:$16 sps:$4 sm:$0xff]  }
 0xe1c   :  { %v7726_v60 = vpop.f32.mrf.mxu1  ;;  %v13384_v20 = vld [vmem:[#allocation11 + $0x9e4] ss:$16 sps:$4 sm:$0xff]   ;;  %v13388_v9 = vld [vmem:[#allocation11 + $0x9c0] ss:$16 sps:$4 sm:$0xff]  }
 0xe1d   :  { %v7743_v46 = vmax.f32 %v7725_v19, 0.0  ;;  %v7727_v31 = vadd.f32 %v7726_v60, %v7674_v25  ;;  %v13390_v58 = vld [vmem:[#allocation11 + $0x9c4] ss:$16 sps:$4 sm:$0xff]   ;;  %v13394_v18 = vld [vmem:[#allocation11 + $0x9a0] ss:$16 sps:$4 sm:$0xff]  }
 0xe1e   :  { %9921 = vmatpush2.bf16.msra.mxu0 %v13322_v62  ;;  %v13396_v14 = vld [vmem:[#allocation11 + $0x9a4] ss:$16 sps:$4 sm:$0xff]   ;;  %v13400_v21 = vld [vmem:[#allocation11 + $0x980] ss:$16 sps:$4 sm:$0xff]  }
 0xe1f   :  { %v7744_v16 = vmax.f32 %v7727_v31, 0.0  ;;  %v7751_v35 = vpack.c.bf16 %v7743_v46, %v7739_v45  ;;  %9922 = vmatprep.subr.bf16.mxu0 %v13327_v23  ;;  %v13402_v43 = vld [vmem:[#allocation11 + $0x984] ss:$16 sps:$4 sm:$0xff]   ;;  %v13406_v51 = vld [vmem:[#allocation11 + $0x960] ss:$16 sps:$4 sm:$0xff]   ;;  %v7853_v46 = vand.u32 7, %v16978_v26 }
 0xe20   :  { %v13408_v7 = vld [vmem:[#allocation11 + $0x964] ss:$16 sps:$4 sm:$0xff]   ;;  %v13412_v19 = vld [vmem:[#allocation11 + $0x940] ss:$16 sps:$4 sm:$0xff]   ;;  %v7846_v31 = vand.u32 7, %v14414_v24 }
 0xe21   :  { %v7752_v52 = vpack.c.bf16 %v7744_v16, %v7740_v56  ;;  %v13414_v25 = vld [vmem:[#allocation11 + $0x944] ss:$16 sps:$4 sm:$0xff]   ;;  %v13418_v17 = vld [vmem:[#allocation11 + $0x920] ss:$16 sps:$4 sm:$0xff]   ;;  %vm12358_vm15 = vcmp.ge.s32.totalorder %v7853_v46, 1  ;;  %vm16679_vm7 = vcmp.lt.s32.totalorder %v7853_v46, 7 }
 0xe22   :  { %9923 = vmatpush2.bf16.msra.mxu0 %v13325_v61  ;;  %v13420_v63 = vld [vmem:[#allocation11 + $0x924] ss:$16 sps:$4 sm:$0xff]   ;;  %v13424_v45 = vld [vmem:[#allocation11 + $0x900] ss:$16 sps:$4 sm:$0xff]   ;;  %vm12359_vm4 = vcmp.ge.s32.totalorder %v7846_v31, 1  ;;  %vm12361_vm8 = vcmp.lt.s32.totalorder %v7846_v31, 7 }
 0xe23   :  { %7811 = vmatprep.subr.bf16.mxu1 %v7752_v52  ;;  %9924 = vmatprep.subr.bf16.mxu0 %v13330_v29  ;;  %v13426_v6 = vld [vmem:[#allocation11 + $0x904] ss:$16 sps:$4 sm:$0xff]   ;;  %vm16649_vm5 = vmpackc.low %vm12358_vm15, %vm12359_vm4 }
 0xe24   :  { %7812 = vmatpush1.bf16.msra.mxu1 %v7751_v35  ;;  %v13432_v60 = vld [vmem:[#allocation11 + $0xce4] ss:$16 sps:$4 sm:$0xff]   ;;  %vm16706_vm13 = vmpackc.low %vm16679_vm7, %vm12361_vm8 }
 0xe25   :  { %7813 = vmatprep.subr.bf16.mxu1 %v7748_v12 }
 0xe26   :  { %9925 = vmatpush2.bf16.msra.mxu0 %v13328_v44 }
 0xe27   :  { %9980 = vmatprep.subr.bf16.mxu0 %v13333_v38 }
 0xe28   :  { %7814 = vmatpush1.bf16.msra.mxu1 %v7747_v3 }
 0xe29   :  { %9937 = vmatprep.subr.bf16.mxu1 %v13336_v49 }
 0xe2b   :  { %11806 = vmatmul.mubr.msk.bf16.vlgmr.msra.gmra.mxu1 %vm7753_vm14, %v15907_v34 }
 0xe2c   :  { %9938 = vmatpush1.bf16.msra.mxu1 %v13334_v42 }
 0xe2d   :  { %9939 = vmatprep.subr.bf16.mxu1 %v13342_v4 }
 0xe30   :  { %9940 = vmatpush1.bf16.msra.mxu1 %v13340_v50 }
 0xe31   :  { %9941 = vmatprep.subr.bf16.mxu1 %v13348_v0  ;;  %v13331_v0 = vld [vmem:[#allocation11 + $0xae0] ss:$16 sps:$4 sm:$0xff]  }
 0xe34   :  { %9942 = vmatpush1.bf16.msra.mxu1 %v13346_v28 }
 0xe35   :  { %9943 = vmatprep.subr.bf16.mxu1 %v13354_v13  ;;  %v13339_v13 = vld [vmem:[#allocation11 + $0xac4] ss:$16 sps:$4 sm:$0xff]  }
 0xe38   :  { %9944 = vmatpush1.bf16.msra.mxu1 %v13352_v2 }
 0xe39   :  { %9945 = vmatprep.subr.bf16.mxu1 %v13360_v22  ;;  %v13337_v22 = vld [vmem:[#allocation11 + $0xac0] ss:$16 sps:$4 sm:$0xff]  }
 0xe3c   :  { %9946 = vmatpush1.bf16.msra.mxu1 %v13358_v47  ;;  %v13345_v47 = vld [vmem:[#allocation11 + $0xaa4] ss:$16 sps:$4 sm:$0xff]  }
 0xe3d   :  { %9947 = vmatprep.subr.bf16.mxu1 %v13366_v10  ;;  %v13343_v10 = vld [vmem:[#allocation11 + $0xaa0] ss:$16 sps:$4 sm:$0xff]  }
 0xe40   :  { %9948 = vmatpush1.bf16.msra.mxu1 %v13364_v32  ;;  %v13351_v32 = vld [vmem:[#allocation11 + $0xa84] ss:$16 sps:$4 sm:$0xff]  }
 0xe41   :  { %9949 = vmatprep.subr.bf16.mxu1 %v13372_v59  ;;  %v13349_v59 = vld [vmem:[#allocation11 + $0xa80] ss:$16 sps:$4 sm:$0xff]  }
 0xe44   :  { %9950 = vmatpush1.bf16.msra.mxu1 %v13370_v36  ;;  %v13357_v36 = vld [vmem:[#allocation11 + $0xa64] ss:$16 sps:$4 sm:$0xff]  }
 0xe45   :  { %9951 = vmatprep.subr.bf16.mxu1 %v13378_v41  ;;  %v13355_v41 = vld [vmem:[#allocation11 + $0xa60] ss:$16 sps:$4 sm:$0xff]  }
 0xe48   :  { %9952 = vmatpush1.bf16.msra.mxu1 %v13376_v40  ;;  %v13363_v40 = vld [vmem:[#allocation11 + $0xa44] ss:$16 sps:$4 sm:$0xff]  }
 0xe49   :  { %9953 = vmatprep.subr.bf16.mxu1 %v13384_v20  ;;  %v13361_v20 = vld [vmem:[#allocation11 + $0xa40] ss:$16 sps:$4 sm:$0xff]  }
 0xe4c   :  { %9954 = vmatpush2.bf16.msra.mxu1 %v13382_v30  ;;  %v13369_v30 = vld [vmem:[#allocation11 + $0xa24] ss:$16 sps:$4 sm:$0xff]  }
 0xe4d   :  { %9955 = vmatprep.subr.bf16.mxu1 %v13390_v58  ;;  %v13367_v58 = vld [vmem:[#allocation11 + $0xa20] ss:$16 sps:$4 sm:$0xff]  }
 0xe50   :  { %9956 = vmatpush2.bf16.msra.mxu1 %v13388_v9  ;;  %v13375_v9 = vld [vmem:[#allocation11 + $0xa04] ss:$16 sps:$4 sm:$0xff]  }
 0xe51   :  { %9957 = vmatprep.subr.bf16.mxu1 %v13396_v14  ;;  %v13373_v14 = vld [vmem:[#allocation11 + $0xa00] ss:$16 sps:$4 sm:$0xff]  }
 0xe54   :  { %9958 = vmatpush2.bf16.msra.mxu1 %v13394_v18  ;;  %v13381_v18 = vld [vmem:[#allocation11 + $0xbe4] ss:$16 sps:$4 sm:$0xff]  }
 0xe55   :  { %9959 = vmatprep.subr.bf16.mxu1 %v13402_v43  ;;  %v13379_v43 = vld [vmem:[#allocation11 + $0xbe0] ss:$16 sps:$4 sm:$0xff]  }
 0xe58   :  { %9960 = vmatpush2.bf16.msra.mxu1 %v13400_v21  ;;  %v13387_v21 = vld [vmem:[#allocation11 + $0xbc4] ss:$16 sps:$4 sm:$0xff]  }
 0xe59   :  { %9961 = vmatprep.subr.bf16.mxu1 %v13408_v7  ;;  %v13385_v7 = vld [vmem:[#allocation11 + $0xbc0] ss:$16 sps:$4 sm:$0xff]  }
 0xe5c   :  { %9962 = vmatpush2.bf16.msra.mxu1 %v13406_v51  ;;  %v13393_v51 = vld [vmem:[#allocation11 + $0xba4] ss:$16 sps:$4 sm:$0xff]  }
 0xe5d   :  { %9963 = vmatprep.subr.bf16.mxu1 %v13414_v25  ;;  %v13391_v25 = vld [vmem:[#allocation11 + $0xba0] ss:$16 sps:$4 sm:$0xff]  }
 0xe60   :  { %9964 = vmatpush2.bf16.msra.mxu1 %v13412_v19  ;;  %v13399_v19 = vld [vmem:[#allocation11 + $0xb84] ss:$16 sps:$4 sm:$0xff]  }
 0xe61   :  { %9965 = vmatprep.subr.bf16.mxu1 %v13420_v63  ;;  %v13397_v63 = vld [vmem:[#allocation11 + $0xb80] ss:$16 sps:$4 sm:$0xff]  }
 0xe64   :  { %9966 = vmatpush2.bf16.msra.mxu1 %v13418_v17  ;;  %v13405_v17 = vld [vmem:[#allocation11 + $0xb64] ss:$16 sps:$4 sm:$0xff]  }
 0xe65   :  { %9967 = vmatprep.subr.bf16.mxu1 %v13426_v6  ;;  %v13403_v6 = vld [vmem:[#allocation11 + $0xb60] ss:$16 sps:$4 sm:$0xff]  }
 0xe68   :  { %9968 = vmatpush2.bf16.msra.mxu1 %v13424_v45  ;;  %v13411_v45 = vld [vmem:[#allocation11 + $0xb44] ss:$16 sps:$4 sm:$0xff]  }
 0xe69   :  { %10023 = vmatprep.subr.bf16.mxu1 %v13432_v60  ;;  %v13409_v60 = vld [vmem:[#allocation11 + $0xb40] ss:$16 sps:$4 sm:$0xff]  }
 0xea9   :  { %v7790_v48 = vpop.f32.mrf.mxu0 }
 0xeaa   :  { %v7896_v8 = vrot.slane %v7790_v48, 1  ;;  %v7866_v3 = vrot.slane %v7790_v48, 7 }
 0xeab   :  { %v16621_v56 = vpop.f32.mrf.mxu0 }
 0xeac   :  { %v7867_v23 = vrot.slane %v16621_v56, 7 }
 0xead   :  { %v7794_v16 = vpop.f32.mrf.mxu0 }
 0xeae   :  { %v7870_v53 = vrot.slane %v7794_v16, 7  ;;  %v7900_v35 = vrot.slane %v7794_v16, 1  ;;  %v16625_v12 = vpack.c.bf16 %v7794_v16, %v7790_v48  ;;  %v13417_v48 = vld [vmem:[#allocation11 + $0xb24] ss:$16 sps:$4 sm:$0xff]  }
 0xeaf   :  { %v16627_v52 = vpop.f32.mrf.mxu0 }
 0xeb0   :  { %v7904_v54 = vsel %vm17066_vm12, %v7896_v8, %v7900_v35  ;;  %v7908_v62 = vsel %vm17067_vm1, %v7900_v35, %v7896_v8  ;;  %v7871_v29 = vrot.slane %v16627_v52, 7  ;;  %v7874_v44 = vsel %vm887_vm6, %v7866_v3, %v7870_v53  ;;  %v13415_v8 = vld [vmem:[#allocation11 + $0xb20] ss:$16 sps:$4 sm:$0xff]   ;;  %v13423_v35 = vld [vmem:[#allocation11 + $0xb04] ss:$16 sps:$4 sm:$0xff]  }
 0xeb1   :  { %v16638_v61 = vpack.c.bf16 %v7908_v62, %v7904_v54  ;;  %v7878_v38 = vsel %vm887_vm6, %v7870_v53, %v7866_v3  ;;  %v16659_v2 = vpack.c.bf16 %v16627_v52, %v16621_v56  ;;  %v7901_v3 = vrot.slane %v16627_v52, 1  ;;  %v13469_v52 = vld [vmem:[#allocation11 + $0xe00] ss:$16 sps:$4 sm:$0xff]  }
 0xeb2   :  { %v7875_v49 = vsel %vm887_vm6, %v7867_v23, %v7871_v29  ;;  %v7879_v42 = vsel %vm887_vm6, %v7871_v29, %v7867_v23  ;;  %v16655_v28 = vpack.c.bf16 %v7874_v44, %v7878_v38  ;;  %v7897_v29 = vrot.slane %v16621_v56, 1 }
 0xeb3   :  { %v16653_v50 = vpack.c.bf16 %v7875_v49, %v7879_v42  ;;  %v13421_v42 = vld [vmem:[#allocation11 + $0xb00] ss:$16 sps:$4 sm:$0xff]  }
 0xeb4   :  { %v7905_v56 = vsel %vm17072_vm10, %v7897_v29, %v7901_v3 }
 0xeb5   :  { %12195 = vmatprep.mubr.msk.bf16.mxu0 %vm16649_vm5, %v16653_v50 }
 0xeb6   :  { %12200 = vmatmul.mubr.msk.bf16.vlgmr.msra.gmra.mxu0 %vm16649_vm5, %v16655_v28 }
 0xeb7   :  { %9981 = vmatpush1.bf16.msra.mxu0 %v13331_v0  ;;  %10012 = vmatprep.mubr.bf16.mxu0 %v16659_v2 }
 0xeb8   :  { %9982 = vmatprep.subr.bf16.mxu0 %v13339_v13 }
 0xebb   :  { %9983 = vmatpush1.bf16.msra.mxu0 %v13337_v22  ;;  %v13429_v22 = vld [vmem:[#allocation11 + $0xee4] ss:$16 sps:$4 sm:$0xff]  }
 0xebc   :  { %9984 = vmatprep.subr.bf16.mxu0 %v13345_v47  ;;  %v7909_v47 = vsel %vm17073_vm11, %v7901_v3, %v7897_v29  ;;  %v13459_v3 = vld [vmem:[#allocation11 + $0xe44] ss:$16 sps:$4 sm:$0xff]  }
 0xebd   :  { %v13465_v29 = vld [vmem:[#allocation11 + $0xe24] ss:$16 sps:$4 sm:$0xff]  }
 0xebf   :  { %9985 = vmatpush1.bf16.msra.mxu0 %v13343_v10 }
 0xec0   :  { %9986 = vmatprep.subr.bf16.mxu0 %v13351_v32 }
 0xec3   :  { %9987 = vmatpush1.bf16.msra.mxu0 %v13349_v59 }
 0xec4   :  { %9988 = vmatprep.subr.bf16.mxu0 %v13357_v36  ;;  %v13427_v36 = vld [vmem:[#allocation11 + $0xee0] ss:$16 sps:$4 sm:$0xff]  }
 0xec7   :  { %9989 = vmatpush1.bf16.msra.mxu0 %v13355_v41 }
 0xec8   :  { %9990 = vmatprep.subr.bf16.mxu0 %v13363_v40 }
 0xecb   :  { %9991 = vmatpush1.bf16.msra.mxu0 %v13361_v20  ;;  %v13877_v20 = vld [vmem:[#allocation11 + $0x1280] ss:$16 sps:$4 sm:$0xff]  }
 0xecc   :  { %9992 = vmatprep.subr.bf16.mxu0 %v13369_v30  ;;  %v13435_v30 = vld [vmem:[#allocation11 + $0xec4] ss:$16 sps:$4 sm:$0xff]  }
 0xecf   :  { %9993 = vmatpush1.bf16.msra.mxu0 %v13367_v58  ;;  %v16710_v58 = vpack.c.bf16 %v7909_v47, %v7905_v56  ;;  %v13474_v56 = vld [vmem:[#allocation11 + $0xc04] ss:$16 sps:$4 sm:$0xff]  }
 0xed0   :  { %9994 = vmatprep.subr.bf16.mxu0 %v13375_v9  ;;  %v13477_v47 = vld [vmem:[#allocation11 + $0xfe4] ss:$16 sps:$4 sm:$0xff]  }
 0xed3   :  { %9995 = vmatpush1.bf16.msra.mxu0 %v13373_v14 }
 0xed4   :  { %9996 = vmatprep.subr.bf16.mxu0 %v13381_v18 }
 0xed7   :  { %9997 = vmatpush2.bf16.msra.mxu0 %v13379_v43  ;;  %v13430_v43 = vld [vmem:[#allocation11 + $0xce0] ss:$16 sps:$4 sm:$0xff]  }
 0xed8   :  { %9998 = vmatprep.subr.bf16.mxu0 %v13387_v21  ;;  %v13433_v21 = vld [vmem:[#allocation11 + $0xec0] ss:$16 sps:$4 sm:$0xff]  }
 0xedb   :  { %9999 = vmatpush2.bf16.msra.mxu0 %v13385_v7  ;;  %v13438_v7 = vld [vmem:[#allocation11 + $0xcc4] ss:$16 sps:$4 sm:$0xff]  }
 0xedc   :  { %10000 = vmatprep.subr.bf16.mxu0 %v13393_v51  ;;  %v13441_v51 = vld [vmem:[#allocation11 + $0xea4] ss:$16 sps:$4 sm:$0xff]  }
 0xedf   :  { %10001 = vmatpush2.bf16.msra.mxu0 %v13391_v25  ;;  %v13436_v25 = vld [vmem:[#allocation11 + $0xcc0] ss:$16 sps:$4 sm:$0xff]  }
 0xee0   :  { %10002 = vmatprep.subr.bf16.mxu0 %v13399_v19  ;;  %v13439_v19 = vld [vmem:[#allocation11 + $0xea0] ss:$16 sps:$4 sm:$0xff]  }
 0xee3   :  { %10003 = vmatpush2.bf16.msra.mxu0 %v13397_v63  ;;  %v13444_v63 = vld [vmem:[#allocation11 + $0xca4] ss:$16 sps:$4 sm:$0xff]  }
 0xee4   :  { %10004 = vmatprep.subr.bf16.mxu0 %v13405_v17  ;;  %v13447_v17 = vld [vmem:[#allocation11 + $0xe84] ss:$16 sps:$4 sm:$0xff]  }
 0xee7   :  { %10005 = vmatpush2.bf16.msra.mxu0 %v13403_v6  ;;  %v13442_v6 = vld [vmem:[#allocation11 + $0xca0] ss:$16 sps:$4 sm:$0xff]  }
 0xee8   :  { %10006 = vmatprep.subr.bf16.mxu0 %v13411_v45  ;;  %v13445_v45 = vld [vmem:[#allocation11 + $0xe80] ss:$16 sps:$4 sm:$0xff]  }
 0xeeb   :  { %v7833_v16 = vpop.f32.mrf.mxu1  ;;  %10007 = vmatpush2.bf16.msra.mxu0 %v13409_v60  ;;  %v13450_v60 = vld [vmem:[#allocation11 + $0xc84] ss:$16 sps:$4 sm:$0xff]  }
 0xeec   :  { %10008 = vmatprep.subr.bf16.mxu0 %v13417_v48  ;;  %v7898_v54 = vrot.slane %v7833_v16, 1  ;;  %v7868_v62 = vrot.slane %v7833_v16, 7  ;;  %v13453_v48 = vld [vmem:[#allocation11 + $0xe64] ss:$16 sps:$4 sm:$0xff]  }
 0xeed   :  { %v16668_v53 = vpop.f32.mrf.mxu1 }
 0xeee   :  { %v7869_v0 = vrot.slane %v16668_v53, 7 }
 0xeef   :  { %v7837_v23 = vpop.f32.mrf.mxu1  ;;  %10009 = vmatpush2.bf16.msra.mxu0 %v13415_v8  ;;  %v13451_v8 = vld [vmem:[#allocation11 + $0xe60] ss:$16 sps:$4 sm:$0xff]  }
 0xef0   :  { %v7872_v44 = vrot.slane %v7837_v23, 7  ;;  %v7902_v38 = vrot.slane %v7837_v23, 1  ;;  %v16672_v49 = vpack.c.bf16 %v7837_v23, %v7833_v16  ;;  %10010 = vmatprep.subr.bf16.mxu0 %v13423_v35  ;;  %v13448_v16 = vld [vmem:[#allocation11 + $0xc80] ss:$16 sps:$4 sm:$0xff]   ;;  %v13456_v35 = vld [vmem:[#allocation11 + $0xc64] ss:$16 sps:$4 sm:$0xff]  }
 0xef1   :  { %v16675_v13 = vpop.f32.mrf.mxu1  ;;  %v13462_v23 = vld [vmem:[#allocation11 + $0xc44] ss:$16 sps:$4 sm:$0xff]  }
 0xef2   :  { %v7906_v10 = vsel %vm17059_vm0, %v7898_v54, %v7902_v38  ;;  %v7910_v32 = vsel %vm17074_vm2, %v7902_v38, %v7898_v54  ;;  %v7876_v26 = vsel %vm887_vm6, %v7868_v62, %v7872_v44  ;;  %v7880_v46 = vsel %vm887_vm6, %v7872_v44, %v7868_v62  ;;  %v13454_v54 = vld [vmem:[#allocation11 + $0xc60] ss:$16 sps:$4 sm:$0xff]  }
 0xef3   :  { %v16697_v59 = vpack.c.bf16 %v7910_v32, %v7906_v10  ;;  %v7873_v31 = vrot.slane %v16675_v13, 7  ;;  %10011 = vmatpush2.bf16.msra.mxu0 %v13421_v42  ;;  %v16712_v9 = vpack.c.bf16 %v7876_v26, %v7880_v46  ;;  %v16718_v18 = vpack.c.bf16 %v16675_v13, %v16668_v53  ;;  %v13457_v62 = vld [vmem:[#allocation11 + $0xe40] ss:$16 sps:$4 sm:$0xff]   ;;  %v13468_v42 = vld [vmem:[#allocation11 + $0xc24] ss:$16 sps:$4 sm:$0xff]  }
 0xef4   :  { %10066 = vmatprep.subr.bf16.mxu0 %v13429_v22  ;;  %v13460_v44 = vld [vmem:[#allocation11 + $0xc40] ss:$16 sps:$4 sm:$0xff]   ;;  %v13480_v26 = vld [vmem:[#allocation11 + $0xde4] ss:$16 sps:$4 sm:$0xff]  }
 0xef5   :  { %v7877_v41 = vsel %vm887_vm6, %v7869_v0, %v7873_v31  ;;  %v7881_v40 = vsel %vm887_vm6, %v7873_v31, %v7869_v0  ;;  %v13463_v38 = vld [vmem:[#allocation11 + $0xe20] ss:$16 sps:$4 sm:$0xff]   ;;  %v13471_v0 = vld [vmem:[#allocation11 + $0xe04] ss:$16 sps:$4 sm:$0xff]   ;;  %vm17077_vm6 = vmmov %vm17059_vm0 }
 0xef6   :  { %v16714_v14 = vpack.c.bf16 %v7877_v41, %v7881_v40  ;;  %10013 = vmatmul.mubr.bf16.vlgmr.msra.gmra.mxu0 %v16625_v12  ;;  %v13466_v22 = vld [vmem:[#allocation11 + $0xc20] ss:$16 sps:$4 sm:$0xff]   ;;  %v13483_v46 = vld [vmem:[#allocation11 + $0xfc4] ss:$16 sps:$4 sm:$0xff]  }
 0xef7   :  { %10067 = vmatpush1.bf16.msra.mxu0 %v13427_v36  ;;  %12215 = vmatprep.mubr.msk.bf16.mxu0 %vm16706_vm13, %v16710_v58  ;;  %v13472_v10 = vld [vmem:[#allocation11 + $0xc00] ss:$16 sps:$4 sm:$0xff]   ;;  %v13486_v41 = vld [vmem:[#allocation11 + $0xdc4] ss:$16 sps:$4 sm:$0xff]  }
 0xef8   :  { %12205 = vmatprep.mubr.msk.bf16.mxu1 %vm16649_vm5, %v16714_v14  ;;  %10068 = vmatprep.subr.bf16.mxu0 %v13435_v30  ;;  %v13475_v32 = vld [vmem:[#allocation11 + $0xfe0] ss:$16 sps:$4 sm:$0xff]   ;;  %v13489_v40 = vld [vmem:[#allocation11 + $0xfa4] ss:$16 sps:$4 sm:$0xff]  }
 0xef9   :  { %12210 = vmatmul.mubr.msk.bf16.vlgmr.msra.gmra.mxu1 %vm16649_vm5, %v16712_v9  ;;  %v13478_v31 = vld [vmem:[#allocation11 + $0xde0] ss:$16 sps:$4 sm:$0xff]  }
 0xefa   :  { %10024 = vmatpush1.bf16.msra.mxu1 %v13430_v43  ;;  %10055 = vmatprep.mubr.bf16.mxu1 %v16718_v18  ;;  %v13481_v36 = vld [vmem:[#allocation11 + $0xfc0] ss:$16 sps:$4 sm:$0xff]  }
 0xefb   :  { %10069 = vmatpush1.bf16.msra.mxu0 %v13433_v21  ;;  %10025 = vmatprep.subr.bf16.mxu1 %v13438_v7  ;;  %v13484_v30 = vld [vmem:[#allocation11 + $0xdc0] ss:$16 sps:$4 sm:$0xff]   ;;  %v13492_v21 = vld [vmem:[#allocation11 + $0xda4] ss:$16 sps:$4 sm:$0xff]  }
 0xefc   :  { %10070 = vmatprep.subr.bf16.mxu0 %v13441_v51  ;;  %v13487_v43 = vld [vmem:[#allocation11 + $0xfa0] ss:$16 sps:$4 sm:$0xff]   ;;  %v13495_v7 = vld [vmem:[#allocation11 + $0xf84] ss:$16 sps:$4 sm:$0xff]  }
 0xefd   :  { %v13490_v51 = vld [vmem:[#allocation11 + $0xda0] ss:$16 sps:$4 sm:$0xff]  }
 0xefe   :  { %10026 = vmatpush1.bf16.msra.mxu1 %v13436_v25  ;;  %v13493_v25 = vld [vmem:[#allocation11 + $0xf80] ss:$16 sps:$4 sm:$0xff]  }
 0xeff   :  { %10071 = vmatpush1.bf16.msra.mxu0 %v13439_v19  ;;  %10027 = vmatprep.subr.bf16.mxu1 %v13444_v63  ;;  %v13498_v19 = vld [vmem:[#allocation11 + $0xd84] ss:$16 sps:$4 sm:$0xff]  }
 0xf00   :  { %10072 = vmatprep.subr.bf16.mxu0 %v13447_v17  ;;  %v13501_v63 = vld [vmem:[#allocation11 + $0xf64] ss:$16 sps:$4 sm:$0xff]   ;;  %v13496_v17 = vld [vmem:[#allocation11 + $0xd80] ss:$16 sps:$4 sm:$0xff]  }
 0xf02   :  { %10028 = vmatpush1.bf16.msra.mxu1 %v13442_v6  ;;  %v13499_v6 = vld [vmem:[#allocation11 + $0xf60] ss:$16 sps:$4 sm:$0xff]  }
 0xf03   :  { %10073 = vmatpush1.bf16.msra.mxu0 %v13445_v45  ;;  %10029 = vmatprep.subr.bf16.mxu1 %v13450_v60  ;;  %v13504_v45 = vld [vmem:[#allocation11 + $0xd64] ss:$16 sps:$4 sm:$0xff]  }
 0xf04   :  { %10074 = vmatprep.subr.bf16.mxu0 %v13453_v48  ;;  %v13507_v60 = vld [vmem:[#allocation11 + $0xf44] ss:$16 sps:$4 sm:$0xff]   ;;  %v13502_v48 = vld [vmem:[#allocation11 + $0xd60] ss:$16 sps:$4 sm:$0xff]  }
 0xf06   :  { %10030 = vmatpush1.bf16.msra.mxu1 %v13448_v16  ;;  %v13505_v16 = vld [vmem:[#allocation11 + $0xf40] ss:$16 sps:$4 sm:$0xff]  }
 0xf07   :  { %10075 = vmatpush1.bf16.msra.mxu0 %v13451_v8  ;;  %10031 = vmatprep.subr.bf16.mxu1 %v13456_v35  ;;  %v13510_v8 = vld [vmem:[#allocation11 + $0xd44] ss:$16 sps:$4 sm:$0xff]  }
 0xf08   :  { %10076 = vmatprep.subr.bf16.mxu0 %v13459_v3  ;;  %v13513_v35 = vld [vmem:[#allocation11 + $0xf24] ss:$16 sps:$4 sm:$0xff]   ;;  %v13508_v3 = vld [vmem:[#allocation11 + $0xd40] ss:$16 sps:$4 sm:$0xff]  }
 0xf0a   :  { %10032 = vmatpush1.bf16.msra.mxu1 %v13454_v54  ;;  %v13511_v54 = vld [vmem:[#allocation11 + $0xf20] ss:$16 sps:$4 sm:$0xff]  }
 0xf0b   :  { %10077 = vmatpush1.bf16.msra.mxu0 %v13457_v62  ;;  %10033 = vmatprep.subr.bf16.mxu1 %v13462_v23  ;;  %v13516_v62 = vld [vmem:[#allocation11 + $0xd24] ss:$16 sps:$4 sm:$0xff]  }
 0xf0c   :  { %10078 = vmatprep.subr.bf16.mxu0 %v13465_v29  ;;  %v13519_v23 = vld [vmem:[#allocation11 + $0xf04] ss:$16 sps:$4 sm:$0xff]   ;;  %v13514_v29 = vld [vmem:[#allocation11 + $0xd20] ss:$16 sps:$4 sm:$0xff]  }
 0xf0e   :  { %10034 = vmatpush1.bf16.msra.mxu1 %v13460_v44  ;;  %v7899_v44 = vrot.slane %v16668_v53, 1  ;;  %v13528_v53 = vld [vmem:[#allocation11 + $0x10e4] ss:$16 sps:$4 sm:$0xff]  }
 0xf0f   :  { %10079 = vmatpush1.bf16.msra.mxu0 %v13463_v38  ;;  %10035 = vmatprep.subr.bf16.mxu1 %v13468_v42  ;;  %v7903_v38 = vrot.slane %v16675_v13, 1  ;;  %v13517_v42 = vld [vmem:[#allocation11 + $0xf00] ss:$16 sps:$4 sm:$0xff]   ;;  %v13531_v13 = vld [vmem:[#allocation11 + $0x6cc] ss:$16 sps:$4 sm:$0xff]  }
 0xf10   :  { %10080 = vmatprep.subr.bf16.mxu0 %v13471_v0  ;;  %v13522_v0 = vld [vmem:[#allocation11 + $0xd04] ss:$16 sps:$4 sm:$0xff]  }
 0xf12   :  { %10036 = vmatpush1.bf16.msra.mxu1 %v13466_v22  ;;  %v13525_v22 = vld [vmem:[#allocation11 + $0x6ec] ss:$16 sps:$4 sm:$0xff]  }
 0xf13   :  { %10081 = vmatpush1.bf16.msra.mxu0 %v13469_v52  ;;  %10037 = vmatprep.subr.bf16.mxu1 %v13474_v56  ;;  %v13520_v52 = vld [vmem:[#allocation11 + $0xd00] ss:$16 sps:$4 sm:$0xff]   ;;  %v7907_v56 = vsel %vm17077_vm6, %v7899_v44, %v7903_v38 }
 0xf14   :  { %10082 = vmatprep.subr.bf16.mxu0 %v13477_v47  ;;  %v7911_v47 = vsel %vm17078_vm3, %v7903_v38, %v7899_v44  ;;  %v13568_v44 = vld [vmem:[#allocation11 + $0x1000] ss:$16 sps:$4 sm:$0xff]   ;;  %v13571_v38 = vld [vmem:[#allocation11 + $0x7e8] ss:$16 sps:$4 sm:$0xff]  }
 0xf16   :  { %10038 = vmatpush1.bf16.msra.mxu1 %v13472_v10  ;;  %v13523_v10 = vld [vmem:[#allocation11 + $0x6e8] ss:$16 sps:$4 sm:$0xff]  }
 0xf17   :  { %10083 = vmatpush2.bf16.msra.mxu0 %v13475_v32  ;;  %10039 = vmatprep.subr.bf16.mxu1 %v13480_v26  ;;  %v16737_v32 = vpack.c.bf16 %v7911_v47, %v7907_v56  ;;  %v13526_v26 = vld [vmem:[#allocation11 + $0x10e0] ss:$16 sps:$4 sm:$0xff]   ;;  %v13582_v56 = vld [vmem:[#allocation11 + $0x11c4] ss:$16 sps:$4 sm:$0xff]   ;;  %v13585_v47 = vld [vmem:[#allocation11 + $0x7ac] ss:$16 sps:$4 sm:$0xff]  }
 0xf18   :  { %10084 = vmatprep.subr.bf16.mxu0 %v13483_v46  ;;  %v13529_v46 = vld [vmem:[#allocation11 + $0x6c8] ss:$16 sps:$4 sm:$0xff]  }
 0xf1a   :  { %10040 = vmatpush2.bf16.msra.mxu1 %v13478_v31  ;;  %v13534_v31 = vld [vmem:[#allocation11 + $0x10c4] ss:$16 sps:$4 sm:$0xff]  }
 0xf1b   :  { %10085 = vmatpush2.bf16.msra.mxu0 %v13481_v36  ;;  %10041 = vmatprep.subr.bf16.mxu1 %v13486_v41  ;;  %v13537_v36 = vld [vmem:[#allocation11 + $0x6ac] ss:$16 sps:$4 sm:$0xff]   ;;  %v13532_v41 = vld [vmem:[#allocation11 + $0x10c0] ss:$16 sps:$4 sm:$0xff]  }
 0xf1c   :  { %10086 = vmatprep.subr.bf16.mxu0 %v13489_v40  ;;  %v13535_v40 = vld [vmem:[#allocation11 + $0x6a8] ss:$16 sps:$4 sm:$0xff]  }
 0xf1e   :  { %10042 = vmatpush2.bf16.msra.mxu1 %v13484_v30  ;;  %v13540_v30 = vld [vmem:[#allocation11 + $0x10a4] ss:$16 sps:$4 sm:$0xff]  }
 0xf1f   :  { %10087 = vmatpush2.bf16.msra.mxu0 %v13487_v43  ;;  %10043 = vmatprep.subr.bf16.mxu1 %v13492_v21  ;;  %v13543_v43 = vld [vmem:[#allocation11 + $0x68c] ss:$16 sps:$4 sm:$0xff]   ;;  %v13541_v21 = vld [vmem:[#allocation11 + $0x688] ss:$16 sps:$4 sm:$0xff]  }
 0xf20   :  { %10088 = vmatprep.subr.bf16.mxu0 %v13495_v7  ;;  %v13546_v7 = vld [vmem:[#allocation11 + $0x1084] ss:$16 sps:$4 sm:$0xff]  }
 0xf22   :  { %10044 = vmatpush2.bf16.msra.mxu1 %v13490_v51  ;;  %v13549_v51 = vld [vmem:[#allocation11 + $0x66c] ss:$16 sps:$4 sm:$0xff]  }
 0xf23   :  { %10089 = vmatpush2.bf16.msra.mxu0 %v13493_v25  ;;  %10045 = vmatprep.subr.bf16.mxu1 %v13498_v19  ;;  %v13544_v25 = vld [vmem:[#allocation11 + $0x1080] ss:$16 sps:$4 sm:$0xff]   ;;  %v13547_v19 = vld [vmem:[#allocation11 + $0x668] ss:$16 sps:$4 sm:$0xff]  }
 0xf24   :  { %10090 = vmatprep.subr.bf16.mxu0 %v13501_v63  ;;  %v13552_v63 = vld [vmem:[#allocation11 + $0x1064] ss:$16 sps:$4 sm:$0xff]  }
 0xf26   :  { %10046 = vmatpush2.bf16.msra.mxu1 %v13496_v17  ;;  %v13555_v17 = vld [vmem:[#allocation11 + $0x64c] ss:$16 sps:$4 sm:$0xff]  }
 0xf27   :  { %10091 = vmatpush2.bf16.msra.mxu0 %v13499_v6  ;;  %10047 = vmatprep.subr.bf16.mxu1 %v13504_v45  ;;  %v13550_v6 = vld [vmem:[#allocation11 + $0x1060] ss:$16 sps:$4 sm:$0xff]   ;;  %v13553_v45 = vld [vmem:[#allocation11 + $0x648] ss:$16 sps:$4 sm:$0xff]  }
 0xf28   :  { %10092 = vmatprep.subr.bf16.mxu0 %v13507_v60  ;;  %v13558_v60 = vld [vmem:[#allocation11 + $0x1044] ss:$16 sps:$4 sm:$0xff]  }
 0xf2a   :  { %10048 = vmatpush2.bf16.msra.mxu1 %v13502_v48  ;;  %v13561_v48 = vld [vmem:[#allocation11 + $0x62c] ss:$16 sps:$4 sm:$0xff]  }
 0xf2b   :  { %10093 = vmatpush2.bf16.msra.mxu0 %v13505_v16  ;;  %10049 = vmatprep.subr.bf16.mxu1 %v13510_v8  ;;  %v13556_v16 = vld [vmem:[#allocation11 + $0x1040] ss:$16 sps:$4 sm:$0xff]   ;;  %v13559_v8 = vld [vmem:[#allocation11 + $0x628] ss:$16 sps:$4 sm:$0xff]  }
 0xf2c   :  { %10094 = vmatprep.subr.bf16.mxu0 %v13513_v35  ;;  %v13564_v35 = vld [vmem:[#allocation11 + $0x1024] ss:$16 sps:$4 sm:$0xff]  }
 0xf2e   :  { %10050 = vmatpush2.bf16.msra.mxu1 %v13508_v3  ;;  %v13567_v3 = vld [vmem:[#allocation11 + $0x60c] ss:$16 sps:$4 sm:$0xff]  }
 0xf2f   :  { %10095 = vmatpush2.bf16.msra.mxu0 %v13511_v54  ;;  %10051 = vmatprep.subr.bf16.mxu1 %v13516_v62  ;;  %v13562_v54 = vld [vmem:[#allocation11 + $0x1020] ss:$16 sps:$4 sm:$0xff]   ;;  %v13565_v62 = vld [vmem:[#allocation11 + $0x608] ss:$16 sps:$4 sm:$0xff]  }
 0xf30   :  { %10096 = vmatprep.subr.bf16.mxu0 %v13519_v23  ;;  %v13570_v23 = vld [vmem:[#allocation11 + $0x1004] ss:$16 sps:$4 sm:$0xff]  }
 0xf32   :  { %10052 = vmatpush2.bf16.msra.mxu1 %v13514_v29  ;;  %v13573_v29 = vld [vmem:[#allocation11 + $0x7ec] ss:$16 sps:$4 sm:$0xff]  }
 0xf33   :  { %10097 = vmatpush2.bf16.msra.mxu0 %v13517_v42  ;;  %10053 = vmatprep.subr.bf16.mxu1 %v13522_v0  ;;  %v13576_v42 = vld [vmem:[#allocation11 + $0x11e4] ss:$16 sps:$4 sm:$0xff]   ;;  %v13579_v0 = vld [vmem:[#allocation11 + $0x7cc] ss:$16 sps:$4 sm:$0xff]  }
 0xf34   :  { %10152 = vmatprep.subr.bf16.mxu0 %v13525_v22  ;;  %v13574_v22 = vld [vmem:[#allocation11 + $0x11e0] ss:$16 sps:$4 sm:$0xff]  }
 0xf36   :  { %10054 = vmatpush2.bf16.msra.mxu1 %v13520_v52  ;;  %12220 = vmatmul.mubr.msk.bf16.vlgmr.msra.gmra.mxu0 %vm16706_vm13, %v16638_v61  ;;  %v13577_v52 = vld [vmem:[#allocation11 + $0x7c8] ss:$16 sps:$4 sm:$0xff]  }
 0xf37   :  { %10153 = vmatpush1.bf16.msra.mxu0 %v13523_v10  ;;  %12235 = vmatprep.mubr.msk.bf16.mxu0 %vm16649_vm5, %v16653_v50  ;;  %v13538_v50 = vld [vmem:[#allocation11 + $0x10a0] ss:$16 sps:$4 sm:$0xff]  }
 0xf38   :  { %10109 = vmatprep.subr.bf16.mxu1 %v13528_v53  ;;  %10154 = vmatprep.subr.bf16.mxu0 %v13531_v13  ;;  %v13580_v10 = vld [vmem:[#allocation11 + $0x11c0] ss:$16 sps:$4 sm:$0xff]   ;;  %v13583_v53 = vld [vmem:[#allocation11 + $0x7a8] ss:$16 sps:$4 sm:$0xff]   ;;  %v13588_v13 = vld [vmem:[#allocation11 + $0x11a4] ss:$16 sps:$4 sm:$0xff]  }
 0xf39   :  { %10056 = vmatmul.mubr.bf16.vlgmr.msra.gmra.mxu1 %v16672_v49 }
 0xf3a   :  { %10110 = vmatpush1.bf16.msra.mxu1 %v13526_v26  ;;  %12225 = vmatprep.mubr.msk.bf16.mxu1 %vm16706_vm13, %v16737_v32  ;;  %v13591_v26 = vld [vmem:[#allocation11 + $0x78c] ss:$16 sps:$4 sm:$0xff]  }
 0xf3b   :  { %10155 = vmatpush1.bf16.msra.mxu0 %v13529_v46  ;;  %10111 = vmatprep.subr.bf16.mxu1 %v13534_v31  ;;  %v13586_v46 = vld [vmem:[#allocation11 + $0x11a0] ss:$16 sps:$4 sm:$0xff]   ;;  %v13589_v31 = vld [vmem:[#allocation11 + $0x788] ss:$16 sps:$4 sm:$0xff]  }
 0xf3c   :  { %10156 = vmatprep.subr.bf16.mxu0 %v13537_v36  ;;  %v13594_v36 = vld [vmem:[#allocation11 + $0x1184] ss:$16 sps:$4 sm:$0xff]  }
 0xf3e   :  { %10112 = vmatpush1.bf16.msra.mxu1 %v13532_v41  ;;  %v13597_v41 = vld [vmem:[#allocation11 + $0x76c] ss:$16 sps:$4 sm:$0xff]  }
 0xf3f   :  { %10157 = vmatpush1.bf16.msra.mxu0 %v13535_v40  ;;  %10113 = vmatprep.subr.bf16.mxu1 %v13540_v30  ;;  %v13592_v40 = vld [vmem:[#allocation11 + $0x1180] ss:$16 sps:$4 sm:$0xff]   ;;  %v13595_v30 = vld [vmem:[#allocation11 + $0x768] ss:$16 sps:$4 sm:$0xff]  }
 0xf40   :  { %10158 = vmatprep.subr.bf16.mxu0 %v13543_v43  ;;  %v13600_v43 = vld [vmem:[#allocation11 + $0x1164] ss:$16 sps:$4 sm:$0xff]  }
 0xf42   :  { %10114 = vmatpush1.bf16.msra.mxu1 %v13538_v50  ;;  %v13603_v50 = vld [vmem:[#allocation11 + $0x74c] ss:$16 sps:$4 sm:$0xff]  }
 0xf43   :  { %10159 = vmatpush1.bf16.msra.mxu0 %v13541_v21  ;;  %10115 = vmatprep.subr.bf16.mxu1 %v13546_v7  ;;  %v13598_v21 = vld [vmem:[#allocation11 + $0x1160] ss:$16 sps:$4 sm:$0xff]   ;;  %v13601_v7 = vld [vmem:[#allocation11 + $0x748] ss:$16 sps:$4 sm:$0xff]  }
 0xf44   :  { %10160 = vmatprep.subr.bf16.mxu0 %v13549_v51  ;;  %v13606_v51 = vld [vmem:[#allocation11 + $0x1144] ss:$16 sps:$4 sm:$0xff]  }
 0xf46   :  { %10116 = vmatpush1.bf16.msra.mxu1 %v13544_v25  ;;  %v13609_v25 = vld [vmem:[#allocation11 + $0x72c] ss:$16 sps:$4 sm:$0xff]  }
 0xf47   :  { %10161 = vmatpush1.bf16.msra.mxu0 %v13547_v19  ;;  %10117 = vmatprep.subr.bf16.mxu1 %v13552_v63  ;;  %v13604_v19 = vld [vmem:[#allocation11 + $0x1140] ss:$16 sps:$4 sm:$0xff]   ;;  %v13607_v63 = vld [vmem:[#allocation11 + $0x728] ss:$16 sps:$4 sm:$0xff]  }
 0xf48   :  { %10162 = vmatprep.subr.bf16.mxu0 %v13555_v17  ;;  %v13612_v17 = vld [vmem:[#allocation11 + $0x1124] ss:$16 sps:$4 sm:$0xff]  }
 0xf4a   :  { %10118 = vmatpush1.bf16.msra.mxu1 %v13550_v6  ;;  %v13615_v6 = vld [vmem:[#allocation11 + $0x70c] ss:$16 sps:$4 sm:$0xff]  }
 0xf4b   :  { %10163 = vmatpush1.bf16.msra.mxu0 %v13553_v45  ;;  %10119 = vmatprep.subr.bf16.mxu1 %v13558_v60  ;;  %v13610_v45 = vld [vmem:[#allocation11 + $0x1120] ss:$16 sps:$4 sm:$0xff]   ;;  %v13613_v60 = vld [vmem:[#allocation11 + $0x708] ss:$16 sps:$4 sm:$0xff]  }
 0xf4c   :  { %10164 = vmatprep.subr.bf16.mxu0 %v13561_v48  ;;  %v13618_v48 = vld [vmem:[#allocation11 + $0x1104] ss:$16 sps:$4 sm:$0xff]  }
 0xf4e   :  { %10120 = vmatpush1.bf16.msra.mxu1 %v13556_v16  ;;  %v13621_v16 = vld [vmem:[#allocation11 + $0xaec] ss:$16 sps:$4 sm:$0xff]  }
 0xf4f   :  { %10165 = vmatpush1.bf16.msra.mxu0 %v13559_v8  ;;  %10121 = vmatprep.subr.bf16.mxu1 %v13564_v35  ;;  %v13616_v8 = vld [vmem:[#allocation11 + $0x1100] ss:$16 sps:$4 sm:$0xff]   ;;  %v13619_v35 = vld [vmem:[#allocation11 + $0xae8] ss:$16 sps:$4 sm:$0xff]  }
 0xf50   :  { %10166 = vmatprep.subr.bf16.mxu0 %v13567_v3  ;;  %v13624_v3 = vld [vmem:[#allocation11 + $0x8ec] ss:$16 sps:$4 sm:$0xff]  }
 0xf52   :  { %10122 = vmatpush1.bf16.msra.mxu1 %v13562_v54  ;;  %v13627_v54 = vld [vmem:[#allocation11 + $0xacc] ss:$16 sps:$4 sm:$0xff]  }
 0xf53   :  { %10167 = vmatpush1.bf16.msra.mxu0 %v13565_v62  ;;  %10123 = vmatprep.subr.bf16.mxu1 %v13570_v23  ;;  %v13622_v62 = vld [vmem:[#allocation11 + $0x8e8] ss:$16 sps:$4 sm:$0xff]  }
 0xf54   :  { %10168 = vmatprep.subr.bf16.mxu0 %v13573_v29  ;;  %v13625_v23 = vld [vmem:[#allocation11 + $0xac8] ss:$16 sps:$4 sm:$0xff]   ;;  %v13630_v29 = vld [vmem:[#allocation11 + $0x8cc] ss:$16 sps:$4 sm:$0xff]  }
 0xf56   :  { %10124 = vmatpush1.bf16.msra.mxu1 %v13568_v44  ;;  %v13633_v44 = vld [vmem:[#allocation11 + $0xaac] ss:$16 sps:$4 sm:$0xff]  }
 0xf57   :  { %10169 = vmatpush2.bf16.msra.mxu0 %v13571_v38  ;;  %10125 = vmatprep.subr.bf16.mxu1 %v13576_v42  ;;  %v13628_v38 = vld [vmem:[#allocation11 + $0x8c8] ss:$16 sps:$4 sm:$0xff]   ;;  %v13636_v42 = vld [vmem:[#allocation11 + $0x8ac] ss:$16 sps:$4 sm:$0xff]  }
 0xf58   :  { %10170 = vmatprep.subr.bf16.mxu0 %v13579_v0  ;;  %v13634_v0 = vld [vmem:[#allocation11 + $0x8a8] ss:$16 sps:$4 sm:$0xff]  }
 0xf5a   :  { %10126 = vmatpush2.bf16.msra.mxu1 %v13574_v22  ;;  %v13637_v22 = vld [vmem:[#allocation11 + $0xa88] ss:$16 sps:$4 sm:$0xff]  }
 0xf5b   :  { %10171 = vmatpush2.bf16.msra.mxu0 %v13577_v52  ;;  %10127 = vmatprep.subr.bf16.mxu1 %v13582_v56  ;;  %v13642_v52 = vld [vmem:[#allocation11 + $0x88c] ss:$16 sps:$4 sm:$0xff]  }
 0xf5c   :  { %10172 = vmatprep.subr.bf16.mxu0 %v13585_v47  ;;  %v13645_v56 = vld [vmem:[#allocation11 + $0xa6c] ss:$16 sps:$4 sm:$0xff]   ;;  %v13640_v47 = vld [vmem:[#allocation11 + $0x888] ss:$16 sps:$4 sm:$0xff]  }
 0xf5e   :  { %10128 = vmatpush2.bf16.msra.mxu1 %v13580_v10  ;;  %v13648_v10 = vld [vmem:[#allocation11 + $0x86c] ss:$16 sps:$4 sm:$0xff]  }
 0xf5f   :  { %10173 = vmatpush2.bf16.msra.mxu0 %v13583_v53  ;;  %10129 = vmatprep.subr.bf16.mxu1 %v13588_v13  ;;  %v13651_v53 = vld [vmem:[#allocation11 + $0xa4c] ss:$16 sps:$4 sm:$0xff]   ;;  %v13646_v13 = vld [vmem:[#allocation11 + $0x868] ss:$16 sps:$4 sm:$0xff]  }
 0xf60   :  { %10174 = vmatprep.subr.bf16.mxu0 %v13591_v26  ;;  %v13649_v26 = vld [vmem:[#allocation11 + $0xa48] ss:$16 sps:$4 sm:$0xff]  }
 0xf62   :  { %10130 = vmatpush2.bf16.msra.mxu1 %v13586_v46  ;;  %v13654_v46 = vld [vmem:[#allocation11 + $0x84c] ss:$16 sps:$4 sm:$0xff]  }
 0xf63   :  { %10175 = vmatpush2.bf16.msra.mxu0 %v13589_v31  ;;  %10131 = vmatprep.subr.bf16.mxu1 %v13594_v36  ;;  %v13657_v31 = vld [vmem:[#allocation11 + $0xa2c] ss:$16 sps:$4 sm:$0xff]   ;;  %v13652_v36 = vld [vmem:[#allocation11 + $0x848] ss:$16 sps:$4 sm:$0xff]  }
 0xf64   :  { %10176 = vmatprep.subr.bf16.mxu0 %v13597_v41  ;;  %v13655_v41 = vld [vmem:[#allocation11 + $0xa28] ss:$16 sps:$4 sm:$0xff]  }
 0xf66   :  { %10132 = vmatpush2.bf16.msra.mxu1 %v13592_v40  ;;  %v13660_v40 = vld [vmem:[#allocation11 + $0x82c] ss:$16 sps:$4 sm:$0xff]  }
 0xf67   :  { %10177 = vmatpush2.bf16.msra.mxu0 %v13595_v30  ;;  %10133 = vmatprep.subr.bf16.mxu1 %v13600_v43  ;;  %v13663_v30 = vld [vmem:[#allocation11 + $0xa0c] ss:$16 sps:$4 sm:$0xff]   ;;  %v13658_v43 = vld [vmem:[#allocation11 + $0x828] ss:$16 sps:$4 sm:$0xff]  }
 0xf68   :  { %10178 = vmatprep.subr.bf16.mxu0 %v13603_v50  ;;  %v13661_v50 = vld [vmem:[#allocation11 + $0xa08] ss:$16 sps:$4 sm:$0xff]  }
 0xf6a   :  { %10134 = vmatpush2.bf16.msra.mxu1 %v13598_v21  ;;  %v13666_v21 = vld [vmem:[#allocation11 + $0x80c] ss:$16 sps:$4 sm:$0xff]  }
 0xf6b   :  { %10179 = vmatpush2.bf16.msra.mxu0 %v13601_v7  ;;  %10135 = vmatprep.subr.bf16.mxu1 %v13606_v51  ;;  %v13669_v7 = vld [vmem:[#allocation11 + $0xbec] ss:$16 sps:$4 sm:$0xff]   ;;  %v13664_v51 = vld [vmem:[#allocation11 + $0x808] ss:$16 sps:$4 sm:$0xff]  }
 0xf6c   :  { %10180 = vmatprep.subr.bf16.mxu0 %v13609_v25  ;;  %v13667_v25 = vld [vmem:[#allocation11 + $0xbe8] ss:$16 sps:$4 sm:$0xff]  }
 0xf6e   :  { %10136 = vmatpush2.bf16.msra.mxu1 %v13604_v19  ;;  %v13672_v19 = vld [vmem:[#allocation11 + $0x9ec] ss:$16 sps:$4 sm:$0xff]  }
 0xf6f   :  { %10181 = vmatpush2.bf16.msra.mxu0 %v13607_v63  ;;  %10137 = vmatprep.subr.bf16.mxu1 %v13612_v17  ;;  %v13675_v63 = vld [vmem:[#allocation11 + $0xbcc] ss:$16 sps:$4 sm:$0xff]   ;;  %v13670_v17 = vld [vmem:[#allocation11 + $0x9e8] ss:$16 sps:$4 sm:$0xff]  }
 0xf70   :  { %10182 = vmatprep.subr.bf16.mxu0 %v13615_v6  ;;  %v13673_v6 = vld [vmem:[#allocation11 + $0xbc8] ss:$16 sps:$4 sm:$0xff]  }
 0xf72   :  { %10138 = vmatpush2.bf16.msra.mxu1 %v13610_v45  ;;  %v13678_v45 = vld [vmem:[#allocation11 + $0x9cc] ss:$16 sps:$4 sm:$0xff]  }
 0xf73   :  { %10183 = vmatpush2.bf16.msra.mxu0 %v13613_v60  ;;  %10139 = vmatprep.subr.bf16.mxu1 %v13618_v48  ;;  %v13681_v60 = vld [vmem:[#allocation11 + $0xbac] ss:$16 sps:$4 sm:$0xff]   ;;  %v13676_v48 = vld [vmem:[#allocation11 + $0x9c8] ss:$16 sps:$4 sm:$0xff]  }
 0xf74   :  { %10238 = vmatprep.subr.bf16.mxu0 %v13621_v16  ;;  %v13679_v16 = vld [vmem:[#allocation11 + $0xba8] ss:$16 sps:$4 sm:$0xff]  }
 0xf76   :  { %10140 = vmatpush2.bf16.msra.mxu1 %v13616_v8  ;;  %12240 = vmatmul.mubr.msk.bf16.vlgmr.msra.gmra.mxu0 %vm16649_vm5, %v16655_v28  ;;  %v13631_v28 = vld [vmem:[#allocation11 + $0xaa8] ss:$16 sps:$4 sm:$0xff]   ;;  %v13684_v8 = vld [vmem:[#allocation11 + $0x9ac] ss:$16 sps:$4 sm:$0xff]  }
 0xf77   :  { %10239 = vmatpush1.bf16.msra.mxu0 %v13619_v35  ;;  %10270 = vmatprep.mubr.bf16.mxu0 %v16659_v2  ;;  %v13639_v2 = vld [vmem:[#allocation11 + $0xa8c] ss:$16 sps:$4 sm:$0xff]  }
 0xf78   :  { %10195 = vmatprep.subr.bf16.mxu1 %v13624_v3  ;;  %10240 = vmatprep.subr.bf16.mxu0 %v13627_v54  ;;  %v13687_v35 = vld [vmem:[#allocation11 + $0xb8c] ss:$16 sps:$4 sm:$0xff]   ;;  %v13682_v3 = vld [vmem:[#allocation11 + $0x9a8] ss:$16 sps:$4 sm:$0xff]  }
 0xf79   :  { %12230 = vmatmul.mubr.msk.bf16.vlgmr.msra.gmra.mxu1 %vm16706_vm13, %v16697_v59  ;;  %v13685_v54 = vld [vmem:[#allocation11 + $0xb88] ss:$16 sps:$4 sm:$0xff]  }
 0xf7a   :  { %10196 = vmatpush1.bf16.msra.mxu1 %v13622_v62  ;;  %12245 = vmatprep.mubr.msk.bf16.mxu1 %vm16649_vm5, %v16714_v14  ;;  %v13643_v14 = vld [vmem:[#allocation11 + $0xa68] ss:$16 sps:$4 sm:$0xff]   ;;  %v13690_v62 = vld [vmem:[#allocation11 + $0x98c] ss:$16 sps:$4 sm:$0xff]  }
 0xf7b   :  { %10241 = vmatpush1.bf16.msra.mxu0 %v13625_v23  ;;  %10197 = vmatprep.subr.bf16.mxu1 %v13630_v29  ;;  %v13693_v23 = vld [vmem:[#allocation11 + $0xb6c] ss:$16 sps:$4 sm:$0xff]   ;;  %v13688_v29 = vld [vmem:[#allocation11 + $0x988] ss:$16 sps:$4 sm:$0xff]  }
 0xf7c   :  { %10242 = vmatprep.subr.bf16.mxu0 %v13633_v44  ;;  %v13691_v44 = vld [vmem:[#allocation11 + $0xb68] ss:$16 sps:$4 sm:$0xff]  }
 0xf7e   :  { %10198 = vmatpush1.bf16.msra.mxu1 %v13628_v38  ;;  %v13696_v38 = vld [vmem:[#allocation11 + $0x96c] ss:$16 sps:$4 sm:$0xff]  }
 0xf7f   :  { %10243 = vmatpush1.bf16.msra.mxu0 %v13631_v28  ;;  %10199 = vmatprep.subr.bf16.mxu1 %v13636_v42  ;;  %v13699_v28 = vld [vmem:[#allocation11 + $0xb4c] ss:$16 sps:$4 sm:$0xff]   ;;  %v13694_v42 = vld [vmem:[#allocation11 + $0x968] ss:$16 sps:$4 sm:$0xff]  }
 0xf80   :  { %10244 = vmatprep.subr.bf16.mxu0 %v13639_v2  ;;  %v13697_v2 = vld [vmem:[#allocation11 + $0xb48] ss:$16 sps:$4 sm:$0xff]  }
 0xf82   :  { %10200 = vmatpush1.bf16.msra.mxu1 %v13634_v0  ;;  %v13702_v0 = vld [vmem:[#allocation11 + $0x94c] ss:$16 sps:$4 sm:$0xff]  }
 0xf83   :  { %10245 = vmatpush1.bf16.msra.mxu0 %v13637_v22  ;;  %10201 = vmatprep.subr.bf16.mxu1 %v13642_v52  ;;  %v9928_v22 = vpop.f32.mrf.mxu0  ;;  %v13705_v52 = vld [vmem:[#allocation11 + $0xb2c] ss:$16 sps:$4 sm:$0xff]  }
 0xf84   :  { %10246 = vmatprep.subr.bf16.mxu0 %v13645_v56  ;;  %v13700_v56 = vld [vmem:[#allocation11 + $0x948] ss:$16 sps:$4 sm:$0xff]  }
 0xf86   :  { %10202 = vmatpush1.bf16.msra.mxu1 %v13640_v47  ;;  %v13703_v47 = vld [vmem:[#allocation11 + $0xb28] ss:$16 sps:$4 sm:$0xff]  }
 0xf87   :  { %10247 = vmatpush1.bf16.msra.mxu0 %v13643_v14  ;;  %10203 = vmatprep.subr.bf16.mxu1 %v13648_v10  ;;  %v13708_v14 = vld [vmem:[#allocation11 + $0x92c] ss:$16 sps:$4 sm:$0xff]   ;;  %v9930_v10 = vpop.f32.mrf.mxu0 }
 0xf88   :  { %10248 = vmatprep.subr.bf16.mxu0 %v13651_v53  ;;  %v13711_v53 = vld [vmem:[#allocation11 + $0xb0c] ss:$16 sps:$4 sm:$0xff]  }
 0xf8a   :  { %10204 = vmatpush1.bf16.msra.mxu1 %v13646_v13  ;;  %v13706_v13 = vld [vmem:[#allocation11 + $0x928] ss:$16 sps:$4 sm:$0xff]  }
 0xf8b   :  { %10249 = vmatpush1.bf16.msra.mxu0 %v13649_v26  ;;  %10205 = vmatprep.subr.bf16.mxu1 %v13654_v46  ;;  %v13709_v26 = vld [vmem:[#allocation11 + $0xb08] ss:$16 sps:$4 sm:$0xff]   ;;  %v13714_v46 = vld [vmem:[#allocation11 + $0x90c] ss:$16 sps:$4 sm:$0xff]  }
 0xf8c   :  { %10250 = vmatprep.subr.bf16.mxu0 %v13657_v31  ;;  %v16759_v31 = vld [vmem:[#allocation12] sm:$0x77] }
 0xf8e   :  { %10206 = vmatpush1.bf16.msra.mxu1 %v13652_v36  ;;  %v7941_v36 = vrot.slane %v16759_v31, %v17051_v33 }
 0xf8f   :  { %10251 = vmatpush1.bf16.msra.mxu0 %v13655_v41  ;;  %10207 = vmatprep.subr.bf16.mxu1 %v13660_v40  ;;  %v9932_v41 = vpop.f32.mrf.mxu0  ;;  %v13717_v40 = vld [vmem:[#allocation11 + $0xeec] ss:$16 sps:$4 sm:$0xff]  }
 0xf90   :  { %10252 = vmatprep.subr.bf16.mxu0 %v13663_v30  ;;  %v7945_v30 = vrot.slane %v16759_v31, %v17053_v5 }
 0xf92   :  { %10208 = vmatpush1.bf16.msra.mxu1 %v13658_v43  ;;  %v13712_v43 = vld [vmem:[#allocation11 + $0x908] ss:$16 sps:$4 sm:$0xff]  }
 0xf93   :  { %10253 = vmatpush1.bf16.msra.mxu0 %v13661_v50  ;;  %10209 = vmatprep.subr.bf16.mxu1 %v13666_v21  ;;  %v13715_v50 = vld [vmem:[#allocation11 + $0xee8] ss:$16 sps:$4 sm:$0xff]   ;;  %v7961_v21 = vrot.slane %v7941_v36, %v17051_v33  ;;  %v13747_v36 = vld [vmem:[#allocation11 + $0xe4c] ss:$16 sps:$4 sm:$0xff]  }
 0xf94   :  { %10254 = vmatprep.subr.bf16.mxu0 %v13669_v7  ;;  %v9934_v7 = vpop.f32.mrf.mxu0 }
 0xf96   :  { %10210 = vmatpush1.bf16.msra.mxu1 %v13664_v51  ;;  %v13720_v51 = vld [vmem:[#allocation11 + $0xcec] ss:$16 sps:$4 sm:$0xff]  }
 0xf97   :  { %10255 = vmatpush2.bf16.msra.mxu0 %v13667_v25  ;;  %10211 = vmatprep.subr.bf16.mxu1 %v13672_v19  ;;  %v13723_v25 = vld [vmem:[#allocation11 + $0xecc] ss:$16 sps:$4 sm:$0xff]   ;;  %v7965_v19 = vrot.slane %v7945_v30, %v17051_v33 }
 0xf98   :  { %10256 = vmatprep.subr.bf16.mxu0 %v13675_v63  ;;  %v13750_v30 = vld [vmem:[#allocation11 + $0xc4c] ss:$16 sps:$4 sm:$0xff]  }
 0xf9a   :  { %10212 = vmatpush2.bf16.msra.mxu1 %v13670_v17  ;;  %v13718_v17 = vld [vmem:[#allocation11 + $0xce8] ss:$16 sps:$4 sm:$0xff]  }
 0xf9b   :  { %10257 = vmatpush2.bf16.msra.mxu0 %v13673_v6  ;;  %10213 = vmatprep.subr.bf16.mxu1 %v13678_v45  ;;  %v13721_v6 = vld [vmem:[#allocation11 + $0xec8] ss:$16 sps:$4 sm:$0xff]   ;;  %v13726_v45 = vld [vmem:[#allocation11 + $0xccc] ss:$16 sps:$4 sm:$0xff]  }
 0xf9c   :  { %10258 = vmatprep.subr.bf16.mxu0 %v13681_v60  ;;  %v9929_v60 = vadd.f32 %v9928_v22, %v7961_v21  ;;  %v13733_v22 = vld [vmem:[#allocation11 + $0xe88] ss:$16 sps:$4 sm:$0xff]  }
 0xf9e   :  { %10214 = vmatpush2.bf16.msra.mxu1 %v13676_v48  ;;  %v13729_v48 = vld [vmem:[#allocation11 + $0xeac] ss:$16 sps:$4 sm:$0xff]  }
 0xf9f   :  { %10259 = vmatpush2.bf16.msra.mxu0 %v13679_v16  ;;  %10215 = vmatprep.subr.bf16.mxu1 %v13684_v8 }
 0xfa0   :  { %10260 = vmatprep.subr.bf16.mxu0 %v13687_v35  ;;  %v9931_v35 = vadd.f32 %v9930_v10, %v7965_v19 }
 0xfa2   :  { %10216 = vmatpush2.bf16.msra.mxu1 %v13682_v3  ;;  %v13724_v3 = vld [vmem:[#allocation11 + $0xcc8] ss:$16 sps:$4 sm:$0xff]  }
 0xfa3   :  { %10261 = vmatpush2.bf16.msra.mxu0 %v13685_v54  ;;  %10217 = vmatprep.subr.bf16.mxu1 %v13690_v62  ;;  %v13732_v62 = vld [vmem:[#allocation11 + $0xcac] ss:$16 sps:$4 sm:$0xff]  }
 0xfa4   :  { %10262 = vmatprep.subr.bf16.mxu0 %v13693_v23  ;;  %v9933_v23 = vadd.f32 %v9932_v41, %v7961_v21  ;;  %v13742_v41 = vld [vmem:[#allocation11 + $0xc68] ss:$16 sps:$4 sm:$0xff]  }
 0xfa5   :  { %v13751_v21 = vld [vmem:[#allocation11 + $0xe28] ss:$16 sps:$4 sm:$0xff]  }
 0xfa6   :  { %10218 = vmatpush2.bf16.msra.mxu1 %v13688_v29 }
 0xfa7   :  { %10263 = vmatpush2.bf16.msra.mxu0 %v13691_v44  ;;  %10219 = vmatprep.subr.bf16.mxu1 %v13696_v38  ;;  %v13735_v44 = vld [vmem:[#allocation11 + $0xe8c] ss:$16 sps:$4 sm:$0xff]  }
 0xfa8   :  { %10264 = vmatprep.subr.bf16.mxu0 %v13699_v28  ;;  %v9935_v28 = vadd.f32 %v9934_v7, %v7965_v19  ;;  %v13756_v7 = vld [vmem:[#allocation11 + $0xc2c] ss:$16 sps:$4 sm:$0xff]   ;;  %v13757_v19 = vld [vmem:[#allocation11 + $0xe08] ss:$16 sps:$4 sm:$0xff]  }
 0xfaa   :  { %10220 = vmatpush2.bf16.msra.mxu1 %v13694_v42 }
 0xfab   :  { %10265 = vmatpush2.bf16.msra.mxu0 %v13697_v2  ;;  %10221 = vmatprep.subr.bf16.mxu1 %v13702_v0  ;;  %v13730_v2 = vld [vmem:[#allocation11 + $0xca8] ss:$16 sps:$4 sm:$0xff]  }
 0xfac   :  { %10266 = vmatprep.subr.bf16.mxu0 %v13705_v52  ;;  %v13738_v52 = vld [vmem:[#allocation11 + $0xc8c] ss:$16 sps:$4 sm:$0xff]  }
 0xfae   :  { %10222 = vmatpush2.bf16.msra.mxu1 %v13700_v56 }
 0xfaf   :  { %10267 = vmatpush2.bf16.msra.mxu0 %v13703_v47  ;;  %10223 = vmatprep.subr.bf16.mxu1 %v13708_v14  ;;  %v13741_v47 = vld [vmem:[#allocation11 + $0xe6c] ss:$16 sps:$4 sm:$0xff]  }
 0xfb0   :  { %10268 = vmatprep.subr.bf16.mxu0 %v13711_v53  ;;  %v13736_v53 = vld [vmem:[#allocation11 + $0xc88] ss:$16 sps:$4 sm:$0xff]  }
 0xfb2   :  { %10224 = vmatpush2.bf16.msra.mxu1 %v13706_v13 }
 0xfb3   :  { %10269 = vmatpush2.bf16.msra.mxu0 %v13709_v26  ;;  %10225 = vmatprep.subr.bf16.mxu1 %v13714_v46  ;;  %v13739_v26 = vld [vmem:[#allocation11 + $0xe68] ss:$16 sps:$4 sm:$0xff]   ;;  %v13744_v46 = vld [vmem:[#allocation11 + $0xc6c] ss:$16 sps:$4 sm:$0xff]  }
 0xfb4   :  { %10324 = vmatprep.subr.bf16.mxu0 %v13717_v40  ;;  %v13745_v40 = vld [vmem:[#allocation11 + $0xe48] ss:$16 sps:$4 sm:$0xff]  }
 0xfb6   :  { %10226 = vmatpush2.bf16.msra.mxu1 %v13712_v43  ;;  %v10014_v63 = vpop.f32.mrf.mxu0  ;;  %10271 = vmatmul.mubr.bf16.vlgmr.msra.gmra.mxu0 %v16625_v12  ;;  %v13753_v43 = vld [vmem:[#allocation11 + $0xe2c] ss:$16 sps:$4 sm:$0xff]  }
 0xfb7   :  { %10325 = vmatpush1.bf16.msra.mxu0 %v13715_v50  ;;  %12255 = vmatprep.mubr.msk.bf16.mxu0 %vm16706_vm13, %v16710_v58  ;;  %v13727_v58 = vld [vmem:[#allocation11 + $0xea8] ss:$16 sps:$4 sm:$0xff]  }
 0xfb8   :  { %10281 = vmatprep.subr.bf16.mxu1 %v13720_v51  ;;  %10326 = vmatprep.subr.bf16.mxu0 %v13723_v25  ;;  %v10016_v16 = vpop.f32.mrf.mxu0  ;;  %v13748_v50 = vld [vmem:[#allocation11 + $0xc48] ss:$16 sps:$4 sm:$0xff]   ;;  %v13759_v51 = vld [vmem:[#allocation11 + $0xe0c] ss:$16 sps:$4 sm:$0xff]  }
 0xfb9   :  { %12250 = vmatmul.mubr.msk.bf16.vlgmr.msra.gmra.mxu1 %vm16649_vm5, %v16712_v9  ;;  %v9971_v8 = vpop.f32.mrf.mxu1  ;;  %v13754_v25 = vld [vmem:[#allocation11 + $0xc28] ss:$16 sps:$4 sm:$0xff]  }
 0xfba   :  { %v9972_v12 = vadd.f32 %v9971_v8, %v9929_v60  ;;  %10282 = vmatpush1.bf16.msra.mxu1 %v13718_v17  ;;  %10313 = vmatprep.mubr.bf16.mxu1 %v16718_v18  ;;  %v10018_v4 = vpop.f32.mrf.mxu0  ;;  %v13765_v17 = vld [vmem:[#allocation11 + $0xfec] ss:$16 sps:$4 sm:$0xff]   ;;  %v13769_v8 = vld [vmem:[#allocation11 + $0xfc8] ss:$16 sps:$4 sm:$0xff]  }
 0xfbb   :  { %v9973_v54 = vpop.f32.mrf.mxu1  ;;  %10327 = vmatpush1.bf16.msra.mxu0 %v13721_v6  ;;  %10283 = vmatprep.subr.bf16.mxu1 %v13726_v45  ;;  %v13760_v6 = vld [vmem:[#allocation11 + $0xc08] ss:$16 sps:$4 sm:$0xff]   ;;  %v13768_v60 = vld [vmem:[#allocation11 + $0xdec] ss:$16 sps:$4 sm:$0xff]  }
 0xfbc   :  { %v9974_v29 = vadd.f32 %v9973_v54, %v9931_v35  ;;  %10328 = vmatprep.subr.bf16.mxu0 %v13729_v48  ;;  %v16775_v38 = vadd.f32 %v10014_v63, %v9972_v12  ;;  %v10020_v10 = vpop.f32.mrf.mxu0  ;;  %v13762_v63 = vld [vmem:[#allocation11 + $0xc0c] ss:$16 sps:$4 sm:$0xff]   ;;  %v13763_v45 = vld [vmem:[#allocation11 + $0xfe8] ss:$16 sps:$4 sm:$0xff]  }
 0xfbd   :  { %v9975_v9 = vpop.f32.mrf.mxu1  ;;  %v13771_v48 = vld [vmem:[#allocation11 + $0xfcc] ss:$16 sps:$4 sm:$0xff]   ;;  %v13775_v54 = vld [vmem:[#allocation11 + $0xfa8] ss:$16 sps:$4 sm:$0xff]  }
 0xfbe   :  { %v9976_v42 = vadd.f32 %v9975_v9, %v9933_v23  ;;  %10284 = vmatpush1.bf16.msra.mxu1 %v13724_v3  ;;  %v16777_v0 = vadd.f32 %v10016_v16, %v9974_v29  ;;  %v13766_v16 = vld [vmem:[#allocation11 + $0xde8] ss:$16 sps:$4 sm:$0xff]   ;;  %v13774_v35 = vld [vmem:[#allocation11 + $0xdcc] ss:$16 sps:$4 sm:$0xff]  }
 0xfbf   :  { %v9977_v18 = vpop.f32.mrf.mxu1  ;;  %10329 = vmatpush1.bf16.msra.mxu0 %v13727_v58  ;;  %10285 = vmatprep.subr.bf16.mxu1 %v13732_v62  ;;  %v13777_v12 = vld [vmem:[#allocation11 + $0xfac] ss:$16 sps:$4 sm:$0xff]   ;;  %v13772_v3 = vld [vmem:[#allocation11 + $0xdc8] ss:$16 sps:$4 sm:$0xff]  }
 0xfc0   :  { %v9978_v56 = vadd.f32 %v9977_v18, %v9935_v28  ;;  %10330 = vmatprep.subr.bf16.mxu0 %v13735_v44  ;;  %v16779_v14 = vadd.f32 %v10018_v4, %v9976_v42  ;;  %v13780_v58 = vld [vmem:[#allocation11 + $0xdac] ss:$16 sps:$4 sm:$0xff]   ;;  %v13778_v23 = vld [vmem:[#allocation11 + $0xda8] ss:$16 sps:$4 sm:$0xff]  }
 0xfc1   :  { %v13783_v62 = vld [vmem:[#allocation11 + $0xf8c] ss:$16 sps:$4 sm:$0xff]   ;;  %v13781_v29 = vld [vmem:[#allocation11 + $0xf88] ss:$16 sps:$4 sm:$0xff]  }
 0xfc2   :  { %10286 = vmatpush1.bf16.msra.mxu1 %v13730_v2  ;;  %v16781_v13 = vadd.f32 %v10020_v10, %v9978_v56  ;;  %v13786_v44 = vld [vmem:[#allocation11 + $0xd8c] ss:$16 sps:$4 sm:$0xff]   ;;  %v13784_v9 = vld [vmem:[#allocation11 + $0xd88] ss:$16 sps:$4 sm:$0xff]  }
 0xfc3   :  { %10331 = vmatpush1.bf16.msra.mxu0 %v13733_v22  ;;  %10287 = vmatprep.subr.bf16.mxu1 %v13738_v52  ;;  %v13789_v4 = vld [vmem:[#allocation11 + $0xf6c] ss:$16 sps:$4 sm:$0xff]   ;;  %v13787_v28 = vld [vmem:[#allocation11 + $0xf68] ss:$16 sps:$4 sm:$0xff]  }
 0xfc4   :  { %10332 = vmatprep.subr.bf16.mxu0 %v13741_v47  ;;  %v13792_v42 = vld [vmem:[#allocation11 + $0xd6c] ss:$16 sps:$4 sm:$0xff]   ;;  %v13790_v18 = vld [vmem:[#allocation11 + $0xd68] ss:$16 sps:$4 sm:$0xff]  }
 0xfc5   :  { %v13795_v2 = vld [vmem:[#allocation11 + $0xf4c] ss:$16 sps:$4 sm:$0xff]   ;;  %v13793_v22 = vld [vmem:[#allocation11 + $0xf48] ss:$16 sps:$4 sm:$0xff]  }
 0xfc6   :  { %10288 = vmatpush1.bf16.msra.mxu1 %v13736_v53  ;;  %v13798_v52 = vld [vmem:[#allocation11 + $0xd4c] ss:$16 sps:$4 sm:$0xff]   ;;  %v13796_v47 = vld [vmem:[#allocation11 + $0xd48] ss:$16 sps:$4 sm:$0xff]  }
 0xfc7   :  { %10333 = vmatpush1.bf16.msra.mxu0 %v13739_v26  ;;  %10289 = vmatprep.subr.bf16.mxu1 %v13744_v46  ;;  %v13801_v56 = vld [vmem:[#allocation11 + $0xf2c] ss:$16 sps:$4 sm:$0xff]   ;;  %v13799_v10 = vld [vmem:[#allocation11 + $0xf28] ss:$16 sps:$4 sm:$0xff]  }
 0xfc8   :  { %10334 = vmatprep.subr.bf16.mxu0 %v13747_v36  ;;  %v13804_v53 = vld [vmem:[#allocation11 + $0xd2c] ss:$16 sps:$4 sm:$0xff]   ;;  %v13802_v46 = vld [vmem:[#allocation11 + $0xd28] ss:$16 sps:$4 sm:$0xff]  }
 0xfc9   :  { %v13807_v26 = vld [vmem:[#allocation11 + $0xf0c] ss:$16 sps:$4 sm:$0xff]   ;;  %v13805_v36 = vld [vmem:[#allocation11 + $0xf08] ss:$16 sps:$4 sm:$0xff]  }
 0xfca   :  { %10290 = vmatpush1.bf16.msra.mxu1 %v13742_v41  ;;  %v13810_v41 = vld [vmem:[#allocation11 + $0xd0c] ss:$16 sps:$4 sm:$0xff]  }
 0xfcb   :  { %10335 = vmatpush1.bf16.msra.mxu0 %v13745_v40  ;;  %10291 = vmatprep.subr.bf16.mxu1 %v13750_v30  ;;  %v13808_v40 = vld [vmem:[#allocation11 + $0xd08] ss:$16 sps:$4 sm:$0xff]   ;;  %v13813_v30 = vld [vmem:[#allocation11 + $0x10ec] ss:$16 sps:$4 sm:$0xff]  }
 0xfcc   :  { %10336 = vmatprep.subr.bf16.mxu0 %v13753_v43 }
 0xfce   :  { %10292 = vmatpush1.bf16.msra.mxu1 %v13748_v50  ;;  %v13811_v50 = vld [vmem:[#allocation11 + $0x10e8] ss:$16 sps:$4 sm:$0xff]  }
 0xfcf   :  { %10337 = vmatpush1.bf16.msra.mxu0 %v13751_v21  ;;  %10293 = vmatprep.subr.bf16.mxu1 %v13756_v7  ;;  %v13816_v21 = vld [vmem:[#allocation11 + $0x10cc] ss:$16 sps:$4 sm:$0xff]  }
 0xfd0   :  { %10338 = vmatprep.subr.bf16.mxu0 %v13759_v51 }
 0xfd2   :  { %10294 = vmatpush1.bf16.msra.mxu1 %v13754_v25 }
 0xfd3   :  { %10339 = vmatpush1.bf16.msra.mxu0 %v13757_v19  ;;  %10295 = vmatprep.subr.bf16.mxu1 %v13762_v63 }
 0xfd4   :  { %10340 = vmatprep.subr.bf16.mxu0 %v13765_v17 }
 0xfd6   :  { %10296 = vmatpush1.bf16.msra.mxu1 %v13760_v6 }
 0xfd7   :  { %10341 = vmatpush2.bf16.msra.mxu0 %v13763_v45  ;;  %10297 = vmatprep.subr.bf16.mxu1 %v13768_v60 }
 0xfd8   :  { %10342 = vmatprep.subr.bf16.mxu0 %v13771_v48  ;;  %v13864_v48 = vld [vmem:[#allocation11 + $0x12ec] ss:$16 sps:$4 sm:$0xff]  }
 0xfda   :  { %10298 = vmatpush2.bf16.msra.mxu1 %v13766_v16  ;;  %v13820_v16 = vld [vmem:[#allocation11 + $0x1088] ss:$16 sps:$4 sm:$0xff]  }
 0xfdb   :  { %10343 = vmatpush2.bf16.msra.mxu0 %v13769_v8  ;;  %10299 = vmatprep.subr.bf16.mxu1 %v13774_v35  ;;  %v13870_v8 = vld [vmem:[#allocation11 + $0x12cc] ss:$16 sps:$4 sm:$0xff]   ;;  %v13868_v35 = vld [vmem:[#allocation11 + $0x12c8] ss:$16 sps:$4 sm:$0xff]  }
 0xfdc   :  { %10344 = vmatprep.subr.bf16.mxu0 %v13777_v12  ;;  %v13876_v12 = vld [vmem:[#allocation11 + $0x12ac] ss:$16 sps:$4 sm:$0xff]  }
 0xfde   :  { %10300 = vmatpush2.bf16.msra.mxu1 %v13772_v3  ;;  %v13823_v3 = vld [vmem:[#allocation11 + $0x1068] ss:$16 sps:$4 sm:$0xff]  }
 0xfdf   :  { %10345 = vmatpush2.bf16.msra.mxu0 %v13775_v54  ;;  %10301 = vmatprep.subr.bf16.mxu1 %v13780_v58  ;;  %v13874_v54 = vld [vmem:[#allocation11 + $0x12a8] ss:$16 sps:$4 sm:$0xff]   ;;  %v13882_v58 = vld [vmem:[#allocation11 + $0x128c] ss:$16 sps:$4 sm:$0xff]  }
 0xfe0   :  { %10346 = vmatprep.subr.bf16.mxu0 %v13783_v62  ;;  %v13826_v62 = vld [vmem:[#allocation11 + $0x1048] ss:$16 sps:$4 sm:$0xff]  }
 0xfe2   :  { %10302 = vmatpush2.bf16.msra.mxu1 %v13778_v23  ;;  %v13831_v23 = vld [vmem:[#allocation11 + $0x102c] ss:$16 sps:$4 sm:$0xff]  }
 0xfe3   :  { %10347 = vmatpush2.bf16.msra.mxu0 %v13781_v29  ;;  %10303 = vmatprep.subr.bf16.mxu1 %v13786_v44  ;;  %v13880_v29 = vld [vmem:[#allocation11 + $0x1288] ss:$16 sps:$4 sm:$0xff]   ;;  %v13888_v44 = vld [vmem:[#allocation11 + $0x126c] ss:$16 sps:$4 sm:$0xff]  }
 0xfe4   :  { %10348 = vmatprep.subr.bf16.mxu0 %v13789_v4  ;;  %v13829_v4 = vld [vmem:[#allocation11 + $0x1028] ss:$16 sps:$4 sm:$0xff]  }
 0xfe6   :  { %10304 = vmatpush2.bf16.msra.mxu1 %v13784_v9  ;;  %v13834_v9 = vld [vmem:[#allocation11 + $0x100c] ss:$16 sps:$4 sm:$0xff]  }
 0xfe7   :  { %10349 = vmatpush2.bf16.msra.mxu0 %v13787_v28  ;;  %10305 = vmatprep.subr.bf16.mxu1 %v13792_v42  ;;  %v13886_v28 = vld [vmem:[#allocation11 + $0x1268] ss:$16 sps:$4 sm:$0xff]   ;;  %v13894_v42 = vld [vmem:[#allocation11 + $0x124c] ss:$16 sps:$4 sm:$0xff]  }
 0xfe8   :  { %10350 = vmatprep.subr.bf16.mxu0 %v13795_v2  ;;  %v13832_v2 = vld [vmem:[#allocation11 + $0x1008] ss:$16 sps:$4 sm:$0xff]  }
 0xfea   :  { %10306 = vmatpush2.bf16.msra.mxu1 %v13790_v18  ;;  %v13837_v18 = vld [vmem:[#allocation11 + $0x11ec] ss:$16 sps:$4 sm:$0xff]  }
 0xfeb   :  { %10351 = vmatpush2.bf16.msra.mxu0 %v13793_v22  ;;  %10307 = vmatprep.subr.bf16.mxu1 %v13798_v52  ;;  %v13892_v22 = vld [vmem:[#allocation11 + $0x1248] ss:$16 sps:$4 sm:$0xff]   ;;  %v13900_v52 = vld [vmem:[#allocation11 + $0x122c] ss:$16 sps:$4 sm:$0xff]  }
 0xfec   :  { %10352 = vmatprep.subr.bf16.mxu0 %v13801_v56  ;;  %v13835_v56 = vld [vmem:[#allocation11 + $0x11e8] ss:$16 sps:$4 sm:$0xff]  }
 0xfee   :  { %10308 = vmatpush2.bf16.msra.mxu1 %v13796_v47  ;;  %v13840_v47 = vld [vmem:[#allocation11 + $0x11cc] ss:$16 sps:$4 sm:$0xff]  }
 0xfef   :  { %10353 = vmatpush2.bf16.msra.mxu0 %v13799_v10  ;;  %10309 = vmatprep.subr.bf16.mxu1 %v13804_v53  ;;  %v13898_v10 = vld [vmem:[#allocation11 + $0x1228] ss:$16 sps:$4 sm:$0xff]   ;;  %v13906_v53 = vld [vmem:[#allocation11 + $0x120c] ss:$16 sps:$4 sm:$0xff]  }
 0xff0   :  { %10354 = vmatprep.subr.bf16.mxu0 %v13807_v26  ;;  %v13838_v26 = vld [vmem:[#allocation11 + $0x11c8] ss:$16 sps:$4 sm:$0xff]  }
 0xff2   :  { %10310 = vmatpush2.bf16.msra.mxu1 %v13802_v46  ;;  %v13843_v46 = vld [vmem:[#allocation11 + $0x11ac] ss:$16 sps:$4 sm:$0xff]  }
 0xff3   :  { %10355 = vmatpush2.bf16.msra.mxu0 %v13805_v36  ;;  %10311 = vmatprep.subr.bf16.mxu1 %v13810_v41  ;;  %v13904_v36 = vld [vmem:[#allocation11 + $0x1208] ss:$16 sps:$4 sm:$0xff]   ;;  %v13912_v41 = vld [vmem:[#allocation11 + $0x13ec] ss:$16 sps:$4 sm:$0xff]  }
 0xff4   :  { %10422 = vmatprep.subr.bf16.mxu0 %v16503_v57 }
 0xff6   :  { %10312 = vmatpush2.bf16.msra.mxu1 %v13808_v40  ;;  %v10100_v43 = vpop.f32.mrf.mxu0  ;;  %12260 = vmatmul.mubr.msk.bf16.vlgmr.msra.gmra.mxu0 %vm16706_vm13, %v16638_v61  ;;  %v13814_v61 = vld [vmem:[#allocation11 + $0x10c8] ss:$16 sps:$4 sm:$0xff]  }
 0xff7   :  { %10423 = vmatpush1.bf16.msra.mxu0 %v16531_v11  ;;  %10367 = vmatprep.subr.bf16.mxu1 %v13813_v30  ;;  %v13819_v11 = vld [vmem:[#allocation11 + $0x10ac] ss:$16 sps:$4 sm:$0xff]   ;;  %v13841_v40 = vld [vmem:[#allocation11 + $0x11a8] ss:$16 sps:$4 sm:$0xff]  }
 0xff8   :  { %10424 = vmatprep.subr.bf16.mxu0 %v16465_v1  ;;  %10442 = vmatprep.mubr.bf16.mxu0 %v16964_v39  ;;  %v10102_v51 = vpop.f32.mrf.mxu0  ;;  %v13846_v30 = vld [vmem:[#allocation11 + $0x118c] ss:$16 sps:$4 sm:$0xff]  }
 0xff9   :  { %v10057_v7 = vpop.f32.mrf.mxu1  ;;  %10314 = vmatmul.mubr.bf16.vlgmr.msra.gmra.mxu1 %v16672_v49 }
 0xffa   :  { %v10058_v57 = vadd.f32 %v10057_v7, %v16775_v38  ;;  %10368 = vmatpush1.bf16.msra.mxu1 %v13811_v50  ;;  %12265 = vmatprep.mubr.msk.bf16.mxu1 %vm16706_vm13, %v16737_v32  ;;  %v10104_v19 = vpop.f32.mrf.mxu0  ;;  %v13817_v38 = vld [vmem:[#allocation11 + $0x10a8] ss:$16 sps:$4 sm:$0xff]   ;;  %v13918_v50 = vld [vmem:[#allocation11 + $0x13cc] ss:$16 sps:$4 sm:$0xff]  }
 0xffb   :  { %v10059_v25 = vpop.f32.mrf.mxu1  ;;  %10425 = vmatpush1.bf16.msra.mxu0 %v16497_v37  ;;  %10369 = vmatprep.subr.bf16.mxu1 %v13816_v21  ;;  %v13822_v37 = vld [vmem:[#allocation11 + $0x108c] ss:$16 sps:$4 sm:$0xff]   ;;  %v13844_v21 = vld [vmem:[#allocation11 + $0x1188] ss:$16 sps:$4 sm:$0xff]  }
 0xffc   :  { %v10060_v1 = vadd.f32 %v10059_v25, %v16777_v0  ;;  %v16797_v39 = vadd.f32 %v10100_v43, %v10058_v57  ;;  %v13862_v0 = vld [vmem:[#allocation11 + $0x12e8] ss:$16 sps:$4 sm:$0xff]   ;;  %v10106_v60 = vpop.f32.mrf.mxu0  ;;  %10854 = vmatprep.subr.bf16.mxu0 %v13864_v48  ;;  %v13849_v7 = vld [vmem:[#allocation11 + $0x116c] ss:$16 sps:$4 sm:$0xff]  }
 0xffd   :  { %v10061_v63 = vpop.f32.mrf.mxu1  ;;  %v13910_v43 = vld [vmem:[#allocation11 + $0x13e8] ss:$16 sps:$4 sm:$0xff]   ;;  %v13924_v57 = vld [vmem:[#allocation11 + $0x13ac] ss:$16 sps:$4 sm:$0xff]  }
 0xffe   :  { %v10062_v49 = vadd.f32 %v10061_v63, %v16779_v14  ;;  %10370 = vmatpush1.bf16.msra.mxu1 %v13814_v61  ;;  %12271 = vmatmul.mubr.msk.bf16.vlgmr.msra.gmra.mxu0 %vm7753_vm14, %v15907_v34  ;;  %v16802_v32 = vadd.f32 %v10102_v51, %v10060_v1  ;;  %v13825_v34 = vld [vmem:[#allocation11 + $0x106c] ss:$16 sps:$4 sm:$0xff]   ;;  %v13916_v51 = vld [vmem:[#allocation11 + $0x13c8] ss:$16 sps:$4 sm:$0xff]  }
 0xfff   :  { %v10063_v17 = vpop.f32.mrf.mxu1  ;;  %10371 = vmatprep.subr.bf16.mxu1 %v13819_v11  ;;  %10855 = vmatpush1.bf16.msra.mxu0 %v13862_v0  ;;  %v13847_v61 = vld [vmem:[#allocation11 + $0x1168] ss:$16 sps:$4 sm:$0xff]   ;;  %v13852_v25 = vld [vmem:[#allocation11 + $0x114c] ss:$16 sps:$4 sm:$0xff]   ;;  %v13859_v0 = vld [vmem:[#allocation11 + $0x12e0] ss:$16 sps:$4 sm:$0xff]  }
0x1000   :  { %v10064_v6 = vadd.f32 %v10063_v17, %v16781_v13  ;;  %v16805_v45 = vadd.f32 %v10104_v19, %v10062_v49  ;;  %10856 = vmatprep.subr.bf16.mxu0 %v13870_v8  ;;  %v13828_v13 = vld [vmem:[#allocation11 + $0x104c] ss:$16 sps:$4 sm:$0xff]   ;;  %v13922_v11 = vld [vmem:[#allocation11 + $0x13a8] ss:$16 sps:$4 sm:$0xff]   ;;  %v13865_v8 = vld [vmem:[#allocation11 + $0x12c0] ss:$16 sps:$4 sm:$0xff]  }
0x1001   :  { %v13930_v1 = vld [vmem:[#allocation11 + $0x138c] ss:$16 sps:$4 sm:$0xff]   ;;  %v13850_v19 = vld [vmem:[#allocation11 + $0x1148] ss:$16 sps:$4 sm:$0xff]  }
0x1002   :  { %10372 = vmatpush1.bf16.msra.mxu1 %v13817_v38  ;;  %v16807_v14 = vadd.f32 %v10106_v60, %v10064_v6  ;;  %v13855_v63 = vld [vmem:[#allocation11 + $0x112c] ss:$16 sps:$4 sm:$0xff]   ;;  %v13928_v49 = vld [vmem:[#allocation11 + $0x1388] ss:$16 sps:$4 sm:$0xff]   ;;  %v13861_v6 = vld [vmem:[#allocation11 + $0x12e4] ss:$16 sps:$4 sm:$0xff]  }
0x1003   :  { %10373 = vmatprep.subr.bf16.mxu1 %v13822_v37  ;;  %10857 = vmatpush1.bf16.msra.mxu0 %v13868_v35  ;;  %v13853_v38 = vld [vmem:[#allocation11 + $0x1128] ss:$16 sps:$4 sm:$0xff]   ;;  %v13858_v17 = vld [vmem:[#allocation11 + $0x110c] ss:$16 sps:$4 sm:$0xff]   ;;  %v13867_v60 = vld [vmem:[#allocation11 + $0x12c4] ss:$16 sps:$4 sm:$0xff]  }
0x1004   :  { %10858 = vmatprep.subr.bf16.mxu0 %v13876_v12  ;;  %v13856_v37 = vld [vmem:[#allocation11 + $0x1108] ss:$16 sps:$4 sm:$0xff]   ;;  %v13936_v48 = vld [vmem:[#allocation11 + $0x136c] ss:$16 sps:$4 sm:$0xff]  }
0x1005   :  { %v13942_v35 = vld [vmem:[#allocation11 + $0x134c] ss:$16 sps:$4 sm:$0xff]   ;;  %v13940_v12 = vld [vmem:[#allocation11 + $0x1348] ss:$16 sps:$4 sm:$0xff]  }
0x1006   :  { %10374 = vmatpush1.bf16.msra.mxu1 %v13820_v16  ;;  %v13934_v16 = vld [vmem:[#allocation11 + $0x1368] ss:$16 sps:$4 sm:$0xff]  }
0x1007   :  { %10375 = vmatprep.subr.bf16.mxu1 %v13825_v34  ;;  %10859 = vmatpush1.bf16.msra.mxu0 %v13874_v54  ;;  %v13873_v34 = vld [vmem:[#allocation11 + $0x12a4] ss:$16 sps:$4 sm:$0xff]   ;;  %v13948_v54 = vld [vmem:[#allocation11 + $0x132c] ss:$16 sps:$4 sm:$0xff]  }
0x1008   :  { %10860 = vmatprep.subr.bf16.mxu0 %v13882_v58  ;;  %v13946_v58 = vld [vmem:[#allocation11 + $0x1328] ss:$16 sps:$4 sm:$0xff]  }
0x100a   :  { %10376 = vmatpush1.bf16.msra.mxu1 %v13823_v3  ;;  %v13871_v3 = vld [vmem:[#allocation11 + $0x12a0] ss:$16 sps:$4 sm:$0xff]  }
0x100b   :  { %10377 = vmatprep.subr.bf16.mxu1 %v13828_v13  ;;  %10861 = vmatpush1.bf16.msra.mxu0 %v13880_v29  ;;  %v13879_v13 = vld [vmem:[#allocation11 + $0x1284] ss:$16 sps:$4 sm:$0xff]   ;;  %v13883_v29 = vld [vmem:[#allocation11 + $0x1260] ss:$16 sps:$4 sm:$0xff]  }
0x100c   :  { %10862 = vmatprep.subr.bf16.mxu0 %v13888_v44  ;;  %v13891_v44 = vld [vmem:[#allocation11 + $0x1244] ss:$16 sps:$4 sm:$0xff]  }
0x100e   :  { %10378 = vmatpush1.bf16.msra.mxu1 %v13826_v62  ;;  %v13954_v62 = vld [vmem:[#allocation11 + $0x130c] ss:$16 sps:$4 sm:$0xff]  }
0x100f   :  { %10379 = vmatprep.subr.bf16.mxu1 %v13831_v23  ;;  %10863 = vmatpush1.bf16.msra.mxu0 %v13886_v28  ;;  %v13952_v23 = vld [vmem:[#allocation11 + $0x1308] ss:$16 sps:$4 sm:$0xff]   ;;  %v13895_v28 = vld [vmem:[#allocation11 + $0x1220] ss:$16 sps:$4 sm:$0xff]  }
0x1010   :  { %10864 = vmatprep.subr.bf16.mxu0 %v13894_v42  ;;  %v13903_v42 = vld [vmem:[#allocation11 + $0x1204] ss:$16 sps:$4 sm:$0xff]  }
0x1012   :  { %10380 = vmatpush1.bf16.msra.mxu1 %v13829_v4  ;;  %v13889_v4 = vld [vmem:[#allocation11 + $0x1240] ss:$16 sps:$4 sm:$0xff]  }
0x1013   :  { %10381 = vmatprep.subr.bf16.mxu1 %v13834_v9  ;;  %10865 = vmatpush1.bf16.msra.mxu0 %v13892_v22  ;;  %v13897_v9 = vld [vmem:[#allocation11 + $0x1224] ss:$16 sps:$4 sm:$0xff]   ;;  %v13907_v22 = vld [vmem:[#allocation11 + $0x13e0] ss:$16 sps:$4 sm:$0xff]  }
0x1014   :  { %10866 = vmatprep.subr.bf16.mxu0 %v13900_v52  ;;  %v13915_v52 = vld [vmem:[#allocation11 + $0x13c4] ss:$16 sps:$4 sm:$0xff]  }
0x1016   :  { %10382 = vmatpush1.bf16.msra.mxu1 %v13832_v2  ;;  %v13901_v2 = vld [vmem:[#allocation11 + $0x1200] ss:$16 sps:$4 sm:$0xff]  }
0x1017   :  { %10383 = vmatprep.subr.bf16.mxu1 %v13837_v18  ;;  %10867 = vmatpush1.bf16.msra.mxu0 %v13898_v10  ;;  %v13909_v18 = vld [vmem:[#allocation11 + $0x13e4] ss:$16 sps:$4 sm:$0xff]   ;;  %v13919_v10 = vld [vmem:[#allocation11 + $0x13a0] ss:$16 sps:$4 sm:$0xff]  }
0x1018   :  { %10868 = vmatprep.subr.bf16.mxu0 %v13906_v53  ;;  %v13927_v53 = vld [vmem:[#allocation11 + $0x1384] ss:$16 sps:$4 sm:$0xff]  }
0x101a   :  { %10384 = vmatpush2.bf16.msra.mxu1 %v13835_v56  ;;  %v13913_v56 = vld [vmem:[#allocation11 + $0x13c0] ss:$16 sps:$4 sm:$0xff]  }
0x101b   :  { %10385 = vmatprep.subr.bf16.mxu1 %v13840_v47  ;;  %10869 = vmatpush1.bf16.msra.mxu0 %v13904_v36  ;;  %v13921_v47 = vld [vmem:[#allocation11 + $0x13a4] ss:$16 sps:$4 sm:$0xff]   ;;  %v13931_v36 = vld [vmem:[#allocation11 + $0x1360] ss:$16 sps:$4 sm:$0xff]  }
0x101c   :  { %10870 = vmatprep.subr.bf16.mxu0 %v13912_v41  ;;  %v13939_v41 = vld [vmem:[#allocation11 + $0x1344] ss:$16 sps:$4 sm:$0xff]  }
0x101e   :  { %10386 = vmatpush2.bf16.msra.mxu1 %v13838_v26  ;;  %v13925_v26 = vld [vmem:[#allocation11 + $0x1380] ss:$16 sps:$4 sm:$0xff]  }
0x101f   :  { %10387 = vmatprep.subr.bf16.mxu1 %v13843_v46  ;;  %10871 = vmatpush2.bf16.msra.mxu0 %v13910_v43  ;;  %v13933_v46 = vld [vmem:[#allocation11 + $0x1364] ss:$16 sps:$4 sm:$0xff]  }
0x1020   :  { %10872 = vmatprep.subr.bf16.mxu0 %v13918_v50  ;;  %v13945_v50 = vld [vmem:[#allocation11 + $0x1324] ss:$16 sps:$4 sm:$0xff]  }
0x1022   :  { %10388 = vmatpush2.bf16.msra.mxu1 %v13841_v40 }
0x1023   :  { %10389 = vmatprep.subr.bf16.mxu1 %v13846_v30  ;;  %10873 = vmatpush2.bf16.msra.mxu0 %v13916_v51  ;;  %v13937_v30 = vld [vmem:[#allocation11 + $0x1340] ss:$16 sps:$4 sm:$0xff]  }
0x1024   :  { %10874 = vmatprep.subr.bf16.mxu0 %v13924_v57  ;;  %v13951_v57 = vld [vmem:[#allocation11 + $0x1304] ss:$16 sps:$4 sm:$0xff]  }
0x1026   :  { %10390 = vmatpush2.bf16.msra.mxu1 %v13844_v21 }
0x1027   :  { %10391 = vmatprep.subr.bf16.mxu1 %v13849_v7  ;;  %10875 = vmatpush2.bf16.msra.mxu0 %v13922_v11  ;;  %v13943_v7 = vld [vmem:[#allocation11 + $0x1320] ss:$16 sps:$4 sm:$0xff]  }
0x1028   :  { %10876 = vmatprep.subr.bf16.mxu0 %v13930_v1 }
0x102a   :  { %10392 = vmatpush2.bf16.msra.mxu1 %v13847_v61  ;;  %v16816_v61 = vld [vmem:[#allocation12 + $0x8] sm:$0x77] }
0x102b   :  { %10393 = vmatprep.subr.bf16.mxu1 %v13852_v25  ;;  %10877 = vmatpush2.bf16.msra.mxu0 %v13928_v49  ;;  %v7949_v25 = vrot.slane %v16816_v61, %v17051_v33  ;;  %v7953_v1 = vrot.slane %v16816_v61, %v17053_v5 }
0x102c   :  { %10878 = vmatprep.subr.bf16.mxu0 %v13936_v48 }
0x102d   :  { %v7969_v49 = vrot.slane %v7949_v25, %v17051_v33 }
0x102e   :  { %10394 = vmatpush2.bf16.msra.mxu1 %v13850_v19  ;;  %v13949_v19 = vld [vmem:[#allocation11 + $0x1300] ss:$16 sps:$4 sm:$0xff]  }
0x102f   :  { %10395 = vmatprep.subr.bf16.mxu1 %v13855_v63  ;;  %10879 = vmatpush2.bf16.msra.mxu0 %v13934_v16 }
0x1030   :  { %10880 = vmatprep.subr.bf16.mxu0 %v13942_v35 }
0x1032   :  { %10396 = vmatpush2.bf16.msra.mxu1 %v13853_v38 }
0x1033   :  { %10397 = vmatprep.subr.bf16.mxu1 %v13858_v17  ;;  %10881 = vmatpush2.bf16.msra.mxu0 %v13940_v12  ;;  %v7973_v17 = vrot.slane %v7953_v1, %v17051_v33  ;;  %v10458_v1 = vrot.slane %v16759_v31, %v17054_v27 }
0x1034   :  { %10882 = vmatprep.subr.bf16.mxu0 %v13948_v54 }
0x1036   :  { %10398 = vmatpush2.bf16.msra.mxu1 %v13856_v37  ;;  %v10186_v40 = vpop.f32.mrf.mxu0 }
0x1037   :  { %10811 = vmatprep.subr.bf16.mxu1 %v13861_v6  ;;  %10883 = vmatpush2.bf16.msra.mxu0 %v13946_v58 }
0x1038   :  { %10884 = vmatprep.subr.bf16.mxu0 %v13954_v62  ;;  %v10188_v21 = vpop.f32.mrf.mxu0 }
0x1039   :  { %12270 = vmatmul.mubr.msk.bf16.vlgmr.msra.gmra.mxu1 %vm16706_vm13, %v16697_v59  ;;  %v13885_v59 = vld [vmem:[#allocation11 + $0x1264] ss:$16 sps:$4 sm:$0xff]   ;;  %v16812_v43 = vpop.f32.mrf.mxu1  ;;  %v10189_v16 = vadd.f32 %v10188_v21, %v7973_v17 }
0x103a   :  { %10812 = vmatpush1.bf16.msra.mxu1 %v13859_v0  ;;  %v10190_v11 = vpop.f32.mrf.mxu0  ;;  %v10187_v0 = vadd.f32 %v10186_v40, %v7969_v49 }
0x103b   :  { %10813 = vmatprep.subr.bf16.mxu1 %v13867_v60  ;;  %10885 = vmatpush2.bf16.msra.mxu0 %v13952_v23  ;;  %v16814_v51 = vpop.f32.mrf.mxu1 }
0x103c   :  { %v10192_v38 = vpop.f32.mrf.mxu0 }
0x103d   :  { %v16822_v63 = vpop.f32.mrf.mxu1  ;;  %v10193_v54 = vadd.f32 %v10192_v38, %v7973_v17  ;;  %v10462_v38 = vrot.slane %v16759_v31, %v17055_v15  ;;  %v10470_v17 = vrot.slane %v16816_v61, %v17055_v15  ;;  %v10146_v15 = vadd.f32 %v16814_v51, %v16802_v32 }
0x103e   :  { %10814 = vmatpush1.bf16.msra.mxu1 %v13865_v8 }
0x103f   :  { %10815 = vmatprep.subr.bf16.mxu1 %v13873_v34  ;;  %v16826_v6 = vpop.f32.mrf.mxu1  ;;  %v10191_v34 = vadd.f32 %v10190_v11, %v7969_v49 }
0x1042   :  { %10816 = vmatpush1.bf16.msra.mxu1 %v13871_v3 }
0x1043   :  { %10817 = vmatprep.subr.bf16.mxu1 %v13879_v13 }
0x1046   :  { %10818 = vmatpush1.bf16.msra.mxu1 %v13877_v20 }
0x1047   :  { %10819 = vmatprep.subr.bf16.mxu1 %v13885_v59 }
0x104a   :  { %10820 = vmatpush1.bf16.msra.mxu1 %v13883_v29 }
0x104b   :  { %10821 = vmatprep.subr.bf16.mxu1 %v13891_v44 }
0x104e   :  { %10822 = vmatpush1.bf16.msra.mxu1 %v13889_v4 }
0x104f   :  { %10823 = vmatprep.subr.bf16.mxu1 %v13897_v9 }
0x1052   :  { %10824 = vmatpush1.bf16.msra.mxu1 %v13895_v28 }
0x1053   :  { %10825 = vmatprep.subr.bf16.mxu1 %v13903_v42 }
0x1056   :  { %10826 = vmatpush1.bf16.msra.mxu1 %v13901_v2 }
0x1057   :  { %10827 = vmatprep.subr.bf16.mxu1 %v13909_v18 }
0x105a   :  { %10828 = vmatpush2.bf16.msra.mxu1 %v13907_v22 }
0x105b   :  { %10829 = vmatprep.subr.bf16.mxu1 %v13915_v52 }
0x105e   :  { %10830 = vmatpush2.bf16.msra.mxu1 %v13913_v56 }
0x105f   :  { %10831 = vmatprep.subr.bf16.mxu1 %v13921_v47 }
0x1062   :  { %10832 = vmatpush2.bf16.msra.mxu1 %v13919_v10 }
0x1063   :  { %10833 = vmatprep.subr.bf16.mxu1 %v13927_v53 }
0x1066   :  { %10834 = vmatpush2.bf16.msra.mxu1 %v13925_v26 }
0x1067   :  { %10835 = vmatprep.subr.bf16.mxu1 %v13933_v46 }
0x106a   :  { %10836 = vmatpush2.bf16.msra.mxu1 %v13931_v36 }
0x106b   :  { %10837 = vmatprep.subr.bf16.mxu1 %v13939_v41 }
0x106e   :  { %10838 = vmatpush2.bf16.msra.mxu1 %v13937_v30 }
0x106f   :  { %10839 = vmatprep.subr.bf16.mxu1 %v13945_v50 }
0x1072   :  { %10840 = vmatpush2.bf16.msra.mxu1 %v13943_v7 }
0x1073   :  { %10841 = vmatprep.subr.bf16.mxu1 %v13951_v57 }
0x1076   :  { %v10272_v37 = vpop.f32.mrf.mxu0  ;;  %10842 = vmatpush2.bf16.msra.mxu1 %v13949_v19  ;;  %v10466_v19 = vrot.slane %v16816_v61, %v17054_v27 }
0x1078   :  { %v10274_v48 = vpop.f32.mrf.mxu0 }
0x1079   :  { %v10229_v60 = vpop.f32.mrf.mxu1 }
0x107a   :  { %v10230_v8 = vadd.f32 %v10229_v60, %v10187_v0  ;;  %v10276_v3 = vpop.f32.mrf.mxu0  ;;  %v10486_v0 = vrot.slane %v10466_v19, %v17054_v27 }
0x107b   :  { %v10231_v5 = vpop.f32.mrf.mxu1 }
0x107c   :  { %v10232_v35 = vadd.f32 %v10231_v5, %v10189_v16  ;;  %v10273_v12 = vadd.f32 %v10272_v37, %v10230_v8  ;;  %v10278_v29 = vpop.f32.mrf.mxu0  ;;  %v10478_v37 = vrot.slane %v10458_v1, %v17054_v27  ;;  %v10490_v16 = vrot.slane %v10470_v17, %v17054_v27 }
0x107d   :  { %v10233_v13 = vpop.f32.mrf.mxu1 }
0x107e   :  { %v10234_v58 = vadd.f32 %v10233_v13, %v10191_v34  ;;  %v10275_v20 = vadd.f32 %v10274_v48, %v10232_v35  ;;  %v10482_v48 = vrot.slane %v10462_v38, %v17054_v27  ;;  %v10144_v34 = vadd.f32 %v16812_v43, %v16797_v39 }
0x107f   :  { %v10235_v59 = vpop.f32.mrf.mxu1 }
0x1080   :  { %v10236_v62 = vadd.f32 %v10235_v59, %v10193_v54  ;;  %v10277_v23 = vadd.f32 %v10276_v3, %v10234_v58 }
0x1082   :  { %v10279_v44 = vadd.f32 %v10278_v29, %v10236_v62  ;;  %v10148_v62 = vadd.f32 %v16822_v63, %v16805_v45 }
0x10b6   :  { %v10358_v4 = vpop.f32.mrf.mxu0 }
0x10b8   :  { %v10360_v9 = vpop.f32.mrf.mxu0 }
0x10b9   :  { %v10315_v28 = vpop.f32.mrf.mxu1 }
0x10ba   :  { %v10316_v42 = vadd.f32 %v10315_v28, %v10273_v12  ;;  %v10362_v2 = vpop.f32.mrf.mxu0 }
0x10bb   :  { %v10317_v18 = vpop.f32.mrf.mxu1 }
0x10bc   :  { %v10318_v22 = vadd.f32 %v10317_v18, %v10275_v20  ;;  %v10364_v52 = vpop.f32.mrf.mxu0  ;;  %v10359_v56 = vadd.f32 %v10358_v4, %v10316_v42 }
0x10bd   :  { %v10319_v47 = vpop.f32.mrf.mxu1 }
0x10be   :  { %v10320_v10 = vadd.f32 %v10319_v47, %v10277_v23  ;;  %v10444_v53 = vpop.f32.mrf.mxu0  ;;  %v10361_v26 = vadd.f32 %v10360_v9, %v10318_v22  ;;  %v10150_v23 = vadd.f32 %v16826_v6, %v16807_v14 }
0x10bf   :  { %v10321_v46 = vpop.f32.mrf.mxu1 }
0x10c0   :  { %v10322_v36 = vadd.f32 %v10321_v46, %v10279_v44  ;;  %v10446_v41 = vpop.f32.mrf.mxu0  ;;  %v10363_v40 = vadd.f32 %v10362_v2, %v10320_v10 }
0x10c2   :  { %v10448_v30 = vpop.f32.mrf.mxu0  ;;  %v10365_v50 = vadd.f32 %v10364_v52, %v10322_v36 }
0x10c3   :  { %v10453_v57 = vpack.c.bf16 %v10448_v30, %v10444_v53 }
0x10c4   :  { %v10450_v21 = vpop.f32.mrf.mxu0 }
0x10c5   :  { %v10454_v7 = vpack.c.bf16 %v10450_v21, %v10446_v41 }
0x10c7   :  { %10843 = vmatprep.mubr.bf16.mxu1 %v10454_v7  ;;  %10886 = vmatprep.mubr.bf16.mxu0 %v10454_v7 }
0x10c8   :  { %10844 = vmatmul.mubr.bf16.vlgmr.msra.gmra.mxu1 %v10453_v57  ;;  %10887 = vmatmul.mubr.bf16.vlgmr.msra.gmra.mxu0 %v10453_v57 }
0x10f9   :  { %v10401_v25 = vpop.f32.mrf.mxu1 }
0x10fa   :  { %v10402_v35 = vadd.f32 %v10401_v25, %v10359_v56 }
0x10fb   :  { %v10403_v11 = vpop.f32.mrf.mxu1 }
0x10fc   :  { %v10404_v61 = vadd.f32 %v10403_v11, %v10361_v26 }
0x10fd   :  { %v10405_v49 = vpop.f32.mrf.mxu1 }
0x10fe   :  { %v10406_v32 = vadd.f32 %v10405_v49, %v10363_v40 }
0x10ff   :  { %v10407_v60 = vpop.f32.mrf.mxu1 }
0x1100   :  { %v10408_v51 = vadd.f32 %v10407_v60, %v10365_v50 }
0x1188   :  { %v10845_v8 = vpop.f32.mrf.mxu1  ;;  %v10888_v5 = vpop.f32.mrf.mxu0 }
0x1189   :  { %v10846_v12 = vadd.f32 %v10845_v8, %v10478_v37  ;;  %v10889_v31 = vadd.f32 %v10888_v5, %v10486_v0 }
0x118a   :  { %v10847_v3 = vpop.f32.mrf.mxu1  ;;  %v10890_v13 = vpop.f32.mrf.mxu0 }
0x118b   :  { %v10897_v54 = vadd.f32 %v10846_v12, %v10144_v34  ;;  %v10899_v58 = vadd.f32 %v10889_v31, %v10402_v35  ;;  %v10848_v20 = vadd.f32 %v10847_v3, %v10482_v48  ;;  %v10891_v59 = vadd.f32 %v10890_v13, %v10490_v16 }
0x118c   :  { %v10849_v39 = vpop.f32.mrf.mxu1  ;;  %v10892_v43 = vpop.f32.mrf.mxu0 }
0x118d   :  { %v10905_v29 = vmax.f32 %v10897_v54, 0.0  ;;  %v10907_v44 = vmax.f32 %v10899_v58, 0.0  ;;  %v10898_v4 = vadd.f32 %v10848_v20, %v10146_v15  ;;  %v10900_v9 = vadd.f32 %v10891_v59, %v10404_v61 }
0x118e   :  { %v10850_v28 = vadd.f32 %v10849_v39, %v10478_v37  ;;  %v10893_v42 = vadd.f32 %v10892_v43, %v10486_v0  ;;  %v10851_v2 = vpop.f32.mrf.mxu1  ;;  %v10894_v18 = vpop.f32.mrf.mxu0 }
0x118f   :  { %v10906_v22 = vmax.f32 %v10898_v4, 0.0  ;;  %v10908_v52 = vmax.f32 %v10900_v9, 0.0  ;;  %v10852_v56 = vadd.f32 %v10851_v2, %v10482_v48  ;;  %v10895_v47 = vadd.f32 %v10894_v18, %v10490_v16 }
0x1190   :  { %v10901_v45 = vadd.f32 %v10850_v28, %v10148_v62  ;;  %v10903_v63 = vadd.f32 %v10893_v42, %v10406_v32 }
0x1191   :  { %v10902_v10 = vadd.f32 %v10852_v56, %v10150_v23  ;;  %v10904_v14 = vadd.f32 %v10895_v47, %v10408_v51 }
0x1192   :  { %v10909_v6 = vmax.f32 %v10901_v45, 0.0  ;;  %v10911_v53 = vmax.f32 %v10903_v63, 0.0 }
0x1193   :  { %v10910_v26 = vmax.f32 %v10902_v10, 0.0  ;;  %v10912_v46 = vmax.f32 %v10904_v14, 0.0 }
0x1194   :  { %14199 = dma.done.wait [#allocation15 + $0xb], 64 }
0x1195   :  { %14200 = vsyncadd [#allocation15 + $0xb], 4294967232  ;;  %v16848_v36 = vld [vmem:[#allocation13] sm:$0xf]  ;;  %v10920_v41 = vrot.slane %v10905_v29, 4  ;;  %v10926_v40 = vrot.slane %v10906_v22, 4 }
0x1196   :  { %v10932_v30 = vrot.slane %v10907_v44, 4  ;;  %v10938_v50 = vrot.slane %v10908_v52, 4 }
0x1197   :  { %14201 = dma.done.wait [#allocation15 + $0xc], 16 }
0x1198   :  { %14202 = vsyncadd [#allocation15 + $0xc], 4294967280  ;;  %v10944_v21 = vrot.slane %v10909_v6, 4  ;;  %v10950_v7 = vrot.slane %v10910_v26, 4  ;;  %v10956_v57 = vrot.slane %v10911_v53, 4  ;;  %v10962_v25 = vrot.slane %v10912_v46, 4 }
0x1199   :  { %v10921_v11 = vmax.f32 %v10905_v29, %v10920_v41  ;;  %v10927_v1 = vmax.f32 %v10906_v22, %v10926_v40  ;;  %v10933_v19 = vmax.f32 %v10907_v44, %v10932_v30  ;;  %v10939_v49 = vmax.f32 %v10908_v52, %v10938_v50  ;;  %v12336_v59 = vld [vmem:[#allocation14] ss:$0 sm:$0xff] }
0x119a   :  { %v10945_v38 = vmax.f32 %v10909_v6, %v10944_v21  ;;  %v10951_v17 = vmax.f32 %v10910_v26, %v10950_v7  ;;  %v10957_v37 = vmax.f32 %v10911_v53, %v10956_v57  ;;  %v10963_v0 = vmax.f32 %v10912_v46, %v10962_v25  ;;  %11079 = vbcast.lane.b32.xlu1 %v12336_v59, 256 }
0x119b   :  { %v10922_v60 = vrot.slane %v10921_v11, 2  ;;  %v10928_v48 = vrot.slane %v10927_v1, 2  ;;  %v10934_v16 = vrot.slane %v10933_v19, 2  ;;  %v10940_v8 = vrot.slane %v10939_v49, 2 }
0x119c   :  { %v10946_v5 = vrot.slane %v10945_v38, 2  ;;  %v10952_v34 = vrot.slane %v10951_v17, 2  ;;  %v10958_v35 = vrot.slane %v10957_v37, 2  ;;  %v10964_v12 = vrot.slane %v10963_v0, 2 }
0x119d   :  { %v10923_v31 = vmax.f32 %v10921_v11, %v10922_v60  ;;  %v10929_v15 = vmax.f32 %v10927_v1, %v10928_v48  ;;  %v10935_v61 = vmax.f32 %v10933_v19, %v10934_v16  ;;  %v10941_v3 = vmax.f32 %v10939_v49, %v10940_v8  ;;  %v17079_v49 = vld [vmem:[#allocation62_spill] sm:$0xff] }
0x119e   :  { %v10947_v13 = vmax.f32 %v10945_v38, %v10946_v5  ;;  %v10953_v54 = vmax.f32 %v10951_v17, %v10952_v34  ;;  %v10959_v58 = vmax.f32 %v10957_v37, %v10958_v35  ;;  %v10965_v20 = vmax.f32 %v10963_v0, %v10964_v12 }
0x119f   :  { %v10924_v62 = vrot.slane %v10923_v31, 1  ;;  %v10930_v23 = vrot.slane %v10929_v15, 1  ;;  %v10936_v39 = vrot.slane %v10935_v61, 1  ;;  %v10942_v43 = vrot.slane %v10941_v3, 1 }
0x11a0   :  { %v10948_v29 = vrot.slane %v10947_v13, 1  ;;  %v10954_v44 = vrot.slane %v10953_v54, 1  ;;  %v10960_v4 = vrot.slane %v10959_v58, 1  ;;  %v10966_v9 = vrot.slane %v10965_v20, 1 }
0x11a1   :  { %v10925_v32 = vmax.f32 %v10923_v31, %v10924_v62  ;;  %v10931_v51 = vmax.f32 %v10929_v15, %v10930_v23  ;;  %v10937_v28 = vmax.f32 %v10935_v61, %v10936_v39  ;;  %v10943_v42 = vmax.f32 %v10941_v3, %v10942_v43 }
0x11a2   :  { %v10949_v2 = vmax.f32 %v10947_v13, %v10948_v29  ;;  %v10955_v18 = vmax.f32 %v10953_v54, %v10954_v44  ;;  %v10961_v22 = vmax.f32 %v10959_v58, %v10960_v4  ;;  %v10967_v52 = vmax.f32 %v10965_v20, %v10966_v9 }
0x11a3   :  { %vm10968_vm9 = vcmask 1040384   ;;  %v14219_v10 = vmov 1966171168   ;;  %vm11087_vm14 = vcmask 1041409   ;;  %vm11090_vm15 = vcmask 1024  }
0x11a4   :  { %v10969_v56 = vsel %vm10968_vm9, %v10925_v32, %v10949_v2  ;;  %v10970_v47 = vsel %vm10968_vm9, %v10931_v51, %v10955_v18  ;;  %v10971_v45 = vsel %vm10968_vm9, %v10937_v28, %v10961_v22  ;;  %v10972_v63 = vsel %vm10968_vm9, %v10943_v42, %v10967_v52 }
0x11a5   :  { %v10980_v14 = vunpack.c.l.s4 %v14219_v10  ;;  %v10977_v6 = vcombine.low %v10969_v56, %v10970_v47  ;;  %v10978_v53 = vcombine.low %v10971_v45, %v10972_v63 }
0x11a7   :  { %v10981_v26 = vunpack.c.0.s8 %v10980_v14 }
0x11a9   :  { %v10984_v46 = vsub.s32 %v10981_v26, %v14414_v24 }
0x11ab   :  { %v10985_v41 = vrot.slane %v10977_v6, %v10984_v46  ;;  %v10992_v40 = vrot.slane %v10978_v53, %v10984_v46 }
0x11ad   :  { %v10994_v30 = vcombine.high %v10985_v41, %v10992_v40  ;;  %v10993_v50 = vcombine.low %v10985_v41, %v10992_v40 }
0x11af   :  { %v11008_v21 = vrot.slane %v10994_v30, %v10984_v46  ;;  %v11001_v7 = vrot.slane %v10993_v50, %v10984_v46 }
0x11b1   :  { %v11012_v57 = vmul.f32 %v11008_v21, %v16848_v36  ;;  %v11011_v25 = vmul.f32 %v11001_v7, %v16848_v36 }
0x11b3   :  { %v11034_v11 = vrot.slane %v11012_v57, %v17065_v55  ;;  %v11038_v1 = vrot.slane %v11012_v57, %v17051_v33  ;;  %v11042_v19 = vrot.slane %v11012_v57, %v17054_v27  ;;  %v11046_v38 = vrot.slane %v11012_v57, %v17079_v49 }
0x11b4   :  { %v11018_v24 = vrot.slane %v11011_v25, %v17065_v55  ;;  %v11022_v17 = vrot.slane %v11011_v25, %v17051_v33  ;;  %v11026_v37 = vrot.slane %v11011_v25, %v17054_v27  ;;  %v11030_v48 = vrot.slane %v11011_v25, %v17079_v49 }
0x11b5   :  { %v11064_v0 = vsel %vm10968_vm9, %v11034_v11, 0.0  ;;  %v11065_v60 = vsel %vm10968_vm9, %v11038_v1, 0.0  ;;  %v11067_v36 = vsel %vm10968_vm9, %v11042_v19, 0.0  ;;  %v11069_v55 = vsel %vm10968_vm9, %v11046_v38, 0.0 }
0x11b6   :  { %v11066_v16 = vadd.f32 %v11065_v60, %v11064_v0  ;;  %v11055_v8 = vsel %vm10968_vm9, %v11018_v24, 0.0  ;;  %v11056_v5 = vsel %vm10968_vm9, %v11022_v17, 0.0  ;;  %v11058_v34 = vsel %vm10968_vm9, %v11026_v37, 0.0 }
0x11b7   :  { %v11057_v33 = vadd.f32 %v11056_v5, %v11055_v8  ;;  %v11060_v12 = vsel %vm10968_vm9, %v11030_v48, 0.0 }
0x11b8   :  { %v11068_v35 = vadd.f32 %v11067_v36, %v11066_v16 }
0x11b9   :  { %v11059_v27 = vadd.f32 %v11058_v34, %v11057_v33 }
0x11ba   :  { %v11070_v31 = vadd.f32 %v11069_v55, %v11068_v35 }
0x11bb   :  { %v11061_v15 = vadd.f32 %v11060_v12, %v11059_v27 }
0x11bc   :  { %11071 = vadd.xlane.f32.xlu0 %v11070_v31 }
0x11c0   :  { %11062 = vadd.xlane.f32.xlu0 %v11061_v15 }
0x120c   :  { %v11080_v61 = vpop.permute.xlu1 %11079 }
0x1245   :  { %v11072_v3 = vpop.xlane.xlu0 %11071 }
0x1246   :  { %v11083_v13 = vadd.f32 %v11080_v61, %v11072_v3 }
0x1248   :  { %v11086_v58 = vrot.slane %v11083_v13, 7 }
0x1249   :  { %v11063_v54 = vpop.xlane.xlu0 %11062 }
0x124a   :  { %v11082_v20 = vadd.f32 %v11080_v61, %v11063_v54 }
0x124c   :  { %v11088_v59 = vsel %vm11087_vm14, %v11086_v58, %v11082_v20 }
0x124d   :  { %11091 = vst.msk [vmem:[%s16889_s13] sm:$0x3] %vm11090_vm15, %v11088_v59 }
0x124e   :  { %11096 = vsyncmov [#allocation15] }
0x1251   :  { %s11097_s0 = vpop.sfrf %11096 }
0x1252   :  { %p12337_p13 = scmp.ne.s32.totalorder %s11097_s0, 0 }
0x1254   :  { %11101 = shalt.err (%p12337_p13)  }
0x1255   :  { %11103 = vsyncmov [#allocation15 + $0x1] }
0x1258   :  { %s11104_s30 = vpop.sfrf %11103 }
0x1259   :  { %p12338_p0 = scmp.ne.s32.totalorder %s11104_s30, 0 }
0x125b   :  { %11108 = shalt.err (%p12338_p0)  }
0x125c   :  { %11110 = vsyncmov [#allocation15 + $0x2] }
0x125f   :  { %s11111_s14 = vpop.sfrf %11110 }
0x1260   :  { %p12339_p1 = scmp.ne.s32.totalorder %s11111_s14, 0 }
0x1262   :  { %11115 = shalt.err (%p12339_p1)  }
0x1263   :  { %11117 = vsyncmov [#allocation15 + $0x3] }
0x1266   :  { %s11118_s15 = vpop.sfrf %11117 }
0x1267   :  { %p12340_p2 = scmp.ne.s32.totalorder %s11118_s15, 0 }
0x1269   :  { %11122 = shalt.err (%p12340_p2)  }
0x126a   :  { %11124 = vsyncmov [#allocation15 + $0x4] }
0x126d   :  { %s11125_s16 = vpop.sfrf %11124 }
0x126e   :  { %p12341_p3 = scmp.ne.s32.totalorder %s11125_s16, 0 }
0x1270   :  { %11129 = shalt.err (%p12341_p3)  }
0x1271   :  { %11131 = vsyncmov [#allocation15 + $0x5] }
0x1274   :  { %s11132_s13 = vpop.sfrf %11131 }
0x1275   :  { %p12342_p4 = scmp.ne.s32.totalorder %s11132_s13, 0 }
0x1277   :  { %11136 = shalt.err (%p12342_p4)  }
0x1278   :  { %11138 = vsyncmov [#allocation15 + $0x6] }
0x127b   :  { %s11139_s17 = vpop.sfrf %11138 }
0x127c   :  { %p12343_p5 = scmp.ne.s32.totalorder %s11139_s17, 0 }
0x127e   :  { %11143 = shalt.err (%p12343_p5)  }
0x127f   :  { %11145 = vsyncmov [#allocation15 + $0x7] }
0x1282   :  { %s11146_s12 = vpop.sfrf %11145 }
0x1283   :  { %p12344_p6 = scmp.ne.s32.totalorder %s11146_s12, 0 }
0x1285   :  { %11150 = shalt.err (%p12344_p6)  }
0x1286   :  { %11152 = vsyncmov [#allocation15 + $0x8] }
0x1289   :  { %s11153_s5 = vpop.sfrf %11152 }
0x128a   :  { %p12345_p7 = scmp.ne.s32.totalorder %s11153_s5, 0 }
0x128c   :  { %11157 = shalt.err (%p12345_p7)  }
0x128d   :  { %11159 = vsyncmov [#allocation15 + $0x9] }
0x1290   :  { %s11160_s18 = vpop.sfrf %11159 }
0x1291   :  { %p12346_p8 = scmp.ne.s32.totalorder %s11160_s18, 0 }
0x1293   :  { %11164 = shalt.err (%p12346_p8)  }
0x1294   :  { %11166 = vsyncmov [#allocation15 + $0xa] }
0x1297   :  { %s11167_s19 = vpop.sfrf %11166 }
0x1298   :  { %p12347_p9 = scmp.ne.s32.totalorder %s11167_s19, 0 }
0x129a   :  { %11171 = shalt.err (%p12347_p9)  }
0x129b   :  { %11173 = vsyncmov [#allocation15 + $0xb] }
0x129e   :  { %s11174_s6 = vpop.sfrf %11173 }
0x129f   :  { %p12348_p10 = scmp.ne.s32.totalorder %s11174_s6, 0 }
0x12a1   :  { %11178 = shalt.err (%p12348_p10)  }
0x12a2   :  { %11180 = vsyncmov [#allocation15 + $0xc] }
0x12a5   :  { %s11181_s1 = vpop.sfrf %11180 }
0x12a6   :  { %p12349_p11 = scmp.ne.s32.totalorder %s11181_s1, 0 }
0x12a8   :  { %11185 = shalt.err (%p12349_p11)  }

</bundles_post_ra>
